<compile_context>
chip_gen: v6e
topology: v6e:2x2x1
jax: 0.10.0
libtpu: 0.0.40
codegen_flags: <defaults>
</compile_context>

<pallas_src>
import functools

import jax
import jax.numpy as jnp
from jax.experimental import pallas as pl
from jax.experimental.pallas import tpu as pltpu


# ---- flat "row stride" spatial bookkeeping -------------------------------
_RS_A = 28            # row stride before the pool (28x28 input)
_RS_B = 12            # row stride after the pool (12x12 grid)
_L0 = 28 * 28         # 784  input length
_L1 = 25 * 28 + 26    # 726  conv1 out (valid 26x26)
_L2 = 23 * 28 + 24    # 668  conv2/conv3 out (valid 24x24)
_LP = 22 * 28 + 23    # 639  pairwise-max length feeding the pool downsample
_L4 = 9 * 12 + 10     # 118  conv4 out (valid 10x10)
_L5 = 7 * 12 + 8      # 92   conv5 out (valid 8x8)
_L6 = 5 * 12 + 6      # 66   conv6/conv7 out (valid 6x6)
_L6P = 8 * 12         # 96   zero-padded conv6 out (8x8 ring, row stride 12)

_BN_CH = (8, 10, 14, 16, 16, 18)          # channels of bn1,bn2,bn4,bn5,bn6,bn7


# ------------------------------ fused kernel ------------------------------

def _make_net_kernel(bt):
    """Builds the fused kernel for a batch tile of `bt` images."""

    def kernel(x_ref, w1, w2, w3, w4, w5, w6, w7, w8,
               bns_ref, bnb_ref, spool_ref, spad_ref, gvec_ref, bsum_ref,
               o_ref):

        def conv3x3(act, wref, out_len, rs):
            # Implicit-GEMM valid 3x3 conv on the flat (BT*C, L) layout:
            # accumulate nine block-diagonal tap matmuls over shifted lane
            # slices.  Invalid (garbage) lane columns never feed valid outputs.
            acc = None
            tap = 0
            for dh in range(3):
                for dw in range(3):
                    shift = dh * rs + dw
                    slab = act[:, shift:shift + out_len]       # (BT*Cin, out_len)
                    y = jnp.dot(wref[tap], slab,
                                preferred_element_type=jnp.float32)
                    acc = y if acc is None else acc + y
                    tap += 1
            return acc

        def relu_bn(y, li):
            # conv -> ReLU -> BatchNorm(eval) folded to a per-channel affine,
            # tiled to the batched (BT*C, 1) row layout.
            c = bt * _BN_CH[li]
            sc = bns_ref[li][:c]                               # (BT*C, 1)
            bi = bnb_ref[li][:c]                               # (BT*C, 1)
            return jnp.maximum(y, 0.0) * sc + bi

        x0 = x_ref[...]                                                  # (BT, 784)
        a1 = relu_bn(conv3x3(x0, w1, _L1, _RS_A), 0)                     # (BT*8, 726)
        a2 = relu_bn(conv3x3(a1, w2, _L2, _RS_A), 1)                     # (BT*10, 668)
        a3 = jnp.dot(w3[...], a2, preferred_element_type=jnp.float32)    # (BT*12, 668)

        # Fused 2x2/stride-2 max pool: pairwise max of the 4 shifted views,
        # then downsample + compact (stride-28 grid -> dense 12x12) via a
        # constant 0/1 selection matmul (shared across all batch rows).
        pm = jnp.maximum(jnp.maximum(a3[:, 0:_LP], a3[:, 1:_LP + 1]),
                         jnp.maximum(a3[:, _RS_A:_RS_A + _LP],
                                     a3[:, _RS_A + 1:_RS_A + 1 + _LP]))  # (BT*12, 639)
        ap = jnp.dot(pm, spool_ref[...],
                     preferred_element_type=jnp.float32)                 # (BT*12, 144)

        a4 = relu_bn(conv3x3(ap, w4, _L4, _RS_B), 2)                     # (BT*14, 118)
        a5 = relu_bn(conv3x3(a4, w5, _L5, _RS_B), 3)                     # (BT*16, 92)
        a6 = relu_bn(conv3x3(a5, w6, _L6, _RS_B), 4)                     # (BT*16, 66)

        # conv7 has padding=1: scatter the valid 6x6 block into a zero 8x8
        # ring (constant 0/1 matmul), then run the same valid 3x3 conv.
        a6p = jnp.dot(a6, spad_ref[...],
                      preferred_element_type=jnp.float32)                # (BT*16, 96)
        a7 = relu_bn(conv3x3(a6p, w7, _L6, _RS_B), 5)                    # (BT*18, 66)

        # Global average pool over the 36 valid positions (matmul with a
        # 1/36-valued column), then block-diagonal 1x1 conv8.
        g = jnp.dot(a7, gvec_ref[...],
                    preferred_element_type=jnp.float32)                  # (BT*18, 1)
        logits = jnp.dot(w8[...], g,
                         preferred_element_type=jnp.float32)             # (BT*10, 1)

        # Per-image log_softmax in the (BT*10, 1) layout.  Shifting every
        # logit in the tile by the same scalar (the tile-wide max, computed by
        # a static halving fold of elementwise maxima) is mathematically
        # identical to the usual per-row max shift and keeps exp() in range.
        m = logits
        while m.shape[0] > 1:
            h = m.shape[0] // 2
            top, bot, rest = m[:h, :], m[h:2 * h, :], m[2 * h:, :]
            m = jnp.maximum(top, bot)
            if rest.shape[0] == 1:
                m = jnp.maximum(m, rest)                                 # broadcast (1,1)
        z = logits - m
        e = jnp.exp(z)
        # Per-image sums of exp via a constant block-ones matmul.
        s = jnp.dot(bsum_ref[...], e, preferred_element_type=jnp.float32)  # (BT*10, 1)
        o_ref[...] = (z - jnp.log(s)).astype(o_ref.dtype)

    return kernel


# --------------------------- host-side helpers ----------------------------

def _blockdiag(w2d, bt):
    # (Cout, Cin) -> (bt*Cout, bt*Cin) block-diagonal (weight shared per image).
    co, ci = w2d.shape
    eye = jnp.eye(bt, dtype=w2d.dtype)
    return jnp.einsum('ij,ab->iajb', eye, w2d).reshape(bt * co, bt * ci)


def _blockdiag_taps(w, bt):
    # PyTorch conv weight (Cout, Cin, 3, 3) -> (9, bt*Cout, bt*Cin) block-diag
    # per tap; tap index = dh*3 + dw.
    co, ci, kh, kw = w.shape
    taps = jnp.transpose(w, (2, 3, 0, 1)).reshape(kh * kw, co, ci)
    eye = jnp.eye(bt, dtype=w.dtype)
    return jnp.einsum('ij,tab->tiajb', eye, taps).reshape(kh * kw, bt * co, bt * ci)


def _pool_select():
    # (639, 144): column i*12+j picks flat position 2i*28+2j of the pair max.
    rows = jnp.array([2 * i * 28 + 2 * j for i in range(12) for j in range(12)],
                     dtype=jnp.int32)
    cols = jnp.arange(144, dtype=jnp.int32)
    return jnp.zeros((_LP, 144), jnp.float32).at[rows, cols].set(1.0)


def _pad_select():
    # (66, 96): scatter the valid 6x6 block (row stride 12) into a zero 8x8 ring.
    rows = jnp.array([i * 12 + j for i in range(6) for j in range(6)], jnp.int32)
    cols = jnp.array([(i + 1) * 12 + (j + 1) for i in range(6) for j in range(6)],
                     jnp.int32)
    return jnp.zeros((_L6, _L6P), jnp.float32).at[rows, cols].set(1.0)


def _gap_vec():
    # (66, 1): 1/36 at the 36 valid positions of the 6x6 map (row stride 12).
    rows = jnp.array([i * 12 + j for i in range(6) for j in range(6)], jnp.int32)
    return jnp.zeros((_L6, 1), jnp.float32).at[rows, 0].set(1.0 / 36.0)


def _block_sum(bt):
    # (bt*10, bt*10): ones within each 10x10 diagonal block -> per-image sums.
    return jnp.kron(jnp.eye(bt, dtype=jnp.float32),
                    jnp.ones((10, 10), jnp.float32))


def _pack_bn(params, bt):
    # Fold + tile eval-mode BN affine params to the batched (bt*C, 1) row
    # layout (row = b*C + c), padded to a common segment of bt*18 rows so the
    # whole thing is two small (6, bt*18, 1) DMAs.
    seg = bt * 18
    rows_s, rows_b = [], []
    for name, c in zip(('bn1', 'bn2', 'bn4', 'bn5', 'bn6', 'bn7'), _BN_CH):
        s, b = params[name]
        ts = jnp.tile(s.reshape(c, 1), (bt, 1))
        tb = jnp.tile(b.reshape(c, 1), (bt, 1))
        pad = seg - bt * c
        rows_s.append(jnp.pad(ts, ((0, pad), (0, 0))))
        rows_b.append(jnp.pad(tb, ((0, pad), (0, 0))))
    return jnp.stack(rows_s), jnp.stack(rows_b)


# ------------------------------ parameters --------------------------------

def init_params(key):
    convs = [('conv1', 8, 1, 3), ('conv2', 10, 8, 3), ('conv3', 12, 10, 1),
             ('conv4', 14, 12, 3), ('conv5', 16, 14, 3), ('conv6', 16, 16, 3),
             ('conv7', 18, 16, 3), ('conv8', 10, 18, 1)]
    params = {}
    for name, cout, cin, k in convs:
        key, sub = jax.random.split(key)
        fan_in = cin * k * k
        params[name] = (jax.random.uniform(sub, (cout, cin, k, k), jnp.float32,
                                           -1.0, 1.0) / jnp.sqrt(float(fan_in)))
    # Eval-mode BatchNorm2d folded into per-channel (scale, bias).
    for name, c in [('bn1', 8), ('bn2', 10), ('bn4', 14),
                    ('bn5', 16), ('bn6', 16), ('bn7', 18)]:
        key, k1, k2, k3, k4 = jax.random.split(key, 5)
        gamma = jax.random.uniform(k1, (c,), jnp.float32, 0.5, 1.5)
        beta = 0.1 * jax.random.normal(k2, (c,), jnp.float32)
        rmean = 0.1 * jax.random.normal(k3, (c,), jnp.float32)
        rvar = jax.random.uniform(k4, (c,), jnp.float32, 0.5, 1.5)
        scale = gamma / jnp.sqrt(rvar + 1e-5)
        params[name] = (scale, beta - rmean * scale)
    return params


# -------------------------------- forward ---------------------------------

def net_forward(params, x_nchw, block_batch=8):
    # Dropout layers are identity at inference time.
    N, C, H, W = x_nchw.shape
    assert (C, H, W) == (1, 28, 28), "Net requires 1x28x28 inputs"

    bt = min(block_batch, N)                       # images per grid step
    npad = ((N + bt - 1) // bt) * bt
    x2d = x_nchw.reshape(N, H * W).astype(jnp.float32)
    if npad != N:
        x2d = jnp.pad(x2d, ((0, npad - N), (0, 0)))

    # Block-diagonal (batched) weights, built once host-side.
    w1 = _blockdiag_taps(params['conv1'], bt)
    w2 = _blockdiag_taps(params['conv2'], bt)
    w3 = _blockdiag(params['conv3'].reshape(12, 10), bt)
    w4 = _blockdiag_taps(params['conv4'], bt)
    w5 = _blockdiag_taps(params['conv5'], bt)
    w6 = _blockdiag_taps(params['conv6'], bt)
    w7 = _blockdiag_taps(params['conv7'], bt)
    w8 = _blockdiag(params['conv8'].reshape(10, 18), bt)

    bns, bnb = _pack_bn(params, bt)
    spool, spad, gvec, bsum = _pool_select(), _pad_select(), _gap_vec(), _block_sum(bt)

    def const_spec(a):
        nd = a.ndim
        return pl.BlockSpec(a.shape, lambda n, _nd=nd: (0,) * _nd)

    consts = (w1, w2, w3, w4, w5, w6, w7, w8, bns, bnb, spool, spad, gvec, bsum)

    out = pl.pallas_call(
        _make_net_kernel(bt),
        out_shape=jax.ShapeDtypeStruct((npad * 10, 1), jnp.float32),
        grid=(npad // bt,),
        in_specs=[pl.BlockSpec((bt, H * W), lambda n: (n, 0))]   # image tile
                 + [const_spec(a) for a in consts],
        out_specs=pl.BlockSpec((bt * 10, 1), lambda n: (n, 0)),
        compiler_params=pltpu.CompilerParams(
            dimension_semantics=("parallel",),       # tiles split across TCs on v7x
            vmem_limit_bytes=32 * 1024 * 1024),
    )(x2d, *consts)

    return out.reshape(npad, 10)[:N]


if __name__ == "__main__":
    key = jax.random.PRNGKey(0)
    pkey, xkey = jax.random.split(key)
    params = init_params(pkey)
    # MNIST-like input (NCHW); 28x28 is required for the 6x6 GAP to reach 1x1.
    x = jax.random.normal(xkey, (2, 1, 28, 28), jnp.float32)
    out = jax.jit(functools.partial(net_forward, params))(x)
    out = jax.block_until_ready(out)
    assert out.shape == (2, 10) and out.dtype == jnp.float32
    print("KERNEL_OK")
</pallas_src>

<mosaic_0001>
module attributes {stable_mosaic.version = 11 : i64} {
  func.func @kernel(%arg0: i32, %arg1: memref<2x784xf32, #tpu.memory_space<vmem>>, %arg2: memref<9x16x2xf32, #tpu.memory_space<vmem>>, %arg3: memref<9x20x16xf32, #tpu.memory_space<vmem>>, %arg4: memref<24x20xf32, #tpu.memory_space<vmem>>, %arg5: memref<9x28x24xf32, #tpu.memory_space<vmem>>, %arg6: memref<9x32x28xf32, #tpu.memory_space<vmem>>, %arg7: memref<9x32x32xf32, #tpu.memory_space<vmem>>, %arg8: memref<9x36x32xf32, #tpu.memory_space<vmem>>, %arg9: memref<20x36xf32, #tpu.memory_space<vmem>>, %arg10: memref<6x36x1xf32, #tpu.memory_space<vmem>>, %arg11: memref<6x36x1xf32, #tpu.memory_space<vmem>>, %arg12: memref<639x144xf32, #tpu.memory_space<vmem>>, %arg13: memref<66x96xf32, #tpu.memory_space<vmem>>, %arg14: memref<66x1xf32, #tpu.memory_space<vmem>>, %arg15: memref<20x20xf32, #tpu.memory_space<vmem>>, %arg16: memref<20x1xf32, #tpu.memory_space<vmem>>) attributes {dimension_semantics = [#tpu.dimension_semantics<parallel>], iteration_bounds = array<i64: 1>, scalar_prefetch = 0 : i64, scratch_operands = 0 : i64, tpu.core_type = #tpu.core_type<tc>, window_params = [{transform_indices = @transform_0, window_bounds = array<i64: 2, 784>}, {pipeline_mode = #tpu.pipeline_mode<synchronous>, transform_indices = @transform_1, window_bounds = array<i64: 9, 16, 2>}, {pipeline_mode = #tpu.pipeline_mode<synchronous>, transform_indices = @transform_2, window_bounds = array<i64: 9, 20, 16>}, {pipeline_mode = #tpu.pipeline_mode<synchronous>, transform_indices = @transform_3, window_bounds = array<i64: 24, 20>}, {pipeline_mode = #tpu.pipeline_mode<synchronous>, transform_indices = @transform_4, window_bounds = array<i64: 9, 28, 24>}, {pipeline_mode = #tpu.pipeline_mode<synchronous>, transform_indices = @transform_5, window_bounds = array<i64: 9, 32, 28>}, {pipeline_mode = #tpu.pipeline_mode<synchronous>, transform_indices = @transform_6, window_bounds = array<i64: 9, 32, 32>}, {pipeline_mode = #tpu.pipeline_mode<synchronous>, transform_indices = @transform_7, window_bounds = array<i64: 9, 36, 32>}, {pipeline_mode = #tpu.pipeline_mode<synchronous>, transform_indices = @transform_8, window_bounds = array<i64: 20, 36>}, {pipeline_mode = #tpu.pipeline_mode<synchronous>, transform_indices = @transform_9, window_bounds = array<i64: 6, 36, 1>}, {pipeline_mode = #tpu.pipeline_mode<synchronous>, transform_indices = @transform_10, window_bounds = array<i64: 6, 36, 1>}, {pipeline_mode = #tpu.pipeline_mode<synchronous>, transform_indices = @transform_11, window_bounds = array<i64: 639, 144>}, {pipeline_mode = #tpu.pipeline_mode<synchronous>, transform_indices = @transform_12, window_bounds = array<i64: 66, 96>}, {pipeline_mode = #tpu.pipeline_mode<synchronous>, transform_indices = @transform_13, window_bounds = array<i64: 66, 1>}, {pipeline_mode = #tpu.pipeline_mode<synchronous>, transform_indices = @transform_14, window_bounds = array<i64: 20, 20>}, {transform_indices = @transform_15, window_bounds = array<i64: 20, 1>}]} {
    %c0 = arith.constant 0 : index
    %c0_0 = arith.constant 0 : index
    %0 = vector.load %arg1[%c0, %c0_0] : memref<2x784xf32, #tpu.memory_space<vmem>>, vector<2x784xf32>
    %1 = vector.extract_strided_slice %0 {offsets = [0, 0], sizes = [2, 726], strides = [1, 1]} : vector<2x784xf32> to vector<2x726xf32>
    %c0_1 = arith.constant 0 : index
    %c0_2 = arith.constant 0 : index
    %c0_3 = arith.constant 0 : index
    %2 = vector.load %arg2[%c0_1, %c0_2, %c0_3] : memref<9x16x2xf32, #tpu.memory_space<vmem>>, vector<1x16x2xf32>
    %3 = vector.shape_cast %2 : vector<1x16x2xf32> to vector<16x2xf32>
    %cst = arith.constant dense<0.000000e+00> : vector<16x726xf32>
    %4 = tpu.matmul %3, %1, %cst {dimension_numbers = #tpu.dot_dimension_numbers<[1], [0], [0], [1], [0, 0, 1, 1], [], []>} : vector<16x2xf32>, vector<2x726xf32>, vector<16x726xf32> -> vector<16x726xf32>
    %5 = vector.extract_strided_slice %0 {offsets = [0, 1], sizes = [2, 726], strides = [1, 1]} : vector<2x784xf32> to vector<2x726xf32>
    %c1 = arith.constant 1 : index
    %c0_4 = arith.constant 0 : index
    %c0_5 = arith.constant 0 : index
    %6 = vector.load %arg2[%c1, %c0_4, %c0_5] : memref<9x16x2xf32, #tpu.memory_space<vmem>>, vector<1x16x2xf32>
    %7 = vector.shape_cast %6 : vector<1x16x2xf32> to vector<16x2xf32>
    %cst_6 = arith.constant dense<0.000000e+00> : vector<16x726xf32>
    %8 = tpu.matmul %7, %5, %cst_6 {dimension_numbers = #tpu.dot_dimension_numbers<[1], [0], [0], [1], [0, 0, 1, 1], [], []>} : vector<16x2xf32>, vector<2x726xf32>, vector<16x726xf32> -> vector<16x726xf32>
    %9 = arith.addf %4, %8 : vector<16x726xf32>
    %10 = vector.extract_strided_slice %0 {offsets = [0, 2], sizes = [2, 726], strides = [1, 1]} : vector<2x784xf32> to vector<2x726xf32>
    %c2 = arith.constant 2 : index
    %c0_7 = arith.constant 0 : index
    %c0_8 = arith.constant 0 : index
    %11 = vector.load %arg2[%c2, %c0_7, %c0_8] : memref<9x16x2xf32, #tpu.memory_space<vmem>>, vector<1x16x2xf32>
    %12 = vector.shape_cast %11 : vector<1x16x2xf32> to vector<16x2xf32>
    %cst_9 = arith.constant dense<0.000000e+00> : vector<16x726xf32>
    %13 = tpu.matmul %12, %10, %cst_9 {dimension_numbers = #tpu.dot_dimension_numbers<[1], [0], [0], [1], [0, 0, 1, 1], [], []>} : vector<16x2xf32>, vector<2x726xf32>, vector<16x726xf32> -> vector<16x726xf32>
    %14 = arith.addf %9, %13 : vector<16x726xf32>
    %15 = vector.extract_strided_slice %0 {offsets = [0, 28], sizes = [2, 726], strides = [1, 1]} : vector<2x784xf32> to vector<2x726xf32>
    %c3 = arith.constant 3 : index
    %c0_10 = arith.constant 0 : index
    %c0_11 = arith.constant 0 : index
    %16 = vector.load %arg2[%c3, %c0_10, %c0_11] : memref<9x16x2xf32, #tpu.memory_space<vmem>>, vector<1x16x2xf32>
    %17 = vector.shape_cast %16 : vector<1x16x2xf32> to vector<16x2xf32>
    %cst_12 = arith.constant dense<0.000000e+00> : vector<16x726xf32>
    %18 = tpu.matmul %17, %15, %cst_12 {dimension_numbers = #tpu.dot_dimension_numbers<[1], [0], [0], [1], [0, 0, 1, 1], [], []>} : vector<16x2xf32>, vector<2x726xf32>, vector<16x726xf32> -> vector<16x726xf32>
    %19 = arith.addf %14, %18 : vector<16x726xf32>
    %20 = vector.extract_strided_slice %0 {offsets = [0, 29], sizes = [2, 726], strides = [1, 1]} : vector<2x784xf32> to vector<2x726xf32>
    %c4 = arith.constant 4 : index
    %c0_13 = arith.constant 0 : index
    %c0_14 = arith.constant 0 : index
    %21 = vector.load %arg2[%c4, %c0_13, %c0_14] : memref<9x16x2xf32, #tpu.memory_space<vmem>>, vector<1x16x2xf32>
    %22 = vector.shape_cast %21 : vector<1x16x2xf32> to vector<16x2xf32>
    %cst_15 = arith.constant dense<0.000000e+00> : vector<16x726xf32>
    %23 = tpu.matmul %22, %20, %cst_15 {dimension_numbers = #tpu.dot_dimension_numbers<[1], [0], [0], [1], [0, 0, 1, 1], [], []>} : vector<16x2xf32>, vector<2x726xf32>, vector<16x726xf32> -> vector<16x726xf32>
    %24 = arith.addf %19, %23 : vector<16x726xf32>
    %25 = vector.extract_strided_slice %0 {offsets = [0, 30], sizes = [2, 726], strides = [1, 1]} : vector<2x784xf32> to vector<2x726xf32>
    %c5 = arith.constant 5 : index
    %c0_16 = arith.constant 0 : index
    %c0_17 = arith.constant 0 : index
    %26 = vector.load %arg2[%c5, %c0_16, %c0_17] : memref<9x16x2xf32, #tpu.memory_space<vmem>>, vector<1x16x2xf32>
    %27 = vector.shape_cast %26 : vector<1x16x2xf32> to vector<16x2xf32>
    %cst_18 = arith.constant dense<0.000000e+00> : vector<16x726xf32>
    %28 = tpu.matmul %27, %25, %cst_18 {dimension_numbers = #tpu.dot_dimension_numbers<[1], [0], [0], [1], [0, 0, 1, 1], [], []>} : vector<16x2xf32>, vector<2x726xf32>, vector<16x726xf32> -> vector<16x726xf32>
    %29 = arith.addf %24, %28 : vector<16x726xf32>
    %30 = vector.extract_strided_slice %0 {offsets = [0, 56], sizes = [2, 726], strides = [1, 1]} : vector<2x784xf32> to vector<2x726xf32>
    %c6 = arith.constant 6 : index
    %c0_19 = arith.constant 0 : index
    %c0_20 = arith.constant 0 : index
    %31 = vector.load %arg2[%c6, %c0_19, %c0_20] : memref<9x16x2xf32, #tpu.memory_space<vmem>>, vector<1x16x2xf32>
    %32 = vector.shape_cast %31 : vector<1x16x2xf32> to vector<16x2xf32>
    %cst_21 = arith.constant dense<0.000000e+00> : vector<16x726xf32>
    %33 = tpu.matmul %32, %30, %cst_21 {dimension_numbers = #tpu.dot_dimension_numbers<[1], [0], [0], [1], [0, 0, 1, 1], [], []>} : vector<16x2xf32>, vector<2x726xf32>, vector<16x726xf32> -> vector<16x726xf32>
    %34 = arith.addf %29, %33 : vector<16x726xf32>
    %35 = vector.extract_strided_slice %0 {offsets = [0, 57], sizes = [2, 726], strides = [1, 1]} : vector<2x784xf32> to vector<2x726xf32>
    %c7 = arith.constant 7 : index
    %c0_22 = arith.constant 0 : index
    %c0_23 = arith.constant 0 : index
    %36 = vector.load %arg2[%c7, %c0_22, %c0_23] : memref<9x16x2xf32, #tpu.memory_space<vmem>>, vector<1x16x2xf32>
    %37 = vector.shape_cast %36 : vector<1x16x2xf32> to vector<16x2xf32>
    %cst_24 = arith.constant dense<0.000000e+00> : vector<16x726xf32>
    %38 = tpu.matmul %37, %35, %cst_24 {dimension_numbers = #tpu.dot_dimension_numbers<[1], [0], [0], [1], [0, 0, 1, 1], [], []>} : vector<16x2xf32>, vector<2x726xf32>, vector<16x726xf32> -> vector<16x726xf32>
    %39 = arith.addf %34, %38 : vector<16x726xf32>
    %40 = vector.extract_strided_slice %0 {offsets = [0, 58], sizes = [2, 726], strides = [1, 1]} : vector<2x784xf32> to vector<2x726xf32>
    %c8 = arith.constant 8 : index
    %c0_25 = arith.constant 0 : index
    %c0_26 = arith.constant 0 : index
    %41 = vector.load %arg2[%c8, %c0_25, %c0_26] : memref<9x16x2xf32, #tpu.memory_space<vmem>>, vector<1x16x2xf32>
    %42 = vector.shape_cast %41 : vector<1x16x2xf32> to vector<16x2xf32>
    %cst_27 = arith.constant dense<0.000000e+00> : vector<16x726xf32>
    %43 = tpu.matmul %42, %40, %cst_27 {dimension_numbers = #tpu.dot_dimension_numbers<[1], [0], [0], [1], [0, 0, 1, 1], [], []>} : vector<16x2xf32>, vector<2x726xf32>, vector<16x726xf32> -> vector<16x726xf32>
    %44 = arith.addf %39, %43 : vector<16x726xf32>
    %c0_28 = arith.constant 0 : index
    %c0_29 = arith.constant 0 : index
    %c0_30 = arith.constant 0 : index
    %45 = vector.load %arg10[%c0_28, %c0_29, %c0_30] : memref<6x36x1xf32, #tpu.memory_space<vmem>>, vector<1x36x1xf32>
    %46 = vector.shape_cast %45 : vector<1x36x1xf32> to vector<36x1xf32>
    %47 = vector.extract_strided_slice %46 {offsets = [0, 0], sizes = [16, 1], strides = [1, 1]} : vector<36x1xf32> to vector<16x1xf32>
    %c0_31 = arith.constant 0 : index
    %c0_32 = arith.constant 0 : index
    %c0_33 = arith.constant 0 : index
    %48 = vector.load %arg11[%c0_31, %c0_32, %c0_33] : memref<6x36x1xf32, #tpu.memory_space<vmem>>, vector<1x36x1xf32>
    %49 = vector.shape_cast %48 : vector<1x36x1xf32> to vector<36x1xf32>
    %50 = vector.extract_strided_slice %49 {offsets = [0, 0], sizes = [16, 1], strides = [1, 1]} : vector<36x1xf32> to vector<16x1xf32>
    %cst_34 = arith.constant 0.000000e+00 : f32
    %51 = vector.broadcast %cst_34 : f32 to vector<16x726xf32>
    %52 = arith.maximumf %44, %51 : vector<16x726xf32>
    %53 = vector.broadcast %47 : vector<16x1xf32> to vector<16x726xf32>
    %54 = arith.mulf %52, %53 : vector<16x726xf32>
    %55 = vector.broadcast %50 : vector<16x1xf32> to vector<16x726xf32>
    %56 = arith.addf %54, %55 : vector<16x726xf32>
    %57 = vector.extract_strided_slice %56 {offsets = [0, 0], sizes = [16, 668], strides = [1, 1]} : vector<16x726xf32> to vector<16x668xf32>
    %c0_35 = arith.constant 0 : index
    %c0_36 = arith.constant 0 : index
    %c0_37 = arith.constant 0 : index
    %58 = vector.load %arg3[%c0_35, %c0_36, %c0_37] : memref<9x20x16xf32, #tpu.memory_space<vmem>>, vector<1x20x16xf32>
    %59 = vector.shape_cast %58 : vector<1x20x16xf32> to vector<20x16xf32>
    %cst_38 = arith.constant dense<0.000000e+00> : vector<20x668xf32>
    %60 = tpu.matmul %59, %57, %cst_38 {dimension_numbers = #tpu.dot_dimension_numbers<[1], [0], [0], [1], [0, 0, 1, 1], [], []>} : vector<20x16xf32>, vector<16x668xf32>, vector<20x668xf32> -> vector<20x668xf32>
    %61 = vector.extract_strided_slice %56 {offsets = [0, 1], sizes = [16, 668], strides = [1, 1]} : vector<16x726xf32> to vector<16x668xf32>
    %c1_39 = arith.constant 1 : index
    %c0_40 = arith.constant 0 : index
    %c0_41 = arith.constant 0 : index
    %62 = vector.load %arg3[%c1_39, %c0_40, %c0_41] : memref<9x20x16xf32, #tpu.memory_space<vmem>>, vector<1x20x16xf32>
    %63 = vector.shape_cast %62 : vector<1x20x16xf32> to vector<20x16xf32>
    %cst_42 = arith.constant dense<0.000000e+00> : vector<20x668xf32>
    %64 = tpu.matmul %63, %61, %cst_42 {dimension_numbers = #tpu.dot_dimension_numbers<[1], [0], [0], [1], [0, 0, 1, 1], [], []>} : vector<20x16xf32>, vector<16x668xf32>, vector<20x668xf32> -> vector<20x668xf32>
    %65 = arith.addf %60, %64 : vector<20x668xf32>
    %66 = vector.extract_strided_slice %56 {offsets = [0, 2], sizes = [16, 668], strides = [1, 1]} : vector<16x726xf32> to vector<16x668xf32>
    %c2_43 = arith.constant 2 : index
    %c0_44 = arith.constant 0 : index
    %c0_45 = arith.constant 0 : index
    %67 = vector.load %arg3[%c2_43, %c0_44, %c0_45] : memref<9x20x16xf32, #tpu.memory_space<vmem>>, vector<1x20x16xf32>
    %68 = vector.shape_cast %67 : vector<1x20x16xf32> to vector<20x16xf32>
    %cst_46 = arith.constant dense<0.000000e+00> : vector<20x668xf32>
    %69 = tpu.matmul %68, %66, %cst_46 {dimension_numbers = #tpu.dot_dimension_numbers<[1], [0], [0], [1], [0, 0, 1, 1], [], []>} : vector<20x16xf32>, vector<16x668xf32>, vector<20x668xf32> -> vector<20x668xf32>
    %70 = arith.addf %65, %69 : vector<20x668xf32>
    %71 = vector.extract_strided_slice %56 {offsets = [0, 28], sizes = [16, 668], strides = [1, 1]} : vector<16x726xf32> to vector<16x668xf32>
    %c3_47 = arith.constant 3 : index
    %c0_48 = arith.constant 0 : index
    %c0_49 = arith.constant 0 : index
    %72 = vector.load %arg3[%c3_47, %c0_48, %c0_49] : memref<9x20x16xf32, #tpu.memory_space<vmem>>, vector<1x20x16xf32>
    %73 = vector.shape_cast %72 : vector<1x20x16xf32> to vector<20x16xf32>
    %cst_50 = arith.constant dense<0.000000e+00> : vector<20x668xf32>
    %74 = tpu.matmul %73, %71, %cst_50 {dimension_numbers = #tpu.dot_dimension_numbers<[1], [0], [0], [1], [0, 0, 1, 1], [], []>} : vector<20x16xf32>, vector<16x668xf32>, vector<20x668xf32> -> vector<20x668xf32>
    %75 = arith.addf %70, %74 : vector<20x668xf32>
    %76 = vector.extract_strided_slice %56 {offsets = [0, 29], sizes = [16, 668], strides = [1, 1]} : vector<16x726xf32> to vector<16x668xf32>
    %c4_51 = arith.constant 4 : index
    %c0_52 = arith.constant 0 : index
    %c0_53 = arith.constant 0 : index
    %77 = vector.load %arg3[%c4_51, %c0_52, %c0_53] : memref<9x20x16xf32, #tpu.memory_space<vmem>>, vector<1x20x16xf32>
    %78 = vector.shape_cast %77 : vector<1x20x16xf32> to vector<20x16xf32>
    %cst_54 = arith.constant dense<0.000000e+00> : vector<20x668xf32>
    %79 = tpu.matmul %78, %76, %cst_54 {dimension_numbers = #tpu.dot_dimension_numbers<[1], [0], [0], [1], [0, 0, 1, 1], [], []>} : vector<20x16xf32>, vector<16x668xf32>, vector<20x668xf32> -> vector<20x668xf32>
    %80 = arith.addf %75, %79 : vector<20x668xf32>
    %81 = vector.extract_strided_slice %56 {offsets = [0, 30], sizes = [16, 668], strides = [1, 1]} : vector<16x726xf32> to vector<16x668xf32>
    %c5_55 = arith.constant 5 : index
    %c0_56 = arith.constant 0 : index
    %c0_57 = arith.constant 0 : index
    %82 = vector.load %arg3[%c5_55, %c0_56, %c0_57] : memref<9x20x16xf32, #tpu.memory_space<vmem>>, vector<1x20x16xf32>
    %83 = vector.shape_cast %82 : vector<1x20x16xf32> to vector<20x16xf32>
    %cst_58 = arith.constant dense<0.000000e+00> : vector<20x668xf32>
    %84 = tpu.matmul %83, %81, %cst_58 {dimension_numbers = #tpu.dot_dimension_numbers<[1], [0], [0], [1], [0, 0, 1, 1], [], []>} : vector<20x16xf32>, vector<16x668xf32>, vector<20x668xf32> -> vector<20x668xf32>
    %85 = arith.addf %80, %84 : vector<20x668xf32>
    %86 = vector.extract_strided_slice %56 {offsets = [0, 56], sizes = [16, 668], strides = [1, 1]} : vector<16x726xf32> to vector<16x668xf32>
    %c6_59 = arith.constant 6 : index
    %c0_60 = arith.constant 0 : index
    %c0_61 = arith.constant 0 : index
    %87 = vector.load %arg3[%c6_59, %c0_60, %c0_61] : memref<9x20x16xf32, #tpu.memory_space<vmem>>, vector<1x20x16xf32>
    %88 = vector.shape_cast %87 : vector<1x20x16xf32> to vector<20x16xf32>
    %cst_62 = arith.constant dense<0.000000e+00> : vector<20x668xf32>
    %89 = tpu.matmul %88, %86, %cst_62 {dimension_numbers = #tpu.dot_dimension_numbers<[1], [0], [0], [1], [0, 0, 1, 1], [], []>} : vector<20x16xf32>, vector<16x668xf32>, vector<20x668xf32> -> vector<20x668xf32>
    %90 = arith.addf %85, %89 : vector<20x668xf32>
    %91 = vector.extract_strided_slice %56 {offsets = [0, 57], sizes = [16, 668], strides = [1, 1]} : vector<16x726xf32> to vector<16x668xf32>
    %c7_63 = arith.constant 7 : index
    %c0_64 = arith.constant 0 : index
    %c0_65 = arith.constant 0 : index
    %92 = vector.load %arg3[%c7_63, %c0_64, %c0_65] : memref<9x20x16xf32, #tpu.memory_space<vmem>>, vector<1x20x16xf32>
    %93 = vector.shape_cast %92 : vector<1x20x16xf32> to vector<20x16xf32>
    %cst_66 = arith.constant dense<0.000000e+00> : vector<20x668xf32>
    %94 = tpu.matmul %93, %91, %cst_66 {dimension_numbers = #tpu.dot_dimension_numbers<[1], [0], [0], [1], [0, 0, 1, 1], [], []>} : vector<20x16xf32>, vector<16x668xf32>, vector<20x668xf32> -> vector<20x668xf32>
    %95 = arith.addf %90, %94 : vector<20x668xf32>
    %96 = vector.extract_strided_slice %56 {offsets = [0, 58], sizes = [16, 668], strides = [1, 1]} : vector<16x726xf32> to vector<16x668xf32>
    %c8_67 = arith.constant 8 : index
    %c0_68 = arith.constant 0 : index
    %c0_69 = arith.constant 0 : index
    %97 = vector.load %arg3[%c8_67, %c0_68, %c0_69] : memref<9x20x16xf32, #tpu.memory_space<vmem>>, vector<1x20x16xf32>
    %98 = vector.shape_cast %97 : vector<1x20x16xf32> to vector<20x16xf32>
    %cst_70 = arith.constant dense<0.000000e+00> : vector<20x668xf32>
    %99 = tpu.matmul %98, %96, %cst_70 {dimension_numbers = #tpu.dot_dimension_numbers<[1], [0], [0], [1], [0, 0, 1, 1], [], []>} : vector<20x16xf32>, vector<16x668xf32>, vector<20x668xf32> -> vector<20x668xf32>
    %100 = arith.addf %95, %99 : vector<20x668xf32>
    %c1_71 = arith.constant 1 : index
    %c0_72 = arith.constant 0 : index
    %c0_73 = arith.constant 0 : index
    %101 = vector.load %arg10[%c1_71, %c0_72, %c0_73] : memref<6x36x1xf32, #tpu.memory_space<vmem>>, vector<1x36x1xf32>
    %102 = vector.shape_cast %101 : vector<1x36x1xf32> to vector<36x1xf32>
    %103 = vector.extract_strided_slice %102 {offsets = [0, 0], sizes = [20, 1], strides = [1, 1]} : vector<36x1xf32> to vector<20x1xf32>
    %c1_74 = arith.constant 1 : index
    %c0_75 = arith.constant 0 : index
    %c0_76 = arith.constant 0 : index
    %104 = vector.load %arg11[%c1_74, %c0_75, %c0_76] : memref<6x36x1xf32, #tpu.memory_space<vmem>>, vector<1x36x1xf32>
    %105 = vector.shape_cast %104 : vector<1x36x1xf32> to vector<36x1xf32>
    %106 = vector.extract_strided_slice %105 {offsets = [0, 0], sizes = [20, 1], strides = [1, 1]} : vector<36x1xf32> to vector<20x1xf32>
    %cst_77 = arith.constant 0.000000e+00 : f32
    %107 = vector.broadcast %cst_77 : f32 to vector<20x668xf32>
    %108 = arith.maximumf %100, %107 : vector<20x668xf32>
    %109 = vector.broadcast %103 : vector<20x1xf32> to vector<20x668xf32>
    %110 = arith.mulf %108, %109 : vector<20x668xf32>
    %111 = vector.broadcast %106 : vector<20x1xf32> to vector<20x668xf32>
    %112 = arith.addf %110, %111 : vector<20x668xf32>
    %c0_78 = arith.constant 0 : index
    %c0_79 = arith.constant 0 : index
    %113 = vector.load %arg4[%c0_78, %c0_79] : memref<24x20xf32, #tpu.memory_space<vmem>>, vector<24x20xf32>
    %cst_80 = arith.constant dense<0.000000e+00> : vector<24x668xf32>
    %114 = tpu.matmul %113, %112, %cst_80 {dimension_numbers = #tpu.dot_dimension_numbers<[1], [0], [0], [1], [0, 0, 1, 1], [], []>} : vector<24x20xf32>, vector<20x668xf32>, vector<24x668xf32> -> vector<24x668xf32>
    %115 = vector.extract_strided_slice %114 {offsets = [0, 0], sizes = [24, 639], strides = [1, 1]} : vector<24x668xf32> to vector<24x639xf32>
    %116 = vector.extract_strided_slice %114 {offsets = [0, 1], sizes = [24, 639], strides = [1, 1]} : vector<24x668xf32> to vector<24x639xf32>
    %117 = arith.maximumf %115, %116 : vector<24x639xf32>
    %118 = vector.extract_strided_slice %114 {offsets = [0, 28], sizes = [24, 639], strides = [1, 1]} : vector<24x668xf32> to vector<24x639xf32>
    %119 = vector.extract_strided_slice %114 {offsets = [0, 29], sizes = [24, 639], strides = [1, 1]} : vector<24x668xf32> to vector<24x639xf32>
    %120 = arith.maximumf %118, %119 : vector<24x639xf32>
    %121 = arith.maximumf %117, %120 : vector<24x639xf32>
    %c0_81 = arith.constant 0 : index
    %c0_82 = arith.constant 0 : index
    %122 = vector.load %arg12[%c0_81, %c0_82] : memref<639x144xf32, #tpu.memory_space<vmem>>, vector<639x144xf32>
    %cst_83 = arith.constant dense<0.000000e+00> : vector<24x144xf32>
    %123 = tpu.matmul %121, %122, %cst_83 {dimension_numbers = #tpu.dot_dimension_numbers<[1], [0], [0], [1], [0, 0, 1, 1], [], []>} : vector<24x639xf32>, vector<639x144xf32>, vector<24x144xf32> -> vector<24x144xf32>
    %124 = vector.extract_strided_slice %123 {offsets = [0, 0], sizes = [24, 118], strides = [1, 1]} : vector<24x144xf32> to vector<24x118xf32>
    %c0_84 = arith.constant 0 : index
    %c0_85 = arith.constant 0 : index
    %c0_86 = arith.constant 0 : index
    %125 = vector.load %arg5[%c0_84, %c0_85, %c0_86] : memref<9x28x24xf32, #tpu.memory_space<vmem>>, vector<1x28x24xf32>
    %126 = vector.shape_cast %125 : vector<1x28x24xf32> to vector<28x24xf32>
    %cst_87 = arith.constant dense<0.000000e+00> : vector<28x118xf32>
    %127 = tpu.matmul %126, %124, %cst_87 {dimension_numbers = #tpu.dot_dimension_numbers<[1], [0], [0], [1], [0, 0, 1, 1], [], []>} : vector<28x24xf32>, vector<24x118xf32>, vector<28x118xf32> -> vector<28x118xf32>
    %128 = vector.extract_strided_slice %123 {offsets = [0, 1], sizes = [24, 118], strides = [1, 1]} : vector<24x144xf32> to vector<24x118xf32>
    %c1_88 = arith.constant 1 : index
    %c0_89 = arith.constant 0 : index
    %c0_90 = arith.constant 0 : index
    %129 = vector.load %arg5[%c1_88, %c0_89, %c0_90] : memref<9x28x24xf32, #tpu.memory_space<vmem>>, vector<1x28x24xf32>
    %130 = vector.shape_cast %129 : vector<1x28x24xf32> to vector<28x24xf32>
    %cst_91 = arith.constant dense<0.000000e+00> : vector<28x118xf32>
    %131 = tpu.matmul %130, %128, %cst_91 {dimension_numbers = #tpu.dot_dimension_numbers<[1], [0], [0], [1], [0, 0, 1, 1], [], []>} : vector<28x24xf32>, vector<24x118xf32>, vector<28x118xf32> -> vector<28x118xf32>
    %132 = arith.addf %127, %131 : vector<28x118xf32>
    %133 = vector.extract_strided_slice %123 {offsets = [0, 2], sizes = [24, 118], strides = [1, 1]} : vector<24x144xf32> to vector<24x118xf32>
    %c2_92 = arith.constant 2 : index
    %c0_93 = arith.constant 0 : index
    %c0_94 = arith.constant 0 : index
    %134 = vector.load %arg5[%c2_92, %c0_93, %c0_94] : memref<9x28x24xf32, #tpu.memory_space<vmem>>, vector<1x28x24xf32>
    %135 = vector.shape_cast %134 : vector<1x28x24xf32> to vector<28x24xf32>
    %cst_95 = arith.constant dense<0.000000e+00> : vector<28x118xf32>
    %136 = tpu.matmul %135, %133, %cst_95 {dimension_numbers = #tpu.dot_dimension_numbers<[1], [0], [0], [1], [0, 0, 1, 1], [], []>} : vector<28x24xf32>, vector<24x118xf32>, vector<28x118xf32> -> vector<28x118xf32>
    %137 = arith.addf %132, %136 : vector<28x118xf32>
    %138 = vector.extract_strided_slice %123 {offsets = [0, 12], sizes = [24, 118], strides = [1, 1]} : vector<24x144xf32> to vector<24x118xf32>
    %c3_96 = arith.constant 3 : index
    %c0_97 = arith.constant 0 : index
    %c0_98 = arith.constant 0 : index
    %139 = vector.load %arg5[%c3_96, %c0_97, %c0_98] : memref<9x28x24xf32, #tpu.memory_space<vmem>>, vector<1x28x24xf32>
    %140 = vector.shape_cast %139 : vector<1x28x24xf32> to vector<28x24xf32>
    %cst_99 = arith.constant dense<0.000000e+00> : vector<28x118xf32>
    %141 = tpu.matmul %140, %138, %cst_99 {dimension_numbers = #tpu.dot_dimension_numbers<[1], [0], [0], [1], [0, 0, 1, 1], [], []>} : vector<28x24xf32>, vector<24x118xf32>, vector<28x118xf32> -> vector<28x118xf32>
    %142 = arith.addf %137, %141 : vector<28x118xf32>
    %143 = vector.extract_strided_slice %123 {offsets = [0, 13], sizes = [24, 118], strides = [1, 1]} : vector<24x144xf32> to vector<24x118xf32>
    %c4_100 = arith.constant 4 : index
    %c0_101 = arith.constant 0 : index
    %c0_102 = arith.constant 0 : index
    %144 = vector.load %arg5[%c4_100, %c0_101, %c0_102] : memref<9x28x24xf32, #tpu.memory_space<vmem>>, vector<1x28x24xf32>
    %145 = vector.shape_cast %144 : vector<1x28x24xf32> to vector<28x24xf32>
    %cst_103 = arith.constant dense<0.000000e+00> : vector<28x118xf32>
    %146 = tpu.matmul %145, %143, %cst_103 {dimension_numbers = #tpu.dot_dimension_numbers<[1], [0], [0], [1], [0, 0, 1, 1], [], []>} : vector<28x24xf32>, vector<24x118xf32>, vector<28x118xf32> -> vector<28x118xf32>
    %147 = arith.addf %142, %146 : vector<28x118xf32>
    %148 = vector.extract_strided_slice %123 {offsets = [0, 14], sizes = [24, 118], strides = [1, 1]} : vector<24x144xf32> to vector<24x118xf32>
    %c5_104 = arith.constant 5 : index
    %c0_105 = arith.constant 0 : index
    %c0_106 = arith.constant 0 : index
    %149 = vector.load %arg5[%c5_104, %c0_105, %c0_106] : memref<9x28x24xf32, #tpu.memory_space<vmem>>, vector<1x28x24xf32>
    %150 = vector.shape_cast %149 : vector<1x28x24xf32> to vector<28x24xf32>
    %cst_107 = arith.constant dense<0.000000e+00> : vector<28x118xf32>
    %151 = tpu.matmul %150, %148, %cst_107 {dimension_numbers = #tpu.dot_dimension_numbers<[1], [0], [0], [1], [0, 0, 1, 1], [], []>} : vector<28x24xf32>, vector<24x118xf32>, vector<28x118xf32> -> vector<28x118xf32>
    %152 = arith.addf %147, %151 : vector<28x118xf32>
    %153 = vector.extract_strided_slice %123 {offsets = [0, 24], sizes = [24, 118], strides = [1, 1]} : vector<24x144xf32> to vector<24x118xf32>
    %c6_108 = arith.constant 6 : index
    %c0_109 = arith.constant 0 : index
    %c0_110 = arith.constant 0 : index
    %154 = vector.load %arg5[%c6_108, %c0_109, %c0_110] : memref<9x28x24xf32, #tpu.memory_space<vmem>>, vector<1x28x24xf32>
    %155 = vector.shape_cast %154 : vector<1x28x24xf32> to vector<28x24xf32>
    %cst_111 = arith.constant dense<0.000000e+00> : vector<28x118xf32>
    %156 = tpu.matmul %155, %153, %cst_111 {dimension_numbers = #tpu.dot_dimension_numbers<[1], [0], [0], [1], [0, 0, 1, 1], [], []>} : vector<28x24xf32>, vector<24x118xf32>, vector<28x118xf32> -> vector<28x118xf32>
    %157 = arith.addf %152, %156 : vector<28x118xf32>
    %158 = vector.extract_strided_slice %123 {offsets = [0, 25], sizes = [24, 118], strides = [1, 1]} : vector<24x144xf32> to vector<24x118xf32>
    %c7_112 = arith.constant 7 : index
    %c0_113 = arith.constant 0 : index
    %c0_114 = arith.constant 0 : index
    %159 = vector.load %arg5[%c7_112, %c0_113, %c0_114] : memref<9x28x24xf32, #tpu.memory_space<vmem>>, vector<1x28x24xf32>
    %160 = vector.shape_cast %159 : vector<1x28x24xf32> to vector<28x24xf32>
    %cst_115 = arith.constant dense<0.000000e+00> : vector<28x118xf32>
    %161 = tpu.matmul %160, %158, %cst_115 {dimension_numbers = #tpu.dot_dimension_numbers<[1], [0], [0], [1], [0, 0, 1, 1], [], []>} : vector<28x24xf32>, vector<24x118xf32>, vector<28x118xf32> -> vector<28x118xf32>
    %162 = arith.addf %157, %161 : vector<28x118xf32>
    %163 = vector.extract_strided_slice %123 {offsets = [0, 26], sizes = [24, 118], strides = [1, 1]} : vector<24x144xf32> to vector<24x118xf32>
    %c8_116 = arith.constant 8 : index
    %c0_117 = arith.constant 0 : index
    %c0_118 = arith.constant 0 : index
    %164 = vector.load %arg5[%c8_116, %c0_117, %c0_118] : memref<9x28x24xf32, #tpu.memory_space<vmem>>, vector<1x28x24xf32>
    %165 = vector.shape_cast %164 : vector<1x28x24xf32> to vector<28x24xf32>
    %cst_119 = arith.constant dense<0.000000e+00> : vector<28x118xf32>
    %166 = tpu.matmul %165, %163, %cst_119 {dimension_numbers = #tpu.dot_dimension_numbers<[1], [0], [0], [1], [0, 0, 1, 1], [], []>} : vector<28x24xf32>, vector<24x118xf32>, vector<28x118xf32> -> vector<28x118xf32>
    %167 = arith.addf %162, %166 : vector<28x118xf32>
    %c2_120 = arith.constant 2 : index
    %c0_121 = arith.constant 0 : index
    %c0_122 = arith.constant 0 : index
    %168 = vector.load %arg10[%c2_120, %c0_121, %c0_122] : memref<6x36x1xf32, #tpu.memory_space<vmem>>, vector<1x36x1xf32>
    %169 = vector.shape_cast %168 : vector<1x36x1xf32> to vector<36x1xf32>
    %170 = vector.extract_strided_slice %169 {offsets = [0, 0], sizes = [28, 1], strides = [1, 1]} : vector<36x1xf32> to vector<28x1xf32>
    %c2_123 = arith.constant 2 : index
    %c0_124 = arith.constant 0 : index
    %c0_125 = arith.constant 0 : index
    %171 = vector.load %arg11[%c2_123, %c0_124, %c0_125] : memref<6x36x1xf32, #tpu.memory_space<vmem>>, vector<1x36x1xf32>
    %172 = vector.shape_cast %171 : vector<1x36x1xf32> to vector<36x1xf32>
    %173 = vector.extract_strided_slice %172 {offsets = [0, 0], sizes = [28, 1], strides = [1, 1]} : vector<36x1xf32> to vector<28x1xf32>
    %cst_126 = arith.constant 0.000000e+00 : f32
    %174 = vector.broadcast %cst_126 : f32 to vector<28x118xf32>
    %175 = arith.maximumf %167, %174 : vector<28x118xf32>
    %176 = vector.broadcast %170 : vector<28x1xf32> to vector<28x118xf32>
    %177 = arith.mulf %175, %176 : vector<28x118xf32>
    %178 = vector.broadcast %173 : vector<28x1xf32> to vector<28x118xf32>
    %179 = arith.addf %177, %178 : vector<28x118xf32>
    %180 = vector.extract_strided_slice %179 {offsets = [0, 0], sizes = [28, 92], strides = [1, 1]} : vector<28x118xf32> to vector<28x92xf32>
    %c0_127 = arith.constant 0 : index
    %c0_128 = arith.constant 0 : index
    %c0_129 = arith.constant 0 : index
    %181 = vector.load %arg6[%c0_127, %c0_128, %c0_129] : memref<9x32x28xf32, #tpu.memory_space<vmem>>, vector<1x32x28xf32>
    %182 = vector.shape_cast %181 : vector<1x32x28xf32> to vector<32x28xf32>
    %cst_130 = arith.constant dense<0.000000e+00> : vector<32x92xf32>
    %183 = tpu.matmul %182, %180, %cst_130 {dimension_numbers = #tpu.dot_dimension_numbers<[1], [0], [0], [1], [0, 0, 1, 1], [], []>} : vector<32x28xf32>, vector<28x92xf32>, vector<32x92xf32> -> vector<32x92xf32>
    %184 = vector.extract_strided_slice %179 {offsets = [0, 1], sizes = [28, 92], strides = [1, 1]} : vector<28x118xf32> to vector<28x92xf32>
    %c1_131 = arith.constant 1 : index
    %c0_132 = arith.constant 0 : index
    %c0_133 = arith.constant 0 : index
    %185 = vector.load %arg6[%c1_131, %c0_132, %c0_133] : memref<9x32x28xf32, #tpu.memory_space<vmem>>, vector<1x32x28xf32>
    %186 = vector.shape_cast %185 : vector<1x32x28xf32> to vector<32x28xf32>
    %cst_134 = arith.constant dense<0.000000e+00> : vector<32x92xf32>
    %187 = tpu.matmul %186, %184, %cst_134 {dimension_numbers = #tpu.dot_dimension_numbers<[1], [0], [0], [1], [0, 0, 1, 1], [], []>} : vector<32x28xf32>, vector<28x92xf32>, vector<32x92xf32> -> vector<32x92xf32>
    %188 = arith.addf %183, %187 : vector<32x92xf32>
    %189 = vector.extract_strided_slice %179 {offsets = [0, 2], sizes = [28, 92], strides = [1, 1]} : vector<28x118xf32> to vector<28x92xf32>
    %c2_135 = arith.constant 2 : index
    %c0_136 = arith.constant 0 : index
    %c0_137 = arith.constant 0 : index
    %190 = vector.load %arg6[%c2_135, %c0_136, %c0_137] : memref<9x32x28xf32, #tpu.memory_space<vmem>>, vector<1x32x28xf32>
    %191 = vector.shape_cast %190 : vector<1x32x28xf32> to vector<32x28xf32>
    %cst_138 = arith.constant dense<0.000000e+00> : vector<32x92xf32>
    %192 = tpu.matmul %191, %189, %cst_138 {dimension_numbers = #tpu.dot_dimension_numbers<[1], [0], [0], [1], [0, 0, 1, 1], [], []>} : vector<32x28xf32>, vector<28x92xf32>, vector<32x92xf32> -> vector<32x92xf32>
    %193 = arith.addf %188, %192 : vector<32x92xf32>
    %194 = vector.extract_strided_slice %179 {offsets = [0, 12], sizes = [28, 92], strides = [1, 1]} : vector<28x118xf32> to vector<28x92xf32>
    %c3_139 = arith.constant 3 : index
    %c0_140 = arith.constant 0 : index
    %c0_141 = arith.constant 0 : index
    %195 = vector.load %arg6[%c3_139, %c0_140, %c0_141] : memref<9x32x28xf32, #tpu.memory_space<vmem>>, vector<1x32x28xf32>
    %196 = vector.shape_cast %195 : vector<1x32x28xf32> to vector<32x28xf32>
    %cst_142 = arith.constant dense<0.000000e+00> : vector<32x92xf32>
    %197 = tpu.matmul %196, %194, %cst_142 {dimension_numbers = #tpu.dot_dimension_numbers<[1], [0], [0], [1], [0, 0, 1, 1], [], []>} : vector<32x28xf32>, vector<28x92xf32>, vector<32x92xf32> -> vector<32x92xf32>
    %198 = arith.addf %193, %197 : vector<32x92xf32>
    %199 = vector.extract_strided_slice %179 {offsets = [0, 13], sizes = [28, 92], strides = [1, 1]} : vector<28x118xf32> to vector<28x92xf32>
    %c4_143 = arith.constant 4 : index
    %c0_144 = arith.constant 0 : index
    %c0_145 = arith.constant 0 : index
    %200 = vector.load %arg6[%c4_143, %c0_144, %c0_145] : memref<9x32x28xf32, #tpu.memory_space<vmem>>, vector<1x32x28xf32>
    %201 = vector.shape_cast %200 : vector<1x32x28xf32> to vector<32x28xf32>
    %cst_146 = arith.constant dense<0.000000e+00> : vector<32x92xf32>
    %202 = tpu.matmul %201, %199, %cst_146 {dimension_numbers = #tpu.dot_dimension_numbers<[1], [0], [0], [1], [0, 0, 1, 1], [], []>} : vector<32x28xf32>, vector<28x92xf32>, vector<32x92xf32> -> vector<32x92xf32>
    %203 = arith.addf %198, %202 : vector<32x92xf32>
    %204 = vector.extract_strided_slice %179 {offsets = [0, 14], sizes = [28, 92], strides = [1, 1]} : vector<28x118xf32> to vector<28x92xf32>
    %c5_147 = arith.constant 5 : index
    %c0_148 = arith.constant 0 : index
    %c0_149 = arith.constant 0 : index
    %205 = vector.load %arg6[%c5_147, %c0_148, %c0_149] : memref<9x32x28xf32, #tpu.memory_space<vmem>>, vector<1x32x28xf32>
    %206 = vector.shape_cast %205 : vector<1x32x28xf32> to vector<32x28xf32>
    %cst_150 = arith.constant dense<0.000000e+00> : vector<32x92xf32>
    %207 = tpu.matmul %206, %204, %cst_150 {dimension_numbers = #tpu.dot_dimension_numbers<[1], [0], [0], [1], [0, 0, 1, 1], [], []>} : vector<32x28xf32>, vector<28x92xf32>, vector<32x92xf32> -> vector<32x92xf32>
    %208 = arith.addf %203, %207 : vector<32x92xf32>
    %209 = vector.extract_strided_slice %179 {offsets = [0, 24], sizes = [28, 92], strides = [1, 1]} : vector<28x118xf32> to vector<28x92xf32>
    %c6_151 = arith.constant 6 : index
    %c0_152 = arith.constant 0 : index
    %c0_153 = arith.constant 0 : index
    %210 = vector.load %arg6[%c6_151, %c0_152, %c0_153] : memref<9x32x28xf32, #tpu.memory_space<vmem>>, vector<1x32x28xf32>
    %211 = vector.shape_cast %210 : vector<1x32x28xf32> to vector<32x28xf32>
    %cst_154 = arith.constant dense<0.000000e+00> : vector<32x92xf32>
    %212 = tpu.matmul %211, %209, %cst_154 {dimension_numbers = #tpu.dot_dimension_numbers<[1], [0], [0], [1], [0, 0, 1, 1], [], []>} : vector<32x28xf32>, vector<28x92xf32>, vector<32x92xf32> -> vector<32x92xf32>
    %213 = arith.addf %208, %212 : vector<32x92xf32>
    %214 = vector.extract_strided_slice %179 {offsets = [0, 25], sizes = [28, 92], strides = [1, 1]} : vector<28x118xf32> to vector<28x92xf32>
    %c7_155 = arith.constant 7 : index
    %c0_156 = arith.constant 0 : index
    %c0_157 = arith.constant 0 : index
    %215 = vector.load %arg6[%c7_155, %c0_156, %c0_157] : memref<9x32x28xf32, #tpu.memory_space<vmem>>, vector<1x32x28xf32>
    %216 = vector.shape_cast %215 : vector<1x32x28xf32> to vector<32x28xf32>
    %cst_158 = arith.constant dense<0.000000e+00> : vector<32x92xf32>
    %217 = tpu.matmul %216, %214, %cst_158 {dimension_numbers = #tpu.dot_dimension_numbers<[1], [0], [0], [1], [0, 0, 1, 1], [], []>} : vector<32x28xf32>, vector<28x92xf32>, vector<32x92xf32> -> vector<32x92xf32>
    %218 = arith.addf %213, %217 : vector<32x92xf32>
    %219 = vector.extract_strided_slice %179 {offsets = [0, 26], sizes = [28, 92], strides = [1, 1]} : vector<28x118xf32> to vector<28x92xf32>
    %c8_159 = arith.constant 8 : index
    %c0_160 = arith.constant 0 : index
    %c0_161 = arith.constant 0 : index
    %220 = vector.load %arg6[%c8_159, %c0_160, %c0_161] : memref<9x32x28xf32, #tpu.memory_space<vmem>>, vector<1x32x28xf32>
    %221 = vector.shape_cast %220 : vector<1x32x28xf32> to vector<32x28xf32>
    %cst_162 = arith.constant dense<0.000000e+00> : vector<32x92xf32>
    %222 = tpu.matmul %221, %219, %cst_162 {dimension_numbers = #tpu.dot_dimension_numbers<[1], [0], [0], [1], [0, 0, 1, 1], [], []>} : vector<32x28xf32>, vector<28x92xf32>, vector<32x92xf32> -> vector<32x92xf32>
    %223 = arith.addf %218, %222 : vector<32x92xf32>
    %c3_163 = arith.constant 3 : index
    %c0_164 = arith.constant 0 : index
    %c0_165 = arith.constant 0 : index
    %224 = vector.load %arg10[%c3_163, %c0_164, %c0_165] : memref<6x36x1xf32, #tpu.memory_space<vmem>>, vector<1x36x1xf32>
    %225 = vector.shape_cast %224 : vector<1x36x1xf32> to vector<36x1xf32>
    %226 = vector.extract_strided_slice %225 {offsets = [0, 0], sizes = [32, 1], strides = [1, 1]} : vector<36x1xf32> to vector<32x1xf32>
    %c3_166 = arith.constant 3 : index
    %c0_167 = arith.constant 0 : index
    %c0_168 = arith.constant 0 : index
    %227 = vector.load %arg11[%c3_166, %c0_167, %c0_168] : memref<6x36x1xf32, #tpu.memory_space<vmem>>, vector<1x36x1xf32>
    %228 = vector.shape_cast %227 : vector<1x36x1xf32> to vector<36x1xf32>
    %229 = vector.extract_strided_slice %228 {offsets = [0, 0], sizes = [32, 1], strides = [1, 1]} : vector<36x1xf32> to vector<32x1xf32>
    %cst_169 = arith.constant 0.000000e+00 : f32
    %230 = vector.broadcast %cst_169 : f32 to vector<32x92xf32>
    %231 = arith.maximumf %223, %230 : vector<32x92xf32>
    %232 = vector.broadcast %226 : vector<32x1xf32> to vector<32x92xf32>
    %233 = arith.mulf %231, %232 : vector<32x92xf32>
    %234 = vector.broadcast %229 : vector<32x1xf32> to vector<32x92xf32>
    %235 = arith.addf %233, %234 : vector<32x92xf32>
    %236 = vector.extract_strided_slice %235 {offsets = [0, 0], sizes = [32, 66], strides = [1, 1]} : vector<32x92xf32> to vector<32x66xf32>
    %c0_170 = arith.constant 0 : index
    %c0_171 = arith.constant 0 : index
    %c0_172 = arith.constant 0 : index
    %237 = vector.load %arg7[%c0_170, %c0_171, %c0_172] : memref<9x32x32xf32, #tpu.memory_space<vmem>>, vector<1x32x32xf32>
    %238 = vector.shape_cast %237 : vector<1x32x32xf32> to vector<32x32xf32>
    %cst_173 = arith.constant dense<0.000000e+00> : vector<32x66xf32>
    %239 = tpu.matmul %238, %236, %cst_173 {dimension_numbers = #tpu.dot_dimension_numbers<[1], [0], [0], [1], [0, 0, 1, 1], [], []>} : vector<32x32xf32>, vector<32x66xf32>, vector<32x66xf32> -> vector<32x66xf32>
    %240 = vector.extract_strided_slice %235 {offsets = [0, 1], sizes = [32, 66], strides = [1, 1]} : vector<32x92xf32> to vector<32x66xf32>
    %c1_174 = arith.constant 1 : index
    %c0_175 = arith.constant 0 : index
    %c0_176 = arith.constant 0 : index
    %241 = vector.load %arg7[%c1_174, %c0_175, %c0_176] : memref<9x32x32xf32, #tpu.memory_space<vmem>>, vector<1x32x32xf32>
    %242 = vector.shape_cast %241 : vector<1x32x32xf32> to vector<32x32xf32>
    %cst_177 = arith.constant dense<0.000000e+00> : vector<32x66xf32>
    %243 = tpu.matmul %242, %240, %cst_177 {dimension_numbers = #tpu.dot_dimension_numbers<[1], [0], [0], [1], [0, 0, 1, 1], [], []>} : vector<32x32xf32>, vector<32x66xf32>, vector<32x66xf32> -> vector<32x66xf32>
    %244 = arith.addf %239, %243 : vector<32x66xf32>
    %245 = vector.extract_strided_slice %235 {offsets = [0, 2], sizes = [32, 66], strides = [1, 1]} : vector<32x92xf32> to vector<32x66xf32>
    %c2_178 = arith.constant 2 : index
    %c0_179 = arith.constant 0 : index
    %c0_180 = arith.constant 0 : index
    %246 = vector.load %arg7[%c2_178, %c0_179, %c0_180] : memref<9x32x32xf32, #tpu.memory_space<vmem>>, vector<1x32x32xf32>
    %247 = vector.shape_cast %246 : vector<1x32x32xf32> to vector<32x32xf32>
    %cst_181 = arith.constant dense<0.000000e+00> : vector<32x66xf32>
    %248 = tpu.matmul %247, %245, %cst_181 {dimension_numbers = #tpu.dot_dimension_numbers<[1], [0], [0], [1], [0, 0, 1, 1], [], []>} : vector<32x32xf32>, vector<32x66xf32>, vector<32x66xf32> -> vector<32x66xf32>
    %249 = arith.addf %244, %248 : vector<32x66xf32>
    %250 = vector.extract_strided_slice %235 {offsets = [0, 12], sizes = [32, 66], strides = [1, 1]} : vector<32x92xf32> to vector<32x66xf32>
    %c3_182 = arith.constant 3 : index
    %c0_183 = arith.constant 0 : index
    %c0_184 = arith.constant 0 : index
    %251 = vector.load %arg7[%c3_182, %c0_183, %c0_184] : memref<9x32x32xf32, #tpu.memory_space<vmem>>, vector<1x32x32xf32>
    %252 = vector.shape_cast %251 : vector<1x32x32xf32> to vector<32x32xf32>
    %cst_185 = arith.constant dense<0.000000e+00> : vector<32x66xf32>
    %253 = tpu.matmul %252, %250, %cst_185 {dimension_numbers = #tpu.dot_dimension_numbers<[1], [0], [0], [1], [0, 0, 1, 1], [], []>} : vector<32x32xf32>, vector<32x66xf32>, vector<32x66xf32> -> vector<32x66xf32>
    %254 = arith.addf %249, %253 : vector<32x66xf32>
    %255 = vector.extract_strided_slice %235 {offsets = [0, 13], sizes = [32, 66], strides = [1, 1]} : vector<32x92xf32> to vector<32x66xf32>
    %c4_186 = arith.constant 4 : index
    %c0_187 = arith.constant 0 : index
    %c0_188 = arith.constant 0 : index
    %256 = vector.load %arg7[%c4_186, %c0_187, %c0_188] : memref<9x32x32xf32, #tpu.memory_space<vmem>>, vector<1x32x32xf32>
    %257 = vector.shape_cast %256 : vector<1x32x32xf32> to vector<32x32xf32>
    %cst_189 = arith.constant dense<0.000000e+00> : vector<32x66xf32>
    %258 = tpu.matmul %257, %255, %cst_189 {dimension_numbers = #tpu.dot_dimension_numbers<[1], [0], [0], [1], [0, 0, 1, 1], [], []>} : vector<32x32xf32>, vector<32x66xf32>, vector<32x66xf32> -> vector<32x66xf32>
    %259 = arith.addf %254, %258 : vector<32x66xf32>
    %260 = vector.extract_strided_slice %235 {offsets = [0, 14], sizes = [32, 66], strides = [1, 1]} : vector<32x92xf32> to vector<32x66xf32>
    %c5_190 = arith.constant 5 : index
    %c0_191 = arith.constant 0 : index
    %c0_192 = arith.constant 0 : index
    %261 = vector.load %arg7[%c5_190, %c0_191, %c0_192] : memref<9x32x32xf32, #tpu.memory_space<vmem>>, vector<1x32x32xf32>
    %262 = vector.shape_cast %261 : vector<1x32x32xf32> to vector<32x32xf32>
    %cst_193 = arith.constant dense<0.000000e+00> : vector<32x66xf32>
    %263 = tpu.matmul %262, %260, %cst_193 {dimension_numbers = #tpu.dot_dimension_numbers<[1], [0], [0], [1], [0, 0, 1, 1], [], []>} : vector<32x32xf32>, vector<32x66xf32>, vector<32x66xf32> -> vector<32x66xf32>
    %264 = arith.addf %259, %263 : vector<32x66xf32>
    %265 = vector.extract_strided_slice %235 {offsets = [0, 24], sizes = [32, 66], strides = [1, 1]} : vector<32x92xf32> to vector<32x66xf32>
    %c6_194 = arith.constant 6 : index
    %c0_195 = arith.constant 0 : index
    %c0_196 = arith.constant 0 : index
    %266 = vector.load %arg7[%c6_194, %c0_195, %c0_196] : memref<9x32x32xf32, #tpu.memory_space<vmem>>, vector<1x32x32xf32>
    %267 = vector.shape_cast %266 : vector<1x32x32xf32> to vector<32x32xf32>
    %cst_197 = arith.constant dense<0.000000e+00> : vector<32x66xf32>
    %268 = tpu.matmul %267, %265, %cst_197 {dimension_numbers = #tpu.dot_dimension_numbers<[1], [0], [0], [1], [0, 0, 1, 1], [], []>} : vector<32x32xf32>, vector<32x66xf32>, vector<32x66xf32> -> vector<32x66xf32>
    %269 = arith.addf %264, %268 : vector<32x66xf32>
    %270 = vector.extract_strided_slice %235 {offsets = [0, 25], sizes = [32, 66], strides = [1, 1]} : vector<32x92xf32> to vector<32x66xf32>
    %c7_198 = arith.constant 7 : index
    %c0_199 = arith.constant 0 : index
    %c0_200 = arith.constant 0 : index
    %271 = vector.load %arg7[%c7_198, %c0_199, %c0_200] : memref<9x32x32xf32, #tpu.memory_space<vmem>>, vector<1x32x32xf32>
    %272 = vector.shape_cast %271 : vector<1x32x32xf32> to vector<32x32xf32>
    %cst_201 = arith.constant dense<0.000000e+00> : vector<32x66xf32>
    %273 = tpu.matmul %272, %270, %cst_201 {dimension_numbers = #tpu.dot_dimension_numbers<[1], [0], [0], [1], [0, 0, 1, 1], [], []>} : vector<32x32xf32>, vector<32x66xf32>, vector<32x66xf32> -> vector<32x66xf32>
    %274 = arith.addf %269, %273 : vector<32x66xf32>
    %275 = vector.extract_strided_slice %235 {offsets = [0, 26], sizes = [32, 66], strides = [1, 1]} : vector<32x92xf32> to vector<32x66xf32>
    %c8_202 = arith.constant 8 : index
    %c0_203 = arith.constant 0 : index
    %c0_204 = arith.constant 0 : index
    %276 = vector.load %arg7[%c8_202, %c0_203, %c0_204] : memref<9x32x32xf32, #tpu.memory_space<vmem>>, vector<1x32x32xf32>
    %277 = vector.shape_cast %276 : vector<1x32x32xf32> to vector<32x32xf32>
    %cst_205 = arith.constant dense<0.000000e+00> : vector<32x66xf32>
    %278 = tpu.matmul %277, %275, %cst_205 {dimension_numbers = #tpu.dot_dimension_numbers<[1], [0], [0], [1], [0, 0, 1, 1], [], []>} : vector<32x32xf32>, vector<32x66xf32>, vector<32x66xf32> -> vector<32x66xf32>
    %279 = arith.addf %274, %278 : vector<32x66xf32>
    %c4_206 = arith.constant 4 : index
    %c0_207 = arith.constant 0 : index
    %c0_208 = arith.constant 0 : index
    %280 = vector.load %arg10[%c4_206, %c0_207, %c0_208] : memref<6x36x1xf32, #tpu.memory_space<vmem>>, vector<1x36x1xf32>
    %281 = vector.shape_cast %280 : vector<1x36x1xf32> to vector<36x1xf32>
    %282 = vector.extract_strided_slice %281 {offsets = [0, 0], sizes = [32, 1], strides = [1, 1]} : vector<36x1xf32> to vector<32x1xf32>
    %c4_209 = arith.constant 4 : index
    %c0_210 = arith.constant 0 : index
    %c0_211 = arith.constant 0 : index
    %283 = vector.load %arg11[%c4_209, %c0_210, %c0_211] : memref<6x36x1xf32, #tpu.memory_space<vmem>>, vector<1x36x1xf32>
    %284 = vector.shape_cast %283 : vector<1x36x1xf32> to vector<36x1xf32>
    %285 = vector.extract_strided_slice %284 {offsets = [0, 0], sizes = [32, 1], strides = [1, 1]} : vector<36x1xf32> to vector<32x1xf32>
    %cst_212 = arith.constant 0.000000e+00 : f32
    %286 = vector.broadcast %cst_212 : f32 to vector<32x66xf32>
    %287 = arith.maximumf %279, %286 : vector<32x66xf32>
    %288 = vector.broadcast %282 : vector<32x1xf32> to vector<32x66xf32>
    %289 = arith.mulf %287, %288 : vector<32x66xf32>
    %290 = vector.broadcast %285 : vector<32x1xf32> to vector<32x66xf32>
    %291 = arith.addf %289, %290 : vector<32x66xf32>
    %c0_213 = arith.constant 0 : index
    %c0_214 = arith.constant 0 : index
    %292 = vector.load %arg13[%c0_213, %c0_214] : memref<66x96xf32, #tpu.memory_space<vmem>>, vector<66x96xf32>
    %cst_215 = arith.constant dense<0.000000e+00> : vector<32x96xf32>
    %293 = tpu.matmul %291, %292, %cst_215 {dimension_numbers = #tpu.dot_dimension_numbers<[1], [0], [0], [1], [0, 0, 1, 1], [], []>} : vector<32x66xf32>, vector<66x96xf32>, vector<32x96xf32> -> vector<32x96xf32>
    %294 = vector.extract_strided_slice %293 {offsets = [0, 0], sizes = [32, 66], strides = [1, 1]} : vector<32x96xf32> to vector<32x66xf32>
    %c0_216 = arith.constant 0 : index
    %c0_217 = arith.constant 0 : index
    %c0_218 = arith.constant 0 : index
    %295 = vector.load %arg8[%c0_216, %c0_217, %c0_218] : memref<9x36x32xf32, #tpu.memory_space<vmem>>, vector<1x36x32xf32>
    %296 = vector.shape_cast %295 : vector<1x36x32xf32> to vector<36x32xf32>
    %cst_219 = arith.constant dense<0.000000e+00> : vector<36x66xf32>
    %297 = tpu.matmul %296, %294, %cst_219 {dimension_numbers = #tpu.dot_dimension_numbers<[1], [0], [0], [1], [0, 0, 1, 1], [], []>} : vector<36x32xf32>, vector<32x66xf32>, vector<36x66xf32> -> vector<36x66xf32>
    %298 = vector.extract_strided_slice %293 {offsets = [0, 1], sizes = [32, 66], strides = [1, 1]} : vector<32x96xf32> to vector<32x66xf32>
    %c1_220 = arith.constant 1 : index
    %c0_221 = arith.constant 0 : index
    %c0_222 = arith.constant 0 : index
    %299 = vector.load %arg8[%c1_220, %c0_221, %c0_222] : memref<9x36x32xf32, #tpu.memory_space<vmem>>, vector<1x36x32xf32>
    %300 = vector.shape_cast %299 : vector<1x36x32xf32> to vector<36x32xf32>
    %cst_223 = arith.constant dense<0.000000e+00> : vector<36x66xf32>
    %301 = tpu.matmul %300, %298, %cst_223 {dimension_numbers = #tpu.dot_dimension_numbers<[1], [0], [0], [1], [0, 0, 1, 1], [], []>} : vector<36x32xf32>, vector<32x66xf32>, vector<36x66xf32> -> vector<36x66xf32>
    %302 = arith.addf %297, %301 : vector<36x66xf32>
    %303 = vector.extract_strided_slice %293 {offsets = [0, 2], sizes = [32, 66], strides = [1, 1]} : vector<32x96xf32> to vector<32x66xf32>
    %c2_224 = arith.constant 2 : index
    %c0_225 = arith.constant 0 : index
    %c0_226 = arith.constant 0 : index
    %304 = vector.load %arg8[%c2_224, %c0_225, %c0_226] : memref<9x36x32xf32, #tpu.memory_space<vmem>>, vector<1x36x32xf32>
    %305 = vector.shape_cast %304 : vector<1x36x32xf32> to vector<36x32xf32>
    %cst_227 = arith.constant dense<0.000000e+00> : vector<36x66xf32>
    %306 = tpu.matmul %305, %303, %cst_227 {dimension_numbers = #tpu.dot_dimension_numbers<[1], [0], [0], [1], [0, 0, 1, 1], [], []>} : vector<36x32xf32>, vector<32x66xf32>, vector<36x66xf32> -> vector<36x66xf32>
    %307 = arith.addf %302, %306 : vector<36x66xf32>
    %308 = vector.extract_strided_slice %293 {offsets = [0, 12], sizes = [32, 66], strides = [1, 1]} : vector<32x96xf32> to vector<32x66xf32>
    %c3_228 = arith.constant 3 : index
    %c0_229 = arith.constant 0 : index
    %c0_230 = arith.constant 0 : index
    %309 = vector.load %arg8[%c3_228, %c0_229, %c0_230] : memref<9x36x32xf32, #tpu.memory_space<vmem>>, vector<1x36x32xf32>
    %310 = vector.shape_cast %309 : vector<1x36x32xf32> to vector<36x32xf32>
    %cst_231 = arith.constant dense<0.000000e+00> : vector<36x66xf32>
    %311 = tpu.matmul %310, %308, %cst_231 {dimension_numbers = #tpu.dot_dimension_numbers<[1], [0], [0], [1], [0, 0, 1, 1], [], []>} : vector<36x32xf32>, vector<32x66xf32>, vector<36x66xf32> -> vector<36x66xf32>
    %312 = arith.addf %307, %311 : vector<36x66xf32>
    %313 = vector.extract_strided_slice %293 {offsets = [0, 13], sizes = [32, 66], strides = [1, 1]} : vector<32x96xf32> to vector<32x66xf32>
    %c4_232 = arith.constant 4 : index
    %c0_233 = arith.constant 0 : index
    %c0_234 = arith.constant 0 : index
    %314 = vector.load %arg8[%c4_232, %c0_233, %c0_234] : memref<9x36x32xf32, #tpu.memory_space<vmem>>, vector<1x36x32xf32>
    %315 = vector.shape_cast %314 : vector<1x36x32xf32> to vector<36x32xf32>
    %cst_235 = arith.constant dense<0.000000e+00> : vector<36x66xf32>
    %316 = tpu.matmul %315, %313, %cst_235 {dimension_numbers = #tpu.dot_dimension_numbers<[1], [0], [0], [1], [0, 0, 1, 1], [], []>} : vector<36x32xf32>, vector<32x66xf32>, vector<36x66xf32> -> vector<36x66xf32>
    %317 = arith.addf %312, %316 : vector<36x66xf32>
    %318 = vector.extract_strided_slice %293 {offsets = [0, 14], sizes = [32, 66], strides = [1, 1]} : vector<32x96xf32> to vector<32x66xf32>
    %c5_236 = arith.constant 5 : index
    %c0_237 = arith.constant 0 : index
    %c0_238 = arith.constant 0 : index
    %319 = vector.load %arg8[%c5_236, %c0_237, %c0_238] : memref<9x36x32xf32, #tpu.memory_space<vmem>>, vector<1x36x32xf32>
    %320 = vector.shape_cast %319 : vector<1x36x32xf32> to vector<36x32xf32>
    %cst_239 = arith.constant dense<0.000000e+00> : vector<36x66xf32>
    %321 = tpu.matmul %320, %318, %cst_239 {dimension_numbers = #tpu.dot_dimension_numbers<[1], [0], [0], [1], [0, 0, 1, 1], [], []>} : vector<36x32xf32>, vector<32x66xf32>, vector<36x66xf32> -> vector<36x66xf32>
    %322 = arith.addf %317, %321 : vector<36x66xf32>
    %323 = vector.extract_strided_slice %293 {offsets = [0, 24], sizes = [32, 66], strides = [1, 1]} : vector<32x96xf32> to vector<32x66xf32>
    %c6_240 = arith.constant 6 : index
    %c0_241 = arith.constant 0 : index
    %c0_242 = arith.constant 0 : index
    %324 = vector.load %arg8[%c6_240, %c0_241, %c0_242] : memref<9x36x32xf32, #tpu.memory_space<vmem>>, vector<1x36x32xf32>
    %325 = vector.shape_cast %324 : vector<1x36x32xf32> to vector<36x32xf32>
    %cst_243 = arith.constant dense<0.000000e+00> : vector<36x66xf32>
    %326 = tpu.matmul %325, %323, %cst_243 {dimension_numbers = #tpu.dot_dimension_numbers<[1], [0], [0], [1], [0, 0, 1, 1], [], []>} : vector<36x32xf32>, vector<32x66xf32>, vector<36x66xf32> -> vector<36x66xf32>
    %327 = arith.addf %322, %326 : vector<36x66xf32>
    %328 = vector.extract_strided_slice %293 {offsets = [0, 25], sizes = [32, 66], strides = [1, 1]} : vector<32x96xf32> to vector<32x66xf32>
    %c7_244 = arith.constant 7 : index
    %c0_245 = arith.constant 0 : index
    %c0_246 = arith.constant 0 : index
    %329 = vector.load %arg8[%c7_244, %c0_245, %c0_246] : memref<9x36x32xf32, #tpu.memory_space<vmem>>, vector<1x36x32xf32>
    %330 = vector.shape_cast %329 : vector<1x36x32xf32> to vector<36x32xf32>
    %cst_247 = arith.constant dense<0.000000e+00> : vector<36x66xf32>
    %331 = tpu.matmul %330, %328, %cst_247 {dimension_numbers = #tpu.dot_dimension_numbers<[1], [0], [0], [1], [0, 0, 1, 1], [], []>} : vector<36x32xf32>, vector<32x66xf32>, vector<36x66xf32> -> vector<36x66xf32>
    %332 = arith.addf %327, %331 : vector<36x66xf32>
    %333 = vector.extract_strided_slice %293 {offsets = [0, 26], sizes = [32, 66], strides = [1, 1]} : vector<32x96xf32> to vector<32x66xf32>
    %c8_248 = arith.constant 8 : index
    %c0_249 = arith.constant 0 : index
    %c0_250 = arith.constant 0 : index
    %334 = vector.load %arg8[%c8_248, %c0_249, %c0_250] : memref<9x36x32xf32, #tpu.memory_space<vmem>>, vector<1x36x32xf32>
    %335 = vector.shape_cast %334 : vector<1x36x32xf32> to vector<36x32xf32>
    %cst_251 = arith.constant dense<0.000000e+00> : vector<36x66xf32>
    %336 = tpu.matmul %335, %333, %cst_251 {dimension_numbers = #tpu.dot_dimension_numbers<[1], [0], [0], [1], [0, 0, 1, 1], [], []>} : vector<36x32xf32>, vector<32x66xf32>, vector<36x66xf32> -> vector<36x66xf32>
    %337 = arith.addf %332, %336 : vector<36x66xf32>
    %c5_252 = arith.constant 5 : index
    %c0_253 = arith.constant 0 : index
    %c0_254 = arith.constant 0 : index
    %338 = vector.load %arg10[%c5_252, %c0_253, %c0_254] : memref<6x36x1xf32, #tpu.memory_space<vmem>>, vector<1x36x1xf32>
    %339 = vector.shape_cast %338 : vector<1x36x1xf32> to vector<36x1xf32>
    %c5_255 = arith.constant 5 : index
    %c0_256 = arith.constant 0 : index
    %c0_257 = arith.constant 0 : index
    %340 = vector.load %arg11[%c5_255, %c0_256, %c0_257] : memref<6x36x1xf32, #tpu.memory_space<vmem>>, vector<1x36x1xf32>
    %341 = vector.shape_cast %340 : vector<1x36x1xf32> to vector<36x1xf32>
    %cst_258 = arith.constant 0.000000e+00 : f32
    %342 = vector.broadcast %cst_258 : f32 to vector<36x66xf32>
    %343 = arith.maximumf %337, %342 : vector<36x66xf32>
    %344 = vector.broadcast %339 : vector<36x1xf32> to vector<36x66xf32>
    %345 = arith.mulf %343, %344 : vector<36x66xf32>
    %346 = vector.broadcast %341 : vector<36x1xf32> to vector<36x66xf32>
    %347 = arith.addf %345, %346 : vector<36x66xf32>
    %c0_259 = arith.constant 0 : index
    %c0_260 = arith.constant 0 : index
    %348 = vector.load %arg14[%c0_259, %c0_260] : memref<66x1xf32, #tpu.memory_space<vmem>>, vector<66x1xf32>
    %cst_261 = arith.constant dense<0.000000e+00> : vector<36x1xf32>
    %349 = tpu.matmul %347, %348, %cst_261 {dimension_numbers = #tpu.dot_dimension_numbers<[1], [0], [0], [1], [0, 0, 1, 1], [], []>} : vector<36x66xf32>, vector<66x1xf32>, vector<36x1xf32> -> vector<36x1xf32>
    %c0_262 = arith.constant 0 : index
    %c0_263 = arith.constant 0 : index
    %350 = vector.load %arg9[%c0_262, %c0_263] : memref<20x36xf32, #tpu.memory_space<vmem>>, vector<20x36xf32>
    %cst_264 = arith.constant dense<0.000000e+00> : vector<20x1xf32>
    %351 = tpu.matmul %350, %349, %cst_264 {dimension_numbers = #tpu.dot_dimension_numbers<[1], [0], [0], [1], [0, 0, 1, 1], [], []>} : vector<20x36xf32>, vector<36x1xf32>, vector<20x1xf32> -> vector<20x1xf32>
    %352 = vector.extract_strided_slice %351 {offsets = [0, 0], sizes = [10, 1], strides = [1, 1]} : vector<20x1xf32> to vector<10x1xf32>
    %353 = vector.extract_strided_slice %351 {offsets = [10, 0], sizes = [10, 1], strides = [1, 1]} : vector<20x1xf32> to vector<10x1xf32>
    %354 = arith.maximumf %352, %353 : vector<10x1xf32>
    %355 = vector.extract_strided_slice %354 {offsets = [0, 0], sizes = [5, 1], strides = [1, 1]} : vector<10x1xf32> to vector<5x1xf32>
    %356 = vector.extract_strided_slice %354 {offsets = [5, 0], sizes = [5, 1], strides = [1, 1]} : vector<10x1xf32> to vector<5x1xf32>
    %357 = arith.maximumf %355, %356 : vector<5x1xf32>
    %358 = vector.extract_strided_slice %357 {offsets = [0, 0], sizes = [2, 1], strides = [1, 1]} : vector<5x1xf32> to vector<2x1xf32>
    %359 = vector.extract_strided_slice %357 {offsets = [2, 0], sizes = [2, 1], strides = [1, 1]} : vector<5x1xf32> to vector<2x1xf32>
    %360 = vector.extract_strided_slice %357 {offsets = [4, 0], sizes = [1, 1], strides = [1, 1]} : vector<5x1xf32> to vector<1x1xf32>
    %361 = arith.maximumf %358, %359 : vector<2x1xf32>
    %362 = vector.broadcast %360 : vector<1x1xf32> to vector<2x1xf32>
    %363 = arith.maximumf %361, %362 : vector<2x1xf32>
    %364 = vector.extract_strided_slice %363 {offsets = [0, 0], sizes = [1, 1], strides = [1, 1]} : vector<2x1xf32> to vector<1x1xf32>
    %365 = vector.extract_strided_slice %363 {offsets = [1, 0], sizes = [1, 1], strides = [1, 1]} : vector<2x1xf32> to vector<1x1xf32>
    %366 = arith.maximumf %364, %365 : vector<1x1xf32>
    %367 = vector.broadcast %366 : vector<1x1xf32> to vector<20x1xf32>
    %368 = arith.subf %351, %367 : vector<20x1xf32>
    %369 = math.exp %368 : vector<20x1xf32>
    %c0_265 = arith.constant 0 : index
    %c0_266 = arith.constant 0 : index
    %370 = vector.load %arg15[%c0_265, %c0_266] : memref<20x20xf32, #tpu.memory_space<vmem>>, vector<20x20xf32>
    %cst_267 = arith.constant dense<0.000000e+00> : vector<20x1xf32>
    %371 = tpu.matmul %370, %369, %cst_267 {dimension_numbers = #tpu.dot_dimension_numbers<[1], [0], [0], [1], [0, 0, 1, 1], [], []>} : vector<20x20xf32>, vector<20x1xf32>, vector<20x1xf32> -> vector<20x1xf32>
    %372 = math.log %371 : vector<20x1xf32>
    %373 = arith.subf %368, %372 : vector<20x1xf32>
    %c0_268 = arith.constant 0 : index
    %c0_269 = arith.constant 0 : index
    %374 = vector.load %arg16[%c0_268, %c0_269] : memref<20x1xf32, #tpu.memory_space<vmem>>, vector<20x1xf32>
    tpu.vector_store %arg16[%c0_268, %c0_269], %373 {strides = array<i32>} : memref<20x1xf32, #tpu.memory_space<vmem>>, vector<20x1xf32>,
    return
  }
  func.func @transform_0(%arg0: i32) -> (i32, i32) {
    %c0_i32 = arith.constant 0 : i32
    %c0_i32_0 = arith.constant 0 : i32
    return %arg0, %c0_i32 : i32, i32
  }
  func.func @transform_1(%arg0: i32) -> (i32, i32, i32) {
    %c0_i32 = arith.constant 0 : i32
    %c0_i32_0 = arith.constant 0 : i32
    %c0_i32_1 = arith.constant 0 : i32
    %c0_i32_2 = arith.constant 0 : i32
    return %c0_i32, %c0_i32_0, %c0_i32_1 : i32, i32, i32
  }
  func.func @transform_2(%arg0: i32) -> (i32, i32, i32) {
    %c0_i32 = arith.constant 0 : i32
    %c0_i32_0 = arith.constant 0 : i32
    %c0_i32_1 = arith.constant 0 : i32
    %c0_i32_2 = arith.constant 0 : i32
    return %c0_i32, %c0_i32_0, %c0_i32_1 : i32, i32, i32
  }
  func.func @transform_3(%arg0: i32) -> (i32, i32) {
    %c0_i32 = arith.constant 0 : i32
    %c0_i32_0 = arith.constant 0 : i32
    %c0_i32_1 = arith.constant 0 : i32
    return %c0_i32, %c0_i32_0 : i32, i32
  }
  func.func @transform_4(%arg0: i32) -> (i32, i32, i32) {
    %c0_i32 = arith.constant 0 : i32
    %c0_i32_0 = arith.constant 0 : i32
    %c0_i32_1 = arith.constant 0 : i32
    %c0_i32_2 = arith.constant 0 : i32
    return %c0_i32, %c0_i32_0, %c0_i32_1 : i32, i32, i32
  }
  func.func @transform_5(%arg0: i32) -> (i32, i32, i32) {
    %c0_i32 = arith.constant 0 : i32
    %c0_i32_0 = arith.constant 0 : i32
    %c0_i32_1 = arith.constant 0 : i32
    %c0_i32_2 = arith.constant 0 : i32
    return %c0_i32, %c0_i32_0, %c0_i32_1 : i32, i32, i32
  }
  func.func @transform_6(%arg0: i32) -> (i32, i32, i32) {
    %c0_i32 = arith.constant 0 : i32
    %c0_i32_0 = arith.constant 0 : i32
    %c0_i32_1 = arith.constant 0 : i32
    %c0_i32_2 = arith.constant 0 : i32
    return %c0_i32, %c0_i32_0, %c0_i32_1 : i32, i32, i32
  }
  func.func @transform_7(%arg0: i32) -> (i32, i32, i32) {
    %c0_i32 = arith.constant 0 : i32
    %c0_i32_0 = arith.constant 0 : i32
    %c0_i32_1 = arith.constant 0 : i32
    %c0_i32_2 = arith.constant 0 : i32
    return %c0_i32, %c0_i32_0, %c0_i32_1 : i32, i32, i32
  }
  func.func @transform_8(%arg0: i32) -> (i32, i32) {
    %c0_i32 = arith.constant 0 : i32
    %c0_i32_0 = arith.constant 0 : i32
    %c0_i32_1 = arith.constant 0 : i32
    return %c0_i32, %c0_i32_0 : i32, i32
  }
  func.func @transform_9(%arg0: i32) -> (i32, i32, i32) {
    %c0_i32 = arith.constant 0 : i32
    %c0_i32_0 = arith.constant 0 : i32
    %c0_i32_1 = arith.constant 0 : i32
    %c0_i32_2 = arith.constant 0 : i32
    return %c0_i32, %c0_i32_0, %c0_i32_1 : i32, i32, i32
  }
  func.func @transform_10(%arg0: i32) -> (i32, i32, i32) {
    %c0_i32 = arith.constant 0 : i32
    %c0_i32_0 = arith.constant 0 : i32
    %c0_i32_1 = arith.constant 0 : i32
    %c0_i32_2 = arith.constant 0 : i32
    return %c0_i32, %c0_i32_0, %c0_i32_1 : i32, i32, i32
  }
  func.func @transform_11(%arg0: i32) -> (i32, i32) {
    %c0_i32 = arith.constant 0 : i32
    %c0_i32_0 = arith.constant 0 : i32
    %c0_i32_1 = arith.constant 0 : i32
    return %c0_i32, %c0_i32_0 : i32, i32
  }
  func.func @transform_12(%arg0: i32) -> (i32, i32) {
    %c0_i32 = arith.constant 0 : i32
    %c0_i32_0 = arith.constant 0 : i32
    %c0_i32_1 = arith.constant 0 : i32
    return %c0_i32, %c0_i32_0 : i32, i32
  }
  func.func @transform_13(%arg0: i32) -> (i32, i32) {
    %c0_i32 = arith.constant 0 : i32
    %c0_i32_0 = arith.constant 0 : i32
    %c0_i32_1 = arith.constant 0 : i32
    return %c0_i32, %c0_i32_0 : i32, i32
  }
  func.func @transform_14(%arg0: i32) -> (i32, i32) {
    %c0_i32 = arith.constant 0 : i32
    %c0_i32_0 = arith.constant 0 : i32
    %c0_i32_1 = arith.constant 0 : i32
    return %c0_i32, %c0_i32_0 : i32, i32
  }
  func.func @transform_15(%arg0: i32) -> (i32, i32) {
    %c0_i32 = arith.constant 0 : i32
    %c0_i32_0 = arith.constant 0 : i32
    return %arg0, %c0_i32 : i32, i32
  }
}

</mosaic_0001>

<bundles_post_ra>
// kernel: net_forward.1
= control target key start
LH: loop header
LB: loop body
LE: loop exit
PB: predicated region body
PF: predicated region fallthrough
CT: control target
= control target key end

     0   :  { %v63_v0 = vlaneseq  ;;  %v13271_v1 = vmov 1983009808   ;;  %v17248_v9 = vmov 0.0   ;;  %s13273_s22 = smov 127   ;;  %s13275_s23 = smov 100   ;;  %v13281_v18 = vmov 0   ;;  %s17232_s0 = inlined_call_operand.vmem [shape: f32[2,784], index: 0, kind: input, shape index: {}]   ;;  %s17233_s9 = inlined_call_operand.vmem [shape: f32[6,36,1], index: 9, kind: input, shape index: {}]   ;;  %s17234_s10 = inlined_call_operand.vmem [shape: f32[6,36,1], index: 10, kind: input, shape index: {}]   ;;  %s17235_s1 = inlined_call_operand.vmem [shape: f32[9,16,2], index: 1, kind: input, shape index: {}]   ;;  %s17236_s2 = inlined_call_operand.vmem [shape: f32[9,20,16], index: 2, kind: input, shape index: {}]   ;;  %s17237_s3 = inlined_call_operand.vmem [shape: f32[24,20], index: 3, kind: input, shape index: {}]   ;;  %s17238_s11 = inlined_call_operand.vmem [shape: f32[639,144], index: 11, kind: input, shape index: {}]   ;;  %s17239_s4 = inlined_call_operand.vmem [shape: f32[9,28,24], index: 4, kind: input, shape index: {}]   ;;  %s17240_s5 = inlined_call_operand.vmem [shape: f32[9,32,28], index: 5, kind: input, shape index: {}]   ;;  %s17241_s6 = inlined_call_operand.vmem [shape: f32[9,32,32], index: 6, kind: input, shape index: {}]   ;;  %s17242_s12 = inlined_call_operand.vmem [shape: f32[66,96], index: 12, kind: input, shape index: {}]   ;;  %s17243_s7 = inlined_call_operand.vmem [shape: f32[9,36,32], index: 7, kind: input, shape index: {}]   ;;  %s17244_s13 = inlined_call_operand.vmem [shape: f32[66,1], index: 13, kind: input, shape index: {}]   ;;  %s17245_s8 = inlined_call_operand.vmem [shape: f32[20,36], index: 8, kind: input, shape index: {}]   ;;  %s17246_s14 = inlined_call_operand.vmem [shape: f32[20,20], index: 14, kind: input, shape index: {}]   ;;  %s17247_s15 = inlined_call_operand.vmem [shape: f32[20,1], index: 15, kind: output, shape index: {}]  }
   0x1   :  { %v61_v2 = vunpack.c.l.s4 %v13271_v1  ;;  %v50_v3 = vld [vmem:[%s17232_s0] sm:$0xff]  ;;  %v51_v5 = vld [vmem:[%s17232_s0 + $0x8] sm:$0x3f]  ;;  %186 = vmatprep.mubr.f32.mxu0 %v17248_v9  ;;  %269 = vmatprep.mubr.f32.mxu1 %v17248_v9  ;;  %s13274_s0 = smov 126   ;;  %s13276_s24 = smov 99   ;;  %vm96_vm0 = vcmask 1039360  }
   0x2   :  { %v13372_v4 = vshrl.u32 %v63_v0, 7  ;;  %v59_v7 = vcombine.high %v50_v3, %v50_v3  ;;  %v1733_v8 = vcombine.high %v51_v5, %v51_v5  ;;  %s13277_s25 = smov 98   ;;  %s13278_s26 = smov 72   ;;  %13200 = vset.pattern.permute.xlu1 %v13281_v18  ;;  %v2594_v19 = vld [vmem:[%s17233_s9 + $0x8] sm:$0xff]  ;;  %13201 = vset.pattern.permute.xlu0 %v13281_v18  ;;  %v2593_v20 = vld [vmem:[%s17233_s9] sm:$0xff]  ;;  %vm109_vm1 = vcmask 1041408  }
   0x3   :  { %v62_v6 = vunpack.c.0.s8 %v61_v2  ;;  %s13279_s27 = smov 71   ;;  %s13280_s28 = smov 70   ;;  %v2596_v21 = vld [vmem:[%s17234_s10 + $0x8] sm:$0xff]  ;;  %v2595_v23 = vld [vmem:[%s17234_s10] sm:$0xff]  ;;  %v11587_v28 = vld [vmem:[%s17235_s1 + $0x10] sm:$0xff]  ;;  %vm102_vm2 = vcmask 15360  }
   0x4   :  { %17253 = vst [vmem:[#allocation2_spill] sm:$0xff] %v13372_v4  ;;  %v11588_v33 = vld [vmem:[%s17235_s1 + $0x18] sm:$0xff]  ;;  %v52_v37 = vld [vmem:[%s17235_s1] sm:$0xff]  ;;  %v53_v41 = vld [vmem:[%s17235_s1 + $0x8] sm:$0xff]  ;;  %vm617_vm3 = vcmask 1031168   ;;  %vm899_vm4 = vcmask 818176  }
   0x5   :  { %v65_v10 = vsub.s32 %v62_v6, %v13372_v4  ;;  %v11613_v53 = vld [vmem:[%s17235_s1 + $0x20] sm:$0xff]  ;;  %v11614_v57 = vld [vmem:[%s17235_s1 + $0x28] sm:$0xff]  ;;  %v11627_v62 = vld [vmem:[%s17235_s1 + $0x30] sm:$0xff]  ;;  %vm1181_vm5 = vcmask 809984   ;;  %vm1463_vm6 = vcmask 801792   ;;  %vm1755_vm7 = vcmask 588800  }
   0x6   :  { %v11628_v2 = vld [vmem:[%s17235_s1 + $0x38] sm:$0xff]  ;;  %vm2040_vm8 = vcmask 580608   ;;  %vm2325_vm9 = vcmask 572416   ;;  %vm2718_vm10 = vcmask 130048   ;;  %vm5622_vm11 = vcmask 1043456   ;;  %s13283_s16 = smov 115  }
   0x7   :  { %v13380_v11 = vrot.slane %v50_v3, %v65_v10  ;;  %v13382_v12 = vrot.slane %v59_v7, %v65_v10  ;;  %v1740_v13 = vrot.slane %v1733_v8, %v65_v10  ;;  %v13394_v16 = vrot.slane %v51_v5, %v65_v10  ;;  %s13284_s17 = smov 114   ;;  %s13287_s18 = smov 102  }
   0x8   :  { %vm5612_vm12 = vcmask 162816   ;;  %vm6269_vm13 = vcmask 1046528   ;;  %vm6546_vm14 = vcmask 195584   ;;  %vm6876_vm15 = vcmask 949248  }
   0x9   :  { %84 = vrot.lane.b32.xlu1 %v13380_v11, %s13273_s22  ;;  %v13388_v14 = vcombine.high %v13380_v11, %v13380_v11  ;;  %v13392_v15 = vcombine.high %v13382_v12, %v13382_v12  ;;  %v13402_v17 = vcombine.high %v13394_v16, %v13394_v16 }
   0xb   :  { %86 = vrot.lane.b32.xlu0 %v13388_v14, %s13273_s22 }
   0xd   :  { %90 = vrot.lane.b32.xlu1 %v13392_v15, %s13273_s22 }
   0xf   :  { %88 = vrot.lane.b32.xlu0 %v13382_v12, %s13273_s22 }
  0x11   :  { %94 = vrot.lane.b32.xlu1 %v13402_v17, %s13273_s22 }
  0x13   :  { %92 = vrot.lane.b32.xlu0 %v13394_v16, %s13273_s22 }
  0x15   :  { %609 = vrot.lane.b32.xlu1 %v13382_v12, %s13274_s0 }
  0x17   :  { %607 = vrot.lane.b32.xlu0 %v13388_v14, %s13274_s0 }
  0x19   :  { %611 = vrot.lane.b32.xlu1 %v13392_v15, %s13274_s0 }
  0x1b   :  { %605 = vrot.lane.b32.xlu0 %v13380_v11, %s13274_s0 }
  0x1d   :  { %615 = vrot.lane.b32.xlu1 %v13402_v17, %s13274_s0 }
  0x1f   :  { %613 = vrot.lane.b32.xlu0 %v13394_v16, %s13274_s0 }
  0x21   :  { %891 = vrot.lane.b32.xlu1 %v13382_v12, %s13275_s23 }
  0x23   :  { %889 = vrot.lane.b32.xlu0 %v13388_v14, %s13275_s23 }
  0x25   :  { %893 = vrot.lane.b32.xlu1 %v13392_v15, %s13275_s23 }
  0x27   :  { %887 = vrot.lane.b32.xlu0 %v13380_v11, %s13275_s23 }
  0x29   :  { %897 = vrot.lane.b32.xlu1 %v13402_v17, %s13275_s23 }
  0x2b   :  { %895 = vrot.lane.b32.xlu0 %v13394_v16, %s13275_s23 }
  0x2d   :  { %1173 = vrot.lane.b32.xlu1 %v13382_v12, %s13276_s24 }
  0x2f   :  { %1171 = vrot.lane.b32.xlu0 %v13388_v14, %s13276_s24 }
  0x31   :  { %1175 = vrot.lane.b32.xlu1 %v13392_v15, %s13276_s24 }
  0x33   :  { %1169 = vrot.lane.b32.xlu0 %v13380_v11, %s13276_s24 }
  0x35   :  { %1179 = vrot.lane.b32.xlu1 %v13402_v17, %s13276_s24 }
  0x37   :  { %1177 = vrot.lane.b32.xlu0 %v13394_v16, %s13276_s24 }
  0x39   :  { %1455 = vrot.lane.b32.xlu1 %v13382_v12, %s13277_s25 }
  0x3b   :  { %1453 = vrot.lane.b32.xlu0 %v13388_v14, %s13277_s25 }
  0x3d   :  { %1457 = vrot.lane.b32.xlu1 %v13392_v15, %s13277_s25 }
  0x3f   :  { %1451 = vrot.lane.b32.xlu0 %v13380_v11, %s13277_s25 }
  0x41   :  { %1461 = vrot.lane.b32.xlu1 %v13402_v17, %s13277_s25 }
  0x43   :  { %1459 = vrot.lane.b32.xlu0 %v13394_v16, %s13277_s25 }
  0x45   :  { %1745 = vrot.lane.b32.xlu1 %v13382_v12, %s13278_s26 }
  0x47   :  { %1743 = vrot.lane.b32.xlu0 %v13388_v14, %s13278_s26 }
  0x49   :  { %1747 = vrot.lane.b32.xlu1 %v13392_v15, %s13278_s26 }
  0x4b   :  { %1741 = vrot.lane.b32.xlu0 %v13380_v11, %s13278_s26 }
  0x4d   :  { %1751 = vrot.lane.b32.xlu1 %v13402_v17, %s13278_s26 }
  0x4f   :  { %1749 = vrot.lane.b32.xlu0 %v13394_v16, %s13278_s26 }
  0x51   :  { %2028 = vrot.lane.b32.xlu1 %v13388_v14, %s13279_s27 }
  0x53   :  { %1753 = vrot.lane.b32.xlu0 %v1740_v13, %s13278_s26 }
  0x55   :  { %2026 = vrot.lane.b32.xlu1 %v13380_v11, %s13279_s27 }
  0x57   :  { %2030 = vrot.lane.b32.xlu0 %v13382_v12, %s13279_s27 }
  0x59   :  { %2034 = vrot.lane.b32.xlu1 %v13394_v16, %s13279_s27 }
  0x5b   :  { %2032 = vrot.lane.b32.xlu0 %v13392_v15, %s13279_s27 }
  0x5d   :  { %2038 = vrot.lane.b32.xlu1 %v1740_v13, %s13279_s27 }
  0x5f   :  { %2036 = vrot.lane.b32.xlu0 %v13402_v17, %s13279_s27 }
  0x61   :  { %2315 = vrot.lane.b32.xlu1 %v13382_v12, %s13280_s28 }
  0x63   :  { %2313 = vrot.lane.b32.xlu0 %v13388_v14, %s13280_s28 }
  0x65   :  { %2317 = vrot.lane.b32.xlu1 %v13392_v15, %s13280_s28 }
  0x67   :  { %2311 = vrot.lane.b32.xlu0 %v13380_v11, %s13280_s28 }
  0x69   :  { %2321 = vrot.lane.b32.xlu1 %v13402_v17, %s13280_s28 }
  0x6b   :  { %2319 = vrot.lane.b32.xlu0 %v13394_v16, %s13280_s28 }
  0x6d   :  { %2616 = vperm.xlu1 %13200, %v2594_v19  }
  0x6f   :  { %2323 = vrot.lane.b32.xlu0 %v1740_v13, %s13280_s28 }
  0x71   :  { %2638 = vperm.xlu1 %13200, %v2596_v21   ;;  %v11642_v21 = vld [vmem:[%s17235_s1 + $0x48] sm:$0xff] }
  0x73   :  { %2611 = vperm.xlu0 %13201, %v2593_v20  }
  0x75   :  { %2633 = vperm.xlu1 %13200, %v2595_v23  }
  0x7b   :  { %v85_v22 = vpop.permute.xlu1 %84 }
  0x7d   :  { %v87_v24 = vpop.permute.xlu0 %86 }
  0x7e   :  { %v97_v29 = vsel %vm96_vm0, %v85_v22, %v87_v24 }
  0x7f   :  { %v91_v25 = vpop.permute.xlu1 %90 }
  0x81   :  { %v89_v26 = vpop.permute.xlu0 %88 }
  0x82   :  { %v98_v27 = vsel %vm96_vm0, %v87_v24, %v89_v26  ;;  %v99_v34 = vsel %vm96_vm0, %v89_v26, %v91_v25  ;;  %v11655_v26 = vld [vmem:[%s17235_s1 + $0x50] sm:$0xff] }
  0x83   :  { %11589 = vmatprep.subr.msk.mxu0 %vm109_vm1, %v98_v27  ;;  %v95_v30 = vpop.permute.xlu1 %94 }
  0x84   :  { %11590 = vmatpush1.msk.msra.mxu0 %vm109_vm1, %v97_v29 }
  0x85   :  { %11591 = vmatmul.mubr.msk.f32.vlgmr.msra.gmra.mxu0 %vm102_vm2, %v11587_v28  ;;  %v93_v31 = vpop.permute.xlu0 %92 }
  0x86   :  { %v100_v32 = vsel %vm96_vm0, %v91_v25, %v93_v31  ;;  %192 = vmatprep.mubr.f32.mxu0 %v17248_v9  ;;  %v101_v39 = vsel %vm96_vm0, %v93_v31, %v95_v30 }
  0x87   :  { %11593 = vmatprep.subr.msk.mxu0 %vm109_vm1, %v100_v32  ;;  %13180 = vmatprep.subr.msk.mxu1 %vm109_vm1, %v100_v32  ;;  %v610_v35 = vpop.permute.xlu1 %609 }
  0x88   :  { %11594 = vmatpush1.msk.msra.mxu0 %vm109_vm1, %v99_v34  ;;  %13181 = vmatpush1.msk.msra.mxu1 %vm109_vm1, %v99_v34 }
  0x89   :  { %11592 = vmatmul.mubr.msk.f32.gmra.mxu0 %vm102_vm2, %v11588_v33  ;;  %v608_v36 = vpop.permute.xlu0 %607  ;;  %11596 = vmatmul.mubr.msk.f32.vlgmr.msra.gmra.mxu1 %vm102_vm2, %v11588_v33 }
  0x8a   :  { %11601 = vmatprep.subr.msk.mxu1 %vm109_vm1, %v13388_v14  ;;  %263 = vmatprep.mubr.f32.mxu0 %v17248_v9  ;;  %v619_v44 = vsel %vm617_vm3, %v608_v36, %v610_v35 }
  0x8b   :  { %11597 = vmatprep.subr.msk.mxu0 %vm109_vm1, %v95_v30  ;;  %11602 = vmatpush1.msk.msra.mxu1 %vm109_vm1, %v13380_v11  ;;  %v612_v38 = vpop.permute.xlu1 %611  ;;  %v11656_v30 = vld [vmem:[%s17235_s1 + $0x58] sm:$0xff] }
  0x8c   :  { %435 = vmatprep.mubr.f32.mxu1 %v17248_v9  ;;  %11609 = vmatprep.subr.msk.mxu1 %vm109_vm1, %v13402_v17  ;;  %v620_v47 = vsel %vm617_vm3, %v610_v35, %v612_v38  ;;  %v11641_v17 = vld [vmem:[%s17235_s1 + $0x40] sm:$0xff] }
  0x8d   :  { %v606_v40 = vpop.permute.xlu0 %605  ;;  %11595 = vmatmul.mubr.msk.f32.vlgmr.msra.gmra.mxu0 %vm102_vm2, %v11587_v28  ;;  %11603 = vmatmul.mubr.msk.f32.vlgmr.msra.gmra.mxu1 %vm102_vm2, %v52_v37 }
  0x8e   :  { %11598 = vmatpush1.msk.msra.mxu0 %vm109_vm1, %v101_v39  ;;  %340 = vmatprep.mubr.f32.mxu0 %v17248_v9  ;;  %v618_v51 = vsel %vm617_vm3, %v606_v40, %v608_v36 }
  0x8f   :  { %441 = vmatprep.mubr.f32.mxu1 %v17248_v9  ;;  %11605 = vmatprep.subr.msk.mxu0 %vm109_vm1, %v13392_v15  ;;  %v616_v42 = vpop.permute.xlu1 %615 }
  0x90   :  { %11610 = vmatpush1.msk.msra.mxu1 %vm109_vm1, %v13394_v16 }
  0x91   :  { %v614_v43 = vpop.permute.xlu0 %613  ;;  %11599 = vmatmul.mubr.msk.f32.vlgmr.msra.gmra.mxu0 %vm102_vm2, %v11587_v28  ;;  %11604 = vmatmul.mubr.msk.f32.gmra.mxu1 %vm102_vm2, %v53_v41 }
  0x92   :  { %11606 = vmatpush1.msk.msra.mxu0 %vm109_vm1, %v13382_v12  ;;  %346 = vmatprep.mubr.f32.mxu0 %v17248_v9  ;;  %v621_v45 = vsel %vm617_vm3, %v612_v38, %v614_v43  ;;  %v622_v60 = vsel %vm617_vm3, %v614_v43, %v616_v42  ;;  %v11669_v43 = vld [vmem:[%s17235_s1 + $0x60] sm:$0xff] }
  0x93   :  { %11615 = vmatprep.subr.msk.mxu0 %vm109_vm1, %v619_v44  ;;  %589 = vmatprep.mubr.f32.mxu1 %v17248_v9  ;;  %v892_v46 = vpop.permute.xlu1 %891 }
  0x94   :  { %11619 = vmatprep.subr.msk.mxu1 %vm109_vm1, %v621_v45 }
  0x95   :  { %v890_v48 = vpop.permute.xlu0 %889  ;;  %11600 = vmatmul.mubr.msk.f32.gmra.mxu0 %vm102_vm2, %v11588_v33  ;;  %11611 = vmatmul.mubr.msk.f32.vlgmr.msra.gmra.mxu1 %vm102_vm2, %v52_v37 }
  0x96   :  { %11620 = vmatpush1.msk.msra.mxu1 %vm109_vm1, %v620_v47  ;;  %512 = vmatprep.mubr.f32.mxu0 %v17248_v9  ;;  %v901_v49 = vsel %vm899_vm4, %v890_v48, %v892_v46 }
  0x97   :  { %595 = vmatprep.mubr.f32.mxu1 %v17248_v9  ;;  %11629 = vmatprep.subr.msk.mxu1 %vm109_vm1, %v901_v49  ;;  %v894_v50 = vpop.permute.xlu1 %893 }
  0x98   :  { %v902_v5 = vsel %vm899_vm4, %v892_v46, %v894_v50 }
  0x99   :  { %v888_v52 = vpop.permute.xlu0 %887  ;;  %11607 = vmatmul.mubr.msk.f32.vlgmr.msra.gmra.mxu0 %vm102_vm2, %v52_v37  ;;  %11612 = vmatmul.mubr.msk.f32.gmra.mxu1 %vm102_vm2, %v53_v41 }
  0x9a   :  { %11616 = vmatpush1.msk.msra.mxu0 %vm109_vm1, %v618_v51  ;;  %518 = vmatprep.mubr.f32.mxu0 %v17248_v9  ;;  %v900_v55 = vsel %vm899_vm4, %v888_v52, %v890_v48  ;;  %v11670_v48 = vld [vmem:[%s17235_s1 + $0x68] sm:$0xff] }
  0x9b   :  { %11623 = vmatprep.subr.msk.mxu0 %vm109_vm1, %v616_v42  ;;  %782 = vmatprep.mubr.f32.mxu1 %v17248_v9  ;;  %v898_v54 = vpop.permute.xlu1 %897 }
  0x9d   :  { %v896_v56 = vpop.permute.xlu0 %895  ;;  %11608 = vmatmul.mubr.msk.f32.gmra.mxu0 %vm102_vm2, %v53_v41  ;;  %11621 = vmatmul.mubr.msk.f32.vlgmr.msra.gmra.mxu1 %vm102_vm2, %v11613_v53 }
  0x9e   :  { %11630 = vmatpush1.msk.msra.mxu1 %vm109_vm1, %v900_v55  ;;  %705 = vmatprep.mubr.f32.mxu0 %v17248_v9  ;;  %v903_v59 = vsel %vm899_vm4, %v894_v50, %v896_v56  ;;  %v904_v0 = vsel %vm899_vm4, %v896_v56, %v898_v54 }
  0x9f   :  { %788 = vmatprep.mubr.f32.mxu1 %v17248_v9  ;;  %11637 = vmatprep.subr.msk.mxu1 %vm109_vm1, %v898_v54  ;;  %v1174_v58 = vpop.permute.xlu1 %1173  ;;  %v11683_v54 = vld [vmem:[%s17235_s1 + $0x70] sm:$0xff] }
  0xa1   :  { %v1172_v61 = vpop.permute.xlu0 %1171  ;;  %11617 = vmatmul.mubr.msk.f32.vlgmr.msra.gmra.mxu0 %vm102_vm2, %v11613_v53  ;;  %11622 = vmatmul.mubr.msk.f32.gmra.mxu1 %vm102_vm2, %v11614_v57 }
  0xa2   :  { %11624 = vmatpush1.msk.msra.mxu0 %vm109_vm1, %v622_v60  ;;  %711 = vmatprep.mubr.f32.mxu0 %v17248_v9  ;;  %v1183_v7 = vsel %vm1181_vm5, %v1172_v61, %v1174_v58 }
  0xa3   :  { %11633 = vmatprep.subr.msk.mxu0 %vm109_vm1, %v903_v59  ;;  %987 = vmatprep.mubr.f32.mxu1 %v17248_v9  ;;  %v1176_v63 = vpop.permute.xlu1 %1175 }
  0xa4   :  { %v1184_v11 = vsel %vm1181_vm5, %v1174_v58, %v1176_v63  ;;  %v11684_v58 = vld [vmem:[%s17235_s1 + $0x78] sm:$0xff] }
  0xa5   :  { %v1170_v1 = vpop.permute.xlu0 %1169  ;;  %11618 = vmatmul.mubr.msk.f32.gmra.mxu0 %vm102_vm2, %v11614_v57  ;;  %11631 = vmatmul.mubr.msk.f32.vlgmr.msra.gmra.mxu1 %vm102_vm2, %v11627_v62 }
  0xa6   :  { %11638 = vmatpush1.msk.msra.mxu1 %vm109_vm1, %v904_v0  ;;  %859 = vmatprep.mubr.f32.mxu0 %v17248_v9  ;;  %v1182_v15 = vsel %vm1181_vm5, %v1170_v1, %v1172_v61 }
  0xa7   :  { %993 = vmatprep.mubr.f32.mxu1 %v17248_v9  ;;  %v1180_v3 = vpop.permute.xlu1 %1179 }
  0xa9   :  { %v1178_v6 = vpop.permute.xlu0 %1177  ;;  %11625 = vmatmul.mubr.msk.f32.vlgmr.msra.gmra.mxu0 %vm102_vm2, %v11613_v53  ;;  %11632 = vmatmul.mubr.msk.f32.gmra.mxu1 %vm102_vm2, %v11628_v2 }
  0xaa   :  { %11634 = vmatpush1.msk.msra.mxu0 %vm109_vm1, %v902_v5  ;;  %865 = vmatprep.mubr.f32.mxu0 %v17248_v9  ;;  %v1185_v8 = vsel %vm1181_vm5, %v1176_v63, %v1178_v6  ;;  %v1186_v24 = vsel %vm1181_vm5, %v1178_v6, %v1180_v3  ;;  %v11697_v6 = vld [vmem:[%s17235_s1 + $0x80] sm:$0xff] }
  0xab   :  { %11643 = vmatprep.subr.msk.mxu0 %vm109_vm1, %v1183_v7  ;;  %1141 = vmatprep.mubr.f32.mxu1 %v17248_v9  ;;  %v1456_v10 = vpop.permute.xlu1 %1455 }
  0xac   :  { %11647 = vmatprep.subr.msk.mxu1 %vm109_vm1, %v1185_v8  ;;  %v11698_v8 = vld [vmem:[%s17235_s1 + $0x88] sm:$0xff] }
  0xad   :  { %v1454_v12 = vpop.permute.xlu0 %1453  ;;  %11626 = vmatmul.mubr.msk.f32.gmra.mxu0 %vm102_vm2, %v11614_v57  ;;  %11639 = vmatmul.mubr.msk.f32.vlgmr.msra.gmra.mxu1 %vm102_vm2, %v11627_v62 }
  0xae   :  { %11648 = vmatpush1.msk.msra.mxu1 %vm109_vm1, %v1184_v11  ;;  %1064 = vmatprep.mubr.f32.mxu0 %v17248_v9  ;;  %v1465_v13 = vsel %vm1463_vm6, %v1454_v12, %v1456_v10 }
  0xaf   :  { %1147 = vmatprep.mubr.f32.mxu1 %v17248_v9  ;;  %11657 = vmatprep.subr.msk.mxu1 %vm109_vm1, %v1465_v13  ;;  %v1458_v14 = vpop.permute.xlu1 %1457 }
  0xb0   :  { %v1466_v32 = vsel %vm1463_vm6, %v1456_v10, %v1458_v14 }
  0xb1   :  { %v1452_v16 = vpop.permute.xlu0 %1451  ;;  %11635 = vmatmul.mubr.msk.f32.vlgmr.msra.gmra.mxu0 %vm102_vm2, %v11627_v62  ;;  %11640 = vmatmul.mubr.msk.f32.gmra.mxu1 %vm102_vm2, %v11628_v2 }
  0xb2   :  { %11644 = vmatpush1.msk.msra.mxu0 %vm109_vm1, %v1182_v15  ;;  %1070 = vmatprep.mubr.f32.mxu0 %v17248_v9  ;;  %v1464_v19 = vsel %vm1463_vm6, %v1452_v16, %v1454_v12 }
  0xb3   :  { %11651 = vmatprep.subr.msk.mxu0 %vm109_vm1, %v1180_v3  ;;  %1346 = vmatprep.mubr.f32.mxu1 %v17248_v9  ;;  %v1462_v18 = vpop.permute.xlu1 %1461 }
  0xb5   :  { %v1460_v20 = vpop.permute.xlu0 %1459  ;;  %11636 = vmatmul.mubr.msk.f32.gmra.mxu0 %vm102_vm2, %v11628_v2  ;;  %11649 = vmatmul.mubr.msk.f32.vlgmr.msra.gmra.mxu1 %vm102_vm2, %v11641_v17 }
  0xb6   :  { %11658 = vmatpush1.msk.msra.mxu1 %vm109_vm1, %v1464_v19  ;;  %1269 = vmatprep.mubr.f32.mxu0 %v17248_v9  ;;  %v1467_v23 = vsel %vm1463_vm6, %v1458_v14, %v1460_v20  ;;  %v1468_v28 = vsel %vm1463_vm6, %v1460_v20, %v1462_v18 }
  0xb7   :  { %1352 = vmatprep.mubr.f32.mxu1 %v17248_v9  ;;  %11665 = vmatprep.subr.msk.mxu1 %vm109_vm1, %v1462_v18  ;;  %v1746_v22 = vpop.permute.xlu1 %1745 }
  0xb9   :  { %v1744_v25 = vpop.permute.xlu0 %1743  ;;  %11645 = vmatmul.mubr.msk.f32.vlgmr.msra.gmra.mxu0 %vm102_vm2, %v11641_v17  ;;  %11650 = vmatmul.mubr.msk.f32.gmra.mxu1 %vm102_vm2, %v11642_v21 }
  0xba   :  { %11652 = vmatpush1.msk.msra.mxu0 %vm109_vm1, %v1186_v24  ;;  %1275 = vmatprep.mubr.f32.mxu0 %v17248_v9  ;;  %v1757_v34 = vsel %vm1755_vm7, %v1744_v25, %v1746_v22 }
  0xbb   :  { %11661 = vmatprep.subr.msk.mxu0 %vm109_vm1, %v1467_v23  ;;  %1551 = vmatprep.mubr.f32.mxu1 %v17248_v9  ;;  %v1748_v27 = vpop.permute.xlu1 %1747 }
  0xbc   :  { %v1758_v37 = vsel %vm1755_vm7, %v1746_v22, %v1748_v27 }
  0xbd   :  { %v1742_v29 = vpop.permute.xlu0 %1741  ;;  %11646 = vmatmul.mubr.msk.f32.gmra.mxu0 %vm102_vm2, %v11642_v21  ;;  %11659 = vmatmul.mubr.msk.f32.vlgmr.msra.gmra.mxu1 %vm102_vm2, %v11655_v26 }
  0xbe   :  { %11666 = vmatpush1.msk.msra.mxu1 %vm109_vm1, %v1468_v28  ;;  %1423 = vmatprep.mubr.f32.mxu0 %v17248_v9  ;;  %v1756_v41 = vsel %vm1755_vm7, %v1742_v29, %v1744_v25 }
  0xbf   :  { %1557 = vmatprep.mubr.f32.mxu1 %v17248_v9  ;;  %v1752_v31 = vpop.permute.xlu1 %1751 }
  0xc1   :  { %v1750_v33 = vpop.permute.xlu0 %1749  ;;  %11653 = vmatmul.mubr.msk.f32.vlgmr.msra.gmra.mxu0 %vm102_vm2, %v11641_v17  ;;  %11660 = vmatmul.mubr.msk.f32.gmra.mxu1 %vm102_vm2, %v11656_v30 }
  0xc2   :  { %11662 = vmatpush1.msk.msra.mxu0 %vm109_vm1, %v1466_v32  ;;  %1429 = vmatprep.mubr.f32.mxu0 %v17248_v9  ;;  %v1759_v35 = vsel %vm1755_vm7, %v1748_v27, %v1750_v33  ;;  %v1760_v51 = vsel %vm1755_vm7, %v1750_v33, %v1752_v31 }
  0xc3   :  { %11671 = vmatprep.subr.msk.mxu0 %vm109_vm1, %v1757_v34  ;;  %1705 = vmatprep.mubr.f32.mxu1 %v17248_v9  ;;  %v2029_v36 = vpop.permute.xlu1 %2028 }
  0xc4   :  { %11675 = vmatprep.subr.msk.mxu1 %vm109_vm1, %v1759_v35 }
  0xc5   :  { %v1754_v38 = vpop.permute.xlu0 %1753  ;;  %11654 = vmatmul.mubr.msk.f32.gmra.mxu0 %vm102_vm2, %v11642_v21  ;;  %11667 = vmatmul.mubr.msk.f32.vlgmr.msra.gmra.mxu1 %vm102_vm2, %v11655_v26 }
  0xc6   :  { %11676 = vmatpush1.msk.msra.mxu1 %vm109_vm1, %v1758_v37  ;;  %1628 = vmatprep.mubr.f32.mxu0 %v17248_v9  ;;  %v1761_v40 = vsel %vm1755_vm7, %v1752_v31, %v1754_v38 }
  0xc7   :  { %1711 = vmatprep.mubr.f32.mxu1 %v17248_v9  ;;  %v2027_v39 = vpop.permute.xlu1 %2026 }
  0xc8   :  { %v2041_v45 = vsel %vm2040_vm8, %v2027_v39, %v2029_v36 }
  0xc9   :  { %v2031_v42 = vpop.permute.xlu0 %2030  ;;  %11663 = vmatmul.mubr.msk.f32.vlgmr.msra.gmra.mxu0 %vm102_vm2, %v11655_v26  ;;  %11668 = vmatmul.mubr.msk.f32.gmra.mxu1 %vm102_vm2, %v11656_v30 }
  0xca   :  { %11672 = vmatpush1.msk.msra.mxu0 %vm109_vm1, %v1756_v41  ;;  %1634 = vmatprep.mubr.f32.mxu0 %v17248_v9  ;;  %v2042_v44 = vsel %vm2040_vm8, %v2029_v36, %v2031_v42 }
  0xcb   :  { %11679 = vmatprep.subr.msk.mxu0 %vm109_vm1, %v1761_v40  ;;  %1921 = vmatprep.mubr.f32.mxu1 %v17248_v9  ;;  %v2035_v46 = vpop.permute.xlu1 %2034 }
  0xcc   :  { %11685 = vmatprep.subr.msk.mxu1 %vm109_vm1, %v2042_v44 }
  0xcd   :  { %v2033_v47 = vpop.permute.xlu0 %2032  ;;  %11664 = vmatmul.mubr.msk.f32.gmra.mxu0 %vm102_vm2, %v11656_v30  ;;  %11677 = vmatmul.mubr.msk.f32.vlgmr.msra.gmra.mxu1 %vm102_vm2, %v11669_v43 }
  0xce   :  { %11686 = vmatpush1.msk.msra.mxu1 %vm109_vm1, %v2041_v45  ;;  %1844 = vmatprep.mubr.f32.mxu0 %v17248_v9  ;;  %v2044_v50 = vsel %vm2040_vm8, %v2033_v47, %v2035_v46  ;;  %v2043_v60 = vsel %vm2040_vm8, %v2031_v42, %v2033_v47 }
  0xcf   :  { %1927 = vmatprep.mubr.f32.mxu1 %v17248_v9  ;;  %v2039_v49 = vpop.permute.xlu1 %2038 }
  0xd1   :  { %v2037_v52 = vpop.permute.xlu0 %2036  ;;  %11673 = vmatmul.mubr.msk.f32.vlgmr.msra.gmra.mxu0 %vm102_vm2, %v11669_v43  ;;  %11678 = vmatmul.mubr.msk.f32.gmra.mxu1 %vm102_vm2, %v11670_v48 }
  0xd2   :  { %11680 = vmatpush1.msk.msra.mxu0 %vm109_vm1, %v1760_v51  ;;  %1850 = vmatprep.mubr.f32.mxu0 %v17248_v9  ;;  %v2046_v53 = vsel %vm2040_vm8, %v2037_v52, %v2039_v49  ;;  %v2045_v55 = vsel %vm2040_vm8, %v2035_v46, %v2037_v52 }
  0xd3   :  { %11689 = vmatprep.subr.msk.mxu0 %vm109_vm1, %v2044_v50  ;;  %2129 = vmatprep.mubr.f32.mxu1 %v17248_v9  ;;  %v2316_v56 = vpop.permute.xlu1 %2315 }
  0xd4   :  { %11693 = vmatprep.subr.msk.mxu1 %vm109_vm1, %v2046_v53 }
  0xd5   :  { %v2314_v57 = vpop.permute.xlu0 %2313  ;;  %11674 = vmatmul.mubr.msk.f32.gmra.mxu0 %vm102_vm2, %v11670_v48  ;;  %11687 = vmatmul.mubr.msk.f32.vlgmr.msra.gmra.mxu1 %vm102_vm2, %v11683_v54 }
  0xd6   :  { %11694 = vmatpush1.msk.msra.mxu1 %vm109_vm1, %v2045_v55  ;;  %1998 = vmatprep.mubr.f32.mxu0 %v17248_v9  ;;  %v2327_v59 = vsel %vm2325_vm9, %v2314_v57, %v2316_v56 }
  0xd7   :  { %2135 = vmatprep.mubr.f32.mxu1 %v17248_v9  ;;  %v2318_v62 = vpop.permute.xlu1 %2317 }
  0xd8   :  { %v2328_v0 = vsel %vm2325_vm9, %v2316_v56, %v2318_v62 }
  0xd9   :  { %v2312_v61 = vpop.permute.xlu0 %2311  ;;  %11681 = vmatmul.mubr.msk.f32.vlgmr.msra.gmra.mxu0 %vm102_vm2, %v11669_v43  ;;  %11688 = vmatmul.mubr.msk.f32.gmra.mxu1 %vm102_vm2, %v11684_v58 }
  0xda   :  { %11690 = vmatpush1.msk.msra.mxu0 %vm109_vm1, %v2043_v60  ;;  %2004 = vmatprep.mubr.f32.mxu0 %v17248_v9  ;;  %v2326_v2 = vsel %vm2325_vm9, %v2312_v61, %v2314_v57 }
  0xdb   :  { %11699 = vmatprep.subr.msk.mxu0 %vm109_vm1, %v2327_v59  ;;  %2283 = vmatprep.mubr.f32.mxu1 %v17248_v9  ;;  %v2322_v3 = vpop.permute.xlu1 %2321 }
  0xdd   :  { %v2320_v63 = vpop.permute.xlu0 %2319  ;;  %11682 = vmatmul.mubr.msk.f32.gmra.mxu0 %vm102_vm2, %v11670_v48  ;;  %11695 = vmatmul.mubr.msk.f32.vlgmr.msra.gmra.mxu1 %vm102_vm2, %v11683_v54 }
  0xde   :  { %v2329_v1 = vsel %vm2325_vm9, %v2318_v62, %v2320_v63  ;;  %2206 = vmatprep.mubr.f32.mxu0 %v17248_v9  ;;  %2289 = vmatprep.mubr.f32.mxu1 %v17248_v9  ;;  %v2330_v10 = vsel %vm2325_vm9, %v2320_v63, %v2322_v3 }
  0xdf   :  { %11703 = vmatprep.subr.msk.mxu1 %vm109_vm1, %v2329_v1 }
  0xe0   :  { %11704 = vmatpush1.msk.msra.mxu1 %vm109_vm1, %v2328_v0 }
  0xe1   :  { %11691 = vmatmul.mubr.msk.f32.vlgmr.msra.gmra.mxu0 %vm102_vm2, %v11683_v54  ;;  %11696 = vmatmul.mubr.msk.f32.gmra.mxu1 %vm102_vm2, %v11684_v58  ;;  %v2324_v5 = vpop.permute.xlu0 %2323 }
  0xe2   :  { %11700 = vmatpush1.msk.msra.mxu0 %vm109_vm1, %v2326_v2  ;;  %2212 = vmatprep.mubr.f32.mxu0 %v17248_v9  ;;  %v2331_v7 = vsel %vm2325_vm9, %v2322_v3, %v2324_v5 }
  0xe3   :  { %2491 = vmatprep.mubr.f32.mxu1 %v17248_v9  ;;  %11707 = vmatprep.subr.msk.mxu0 %vm109_vm1, %v2331_v7 }
  0xe5   :  { %11692 = vmatmul.mubr.msk.f32.gmra.mxu0 %vm102_vm2, %v11684_v58  ;;  %11705 = vmatmul.mubr.msk.f32.vlgmr.msra.gmra.mxu1 %vm102_vm2, %v11697_v6 }
  0xe6   :  { %2414 = vmatprep.mubr.f32.mxu0 %v17248_v9  ;;  %2497 = vmatprep.mubr.f32.mxu1 %v17248_v9 }
  0xe9   :  { %11701 = vmatmul.mubr.msk.f32.vlgmr.msra.gmra.mxu0 %vm102_vm2, %v11697_v6  ;;  %11706 = vmatmul.mubr.msk.f32.gmra.mxu1 %vm102_vm2, %v11698_v8 }
  0xea   :  { %11708 = vmatpush1.msk.msra.mxu0 %vm109_vm1, %v2330_v10  ;;  %2420 = vmatprep.mubr.f32.mxu0 %v17248_v9 }
  0xeb   :  { %2792 = vmatprep.mubr.f32.mxu1 %v17248_v9 }
  0xed   :  { %11702 = vmatmul.mubr.msk.f32.gmra.mxu0 %vm102_vm2, %v11698_v8 }
  0xee   :  { %2568 = vmatprep.mubr.f32.mxu0 %v17248_v9 }
  0xf1   :  { %11709 = vmatmul.mubr.msk.f32.vlgmr.msra.gmra.mxu0 %vm102_vm2, %v11697_v6 }
  0xf2   :  { %2574 = vmatprep.mubr.f32.mxu0 %v17248_v9 }
  0xf5   :  { %11710 = vmatmul.mubr.msk.f32.gmra.mxu0 %vm102_vm2, %v11698_v8  ;;  %vm7126_vm2 = vcmask 932864  }
  0xf6   :  { %2875 = vmatprep.mubr.f32.mxu0 %v17248_v9 }
 0x145   :  { %v188_v11 = vpop.f32.mrf.mxu0 }
 0x147   :  { %v13776_v12 = vpop.f32.mrf.mxu0 }
 0x149   :  { %v194_v13 = vpop.f32.mrf.mxu0  ;;  %v271_v14 = vpop.f32.mrf.mxu1 }
 0x14b   :  { %v13778_v15 = vpop.f32.mrf.mxu0  ;;  %v13780_v16 = vpop.f32.mrf.mxu1 }
 0x14d   :  { %v13782_v17 = vpop.f32.mrf.mxu0  ;;  %v437_v18 = vpop.f32.mrf.mxu1 }
 0x14e   :  { %v438_v19 = vadd.f32 %v437_v18, %v188_v11 }
 0x14f   :  { %v13784_v20 = vpop.f32.mrf.mxu0  ;;  %v13786_v21 = vpop.f32.mrf.mxu1 }
 0x151   :  { %v342_v22 = vpop.f32.mrf.mxu0  ;;  %v443_v23 = vpop.f32.mrf.mxu1 }
 0x152   :  { %v444_v24 = vadd.f32 %v443_v23, %v194_v13 }
 0x153   :  { %v13788_v25 = vpop.f32.mrf.mxu0  ;;  %v13790_v26 = vpop.f32.mrf.mxu1 }
 0x155   :  { %v348_v27 = vpop.f32.mrf.mxu0  ;;  %v591_v28 = vpop.f32.mrf.mxu1 }
 0x156   :  { %v592_v29 = vadd.f32 %v591_v28, %v342_v22 }
 0x157   :  { %v13792_v30 = vpop.f32.mrf.mxu0  ;;  %v13794_v31 = vpop.f32.mrf.mxu1 }
 0x158   :  { %17254 = vst [vmem:[#allocation3_spill] sm:$0xff] %v13792_v30 }
 0x159   :  { %v13796_v32 = vpop.f32.mrf.mxu0  ;;  %v597_v33 = vpop.f32.mrf.mxu1 }
 0x15a   :  { %v598_v34 = vadd.f32 %v597_v33, %v348_v27 }
 0x15b   :  { %v13798_v35 = vpop.f32.mrf.mxu0  ;;  %v13800_v36 = vpop.f32.mrf.mxu1 }
 0x15c   :  { %17255 = vst [vmem:[#allocation4_spill] sm:$0xff] %v13800_v36 }
 0x15d   :  { %v520_v37 = vpop.f32.mrf.mxu0  ;;  %v13802_v38 = vpop.f32.mrf.mxu1 }
 0x15e   :  { %v521_v39 = vadd.f32 %v520_v37, %v271_v14 }
 0x15f   :  { %v13804_v40 = vpop.f32.mrf.mxu0  ;;  %v13806_v41 = vpop.f32.mrf.mxu1 }
 0x161   :  { %v707_v42 = vpop.f32.mrf.mxu0  ;;  %v790_v43 = vpop.f32.mrf.mxu1 }
 0x162   :  { %v872_v44 = vadd.f32 %v707_v42, %v438_v19  ;;  %v13808_v45 = vadd.f32 %v790_v43, %v521_v39 }
 0x163   :  { %v13810_v46 = vpop.f32.mrf.mxu0  ;;  %v13812_v47 = vpop.f32.mrf.mxu1 }
 0x165   :  { %v713_v48 = vpop.f32.mrf.mxu0  ;;  %v989_v49 = vpop.f32.mrf.mxu1 }
 0x166   :  { %v878_v50 = vadd.f32 %v713_v48, %v444_v24  ;;  %v13814_v51 = vadd.f32 %v989_v49, %v872_v44 }
 0x167   :  { %v13816_v52 = vpop.f32.mrf.mxu0  ;;  %v13818_v53 = vpop.f32.mrf.mxu1 }
 0x169   :  { %v861_v54 = vpop.f32.mrf.mxu0  ;;  %v995_v55 = vpop.f32.mrf.mxu1 }
 0x16a   :  { %v876_v56 = vadd.f32 %v861_v54, %v592_v29  ;;  %v13820_v57 = vadd.f32 %v995_v55, %v878_v50 }
 0x16b   :  { %v13822_v58 = vpop.f32.mrf.mxu0  ;;  %v13824_v59 = vpop.f32.mrf.mxu1 }
 0x16d   :  { %v867_v60 = vpop.f32.mrf.mxu0  ;;  %v1143_v61 = vpop.f32.mrf.mxu1 }
 0x16e   :  { %v882_v62 = vadd.f32 %v867_v60, %v598_v34  ;;  %v13826_v63 = vadd.f32 %v1143_v61, %v876_v56 }
 0x16f   :  { %v13828_v0 = vpop.f32.mrf.mxu0  ;;  %v13830_v1 = vpop.f32.mrf.mxu1 }
 0x170   :  { %17256 = vst [vmem:[#allocation5_spill] sm:$0xff] %v13826_v63  ;;  %17257 = vst [vmem:[#allocation6_spill] sm:$0xff] %v13828_v0 }
 0x171   :  { %v1066_v2 = vpop.f32.mrf.mxu0  ;;  %v1149_v3 = vpop.f32.mrf.mxu1 }
 0x172   :  { %v13832_v5 = vadd.f32 %v1149_v3, %v882_v62 }
 0x173   :  { %v1068_v6 = vpop.f32.mrf.mxu0  ;;  %v13834_v7 = vpop.f32.mrf.mxu1 }
 0x174   :  { %17258 = vst [vmem:[#allocation7_spill] sm:$0xff] %v13832_v5  ;;  %17259 = vst [vmem:[#allocation8_spill] sm:$0xff] %v13834_v7 }
 0x175   :  { %v1072_v8 = vpop.f32.mrf.mxu0  ;;  %v1348_v10 = vpop.f32.mrf.mxu1 }
 0x177   :  { %v1074_v11 = vpop.f32.mrf.mxu0  ;;  %v1350_v13 = vpop.f32.mrf.mxu1 }
 0x179   :  { %v13836_v14 = vpop.f32.mrf.mxu0  ;;  %v1354_v18 = vpop.f32.mrf.mxu1 }
 0x17b   :  { %v13838_v19 = vpop.f32.mrf.mxu0  ;;  %v1356_v22 = vpop.f32.mrf.mxu1 }
 0x17d   :  { %v13840_v23 = vpop.f32.mrf.mxu0  ;;  %v13842_v24 = vpop.f32.mrf.mxu1 }
 0x17f   :  { %v13844_v27 = vpop.f32.mrf.mxu0  ;;  %v13846_v28 = vpop.f32.mrf.mxu1 }
 0x181   :  { %v13848_v29 = vpop.f32.mrf.mxu0  ;;  %v13850_v33 = vpop.f32.mrf.mxu1 }
 0x182   :  { %17260 = vst [vmem:[#allocation9_spill] sm:$0xff] %v13848_v29 }
 0x183   :  { %v13852_v34 = vpop.f32.mrf.mxu0  ;;  %v13854_v37 = vpop.f32.mrf.mxu1 }
 0x184   :  { %17261 = vst [vmem:[#allocation10_spill] sm:$0xff] %v13852_v34 }
 0x185   :  { %v13856_v39 = vpop.f32.mrf.mxu0  ;;  %v13858_v42 = vpop.f32.mrf.mxu1 }
 0x186   :  { %17262 = vst [vmem:[#allocation11_spill] sm:$0xff] %v13856_v39  ;;  %17263 = vst [vmem:[#allocation12_spill] sm:$0xff] %v13858_v42  ;;  %v517_v42 = vadd.f32 %v13798_v35, %v13784_v20  ;;  %v523_v20 = vadd.f32 %v13804_v40, %v13780_v16 }
 0x187   :  { %v13860_v43 = vpop.f32.mrf.mxu0  ;;  %v13862_v44 = vpop.f32.mrf.mxu1 }
 0x188   :  { %17264 = vst [vmem:[#allocation13_spill] sm:$0xff] %v13860_v43  ;;  %17265 = vst [vmem:[#allocation14_spill] sm:$0xff] %v13862_v44  ;;  %v875_v29 = vadd.f32 %v13806_v41, %v517_v42 }
 0x189   :  { %v1630_v48 = vpop.f32.mrf.mxu0  ;;  %v13864_v49 = vpop.f32.mrf.mxu1 }
 0x18a   :  { %17266 = vst [vmem:[#allocation15_spill] sm:$0xff] %v13864_v49 }
 0x18b   :  { %v1632_v50 = vpop.f32.mrf.mxu0  ;;  %v13866_v54 = vpop.f32.mrf.mxu1 }
 0x18c   :  { %17267 = vst [vmem:[#allocation16_spill] sm:$0xff] %v13866_v54  ;;  %v515_v54 = vadd.f32 %v13796_v32, %v13782_v17  ;;  %v1157_v17 = vadd.f32 %v1068_v6, %v875_v29 }
 0x18d   :  { %v1636_v55 = vpop.f32.mrf.mxu0  ;;  %v1923_v56 = vpop.f32.mrf.mxu1 }
 0x18e   :  { %v874_v39 = vadd.f32 %v13802_v38, %v515_v54  ;;  %v1162_v54 = vadd.f32 %v1072_v8, %v13808_v45 }
 0x18f   :  { %v1638_v60 = vpop.f32.mrf.mxu0  ;;  %v1925_v61 = vpop.f32.mrf.mxu1 }
 0x190   :  { %v1156_v63 = vadd.f32 %v1066_v2, %v874_v39  ;;  %v881_v2 = vadd.f32 %v13812_v47, %v523_v20  ;;  %v1444_v6 = vadd.f32 %v1354_v18, %v1162_v54  ;;  %v446_v20 = vadd.f32 %v13790_v26, %v13778_v15 }
 0x191   :  { %v13868_v62 = vpop.f32.mrf.mxu0  ;;  %v1929_v3 = vpop.f32.mrf.mxu1 }
 0x192   :  { %v1438_v32 = vadd.f32 %v1348_v10, %v1156_v63  ;;  %v1163_v29 = vadd.f32 %v1074_v11, %v881_v2  ;;  %v1726_v16 = vadd.f32 %v1636_v55, %v1444_v6  ;;  %v1442_v11 = vadd.f32 %v13840_v23, %v13820_v57 }
 0x193   :  { %v13870_v9 = vpop.f32.mrf.mxu0  ;;  %v1931_v4 = vpop.f32.mrf.mxu1  ;;  %v440_v23 = vadd.f32 %v13786_v21, %v13776_v12 }
 0x194   :  { %v1720_v41 = vadd.f32 %v1630_v48, %v1438_v32  ;;  %v1445_v45 = vadd.f32 %v1356_v22, %v1163_v29  ;;  %v2019_v48 = vadd.f32 %v1929_v3, %v1726_v16  ;;  %v13914_v32 = vpop.permute.xlu0 %2611  ;;  %v1436_v22 = vadd.f32 %v13836_v14, %v13814_v51 }
 0x195   :  { %v13872_v7 = vpop.f32.mrf.mxu0  ;;  %v13874_v43 = vpop.f32.mrf.mxu1  ;;  %v1724_v54 = vadd.f32 %v13850_v33, %v1442_v11 }
 0x196   :  { %v2013_v10 = vadd.f32 %v1923_v56, %v1720_v41  ;;  %v1727_v18 = vadd.f32 %v1638_v60, %v1445_v45 }
 0x197   :  { %v13876_v0 = vpop.f32.mrf.mxu0  ;;  %v13878_v36 = vpop.f32.mrf.mxu1  ;;  %v2017_v51 = vadd.f32 %v13872_v7, %v1724_v54 }
 0x198   :  { %17268 = vst [vmem:[#allocation17_spill] sm:$0xff] %v13878_v36  ;;  %v2020_v3 = vadd.f32 %v1931_v4, %v1727_v18  ;;  %v1718_v4 = vadd.f32 %v13842_v24, %v1436_v22  ;;  %v17278_v22 = vld [vmem:[#allocation9_spill] sm:$0xff] }
 0x199   :  { %v13882_v30 = vpop.f32.mrf.mxu0  ;;  %v13884_v49 = vpop.f32.mrf.mxu1 }
 0x19a   :  { %17269 = vst [vmem:[#allocation18_spill] sm:$0xff] %v13882_v30  ;;  %v13898_v30 = vpop.permute.xlu1 %2616  ;;  %v2011_v21 = vadd.f32 %v13868_v62, %v1718_v4 }
 0x19b   :  { %v13889_v5 = vpop.f32.mrf.mxu0  ;;  %v13891_v44 = vpop.f32.mrf.mxu1 }
 0x19c   :  { %17270 = vst [vmem:[#allocation19_spill] sm:$0xff] %v13889_v5  ;;  %v1439_v5 = vadd.f32 %v1350_v13, %v1157_v17 }
 0x19d   :  { %v13894_v34 = vpop.f32.mrf.mxu0  ;;  %v13896_v36 = vpop.f32.mrf.mxu1 }
 0x19e   :  { %17271 = vst [vmem:[#allocation20_spill] sm:$0xff] %v13894_v34  ;;  %17272 = vst [vmem:[#allocation21_spill] sm:$0xff] %v13896_v36  ;;  %v1721_v63 = vadd.f32 %v1632_v50, %v1439_v5 }
 0x19f   :  { %v13902_v35 = vpop.f32.mrf.mxu0  ;;  %v13904_v38 = vpop.f32.mrf.mxu1 }
 0x1a0   :  { %17273 = vst [vmem:[#allocation22_spill] sm:$0xff] %v13902_v35  ;;  %17274 = vst [vmem:[#allocation23_spill] sm:$0xff] %v13904_v38  ;;  %v2014_v40 = vadd.f32 %v1925_v61, %v1721_v63  ;;  %v13912_v35 = vpop.permute.xlu1 %2638  ;;  %v873_v63 = vadd.f32 %v13810_v46, %v440_v23  ;;  %v17282_v23 = vld [vmem:[#allocation12_spill] sm:$0xff] }
 0x1a1   :  { %v2208_v39 = vpop.f32.mrf.mxu0  ;;  %v13908_v42 = vpop.f32.mrf.mxu1 }
 0x1a2   :  { %v2298_v38 = vadd.f32 %v2208_v39, %v2013_v10  ;;  %v879_v39 = vadd.f32 %v13816_v52, %v446_v20  ;;  %v2302_v52 = vadd.f32 %v13884_v49, %v2017_v51  ;;  %v17277_v20 = vld [vmem:[#allocation5_spill] sm:$0xff] }
 0x1a3   :  { %v2210_v36 = vpop.f32.mrf.mxu0  ;;  %v13910_v34 = vpop.f32.mrf.mxu1 }
 0x1a4   :  { %v2299_v47 = vadd.f32 %v2210_v36, %v2014_v40  ;;  %v13923_v60 = vpop.permute.xlu1 %2633  ;;  %v1161_v10 = vadd.f32 %v13824_v59, %v879_v39  ;;  %v1155_v40 = vadd.f32 %v13818_v53, %v873_v63  ;;  %v2296_v59 = vadd.f32 %v13874_v43, %v2011_v21 }
 0x1a5   :  { %v2214_v8 = vpop.f32.mrf.mxu0  ;;  %v2493_v13 = vpop.f32.mrf.mxu1  ;;  %v594_v53 = vadd.f32 %v13794_v31, %v13788_v25 }
 0x1a6   :  { %v2583_v17 = vadd.f32 %v2493_v13, %v2298_v38  ;;  %v2304_v56 = vadd.f32 %v2214_v8, %v2019_v48  ;;  %v1443_v46 = vadd.f32 %v13844_v27, %v1161_v10  ;;  %v1437_v62 = vadd.f32 %v13838_v19, %v1155_v40  ;;  %v17285_v10 = vld [vmem:[#allocation18_spill] sm:$0xff] }
 0x1a7   :  { %v2216_v5 = vpop.f32.mrf.mxu0  ;;  %v2495_v50 = vpop.f32.mrf.mxu1  ;;  %v877_v19 = vadd.f32 %v13822_v58, %v594_v53 }
 0x1a8   :  { %v2599_v55 = vmax.f32 %v2583_v17, 0.0  ;;  %v2584_v61 = vadd.f32 %v2495_v50, %v2299_v47  ;;  %v2305_v15 = vadd.f32 %v2216_v5, %v2020_v3  ;;  %v1725_v8 = vadd.f32 %v13854_v37, %v1443_v46  ;;  %v17279_v3 = vld [vmem:[#allocation14_spill] sm:$0xff]  ;;  %v17289_v46 = vld [vmem:[#allocation20_spill] sm:$0xff] }
 0x1a9   :  { %v2416_v36 = vpop.f32.mrf.mxu0  ;;  %v2499_v38 = vpop.f32.mrf.mxu1  ;;  %v1719_v27 = vadd.f32 %v13846_v28, %v1437_v62  ;;  %v1159_v31 = vadd.f32 %v13830_v1, %v877_v19  ;;  %v1440_v1 = vadd.f32 %v17278_v22, %v17277_v20  ;;  %v17292_v19 = vld [vmem:[#allocation8_spill] sm:$0xff] }
 0x1aa   :  { %v2600_v41 = vmax.f32 %v2584_v61, 0.0  ;;  %v2621_v2 = vmul.f32 %v13914_v32, %v2599_v55  ;;  %v2589_v57 = vadd.f32 %v2499_v38, %v2304_v56  ;;  %v2581_v13 = vadd.f32 %v2416_v36, %v2296_v59 }
 0x1ab   :  { %v2418_v26 = vpop.f32.mrf.mxu0  ;;  %v2501_v6 = vpop.f32.mrf.mxu1  ;;  %v2018_v43 = vadd.f32 %v13876_v0, %v1725_v8  ;;  %v2012_v18 = vadd.f32 %v13870_v9, %v1719_v27  ;;  %v17275_v0 = vld [vmem:[#allocation17_spill] sm:$0xff]  ;;  %v17276_v9 = vld [vmem:[#allocation10_spill] sm:$0xff]  ;;  %v1722_v39 = vadd.f32 %v17282_v23, %v1440_v1 }
 0x1ac   :  { %v2622_v14 = vmul.f32 %v13914_v32, %v2600_v41  ;;  %v13933_v33 = vadd.f32 %v13923_v60, %v2621_v2  ;;  %v2590_v29 = vadd.f32 %v2501_v6, %v2305_v15  ;;  %v2605_v24 = vmax.f32 %v2589_v57, 0.0  ;;  %v17280_v41 = vld [vmem:[#allocation7_spill] sm:$0xff] }
 0x1ad   :  { %v2422_v12 = vpop.f32.mrf.mxu0  ;;  %v2303_v5 = vadd.f32 %v13891_v44, %v2018_v43  ;;  %v2597_v50 = vmax.f32 %v2581_v13, 0.0  ;;  %v2297_v28 = vadd.f32 %v17275_v0, %v2012_v18  ;;  %v1441_v58 = vadd.f32 %v17276_v9, %v1159_v31  ;;  %v17281_v2 = vld [vmem:[#allocation11_spill] sm:$0xff]  ;;  %v17293_v31 = vld [vmem:[#allocation13_spill] sm:$0xff] }
 0x1ae   :  { %v13940_v16 = vadd.f32 %v13923_v60, %v2622_v14  ;;  %2676 = vrot.lane.b32.xlu0 %v13933_v33, %s13273_s22  ;;  %v2606_v7 = vmax.f32 %v2590_v29, 0.0  ;;  %v2587_v45 = vadd.f32 %v2422_v12, %v2302_v52  ;;  %v2627_v48 = vmul.f32 %v13898_v30, %v2605_v24  ;;  %v17283_v15 = vld [vmem:[#allocation19_spill] sm:$0xff] }
 0x1af   :  { %v2424_v37 = vpop.f32.mrf.mxu0  ;;  %v2619_v44 = vmul.f32 %v13914_v32, %v2597_v50  ;;  %v2582_v55 = vadd.f32 %v2418_v26, %v2297_v28  ;;  %v1723_v36 = vadd.f32 %v17279_v3, %v1441_v58  ;;  %v1446_v57 = vadd.f32 %v17281_v2, %v17280_v41  ;;  %v17284_v14 = vld [vmem:[#allocation15_spill] sm:$0xff]  ;;  %v17294_v28 = vld [vmem:[#allocation16_spill] sm:$0xff]  ;;  %v17295_v58 = vld [vmem:[#allocation22_spill] sm:$0xff] }
 0x1b0   :  { %2678 = vrot.lane.b32.xlu1 %v13940_v16, %s13273_s22  ;;  %v2628_v49 = vmul.f32 %v13898_v30, %v2606_v7  ;;  %v2603_v17 = vmax.f32 %v2587_v45, 0.0  ;;  %v13968_v25 = vadd.f32 %v13912_v35, %v2627_v48  ;;  %v2588_v56 = vadd.f32 %v2424_v37, %v2303_v5  ;;  %v17286_v12 = vld [vmem:[#allocation23_spill] sm:$0xff]  ;;  %v17288_v7 = vld [vmem:[#allocation4_spill] sm:$0xff]  ;;  %v17290_v45 = vld [vmem:[#allocation21_spill] sm:$0xff] }
 0x1b1   :  { %v2570_v61 = vpop.f32.mrf.mxu0  ;;  %v2016_v26 = vadd.f32 %v17283_v15, %v1723_v36  ;;  %v13994_v6 = vadd.f32 %v13923_v60, %v2619_v44  ;;  %v2598_v4 = vmax.f32 %v2582_v55, 0.0  ;;  %v1728_v63 = vadd.f32 %v17284_v14, %v1446_v57  ;;  %v17287_v24 = vld [vmem:[#allocation3_spill] sm:$0xff]  ;;  %v17291_v48 = vld [vmem:[#allocation6_spill] sm:$0xff] }
 0x1b2   :  { %3243 = vrot.lane.b32.xlu0 %v13933_v33, %s13274_s0  ;;  %v13960_v47 = vadd.f32 %v13912_v35, %v2628_v49  ;;  %v2625_v11 = vmul.f32 %v13898_v30, %v2603_v17  ;;  %v2604_v54 = vmax.f32 %v2588_v56, 0.0  ;;  %v2015_v29 = vadd.f32 %v17285_v10, %v1722_v39 }
 0x1b3   :  { %v2572_v51 = vpop.f32.mrf.mxu0  ;;  %v2301_v21 = vadd.f32 %v17286_v12, %v2016_v26  ;;  %v600_v40 = vadd.f32 %v17288_v7, %v17287_v24  ;;  %v2021_v59 = vadd.f32 %v17289_v46, %v1728_v63  ;;  %v2620_v62 = vmul.f32 %v13914_v32, %v2598_v4  ;;  %v11711_v24 = vld [vmem:[%s17236_s2 + $0x18] sm:$0xff] }
 0x1b4   :  { %3245 = vrot.lane.b32.xlu1 %v13940_v16, %s13274_s0  ;;  %v13985_v38 = vadd.f32 %v13912_v35, %v2625_v11  ;;  %v2626_v52 = vmul.f32 %v13898_v30, %v2604_v54  ;;  %v2300_v49 = vadd.f32 %v17290_v45, %v2015_v29  ;;  %v17296_v46 = vmov 0.0  }
 0x1b5   :  { %v2586_v8 = vadd.f32 %v2572_v51, %v2301_v21  ;;  %v2576_v13 = vpop.f32.mrf.mxu0  ;;  %v883_v53 = vadd.f32 %v17291_v48, %v600_v40  ;;  %v2306_v27 = vadd.f32 %v13908_v42, %v2021_v59  ;;  %v14020_v18 = vadd.f32 %v13923_v60, %v2620_v62  ;;  %v14197_v59 = vld [vmem:[%s17236_s2 + $0x20] sm:$0xff]  ;;  %v14211_v62 = vld [vmem:[%s17236_s2 + $0x28] sm:$0xf] }
 0x1b6   :  { %2690 = vrot.lane.b32.xlu0 %v13960_v47, %s13273_s22  ;;  %v14014_v43 = vadd.f32 %v13912_v35, %v2626_v52  ;;  %v2585_v17 = vadd.f32 %v2570_v61, %v2300_v49 }
 0x1b7   :  { %v1165_v37 = vadd.f32 %v17292_v19, %v883_v53  ;;  %v2602_v5 = vmax.f32 %v2586_v8, 0.0  ;;  %v2591_v50 = vadd.f32 %v2576_v13, %v2306_v27  ;;  %v2578_v61 = vpop.f32.mrf.mxu0 }
 0x1b8   :  { %2688 = vrot.lane.b32.xlu1 %v13968_v25, %s13273_s22  ;;  %v2601_v42 = vmax.f32 %v2585_v17, 0.0 }
 0x1b9   :  { %v1447_v0 = vadd.f32 %v17293_v31, %v1165_v37  ;;  %v2624_v56 = vmul.f32 %v13914_v32, %v2602_v5  ;;  %v2607_v9 = vmax.f32 %v2591_v50, 0.0 }
 0x1ba   :  { %3257 = vrot.lane.b32.xlu0 %v13960_v47, %s13274_s0  ;;  %v2623_v55 = vmul.f32 %v13914_v32, %v2601_v42 }
 0x1bb   :  { %v1729_v11 = vadd.f32 %v17294_v28, %v1447_v0  ;;  %v14037_v22 = vadd.f32 %v13923_v60, %v2624_v56  ;;  %v2629_v1 = vmul.f32 %v13898_v30, %v2607_v9  ;;  %v2653_v56 = vld [vmem:[%s17236_s2] sm:$0xff] }
 0x1bc   :  { %3255 = vrot.lane.b32.xlu1 %v13968_v25, %s13274_s0  ;;  %v14043_v3 = vadd.f32 %v13923_v60, %v2623_v55 }
 0x1bd   :  { %v2022_v44 = vadd.f32 %v17295_v58, %v1729_v11  ;;  %v14048_v32 = vadd.f32 %v13912_v35, %v2629_v1  ;;  %v2655_v1 = vld [vmem:[%s17236_s2 + $0x10] sm:$0xf] }
 0x1be   :  { %2684 = vrot.lane.b32.xlu0 %v13985_v38, %s13273_s22 }
 0x1bf   :  { %v2307_v20 = vadd.f32 %v13910_v34, %v2022_v44 }
 0x1c0   :  { %2672 = vrot.lane.b32.xlu1 %v13994_v6, %s13273_s22 }
 0x1c1   :  { %v2592_v36 = vadd.f32 %v2578_v61, %v2307_v20  ;;  %v2654_v61 = vld [vmem:[%s17236_s2 + $0x8] sm:$0xff] }
 0x1c2   :  { %3251 = vrot.lane.b32.xlu0 %v13985_v38, %s13274_s0 }
 0x1c3   :  { %v2608_v34 = vmax.f32 %v2592_v36, 0.0 }
 0x1c4   :  { %3239 = vrot.lane.b32.xlu1 %v13994_v6, %s13274_s0 }
 0x1c5   :  { %v2630_v60 = vmul.f32 %v13898_v30, %v2608_v34 }
 0x1c6   :  { %2686 = vrot.lane.b32.xlu0 %v14014_v43, %s13273_s22 }
 0x1c7   :  { %v14062_v54 = vadd.f32 %v13912_v35, %v2630_v60 }
 0x1c8   :  { %2674 = vrot.lane.b32.xlu1 %v14020_v18, %s13273_s22 }
 0x1ca   :  { %3253 = vrot.lane.b32.xlu0 %v14014_v43, %s13274_s0 }
 0x1cc   :  { %3241 = vrot.lane.b32.xlu1 %v14020_v18, %s13274_s0 }
 0x1ce   :  { %3579 = vrot.lane.b32.xlu0 %v14014_v43, %s13275_s23 }
 0x1d0   :  { %2682 = vrot.lane.b32.xlu1 %v14037_v22, %s13273_s22 }
 0x1d2   :  { %2680 = vrot.lane.b32.xlu0 %v14043_v3, %s13273_s22 }
 0x1d4   :  { %2692 = vrot.lane.b32.xlu1 %v14048_v32, %s13273_s22 }
 0x1d6   :  { %3247 = vrot.lane.b32.xlu0 %v14043_v3, %s13274_s0 }
 0x1d8   :  { %3581 = vrot.lane.b32.xlu1 %v13968_v25, %s13275_s23 }
 0x1da   :  { %3567 = vrot.lane.b32.xlu0 %v14020_v18, %s13275_s23 }
 0x1dc   :  { %3577 = vrot.lane.b32.xlu1 %v13985_v38, %s13275_s23 }
 0x1de   :  { %2694 = vrot.lane.b32.xlu0 %v14062_v54, %s13273_s22 }
 0x1e0   :  { %3569 = vrot.lane.b32.xlu1 %v13933_v33, %s13275_s23 }
 0x1e2   :  { %3249 = vrot.lane.b32.xlu0 %v14037_v22, %s13274_s0 }
 0x1e4   :  { %3259 = vrot.lane.b32.xlu1 %v14048_v32, %s13274_s0 }
 0x1e6   :  { %3583 = vrot.lane.b32.xlu0 %v13960_v47, %s13275_s23 }
 0x1e8   :  { %3565 = vrot.lane.b32.xlu1 %v13994_v6, %s13275_s23 }
 0x1ea   :  { %3573 = vrot.lane.b32.xlu0 %v14043_v3, %s13275_s23 }
 0x1ec   :  { %3585 = vrot.lane.b32.xlu1 %v14048_v32, %s13275_s23 }
 0x1ee   :  { %3905 = vrot.lane.b32.xlu0 %v14014_v43, %s13276_s24 }
 0x1f0   :  { %3571 = vrot.lane.b32.xlu1 %v13940_v16, %s13275_s23 }
 0x1f2   :  { %3909 = vrot.lane.b32.xlu0 %v13960_v47, %s13276_s24 }
 0x1f4   :  { %3575 = vrot.lane.b32.xlu1 %v14037_v22, %s13275_s23 }
 0x1f6   :  { %3903 = vrot.lane.b32.xlu0 %v13985_v38, %s13276_s24 }
 0x1f8   :  { %3907 = vrot.lane.b32.xlu1 %v13968_v25, %s13276_s24 }
 0x1fa   :  { %3895 = vrot.lane.b32.xlu0 %v13933_v33, %s13276_s24 }
 0x1fc   :  { %3911 = vrot.lane.b32.xlu1 %v14048_v32, %s13276_s24 }
 0x1fe   :  { %3899 = vrot.lane.b32.xlu0 %v14043_v3, %s13276_s24 }
 0x200   :  { %3893 = vrot.lane.b32.xlu1 %v14020_v18, %s13276_s24 }
 0x202   :  { %3261 = vrot.lane.b32.xlu0 %v14062_v54, %s13274_s0 }
 0x204   :  { %3897 = vrot.lane.b32.xlu1 %v13940_v16, %s13276_s24 }
 0x206   :  { %4231 = vrot.lane.b32.xlu0 %v14014_v43, %s13277_s25 }
 0x208   :  { %3891 = vrot.lane.b32.xlu1 %v13994_v6, %s13276_s24 }
 0x20a   :  { %4219 = vrot.lane.b32.xlu0 %v14020_v18, %s13277_s25 }
 0x20c   :  { %4233 = vrot.lane.b32.xlu1 %v13968_v25, %s13277_s25 }
 0x20e   :  { %3587 = vrot.lane.b32.xlu0 %v14062_v54, %s13275_s23 }
 0x210   :  { %4229 = vrot.lane.b32.xlu1 %v13985_v38, %s13277_s25 }
 0x212   :  { %3901 = vrot.lane.b32.xlu0 %v14037_v22, %s13276_s24 }
 0x214   :  { %4221 = vrot.lane.b32.xlu1 %v13933_v33, %s13277_s25 }
 0x216   :  { %4235 = vrot.lane.b32.xlu0 %v13960_v47, %s13277_s25 }
 0x218   :  { %4217 = vrot.lane.b32.xlu1 %v13994_v6, %s13277_s25 }
 0x21a   :  { %4225 = vrot.lane.b32.xlu0 %v14043_v3, %s13277_s25 }
 0x21c   :  { %4237 = vrot.lane.b32.xlu1 %v14048_v32, %s13277_s25 }
 0x21e   :  { %4557 = vrot.lane.b32.xlu0 %v14014_v43, %s13278_s26 }
 0x220   :  { %v14132_v30 = vpop.permute.xlu0 %2676  ;;  %4223 = vrot.lane.b32.xlu1 %v13940_v16, %s13277_s25 }
 0x222   :  { %v14136_v35 = vpop.permute.xlu1 %2678  ;;  %4561 = vrot.lane.b32.xlu0 %v13960_v47, %s13278_s26 }
 0x223   :  { %v2698_v37 = vsel %vm96_vm0, %v14132_v30, %v14136_v35 }
 0x224   :  { %v14140_v41 = vpop.permute.xlu0 %3243  ;;  %4227 = vrot.lane.b32.xlu1 %v14037_v22, %s13277_s25 }
 0x226   :  { %v14144_v2 = vpop.permute.xlu1 %3245  ;;  %3913 = vrot.lane.b32.xlu0 %v14062_v54, %s13276_s24 }
 0x228   :  { %v2691_v57 = vpop.permute.xlu0 %2690  ;;  %4559 = vrot.lane.b32.xlu1 %v13968_v25, %s13278_s26 }
 0x22a   :  { %v2689_v23 = vpop.permute.xlu1 %2688  ;;  %4555 = vrot.lane.b32.xlu0 %v13985_v38, %s13278_s26 }
 0x22b   :  { %v2703_v27 = vsel %vm96_vm0, %v2689_v23, %v2691_v57 }
 0x22c   :  { %v14152_v39 = vpop.permute.xlu0 %3257  ;;  %4563 = vrot.lane.b32.xlu1 %v14048_v32, %s13278_s26 }
 0x22e   :  { %v14156_v15 = vpop.permute.xlu1 %3255  ;;  %4547 = vrot.lane.b32.xlu0 %v13933_v33, %s13278_s26 }
 0x230   :  { %v2685_v26 = vpop.permute.xlu0 %2684  ;;  %4545 = vrot.lane.b32.xlu1 %v14020_v18, %s13278_s26 }
 0x232   :  { %4239 = vrot.lane.b32.xlu0 %v14062_v54, %s13277_s25  ;;  %v2673_v4 = vpop.permute.xlu1 %2672  ;;  %s13286_s25 = smov 103  }
 0x234   :  { %v14164_v51 = vpop.permute.xlu0 %3251  ;;  %4549 = vrot.lane.b32.xlu1 %v13940_v16, %s13278_s26 }
 0x236   :  { %4551 = vrot.lane.b32.xlu0 %v14043_v3, %s13278_s26  ;;  %v14170_v14 = vpop.permute.xlu1 %3239 }
 0x238   :  { %v2687_v63 = vpop.permute.xlu0 %2686  ;;  %4543 = vrot.lane.b32.xlu1 %v13994_v6, %s13278_s26 }
 0x239   :  { %v2702_v10 = vsel %vm96_vm0, %v2687_v63, %v2689_v23  ;;  %v2701_v29 = vsel %vm96_vm0, %v2685_v26, %v2687_v63  ;;  %v11821_v26 = vld [vmem:[%s17234_s10 + $0x38] sm:$0xff]  ;;  %v11816_v63 = vld [vmem:[%s17233_s9 + $0x28] sm:$0xff] }
 0x23a   :  { %2756 = vmatprep.subr.mxu1 %v2702_v10  ;;  %4883 = vrot.lane.b32.xlu0 %v14014_v43, %s13279_s27  ;;  %v2675_v12 = vpop.permute.xlu1 %2674 }
 0x23b   :  { %2757 = vmatpush1.msra.mxu1 %v2701_v29  ;;  %v2697_v21 = vsel %vm96_vm0, %v2675_v12, %v14132_v30  ;;  %v2696_v52 = vsel %vm96_vm0, %v2673_v4, %v2675_v12  ;;  %v11734_v12 = vld [vmem:[%s17236_s2 + $0x40] sm:$0xf] }
 0x23c   :  { %v14184_v7 = vpop.permute.xlu0 %3253  ;;  %4885 = vrot.lane.b32.xlu1 %v13968_v25, %s13279_s27  ;;  %2758 = vmatprep.subr.mxu1 %v2697_v21  ;;  %v11820_v21 = vld [vmem:[%s17234_s10 + $0x30] sm:$0xff] }
 0x23d   :  { %2759 = vmatpush1.msra.mxu1 %v2696_v52  ;;  %v3269_v44 = vsel %vm617_vm3, %v14184_v7, %v14156_v15 }
 0x23e   :  { %4871 = vrot.lane.b32.xlu0 %v14020_v18, %s13279_s27  ;;  %v14190_v40 = vpop.permute.xlu1 %3241  ;;  %11714 = vmatmul.mubr.msk.f32.vlgmr.msra.gmra.mxu1 %vm2718_vm10, %v11711_v24 }
 0x23f   :  { %2798 = vmatprep.mubr.f32.mxu1 %v17296_v46  ;;  %v3264_v34 = vsel %vm617_vm3, %v14190_v40, %v14140_v41 }
 0x240   :  { %v14199_v45 = vpop.permute.xlu0 %3579  ;;  %4881 = vrot.lane.b32.xlu1 %v13985_v38, %s13279_s27 }
 0x242   :  { %4553 = vrot.lane.b32.xlu0 %v14037_v22, %s13278_s26  ;;  %v2683_v49 = vpop.permute.xlu1 %2682  ;;  %11715 = vmatmul.mubr.msk.f32.gmra.mxu1 %vm2718_vm10, %v14197_v59 }
 0x243   :  { %2804 = vmatprep.mubr.f32.mxu1 %v17296_v46 }
 0x244   :  { %v2681_v8 = vpop.permute.xlu0 %2680  ;;  %4873 = vrot.lane.b32.xlu1 %v13933_v33, %s13279_s27 }
 0x245   :  { %v2699_v17 = vsel %vm96_vm0, %v14136_v35, %v2681_v8  ;;  %v2700_v11 = vsel %vm96_vm0, %v2681_v8, %v2683_v49 }
 0x246   :  { %4887 = vrot.lane.b32.xlu0 %v13960_v47, %s13279_s27  ;;  %v2693_v13 = vpop.permute.xlu1 %2692  ;;  %11716 = vmatmul.mubr.msk.f32.gmra.mxu1 %vm2718_vm10, %v14211_v62 }
 0x247   :  { %v2704_v48 = vsel %vm96_vm0, %v2691_v57, %v2693_v13  ;;  %2958 = vmatprep.mubr.f32.mxu1 %v17296_v46 }
 0x248   :  { %v14221_v53 = vpop.permute.xlu0 %3247  ;;  %4869 = vrot.lane.b32.xlu1 %v13994_v6, %s13279_s27  ;;  %2839 = vmatprep.subr.mxu0 %v2704_v48 }
 0x249   :  { %2840 = vmatpush1.msra.mxu0 %v2703_v27  ;;  %v3266_v35 = vsel %vm617_vm3, %v14144_v2, %v14221_v53 }
 0x24a   :  { %4565 = vrot.lane.b32.xlu0 %v14062_v54, %s13278_s26  ;;  %2841 = vmatprep.subr.mxu0 %v2699_v17  ;;  %v14230_v19 = vpop.permute.xlu1 %3581 }
 0x24b   :  { %2842 = vmatpush1.msra.mxu0 %v2698_v37  ;;  %v3595_v23 = vsel %vm899_vm4, %v14199_v45, %v14230_v19  ;;  %v11745_v37 = vld [vmem:[%s17236_s2 + $0x50] sm:$0xff] }
 0x24c   :  { %v14235_v5 = vpop.permute.xlu0 %3567  ;;  %4889 = vrot.lane.b32.xlu1 %v14048_v32, %s13279_s27  ;;  %11717 = vmatmul.mubr.msk.f32.vlgmr.msra.gmra.mxu0 %vm2718_vm10, %v11711_v24 }
 0x24d   :  { %3014 = vmatprep.subr.mxu0 %v14014_v43  ;;  %2881 = vmatprep.mubr.f32.mxu0 %v17296_v46 }
 0x24e   :  { %3015 = vmatpush1.msra.mxu0 %v13985_v38  ;;  %4877 = vrot.lane.b32.xlu0 %v14043_v3, %s13279_s27  ;;  %v14245_v50 = vpop.permute.xlu1 %3577 }
 0x24f   :  { %3016 = vmatprep.subr.mxu0 %v14020_v18 }
 0x250   :  { %3017 = vmatpush1.msra.mxu0 %v13994_v6  ;;  %v2695_v31 = vpop.permute.xlu0 %2694  ;;  %4875 = vrot.lane.b32.xlu1 %v13940_v16, %s13279_s27 }
 0x251   :  { %11718 = vmatmul.mubr.msk.f32.gmra.mxu0 %vm2718_vm10, %v14197_v59  ;;  %3180 = vmatprep.subr.mxu0 %v14062_v54  ;;  %v2705_v0 = vsel %vm96_vm0, %v2693_v13, %v2695_v31  ;;  %v11744_v13 = vld [vmem:[%s17236_s2 + $0x48] sm:$0xff] }
 0x252   :  { %2922 = vmatprep.subr.mxu1 %v2695_v31  ;;  %5209 = vrot.lane.b32.xlu0 %v14014_v43, %s13280_s28  ;;  %v14257_v42 = vpop.permute.xlu1 %3569 }
 0x253   :  { %2923 = vmatpush1.msra.mxu1 %v2705_v0  ;;  %2887 = vmatprep.mubr.f32.mxu0 %v17296_v46  ;;  %v11746_v0 = vld [vmem:[%s17236_s2 + $0x58] sm:$0xf] }
 0x254   :  { %2924 = vmatprep.subr.mxu1 %v2683_v49  ;;  %v14260_v28 = vpop.permute.xlu0 %3249  ;;  %4879 = vrot.lane.b32.xlu1 %v14037_v22, %s13279_s27 }
 0x255   :  { %11719 = vmatmul.mubr.msk.f32.gmra.mxu0 %vm2718_vm10, %v14211_v62  ;;  %2925 = vmatpush1.msra.mxu1 %v2700_v11 }
 0x256   :  { %11720 = vmatmul.mubr.msk.f32.vlgmr.msra.gmra.mxu1 %vm2718_vm10, %v11711_v24  ;;  %3097 = vmatprep.subr.mxu1 %v13960_v47  ;;  %v14269_v43 = vpop.permute.xlu1 %3259 }
 0x257   :  { %4891 = vrot.lane.b32.xlu0 %v14062_v54, %s13279_s27  ;;  %3098 = vmatpush1.msra.mxu1 %v13968_v25  ;;  %v3271_v55 = vsel %vm617_vm3, %v14152_v39, %v14269_v43 }
 0x258   :  { %3050 = vmatprep.mubr.f32.mxu0 %v17296_v46  ;;  %3099 = vmatprep.subr.mxu1 %v13940_v16  ;;  %v14279_v9 = vpop.permute.xlu0 %3583 }
 0x259   :  { %5211 = vrot.lane.b32.xlu1 %v13968_v25, %s13280_s28  ;;  %2964 = vmatprep.mubr.f32.mxu1 %v17296_v46  ;;  %v3596_v8 = vsel %vm899_vm4, %v14230_v19, %v14279_v9 }
 0x25a   :  { %11723 = vmatmul.mubr.msk.f32.vlgmr.msra.gmra.mxu0 %vm2718_vm10, %v2653_v56  ;;  %3100 = vmatpush1.msra.mxu1 %v13933_v33  ;;  %v14286_v58 = vpop.permute.xlu1 %3565 }
 0x25b   :  { %3181 = vmatpush1.msra.mxu0 %v14048_v32  ;;  %11721 = vmatmul.mubr.msk.f32.gmra.mxu1 %vm2718_vm10, %v14197_v59  ;;  %v3589_v29 = vsel %vm899_vm4, %v14286_v58, %v14235_v5  ;;  %v3267_v59 = vsel %vm617_vm3, %v14221_v53, %v14260_v28 }
 0x25c   :  { %3182 = vmatprep.subr.mxu0 %v14037_v22  ;;  %3322 = vmatprep.subr.mxu1 %v3269_v44  ;;  %v14295_v25 = vpop.permute.xlu0 %3573 }
 0x25d   :  { %5213 = vrot.lane.b32.xlu0 %v13960_v47, %s13280_s28  ;;  %3183 = vmatpush1.msra.mxu0 %v14043_v3 }
 0x25e   :  { %3056 = vmatprep.mubr.f32.mxu0 %v17296_v46  ;;  %3405 = vmatprep.subr.mxu0 %v3271_v55  ;;  %v14307_v20 = vpop.permute.xlu1 %3585 }
 0x25f   :  { %5215 = vrot.lane.b32.xlu1 %v14048_v32, %s13280_s28  ;;  %2970 = vmatprep.mubr.f32.mxu1 %v17296_v46  ;;  %v3597_v49 = vsel %vm899_vm4, %v14279_v9, %v14307_v20 }
 0x260   :  { %11724 = vmatmul.mubr.msk.f32.gmra.mxu0 %vm2718_vm10, %v2654_v61  ;;  %11722 = vmatmul.mubr.msk.f32.gmra.mxu1 %vm2718_vm10, %v14211_v62  ;;  %v14315_v47 = vpop.permute.xlu0 %3905 }
 0x261   :  { %5207 = vrot.lane.b32.xlu0 %v13985_v38, %s13280_s28  ;;  %3062 = vmatprep.mubr.f32.mxu0 %v17296_v46  ;;  %v3268_v38 = vsel %vm617_vm3, %v14164_v51, %v14184_v7  ;;  %v3594_v51 = vsel %vm899_vm4, %v14245_v50, %v14199_v45  ;;  %v11819_v7 = vld [vmem:[%s17234_s10 + $0x28] sm:$0xff] }
 0x262   :  { %3133 = vmatprep.mubr.f32.mxu1 %v17296_v46  ;;  %v14324_v36 = vpop.permute.xlu1 %3571 }
 0x263   :  { %5197 = vrot.lane.b32.xlu1 %v14020_v18, %s13280_s28  ;;  %v3263_v18 = vsel %vm617_vm3, %v14170_v14, %v14190_v40  ;;  %v3590_v14 = vsel %vm899_vm4, %v14235_v5, %v14257_v42  ;;  %v3592_v48 = vsel %vm899_vm4, %v14324_v36, %v14295_v25  ;;  %v3591_v27 = vsel %vm899_vm4, %v14257_v42, %v14324_v36 }
 0x264   :  { %11725 = vmatmul.mubr.msk.f32.gmra.mxu0 %vm2718_vm10, %v2655_v1  ;;  %11726 = vmatmul.mubr.msk.f32.vlgmr.msra.gmra.mxu1 %vm2718_vm10, %v2653_v56  ;;  %v14333_v32 = vpop.permute.xlu0 %3909 }
 0x265   :  { %3323 = vmatpush1.msra.mxu1 %v3268_v38  ;;  %5199 = vrot.lane.b32.xlu0 %v13933_v33, %s13280_s28  ;;  %v3270_v33 = vsel %vm617_vm3, %v14156_v15, %v14152_v39  ;;  %v11756_v38 = vld [vmem:[%s17236_s2 + $0x60] sm:$0xff] }
 0x266   :  { %3324 = vmatprep.subr.mxu1 %v3264_v34  ;;  %3216 = vmatprep.mubr.f32.mxu0 %v17296_v46  ;;  %v14344_v60 = vpop.permute.xlu1 %3575 }
 0x267   :  { %3325 = vmatpush1.msra.mxu1 %v3263_v18  ;;  %5201 = vrot.lane.b32.xlu1 %v13940_v16, %s13280_s28  ;;  %v3265_v16 = vsel %vm617_vm3, %v14140_v41, %v14144_v2  ;;  %v11818_v41 = vld [vmem:[%s17233_s9 + $0x38] sm:$0xff]  ;;  %v3593_v42 = vsel %vm899_vm4, %v14295_v25, %v14344_v60  ;;  %v11757_v18 = vld [vmem:[%s17236_s2 + $0x68] sm:$0xff] }
 0x268   :  { %3139 = vmatprep.mubr.f32.mxu1 %v17296_v46  ;;  %11729 = vmatmul.mubr.msk.f32.vlgmr.msra.gmra.mxu0 %vm2718_vm10, %v2653_v56  ;;  %v14353_v30 = vpop.permute.xlu0 %3903 }
 0x269   :  { %3406 = vmatpush1.msra.mxu0 %v3270_v33  ;;  %11727 = vmatmul.mubr.msk.f32.gmra.mxu1 %vm2718_vm10, %v2654_v61  ;;  %v3920_v56 = vsel %vm1181_vm5, %v14353_v30, %v14315_v47 }
 0x26a   :  { %3407 = vmatprep.subr.mxu0 %v3266_v35  ;;  %5203 = vrot.lane.b32.xlu0 %v14043_v3, %s13280_s28  ;;  %v14364_v57 = vpop.permute.xlu1 %3907 }
 0x26b   :  { %3408 = vmatpush1.msra.mxu0 %v3265_v16  ;;  %3222 = vmatprep.mubr.f32.mxu0 %v17296_v46  ;;  %v3921_v17 = vsel %vm1181_vm5, %v14315_v47, %v14364_v57  ;;  %v3922_v25 = vsel %vm1181_vm5, %v14364_v57, %v14333_v32 }
 0x26c   :  { %3648 = vmatprep.subr.mxu0 %v3595_v23  ;;  %5195 = vrot.lane.b32.xlu1 %v13994_v6, %s13280_s28  ;;  %v14372_v39 = vpop.permute.xlu0 %3895  ;;  %v11732_v6 = vld [vmem:[%s17236_s2 + $0x30] sm:$0xff] }
 0x26d   :  { %3145 = vmatprep.mubr.f32.mxu1 %v17296_v46  ;;  %11730 = vmatmul.mubr.msk.f32.gmra.mxu0 %vm2718_vm10, %v2654_v61  ;;  %v11758_v23 = vld [vmem:[%s17236_s2 + $0x70] sm:$0xf] }
 0x26e   :  { %11728 = vmatmul.mubr.msk.f32.gmra.mxu1 %vm2718_vm10, %v2655_v1  ;;  %5217 = vrot.lane.b32.xlu0 %v14062_v54, %s13280_s28  ;;  %v14379_v3 = vpop.permute.xlu1 %3911  ;;  %v11817_v54 = vld [vmem:[%s17233_s9 + $0x30] sm:$0xff] }
 0x26f   :  { %3228 = vmatprep.mubr.f32.mxu0 %v17296_v46  ;;  %3358 = vmatprep.mubr.f32.mxu1 %v17296_v46  ;;  %v3923_v11 = vsel %vm1181_vm5, %v14333_v32, %v14379_v3 }
 0x270   :  { %5205 = vrot.lane.b32.xlu1 %v14037_v22, %s13280_s28  ;;  %v14391_v2 = vpop.permute.xlu0 %3899  ;;  %v11733_v22 = vld [vmem:[%s17236_s2 + $0x38] sm:$0xff] }
 0x271   :  { %11731 = vmatmul.mubr.msk.f32.gmra.mxu0 %vm2718_vm10, %v2655_v1 }
 0x272   :  { %11735 = vmatmul.mubr.msk.f32.vlgmr.msra.gmra.mxu1 %vm2718_vm10, %v11732_v6  ;;  %5555 = vperm.xlu0 %13201, %v11818_v41   ;;  %v14398_v15 = vpop.permute.xlu1 %3893 }
 0x273   :  { %3441 = vmatprep.mubr.f32.mxu0 %v17296_v46  ;;  %3364 = vmatprep.mubr.f32.mxu1 %v17296_v46  ;;  %v3916_v9 = vsel %vm1181_vm5, %v14398_v15, %v14372_v39 }
 0x274   :  { %5550 = vperm.xlu1 %13200, %v11817_v54   ;;  %v3262_v4 = vpop.permute.xlu0 %3261 }
 0x275   :  { %11738 = vmatmul.mubr.msk.f32.vlgmr.msra.gmra.mxu0 %vm2718_vm10, %v11732_v6  ;;  %3488 = vmatprep.subr.mxu1 %v3262_v4  ;;  %v3272_v52 = vsel %vm617_vm3, %v14269_v43, %v3262_v4  ;;  %vm7251_vm3 = vcmask 850944  }
 0x276   :  { %3649 = vmatpush1.msra.mxu0 %v3594_v51  ;;  %11736 = vmatmul.mubr.msk.f32.gmra.mxu1 %vm2718_vm10, %v11733_v22  ;;  %v14419_v10 = vpop.permute.xlu1 %3897 }
 0x277   :  { %3650 = vmatprep.subr.mxu0 %v3590_v14  ;;  %5588 = vperm.xlu0 %13201, %v11821_v26   ;;  %v3918_v61 = vsel %vm1181_vm5, %v14419_v10, %v14391_v2 }
 0x278   :  { %3651 = vmatpush1.msra.mxu0 %v3589_v29  ;;  %3447 = vmatprep.mubr.f32.mxu0 %v17296_v46  ;;  %v14433_v24 = vpop.permute.xlu0 %4231  ;;  %v11769_v29 = vld [vmem:[%s17236_s2 + $0x80] sm:$0xff] }
 0x279   :  { %5545 = vperm.xlu1 %13200, %v11816_v63   ;;  %3370 = vmatprep.mubr.f32.mxu1 %v17296_v46 }
 0x27a   :  { %11739 = vmatmul.mubr.msk.f32.gmra.mxu0 %vm2718_vm10, %v11733_v22  ;;  %11737 = vmatmul.mubr.msk.f32.gmra.mxu1 %vm2718_vm10, %v11734_v12  ;;  %v3892_v40 = vpop.permute.xlu1 %3891 }
 0x27b   :  { %5583 = vperm.xlu0 %13201, %v11820_v21   ;;  %3489 = vmatpush1.msra.mxu1 %v3272_v52  ;;  %v3915_v44 = vsel %vm1181_vm5, %v3892_v40, %v14398_v15  ;;  %v11770_v52 = vld [vmem:[%s17236_s2 + $0x88] sm:$0xf] }
 0x27c   :  { %3453 = vmatprep.mubr.f32.mxu0 %v17296_v46  ;;  %3490 = vmatprep.subr.mxu1 %v14260_v28  ;;  %v14446_v45 = vpop.permute.xlu0 %4219 }
 0x27d   :  { %5578 = vperm.xlu1 %13200, %v11819_v7   ;;  %3491 = vmatpush1.msra.mxu1 %v3267_v59 }
 0x27e   :  { %11740 = vmatmul.mubr.msk.f32.gmra.mxu0 %vm2718_vm10, %v11734_v12  ;;  %3524 = vmatprep.mubr.f32.mxu1 %v17296_v46  ;;  %v14453_v62 = vpop.permute.xlu1 %4233 }
 0x27f   :  { %11741 = vmatmul.mubr.msk.f32.vlgmr.msra.gmra.mxu1 %vm2718_vm10, %v11732_v6  ;;  %3731 = vmatprep.subr.mxu1 %v3597_v49  ;;  %v4247_v1 = vsel %vm1463_vm6, %v14433_v24, %v14453_v62 }
 0x280   :  { %3732 = vmatpush1.msra.mxu1 %v3596_v8  ;;  %3684 = vmatprep.mubr.f32.mxu0 %v17296_v46  ;;  %v3588_v53 = vpop.permute.xlu0 %3587 }
 0x281   :  { %3733 = vmatprep.subr.mxu1 %v3592_v48  ;;  %3530 = vmatprep.mubr.f32.mxu1 %v17296_v46  ;;  %v3598_v5 = vsel %vm899_vm4, %v14307_v20, %v3588_v53  ;;  %v3917_v20 = vsel %vm1181_vm5, %v14372_v39, %v14419_v10 }
 0x282   :  { %11747 = vmatmul.mubr.msk.f32.vlgmr.msra.gmra.mxu0 %vm2718_vm10, %v11744_v13  ;;  %3734 = vmatpush1.msra.mxu1 %v3591_v27  ;;  %v14474_v19 = vpop.permute.xlu1 %4229 }
 0x283   :  { %11742 = vmatmul.mubr.msk.f32.gmra.mxu1 %vm2718_vm10, %v11733_v22  ;;  %3974 = vmatprep.subr.mxu1 %v3921_v17  ;;  %v4246_v30 = vsel %vm1463_vm6, %v14474_v19, %v14433_v24 }
 0x284   :  { %3690 = vmatprep.mubr.f32.mxu0 %v17296_v46  ;;  %3536 = vmatprep.mubr.f32.mxu1 %v17296_v46  ;;  %v14484_v50 = vpop.permute.xlu0 %3901 }
 0x285   :  { %3814 = vmatprep.subr.mxu0 %v3588_v53  ;;  %v3919_v6 = vsel %vm1181_vm5, %v14391_v2, %v14484_v50  ;;  %v11768_v2 = vld [vmem:[%s17236_s2 + $0x78] sm:$0xff] }
 0x286   :  { %11748 = vmatmul.mubr.msk.f32.gmra.mxu0 %vm2718_vm10, %v11745_v37  ;;  %v14487_v31 = vpop.permute.xlu1 %4221 }
 0x287   :  { %11743 = vmatmul.mubr.msk.f32.gmra.mxu1 %vm2718_vm10, %v11734_v12  ;;  %3815 = vmatpush1.msra.mxu0 %v3598_v5  ;;  %v4242_v16 = vsel %vm1463_vm6, %v14446_v45, %v14487_v31  ;;  %v11780_v5 = vld [vmem:[%s17236_s2 + $0x90] sm:$0xff] }
 0x288   :  { %3696 = vmatprep.mubr.f32.mxu0 %v17296_v46  ;;  %3816 = vmatprep.subr.mxu0 %v14344_v60  ;;  %v14498_v28 = vpop.permute.xlu0 %4235 }
 0x289   :  { %3767 = vmatprep.mubr.f32.mxu1 %v17296_v46  ;;  %3817 = vmatpush1.msra.mxu0 %v3593_v42  ;;  %v4248_v22 = vsel %vm1463_vm6, %v14453_v62, %v14498_v28 }
 0x28a   :  { %11749 = vmatmul.mubr.msk.f32.gmra.mxu0 %vm2718_vm10, %v11746_v0  ;;  %4057 = vmatprep.subr.mxu0 %v3923_v11  ;;  %v4218_v43 = vpop.permute.xlu1 %4217 }
 0x28b   :  { %11750 = vmatmul.mubr.msk.f32.vlgmr.msra.gmra.mxu1 %vm2718_vm10, %v11744_v13  ;;  %3850 = vmatprep.mubr.f32.mxu0 %v17296_v46  ;;  %v4241_v57 = vsel %vm1463_vm6, %v4218_v43, %v14446_v45 }
 0x28c   :  { %3975 = vmatpush1.msra.mxu1 %v3920_v56  ;;  %3773 = vmatprep.mubr.f32.mxu1 %v17296_v46  ;;  %v14514_v58 = vpop.permute.xlu0 %4225 }
 0x28d   :  { %3976 = vmatprep.subr.mxu1 %v3916_v9 }
 0x28e   :  { %3977 = vmatpush1.msra.mxu1 %v3915_v44  ;;  %11753 = vmatmul.mubr.msk.f32.vlgmr.msra.gmra.mxu0 %vm2718_vm10, %v11744_v13  ;;  %v14522_v55 = vpop.permute.xlu1 %4237 }
 0x28f   :  { %4058 = vmatpush1.msra.mxu0 %v3922_v25  ;;  %11751 = vmatmul.mubr.msk.f32.gmra.mxu1 %vm2718_vm10, %v11745_v37  ;;  %v4249_v41 = vsel %vm1463_vm6, %v14498_v28, %v14522_v55 }
 0x290   :  { %4059 = vmatprep.subr.mxu0 %v3918_v61  ;;  %3856 = vmatprep.mubr.f32.mxu0 %v17296_v46  ;;  %v14532_v47 = vpop.permute.xlu0 %4557 }
 0x291   :  { %4060 = vmatpush1.msra.mxu0 %v3917_v20  ;;  %3779 = vmatprep.mubr.f32.mxu1 %v17296_v46 }
 0x292   :  { %4300 = vmatprep.subr.mxu0 %v4247_v1  ;;  %11754 = vmatmul.mubr.msk.f32.gmra.mxu0 %vm2718_vm10, %v11745_v37  ;;  %v4224_v36 = vpop.permute.xlu1 %4223 }
 0x293   :  { %11752 = vmatmul.mubr.msk.f32.gmra.mxu1 %vm2718_vm10, %v11746_v0  ;;  %3862 = vmatprep.mubr.f32.mxu0 %v17296_v46  ;;  %v4244_v26 = vsel %vm1463_vm6, %v4224_v36, %v14514_v58  ;;  %v4243_v51 = vsel %vm1463_vm6, %v14487_v31, %v4224_v36 }
 0x294   :  { %4010 = vmatprep.mubr.f32.mxu1 %v17296_v46  ;;  %v14545_v32 = vpop.permute.xlu0 %4561 }
 0x296   :  { %11755 = vmatmul.mubr.msk.f32.gmra.mxu0 %vm2718_vm10, %v11746_v0  ;;  %v14548_v34 = vpop.permute.xlu1 %4227  ;;  %v11781_v0 = vld [vmem:[%s17236_s2 + $0x98] sm:$0xff] }
 0x297   :  { %11759 = vmatmul.mubr.msk.f32.vlgmr.msra.gmra.mxu1 %vm2718_vm10, %v11756_v38  ;;  %4093 = vmatprep.mubr.f32.mxu0 %v17296_v46  ;;  %v4245_v24 = vsel %vm1463_vm6, %v14514_v58, %v14548_v34  ;;  %v11782_v58 = vld [vmem:[%s17236_s2 + $0xa0] sm:$0xf] }
 0x298   :  { %4016 = vmatprep.mubr.f32.mxu1 %v17296_v46  ;;  %v3914_v60 = vpop.permute.xlu0 %3913 }
 0x299   :  { %4140 = vmatprep.subr.mxu1 %v3914_v60  ;;  %v3924_v33 = vsel %vm1181_vm5, %v14379_v3, %v3914_v60  ;;  %v11793_v60 = vld [vmem:[%s17236_s2 + $0xb0] sm:$0xff]  ;;  %vm7501_vm5 = vcmask 834560  }
 0x29a   :  { %11762 = vmatmul.mubr.msk.f32.vlgmr.msra.gmra.mxu0 %vm2718_vm10, %v11756_v38  ;;  %4141 = vmatpush1.msra.mxu1 %v3924_v33  ;;  %v14562_v35 = vpop.permute.xlu1 %4559 }
 0x29b   :  { %4301 = vmatpush1.msra.mxu0 %v4246_v30  ;;  %11760 = vmatmul.mubr.msk.f32.gmra.mxu1 %vm2718_vm10, %v11757_v18  ;;  %v4573_v14 = vsel %vm1755_vm7, %v14532_v47, %v14562_v35  ;;  %v4574_v13 = vsel %vm1755_vm7, %v14562_v35, %v14545_v32 }
 0x29c   :  { %4302 = vmatprep.subr.mxu0 %v4242_v16  ;;  %4099 = vmatprep.mubr.f32.mxu0 %v17296_v46  ;;  %v4556_v39 = vpop.permute.xlu0 %4555  ;;  %v11794_v16 = vld [vmem:[%s17236_s2 + $0xb8] sm:$0xf] }
 0x29d   :  { %4303 = vmatpush1.msra.mxu0 %v4241_v57  ;;  %4022 = vmatprep.mubr.f32.mxu1 %v17296_v46  ;;  %v4572_v45 = vsel %vm1755_vm7, %v4556_v39, %v14532_v47 }
 0x29e   :  { %11763 = vmatmul.mubr.msk.f32.gmra.mxu0 %vm2718_vm10, %v11757_v18  ;;  %4142 = vmatprep.subr.mxu1 %v14484_v50  ;;  %v14577_v3 = vpop.permute.xlu1 %4563 }
 0x29f   :  { %11761 = vmatmul.mubr.msk.f32.gmra.mxu1 %vm2718_vm10, %v11758_v23  ;;  %4105 = vmatprep.mubr.f32.mxu0 %v17296_v46  ;;  %v4575_v7 = vsel %vm1755_vm7, %v14545_v32, %v14577_v3 }
 0x2a0   :  { %4143 = vmatpush1.msra.mxu1 %v3919_v6  ;;  %4176 = vmatprep.mubr.f32.mxu1 %v17296_v46  ;;  %v4548_v54 = vpop.permute.xlu0 %4547 }
 0x2a1   :  { %4383 = vmatprep.subr.mxu1 %v4249_v41 }
 0x2a2   :  { %11764 = vmatmul.mubr.msk.f32.gmra.mxu0 %vm2718_vm10, %v11758_v23  ;;  %v4546_v15 = vpop.permute.xlu1 %4545 }
 0x2a3   :  { %11765 = vmatmul.mubr.msk.f32.vlgmr.msra.gmra.mxu1 %vm2718_vm10, %v11756_v38  ;;  %4336 = vmatprep.mubr.f32.mxu0 %v17296_v46  ;;  %v4568_v62 = vsel %vm1755_vm7, %v4546_v15, %v4548_v54  ;;  %v11792_v38 = vld [vmem:[%s17236_s2 + $0xa8] sm:$0xff] }
 0x2a4   :  { %4384 = vmatpush1.msra.mxu1 %v4248_v22  ;;  %4182 = vmatprep.mubr.f32.mxu1 %v17296_v46  ;;  %v4240_v4 = vpop.permute.xlu0 %4239 }
 0x2a5   :  { %4385 = vmatprep.subr.mxu1 %v4244_v26  ;;  %4466 = vmatprep.subr.mxu0 %v4240_v4  ;;  %v4250_v63 = vsel %vm1463_vm6, %v14522_v55, %v4240_v4  ;;  %vm7695_vm6 = vcmask 228352  }
 0x2a6   :  { %11771 = vmatmul.mubr.msk.f32.vlgmr.msra.gmra.mxu0 %vm2718_vm10, %v11768_v2  ;;  %4386 = vmatpush1.msra.mxu1 %v4243_v51  ;;  %v4550_v10 = vpop.permute.xlu1 %4549 }
 0x2a7   :  { %11766 = vmatmul.mubr.msk.f32.gmra.mxu1 %vm2718_vm10, %v11757_v18  ;;  %4626 = vmatprep.subr.mxu1 %v4573_v14  ;;  %v4569_v17 = vsel %vm1755_vm7, %v4548_v54, %v4550_v10 }
 0x2a8   :  { %4342 = vmatprep.mubr.f32.mxu0 %v17296_v46  ;;  %4188 = vmatprep.mubr.f32.mxu1 %v17296_v46  ;;  %v14614_v12 = vpop.permute.xlu0 %4551 }
 0x2a9   :  { %4467 = vmatpush1.msra.mxu0 %v4250_v63  ;;  %v4570_v53 = vsel %vm1755_vm7, %v4550_v10, %v14614_v12  ;;  %v11804_v63 = vld [vmem:[%s17236_s2 + $0xc0] sm:$0xff] }
 0x2aa   :  { %11772 = vmatmul.mubr.msk.f32.gmra.mxu0 %vm2718_vm10, %v11769_v29  ;;  %4468 = vmatprep.subr.mxu0 %v14548_v34  ;;  %v4544_v21 = vpop.permute.xlu1 %4543 }
 0x2ab   :  { %11767 = vmatmul.mubr.msk.f32.gmra.mxu1 %vm2718_vm10, %v11758_v23  ;;  %4348 = vmatprep.mubr.f32.mxu0 %v17296_v46  ;;  %v4567_v49 = vsel %vm1755_vm7, %v4544_v21, %v4546_v15 }
 0x2ac   :  { %4419 = vmatprep.mubr.f32.mxu1 %v17296_v46  ;;  %4469 = vmatpush1.msra.mxu0 %v4245_v24  ;;  %v4884_v40 = vpop.permute.xlu0 %4883 }
 0x2ad   :  { %4709 = vmatprep.subr.mxu0 %v4575_v7  ;;  %v11806_v7 = vld [vmem:[%s17236_s2 + $0xd0] sm:$0xf] }
 0x2ae   :  { %11773 = vmatmul.mubr.msk.f32.gmra.mxu0 %vm2718_vm10, %v11770_v52  ;;  %v14631_v59 = vpop.permute.xlu1 %4885 }
 0x2af   :  { %11774 = vmatmul.mubr.msk.f32.vlgmr.msra.gmra.mxu1 %vm2718_vm10, %v11768_v2  ;;  %4502 = vmatprep.mubr.f32.mxu0 %v17296_v46  ;;  %v4899_v27 = vsel %vm2040_vm8, %v4884_v40, %v14631_v59 }
 0x2b0   :  { %4627 = vmatpush1.msra.mxu1 %v4572_v45  ;;  %4425 = vmatprep.mubr.f32.mxu1 %v17296_v46  ;;  %v4872_v8 = vpop.permute.xlu0 %4871 }
 0x2b1   :  { %4628 = vmatprep.subr.mxu1 %v4568_v62 }
 0x2b2   :  { %11777 = vmatmul.mubr.msk.f32.vlgmr.msra.gmra.mxu0 %vm2718_vm10, %v11768_v2  ;;  %4629 = vmatpush1.msra.mxu1 %v4567_v49  ;;  %v4882_v48 = vpop.permute.xlu1 %4881 }
 0x2b3   :  { %4710 = vmatpush1.msra.mxu0 %v4574_v13  ;;  %11775 = vmatmul.mubr.msk.f32.gmra.mxu1 %vm2718_vm10, %v11769_v29  ;;  %v4898_v43 = vsel %vm2040_vm8, %v4882_v48, %v4884_v40 }
 0x2b4   :  { %4711 = vmatprep.subr.mxu0 %v4570_v53  ;;  %4508 = vmatprep.mubr.f32.mxu0 %v17296_v46  ;;  %v4554_v19 = vpop.permute.xlu0 %4553 }
 0x2b5   :  { %4712 = vmatpush1.msra.mxu0 %v4569_v17  ;;  %4431 = vmatprep.mubr.f32.mxu1 %v17296_v46  ;;  %v4571_v61 = vsel %vm1755_vm7, %v14614_v12, %v4554_v19 }
 0x2b6   :  { %11778 = vmatmul.mubr.msk.f32.gmra.mxu0 %vm2718_vm10, %v11769_v29  ;;  %4952 = vmatprep.subr.mxu0 %v4899_v27  ;;  %v4874_v37 = vpop.permute.xlu1 %4873 }
 0x2b7   :  { %11776 = vmatmul.mubr.msk.f32.gmra.mxu1 %vm2718_vm10, %v11770_v52  ;;  %4514 = vmatprep.mubr.f32.mxu0 %v17296_v46  ;;  %v4894_v28 = vsel %vm2040_vm8, %v4872_v8, %v4874_v37 }
 0x2b8   :  { %4662 = vmatprep.mubr.f32.mxu1 %v17296_v46  ;;  %v4888_v50 = vpop.permute.xlu0 %4887 }
 0x2b9   :  { %v4900_v36 = vsel %vm2040_vm8, %v14631_v59, %v4888_v50 }
 0x2ba   :  { %11779 = vmatmul.mubr.msk.f32.gmra.mxu0 %vm2718_vm10, %v11770_v52  ;;  %v4870_v31 = vpop.permute.xlu1 %4869  ;;  %v11805_v52 = vld [vmem:[%s17236_s2 + $0xc8] sm:$0xff] }
 0x2bb   :  { %11783 = vmatmul.mubr.msk.f32.vlgmr.msra.gmra.mxu1 %vm2718_vm10, %v11780_v5  ;;  %4745 = vmatprep.mubr.f32.mxu0 %v17296_v46  ;;  %v4893_v56 = vsel %vm2040_vm8, %v4870_v31, %v4872_v8 }
 0x2bc   :  { %4668 = vmatprep.mubr.f32.mxu1 %v17296_v46  ;;  %v4566_v42 = vpop.permute.xlu0 %4565 }
 0x2bd   :  { %4792 = vmatprep.subr.mxu1 %v4566_v42  ;;  %v4576_v11 = vsel %vm1755_vm7, %v14577_v3, %v4566_v42  ;;  %vm8814_vm7 = vcmask 261120  }
 0x2be   :  { %11786 = vmatmul.mubr.msk.f32.vlgmr.msra.gmra.mxu0 %vm2718_vm10, %v11780_v5  ;;  %4793 = vmatpush1.msra.mxu1 %v4576_v11  ;;  %v4890_v9 = vpop.permute.xlu1 %4889 }
 0x2bf   :  { %4953 = vmatpush1.msra.mxu0 %v4898_v43  ;;  %11784 = vmatmul.mubr.msk.f32.gmra.mxu1 %vm2718_vm10, %v11781_v0  ;;  %v4901_v25 = vsel %vm2040_vm8, %v4888_v50, %v4890_v9 }
 0x2c0   :  { %4954 = vmatprep.subr.mxu0 %v4894_v28  ;;  %4751 = vmatprep.mubr.f32.mxu0 %v17296_v46  ;;  %v4878_v44 = vpop.permute.xlu0 %4877 }
 0x2c1   :  { %4674 = vmatprep.mubr.f32.mxu1 %v17296_v46  ;;  %4955 = vmatpush1.msra.mxu0 %v4893_v56 }
 0x2c2   :  { %11787 = vmatmul.mubr.msk.f32.gmra.mxu0 %vm2718_vm10, %v11781_v0  ;;  %4794 = vmatprep.subr.mxu1 %v4554_v19  ;;  %v4876_v55 = vpop.permute.xlu1 %4875 }
 0x2c3   :  { %11785 = vmatmul.mubr.msk.f32.gmra.mxu1 %vm2718_vm10, %v11782_v58  ;;  %4757 = vmatprep.mubr.f32.mxu0 %v17296_v46  ;;  %v4896_v47 = vsel %vm2040_vm8, %v4876_v55, %v4878_v44  ;;  %v4895_v32 = vsel %vm2040_vm8, %v4874_v37, %v4876_v55 }
 0x2c4   :  { %4795 = vmatpush1.msra.mxu1 %v4571_v61  ;;  %4828 = vmatprep.mubr.f32.mxu1 %v17296_v46  ;;  %v5210_v20 = vpop.permute.xlu0 %5209 }
 0x2c5   :  { %5035 = vmatprep.subr.mxu1 %v4901_v25 }
 0x2c6   :  { %11788 = vmatmul.mubr.msk.f32.gmra.mxu0 %vm2718_vm10, %v11782_v58  ;;  %v4880_v1 = vpop.permute.xlu1 %4879 }
 0x2c7   :  { %11789 = vmatmul.mubr.msk.f32.vlgmr.msra.gmra.mxu1 %vm2718_vm10, %v11780_v5  ;;  %4988 = vmatprep.mubr.f32.mxu0 %v17296_v46  ;;  %v4897_v57 = vsel %vm2040_vm8, %v4878_v44, %v4880_v1 }
 0x2c8   :  { %5036 = vmatpush1.msra.mxu1 %v4900_v36  ;;  %4834 = vmatprep.mubr.f32.mxu1 %v17296_v46 }
 0x2c9   :  { %5037 = vmatprep.subr.mxu1 %v4896_v47  ;;  %v4892_v34 = vpop.permute.xlu0 %4891 }
 0x2ca   :  { %11795 = vmatmul.mubr.msk.f32.vlgmr.msra.gmra.mxu0 %vm2718_vm10, %v11792_v38  ;;  %5038 = vmatpush1.msra.mxu1 %v4895_v32  ;;  %v4902_v18 = vsel %vm2040_vm8, %v4890_v9, %v4892_v34  ;;  %vm9906_vm8 = vcmask 539648  }
 0x2cb   :  { %11790 = vmatmul.mubr.msk.f32.gmra.mxu1 %vm2718_vm10, %v11781_v0  ;;  %4994 = vmatprep.mubr.f32.mxu0 %v17296_v46  ;;  %v5212_v33 = vpop.permute.xlu1 %5211 }
 0x2cc   :  { %4840 = vmatprep.mubr.f32.mxu1 %v17296_v46  ;;  %5118 = vmatprep.subr.mxu0 %v4892_v34  ;;  %v5225_v30 = vsel %vm2325_vm9, %v5210_v20, %v5212_v33 }
 0x2cd   :  { %5119 = vmatpush1.msra.mxu0 %v4902_v18  ;;  %5278 = vmatprep.subr.mxu1 %v5225_v30 }
 0x2ce   :  { %11796 = vmatmul.mubr.msk.f32.gmra.mxu0 %vm2718_vm10, %v11793_v60  ;;  %5120 = vmatprep.subr.mxu0 %v4880_v1 }
 0x2cf   :  { %11791 = vmatmul.mubr.msk.f32.gmra.mxu1 %vm2718_vm10, %v11782_v58  ;;  %5000 = vmatprep.mubr.f32.mxu0 %v17296_v46  ;;  %v5214_v35 = vpop.permute.xlu0 %5213 }
 0x2d0   :  { %5071 = vmatprep.mubr.f32.mxu1 %v17296_v46  ;;  %5121 = vmatpush1.msra.mxu0 %v4897_v57  ;;  %v5226_v54 = vsel %vm2325_vm9, %v5212_v33, %v5214_v35 }
 0x2d1   :  { %v5216_v23 = vpop.permute.xlu1 %5215 }
 0x2d2   :  { %11797 = vmatmul.mubr.msk.f32.gmra.mxu0 %vm2718_vm10, %v11794_v16  ;;  %v5227_v39 = vsel %vm2325_vm9, %v5214_v35, %v5216_v23 }
 0x2d3   :  { %11798 = vmatmul.mubr.msk.f32.vlgmr.msra.gmra.mxu1 %vm2718_vm10, %v11792_v38  ;;  %5154 = vmatprep.mubr.f32.mxu0 %v17296_v46  ;;  %v5208_v3 = vpop.permute.xlu0 %5207 }
 0x2d4   :  { %v5224_v6 = vsel %vm2325_vm9, %v5208_v3, %v5210_v20  ;;  %5077 = vmatprep.mubr.f32.mxu1 %v17296_v46  ;;  %5361 = vmatprep.subr.mxu0 %v5227_v39 }
 0x2d5   :  { %5279 = vmatpush1.msra.mxu1 %v5224_v6  ;;  %v5198_v41 = vpop.permute.xlu1 %5197 }
 0x2d6   :  { %11801 = vmatmul.mubr.msk.f32.vlgmr.msra.gmra.mxu0 %vm2718_vm10, %v11792_v38 }
 0x2d7   :  { %11799 = vmatmul.mubr.msk.f32.gmra.mxu1 %vm2718_vm10, %v11793_v60  ;;  %5362 = vmatpush1.msra.mxu0 %v5226_v54  ;;  %v5200_v15 = vpop.permute.xlu0 %5199 }
 0x2d8   :  { %5160 = vmatprep.mubr.f32.mxu0 %v17296_v46  ;;  %5083 = vmatprep.mubr.f32.mxu1 %v17296_v46  ;;  %v5220_v22 = vsel %vm2325_vm9, %v5198_v41, %v5200_v15 }
 0x2d9   :  { %5280 = vmatprep.subr.mxu1 %v5220_v22  ;;  %v5202_v2 = vpop.permute.xlu1 %5201 }
 0x2da   :  { %11802 = vmatmul.mubr.msk.f32.gmra.mxu0 %vm2718_vm10, %v11793_v60  ;;  %v5221_v14 = vsel %vm2325_vm9, %v5200_v15, %v5202_v2 }
 0x2db   :  { %11800 = vmatmul.mubr.msk.f32.gmra.mxu1 %vm2718_vm10, %v11794_v16  ;;  %5166 = vmatprep.mubr.f32.mxu0 %v17296_v46 }
 0x2dc   :  { %v5204_v26 = vpop.permute.xlu0 %5203  ;;  %5314 = vmatprep.mubr.f32.mxu1 %v17296_v46 }
 0x2dd   :  { %v5222_v4 = vsel %vm2325_vm9, %v5202_v2, %v5204_v26 }
 0x2de   :  { %11803 = vmatmul.mubr.msk.f32.gmra.mxu0 %vm2718_vm10, %v11794_v16  ;;  %5363 = vmatprep.subr.mxu0 %v5222_v4  ;;  %v5196_v51 = vpop.permute.xlu1 %5195 }
 0x2df   :  { %v5219_v10 = vsel %vm2325_vm9, %v5196_v51, %v5198_v41  ;;  %5364 = vmatpush1.msra.mxu0 %v5221_v14  ;;  %5397 = vmatprep.mubr.f32.mxu0 %v17296_v46 }
 0x2e0   :  { %v5218_v29 = vpop.permute.xlu0 %5217  ;;  %5281 = vmatpush1.msra.mxu1 %v5219_v10 }
 0x2e1   :  { %11807 = vmatmul.mubr.msk.f32.vlgmr.msra.gmra.mxu1 %vm2718_vm10, %v11804_v63  ;;  %5444 = vmatprep.subr.mxu1 %v5218_v29  ;;  %v5228_v12 = vsel %vm2325_vm9, %v5216_v23, %v5218_v29 }
 0x2e2   :  { %11810 = vmatmul.mubr.msk.f32.vlgmr.msra.gmra.mxu0 %vm2718_vm10, %v11804_v63  ;;  %5445 = vmatpush1.msra.mxu1 %v5228_v12  ;;  %v5206_v21 = vpop.permute.xlu1 %5205 }
 0x2e3   :  { %5403 = vmatprep.mubr.f32.mxu0 %v17296_v46  ;;  %5446 = vmatprep.subr.mxu1 %v5206_v21  ;;  %v5223_v24 = vsel %vm2325_vm9, %v5204_v26, %v5206_v21  ;;  %vm13288_vm9 = vmmov 0  }
 0x2e4   :  { %5320 = vmatprep.mubr.f32.mxu1 %v17296_v46  ;;  %5447 = vmatpush1.msra.mxu1 %v5223_v24 }
 0x2e5   :  { %11808 = vmatmul.mubr.msk.f32.gmra.mxu1 %vm2718_vm10, %v11805_v52 }
 0x2e6   :  { %11811 = vmatmul.mubr.msk.f32.gmra.mxu0 %vm2718_vm10, %v11805_v52  ;;  %5326 = vmatprep.mubr.f32.mxu1 %v17296_v46 }
 0x2e7   :  { %5409 = vmatprep.mubr.f32.mxu0 %v17296_v46 }
 0x2e9   :  { %11809 = vmatmul.mubr.msk.f32.gmra.mxu1 %vm2718_vm10, %v11806_v7 }
 0x2ea   :  { %11812 = vmatmul.mubr.msk.f32.gmra.mxu0 %vm2718_vm10, %v11806_v7  ;;  %5480 = vmatprep.mubr.f32.mxu1 %v17296_v46 }
 0x2eb   :  { %5705 = vmatprep.mubr.f32.mxu0 %v17296_v46 }
 0x2ed   :  { %11813 = vmatmul.mubr.msk.f32.vlgmr.msra.gmra.mxu1 %vm2718_vm10, %v11804_v63 }
 0x2ee   :  { %5486 = vmatprep.mubr.f32.mxu1 %v17296_v46 }
 0x2f1   :  { %11814 = vmatmul.mubr.msk.f32.gmra.mxu1 %vm2718_vm10, %v11805_v52 }
 0x2f2   :  { %5492 = vmatprep.mubr.f32.mxu1 %v17296_v46 }
 0x2f5   :  { %11815 = vmatmul.mubr.msk.f32.gmra.mxu1 %vm2718_vm10, %v11806_v7  ;;  %vm11432_vm10 = vcmask 1045504  }
 0x2f6   :  { %5788 = vmatprep.mubr.f32.mxu1 %v17296_v46 }
 0x2fe   :  { %v2794_v40 = vpop.f32.mrf.mxu1 }
 0x300   :  { %v14763_v59 = vpop.f32.mrf.mxu1 }
 0x302   :  { %v2800_v45 = vpop.f32.mrf.mxu1 }
 0x304   :  { %v14765_v49 = vpop.f32.mrf.mxu1 }
 0x306   :  { %v2806_v13 = vpop.f32.mrf.mxu1 }
 0x308   :  { %v14769_v53 = vpop.f32.mrf.mxu1 }
 0x30c   :  { %v2877_v62 = vpop.f32.mrf.mxu0 }
 0x30e   :  { %v14767_v8 = vpop.f32.mrf.mxu0 }
 0x311   :  { %v2883_v48 = vpop.f32.mrf.mxu0 }
 0x313   :  { %v14771_v27 = vpop.f32.mrf.mxu0 }
 0x315   :  { %v2889_v17 = vpop.f32.mrf.mxu0 }
 0x316   :  { %v2960_v19 = vpop.f32.mrf.mxu1 }
 0x317   :  { %v14773_v37 = vpop.f32.mrf.mxu0 }
 0x318   :  { %v14775_v5 = vpop.f32.mrf.mxu1 }
 0x31a   :  { %v3052_v50 = vpop.f32.mrf.mxu0 }
 0x31b   :  { %v3053_v31 = vadd.f32 %v3052_v50, %v2794_v40  ;;  %v2966_v0 = vpop.f32.mrf.mxu1 }
 0x31c   :  { %v14777_v42 = vpop.f32.mrf.mxu0 }
 0x31d   :  { %v14779_v28 = vpop.f32.mrf.mxu1 }
 0x320   :  { %v3058_v11 = vpop.f32.mrf.mxu0  ;;  %v2972_v43 = vpop.f32.mrf.mxu1 }
 0x321   :  { %v3059_v56 = vadd.f32 %v3058_v11, %v2800_v45 }
 0x322   :  { %v14781_v9 = vpop.f32.mrf.mxu0  ;;  %v14783_v58 = vpop.f32.mrf.mxu1 }
 0x324   :  { %v3064_v44 = vpop.f32.mrf.mxu0  ;;  %v3135_v25 = vpop.f32.mrf.mxu1 }
 0x325   :  { %v3065_v55 = vadd.f32 %v3064_v44, %v2806_v13  ;;  %v3136_v61 = vadd.f32 %v3135_v25, %v2877_v62 }
 0x326   :  { %v14785_v20 = vpop.f32.mrf.mxu0  ;;  %v14787_v47 = vpop.f32.mrf.mxu1 }
 0x328   :  { %v3218_v1 = vpop.f32.mrf.mxu0 }
 0x329   :  { %v3219_v36 = vadd.f32 %v3218_v1, %v2960_v19  ;;  %v3141_v38 = vpop.f32.mrf.mxu1 }
 0x32a   :  { %v3142_v32 = vadd.f32 %v3141_v38, %v2883_v48  ;;  %v14789_v34 = vpop.f32.mrf.mxu0 }
 0x32b   :  { %v14791_v18 = vpop.f32.mrf.mxu1 }
 0x32d   :  { %v3224_v60 = vpop.f32.mrf.mxu0 }
 0x32e   :  { %v3225_v33 = vadd.f32 %v3224_v60, %v2966_v0  ;;  %v3147_v30 = vpop.f32.mrf.mxu1 }
 0x32f   :  { %v3148_v35 = vadd.f32 %v3147_v30, %v2889_v17  ;;  %v14793_v16 = vpop.f32.mrf.mxu0 }
 0x330   :  { %v14795_v57 = vpop.f32.mrf.mxu1 }
 0x331   :  { %v3230_v23 = vpop.f32.mrf.mxu0 }
 0x332   :  { %v3231_v39 = vadd.f32 %v3230_v23, %v2972_v43  ;;  %v3360_v3 = vpop.f32.mrf.mxu1 }
 0x333   :  { %v3543_v6 = vadd.f32 %v3360_v3, %v3053_v31  ;;  %v14797_v41 = vpop.f32.mrf.mxu0 }
 0x334   :  { %v14799_v54 = vpop.f32.mrf.mxu1 }
 0x335   :  { %v3443_v15 = vpop.f32.mrf.mxu0 }
 0x336   :  { %v3545_v22 = vadd.f32 %v3443_v15, %v3136_v61  ;;  %v3366_v2 = vpop.f32.mrf.mxu1 }
 0x337   :  { %v3549_v26 = vadd.f32 %v3366_v2, %v3059_v56  ;;  %v14801_v4 = vpop.f32.mrf.mxu0 }
 0x338   :  { %v14803_v51 = vpop.f32.mrf.mxu1 }
 0x33a   :  { %v3449_v14 = vpop.f32.mrf.mxu0  ;;  %v3372_v63 = vpop.f32.mrf.mxu1 }
 0x33b   :  { %v3551_v10 = vadd.f32 %v3449_v14, %v3142_v32  ;;  %v3555_v29 = vadd.f32 %v3372_v63, %v3065_v55 }
 0x33c   :  { %v14805_v12 = vpop.f32.mrf.mxu0  ;;  %v14807_v21 = vpop.f32.mrf.mxu1 }
 0x33e   :  { %v3455_v52 = vpop.f32.mrf.mxu0 }
 0x33f   :  { %v3557_v24 = vadd.f32 %v3455_v52, %v3148_v35  ;;  %v3526_v7 = vpop.f32.mrf.mxu1 }
 0x340   :  { %v3547_v40 = vadd.f32 %v3526_v7, %v3219_v36  ;;  %v14809_v45 = vpop.f32.mrf.mxu0 }
 0x341   :  { %v14811_v62 = vpop.f32.mrf.mxu1 }
 0x342   :  { %v3686_v13 = vpop.f32.mrf.mxu0 }
 0x343   :  { %v3869_v48 = vadd.f32 %v3686_v13, %v3543_v6  ;;  %v3532_v17 = vpop.f32.mrf.mxu1 }
 0x344   :  { %v3553_v19 = vadd.f32 %v3532_v17, %v3225_v33  ;;  %v14813_v50 = vpop.f32.mrf.mxu0 }
 0x345   :  { %v14815_v31 = vpop.f32.mrf.mxu1 }
 0x346   :  { %v3692_v0 = vpop.f32.mrf.mxu0 }
 0x347   :  { %v3875_v11 = vadd.f32 %v3692_v0, %v3549_v26  ;;  %v3538_v43 = vpop.f32.mrf.mxu1 }
 0x348   :  { %v3559_v56 = vadd.f32 %v3538_v43, %v3231_v39  ;;  %v14817_v44 = vpop.f32.mrf.mxu0 }
 0x349   :  { %v14819_v25 = vpop.f32.mrf.mxu1 }
 0x34a   :  { %v3698_v55 = vpop.f32.mrf.mxu0 }
 0x34b   :  { %v3881_v61 = vadd.f32 %v3698_v55, %v3555_v29  ;;  %v3769_v1 = vpop.f32.mrf.mxu1 }
 0x34c   :  { %v3871_v36 = vadd.f32 %v3769_v1, %v3545_v22  ;;  %v14821_v38 = vpop.f32.mrf.mxu0 }
 0x34d   :  { %v14823_v32 = vpop.f32.mrf.mxu1 }
 0x34e   :  { %v3852_v60 = vpop.f32.mrf.mxu0 }
 0x34f   :  { %v3873_v33 = vadd.f32 %v3852_v60, %v3547_v40  ;;  %v3775_v30 = vpop.f32.mrf.mxu1 }
 0x350   :  { %v3877_v35 = vadd.f32 %v3775_v30, %v3551_v10  ;;  %v14825_v23 = vpop.f32.mrf.mxu0 }
 0x351   :  { %v14827_v3 = vpop.f32.mrf.mxu1 }
 0x352   :  { %v3858_v39 = vpop.f32.mrf.mxu0 }
 0x353   :  { %v3879_v6 = vadd.f32 %v3858_v39, %v3553_v19  ;;  %v3781_v15 = vpop.f32.mrf.mxu1 }
 0x354   :  { %v3883_v2 = vadd.f32 %v3781_v15, %v3557_v24  ;;  %v14829_v26 = vpop.f32.mrf.mxu0 }
 0x355   :  { %v14831_v14 = vpop.f32.mrf.mxu1 }
 0x356   :  { %v3864_v22 = vpop.f32.mrf.mxu0 }
 0x357   :  { %v3885_v63 = vadd.f32 %v3864_v22, %v3559_v56  ;;  %v4012_v29 = vpop.f32.mrf.mxu1 }
 0x358   :  { %v4195_v52 = vadd.f32 %v4012_v29, %v3869_v48  ;;  %v14833_v7 = vpop.f32.mrf.mxu0 }
 0x359   :  { %v14835_v40 = vpop.f32.mrf.mxu1 }
 0x35a   :  { %v4095_v10 = vpop.f32.mrf.mxu0 }
 0x35b   :  { %v14837_v13 = vadd.f32 %v4095_v10, %v3871_v36  ;;  %v4018_v17 = vpop.f32.mrf.mxu1 }
 0x35c   :  { %v14839_v0 = vadd.f32 %v4018_v17, %v3875_v11  ;;  %v14841_v19 = vpop.f32.mrf.mxu0 }
 0x35d   :  { %v14843_v24 = vpop.f32.mrf.mxu1 }
 0x35e   :  { %v4101_v43 = vpop.f32.mrf.mxu0 }
 0x35f   :  { %v14845_v55 = vadd.f32 %v4101_v43, %v3877_v35  ;;  %v4024_v56 = vpop.f32.mrf.mxu1 }
 0x360   :  { %v14847_v1 = vadd.f32 %v4024_v56, %v3881_v61  ;;  %v14849_v48 = vpop.f32.mrf.mxu0 }
 0x361   :  { %17297 = vst [vmem:[#allocation17_spill] sm:$0xff] %v14845_v55  ;;  %v14851_v60 = vpop.f32.mrf.mxu1 }
 0x362   :  { %v4107_v30 = vpop.f32.mrf.mxu0 }
 0x363   :  { %v14853_v36 = vadd.f32 %v4107_v30, %v3883_v2  ;;  %v4178_v39 = vpop.f32.mrf.mxu1 }
 0x364   :  { %v4199_v11 = vadd.f32 %v4178_v39, %v3873_v33  ;;  %v14855_v15 = vpop.f32.mrf.mxu0 }
 0x365   :  { %17298 = vst [vmem:[#allocation10_spill] sm:$0xff] %v14853_v36  ;;  %v14857_v22 = vpop.f32.mrf.mxu1 }
 0x366   :  { %v4338_v29 = vpop.f32.mrf.mxu0 }
 0x367   :  { %v14859_v10 = vadd.f32 %v4338_v29, %v4195_v52  ;;  %v4184_v35 = vpop.f32.mrf.mxu1 }
 0x368   :  { %v14861_v17 = vadd.f32 %v4184_v35, %v3879_v6  ;;  %v14863_v61 = vpop.f32.mrf.mxu0 }
 0x369   :  { %17299 = vst [vmem:[#allocation5_spill] sm:$0xff] %v14859_v10  ;;  %v14865_v43 = vpop.f32.mrf.mxu1 }
 0x36a   :  { %17300 = vst [vmem:[#allocation9_spill] sm:$0xff] %v14861_v17  ;;  %v14867_v56 = vpop.f32.mrf.mxu0 }
 0x36b   :  { %v4190_v2 = vpop.f32.mrf.mxu1 }
 0x36c   :  { %v14869_v30 = vadd.f32 %v4190_v2, %v3885_v63  ;;  %v14871_v33 = vpop.f32.mrf.mxu0 }
 0x36d   :  { %v14873_v39 = vpop.f32.mrf.mxu1 }
 0x36e   :  { %17301 = vst [vmem:[#allocation14_spill] sm:$0xff] %v14869_v30  ;;  %v14875_v46 = vpop.f32.mrf.mxu0 }
 0x36f   :  { %v14877_v52 = vpop.f32.mrf.mxu1 }
 0x370   :  { %17302 = vst [vmem:[#allocation7_spill] sm:$0xff] %v14877_v52  ;;  %v14879_v29 = vpop.f32.mrf.mxu0 }
 0x371   :  { %17303 = vst [vmem:[#allocation11_spill] sm:$0xff] %v14879_v29  ;;  %v14881_v6 = vpop.f32.mrf.mxu1 }
 0x372   :  { %17304 = vst [vmem:[#allocation12_spill] sm:$0xff] %v14881_v6  ;;  %v4504_v35 = vpop.f32.mrf.mxu0 }
 0x373   :  { %v14883_v10 = vadd.f32 %v4504_v35, %v4199_v11  ;;  %v14885_v36 = vpop.f32.mrf.mxu1 }
 0x374   :  { %v14887_v17 = vpop.f32.mrf.mxu0 }
 0x375   :  { %17305 = vst [vmem:[#allocation19_spill] sm:$0xff] %v14883_v10  ;;  %17306 = vst [vmem:[#allocation15_spill] sm:$0xff] %v14887_v17  ;;  %v14889_v63 = vpop.f32.mrf.mxu1 }
 0x376   :  { %17307 = vst [vmem:[#allocation18_spill] sm:$0xff] %v14889_v63  ;;  %v14891_v2 = vpop.f32.mrf.mxu0 }
 0x377   :  { %17308 = vst [vmem:[#allocation23_spill] sm:$0xff] %v14891_v2  ;;  %v14893_v30 = vpop.f32.mrf.mxu1 }
 0x378   :  { %17309 = vst [vmem:[#allocation3_spill] sm:$0xff] %v14893_v30  ;;  %v14895_v55 = vpop.f32.mrf.mxu0 }
 0x379   :  { %17310 = vst [vmem:[#allocation4_spill] sm:$0xff] %v14895_v55  ;;  %v14897_v52 = vpop.f32.mrf.mxu1 }
 0x37a   :  { %17311 = vst [vmem:[#allocation20_spill] sm:$0xff] %v14897_v52  ;;  %v14899_v29 = vpop.f32.mrf.mxu0 }
 0x37b   :  { %17312 = vst [vmem:[#allocation21_spill] sm:$0xff] %v14899_v29  ;;  %v14901_v6 = vpop.f32.mrf.mxu1 }
 0x37c   :  { %17313 = vst [vmem:[#allocation6_spill] sm:$0xff] %v14901_v6  ;;  %v14903_v11 = vpop.f32.mrf.mxu0 }
 0x37d   :  { %17314 = vst [vmem:[#allocation8_spill] sm:$0xff] %v14903_v11  ;;  %v14905_v35 = vpop.f32.mrf.mxu1 }
 0x37e   :  { %17315 = vst [vmem:[#allocation13_spill] sm:$0xff] %v14905_v35  ;;  %v14907_v10 = vpop.f32.mrf.mxu0 }
 0x37f   :  { %17316 = vst [vmem:[#allocation16_spill] sm:$0xff] %v14907_v10  ;;  %v14909_v17 = vpop.f32.mrf.mxu1 }
 0x380   :  { %17317 = vst [vmem:[#allocation22_spill] sm:$0xff] %v14909_v17  ;;  %v14911_v63 = vpop.f32.mrf.mxu0 }
 0x381   :  { %17318 = vst [vmem:[#allocation24_spill] sm:$0xff] %v14911_v63  ;;  %v14913_v2 = vpop.f32.mrf.mxu1 }
 0x382   :  { %17319 = vst [vmem:[#allocation25_spill] sm:$0xff] %v14913_v2  ;;  %v14915_v30 = vpop.f32.mrf.mxu0 }
 0x383   :  { %17320 = vst [vmem:[#allocation26_spill] sm:$0xff] %v14915_v30  ;;  %v14917_v55 = vpop.f32.mrf.mxu1 }
 0x384   :  { %17321 = vst [vmem:[#allocation27_spill] sm:$0xff] %v14917_v55  ;;  %v14919_v52 = vpop.f32.mrf.mxu0 }
 0x385   :  { %17322 = vst [vmem:[#allocation28_spill] sm:$0xff] %v14919_v52  ;;  %v14921_v29 = vpop.f32.mrf.mxu1 }
 0x386   :  { %17323 = vst [vmem:[#allocation29_spill] sm:$0xff] %v14921_v29  ;;  %v14923_v6 = vpop.f32.mrf.mxu0 }
 0x387   :  { %17324 = vst [vmem:[#allocation30_spill] sm:$0xff] %v14923_v6  ;;  %v14925_v11 = vpop.f32.mrf.mxu1 }
 0x388   :  { %17325 = vst [vmem:[#allocation31_spill] sm:$0xff] %v14925_v11  ;;  %v14927_v35 = vpop.f32.mrf.mxu0 }
 0x389   :  { %17326 = vst [vmem:[#allocation32_spill] sm:$0xff] %v14927_v35  ;;  %v14929_v10 = vpop.f32.mrf.mxu1 }
 0x38a   :  { %v14931_v17 = vpop.f32.mrf.mxu0 }
 0x38b   :  { %17327 = vst [vmem:[#allocation33_spill] sm:$0xff] %v14931_v17  ;;  %v14933_v63 = vpop.f32.mrf.mxu1  ;;  %v3055_v17 = vadd.f32 %v14777_v42, %v14763_v59  ;;  %v3150_v59 = vadd.f32 %v14795_v57, %v14773_v37 }
 0x38c   :  { %v14935_v2 = vpop.f32.mrf.mxu0 }
 0x38d   :  { %17328 = vst [vmem:[#allocation34_spill] sm:$0xff] %v14935_v2  ;;  %v14937_v30 = vpop.f32.mrf.mxu1  ;;  %v3061_v2 = vadd.f32 %v14781_v9, %v14765_v49  ;;  %v3227_v49 = vadd.f32 %v14793_v16, %v14779_v28  ;;  %v3544_v9 = vadd.f32 %v14799_v54, %v3055_v17 }
 0x38e   :  { %17329 = vst [vmem:[#allocation35_spill] sm:$0xff] %v14937_v30  ;;  %v14939_v55 = vpop.f32.mrf.mxu0  ;;  %v3067_v30 = vadd.f32 %v14785_v20, %v14769_v53  ;;  %v3233_v53 = vadd.f32 %v14797_v41, %v14783_v58 }
 0x38f   :  { %17330 = vst [vmem:[#allocation36_spill] sm:$0xff] %v14939_v55  ;;  %v14941_v52 = vpop.f32.mrf.mxu1  ;;  %v3870_v58 = vadd.f32 %v14813_v50, %v3544_v9  ;;  %v17343_v9 = vld [vmem:[#allocation3_spill] sm:$0xff] }
 0x390   :  { %v14943_v29 = vpop.f32.mrf.mxu0  ;;  %v3556_v37 = vadd.f32 %v14807_v21, %v3067_v30  ;;  %v3560_v41 = vadd.f32 %v14819_v25, %v3233_v53 }
 0x391   :  { %17331 = vst [vmem:[#allocation37_spill] sm:$0xff] %v14943_v29  ;;  %v14945_v6 = vpop.f32.mrf.mxu1  ;;  %v3138_v29 = vadd.f32 %v14787_v47, %v14767_v8  ;;  %v3550_v8 = vadd.f32 %v14803_v51, %v3061_v2  ;;  %v3558_v47 = vadd.f32 %v14809_v45, %v3150_v59  ;;  %v4196_v50 = vadd.f32 %v14835_v40, %v3870_v58 }
 0x392   :  { %17332 = vst [vmem:[#allocation38_spill] sm:$0xff] %v14945_v6  ;;  %v14947_v11 = vpop.f32.mrf.mxu0  ;;  %v3221_v6 = vadd.f32 %v14789_v34, %v14775_v5  ;;  %v3882_v54 = vadd.f32 %v14821_v38, %v3556_v37 }
 0x393   :  { %v14949_v35 = vpop.f32.mrf.mxu1  ;;  %v3546_v5 = vadd.f32 %v14801_v4, %v3138_v29  ;;  %v3876_v16 = vadd.f32 %v14817_v44, %v3550_v8  ;;  %v3886_v44 = vadd.f32 %v14833_v7, %v3560_v41  ;;  %v4522_v40 = vadd.f32 %v14863_v61, %v4196_v50  ;;  %v17336_v61 = vld [vmem:[#allocation12_spill] sm:$0xff] }
 0x394   :  { %17333 = vst [vmem:[#allocation39_spill] sm:$0xff] %v14949_v35  ;;  %v14957_v55 = vpop.f32.mrf.mxu0  ;;  %v3144_v35 = vadd.f32 %v14791_v18, %v14771_v27  ;;  %v3548_v28 = vadd.f32 %v14811_v62, %v3221_v6  ;;  %v3554_v18 = vadd.f32 %v14815_v31, %v3227_v49  ;;  %v3884_v62 = vadd.f32 %v14831_v14, %v3558_v47  ;;  %v17341_v49 = vld [vmem:[#allocation23_spill] sm:$0xff]  ;;  %v17344_v8 = vld [vmem:[#allocation4_spill] sm:$0xff]  ;;  %v17346_v47 = vld [vmem:[#allocation14_spill] sm:$0xff] }
 0x395   :  { %v14967_v42 = vpop.f32.mrf.mxu1  ;;  %v3872_v4 = vadd.f32 %v14823_v32, %v3546_v5  ;;  %v4202_v38 = vadd.f32 %v14843_v24, %v3876_v16  ;;  %v17349_v16 = vld [vmem:[#allocation6_spill] sm:$0xff] }
 0x396   :  { %v14975_v20 = vpop.f32.mrf.mxu0  ;;  %v3552_v27 = vadd.f32 %v14805_v12, %v3144_v35  ;;  %v3874_v21 = vadd.f32 %v14825_v23, %v3548_v28  ;;  %v3880_v45 = vadd.f32 %v14829_v26, %v3554_v18  ;;  %v4208_v23 = vadd.f32 %v14851_v60, %v3882_v54  ;;  %v17347_v28 = vld [vmem:[#allocation21_spill] sm:$0xff]  ;;  %v17350_v54 = vld [vmem:[#allocation8_spill] sm:$0xff] }
 0x397   :  { %v14981_v34 = vpop.f32.mrf.mxu1  ;;  %v4198_v25 = vadd.f32 %v14841_v19, %v3872_v4  ;;  %v4210_v26 = vadd.f32 %v14855_v15, %v3884_v62  ;;  %v4527_v19 = vadd.f32 %v14867_v56, %v14839_v0  ;;  %v4528_v24 = vadd.f32 %v14871_v33, %v4202_v38  ;;  %v17334_v15 = vld [vmem:[#allocation7_spill] sm:$0xff]  ;;  %v17339_v33 = vld [vmem:[#allocation18_spill] sm:$0xff]  ;;  %v17354_v38 = vld [vmem:[#allocation24_spill] sm:$0xff] }
 0x398   :  { %v14987_v57 = vpop.f32.mrf.mxu0  ;;  %v3878_v51 = vadd.f32 %v14827_v3, %v3552_v27  ;;  %v4200_v14 = vadd.f32 %v14857_v22, %v3874_v21  ;;  %v4206_v7 = vadd.f32 %v14865_v43, %v3880_v45  ;;  %v4533_v60 = vadd.f32 %v14875_v46, %v14847_v1  ;;  %v17335_v22 = vld [vmem:[#allocation11_spill] sm:$0xff]  ;;  %v17337_v43 = vld [vmem:[#allocation17_spill] sm:$0xff]  ;;  %v17342_v1 = vld [vmem:[#allocation10_spill] sm:$0xff] }
 0x399   :  { %v14993_v12 = vpop.f32.mrf.mxu1  ;;  %v4523_v30 = vadd.f32 %v17334_v15, %v14837_v13  ;;  %v4534_v29 = vadd.f32 %v17335_v22, %v4208_v23  ;;  %v4524_v6 = vadd.f32 %v17336_v61, %v4198_v25  ;;  %v4529_v35 = vadd.f32 %v14885_v36, %v17337_v43  ;;  %v17338_v0 = vld [vmem:[#allocation15_spill] sm:$0xff]  ;;  %v17345_v27 = vld [vmem:[#allocation20_spill] sm:$0xff]  ;;  %v17348_v36 = vld [vmem:[#allocation5_spill] sm:$0xff] }
 0x39a   :  { %v14999_v31 = vpop.f32.mrf.mxu0  ;;  %v4204_v32 = vadd.f32 %v14849_v48, %v3878_v51  ;;  %v4212_v48 = vadd.f32 %v14873_v39, %v3886_v44  ;;  %v4526_v56 = vadd.f32 %v17338_v0, %v4200_v14  ;;  %v17340_v39 = vld [vmem:[#allocation9_spill] sm:$0xff]  ;;  %v4535_v13 = vadd.f32 %v17343_v9, %v17342_v1  ;;  %v17352_v45 = vld [vmem:[#allocation16_spill] sm:$0xff]  ;;  %v17353_v44 = vld [vmem:[#allocation22_spill] sm:$0xff] }
 0x39b   :  { %v15005_v3 = vpop.f32.mrf.mxu1  ;;  %v4531_v53 = vadd.f32 %v17341_v49, %v17340_v39  ;;  %v4532_v5 = vadd.f32 %v17344_v8, %v4206_v7  ;;  %v4536_v37 = vadd.f32 %v17345_v27, %v4210_v26  ;;  %v4537_v58 = vadd.f32 %v17347_v28, %v17346_v47  ;;  %v17351_v51 = vld [vmem:[#allocation13_spill] sm:$0xff]  ;;  %v17356_v14 = vld [vmem:[#allocation26_spill] sm:$0xff]  ;;  %v17357_v22 = vld [vmem:[#allocation27_spill] sm:$0xff] }
 0x39c   :  { %v15011_v17 = vpop.f32.mrf.mxu0  ;;  %v4530_v59 = vadd.f32 %v17339_v33, %v4204_v32  ;;  %v4847_v41 = vadd.f32 %v17349_v16, %v17348_v36  ;;  %v4538_v4 = vadd.f32 %v17350_v54, %v4212_v48  ;;  %v4848_v21 = vadd.f32 %v17351_v51, %v4522_v40  ;;  %v17355_v23 = vld [vmem:[#allocation25_spill] sm:$0xff]  ;;  %v17358_v43 = vld [vmem:[#allocation28_spill] sm:$0xff]  ;;  %v17360_v39 = vld [vmem:[#allocation30_spill] sm:$0xff]  ;;  %v15062_v54 = vpop.permute.xlu0 %5555 }
 0x39d   :  { %v5087_v46 = vpop.f32.mrf.mxu1  ;;  %v4849_v62 = vadd.f32 %v17352_v45, %v4523_v30  ;;  %v4853_v25 = vadd.f32 %v17353_v44, %v4527_v19  ;;  %v4850_v32 = vadd.f32 %v17354_v38, %v4524_v6  ;;  %v4854_v26 = vadd.f32 %v17355_v23, %v4528_v24  ;;  %v17359_v33 = vld [vmem:[#allocation29_spill] sm:$0xff]  ;;  %v17361_v30 = vld [vmem:[#allocation19_spill] sm:$0xff]  ;;  %v17363_v19 = vld [vmem:[#allocation32_spill] sm:$0xff]  ;;  %v15068_v38 = vpop.permute.xlu1 %5550 }
 0x39e   :  { %v15024_v2 = vpop.f32.mrf.mxu0  ;;  %v4855_v7 = vadd.f32 %v17356_v14, %v4529_v35  ;;  %v4859_v61 = vadd.f32 %v17357_v22, %v4533_v60  ;;  %v4856_v0 = vadd.f32 %v17358_v43, %v4530_v59  ;;  %v4860_v48 = vadd.f32 %v17359_v33, %v4534_v29  ;;  %v17362_v1 = vld [vmem:[#allocation31_spill] sm:$0xff]  ;;  %v17364_v24 = vld [vmem:[#allocation33_spill] sm:$0xff]  ;;  %v17365_v60 = vld [vmem:[#allocation34_spill] sm:$0xff] }
 0x39f   :  { %v4861_v40 = vadd.f32 %v17360_v39, %v4535_v13  ;;  %v4851_v9 = vadd.f32 %v17362_v1, %v17361_v30  ;;  %v4862_v8 = vadd.f32 %v17363_v19, %v4536_v37  ;;  %v4852_v6 = vadd.f32 %v14929_v10, %v4526_v56  ;;  %v17366_v59 = vld [vmem:[#allocation35_spill] sm:$0xff]  ;;  %v17367_v29 = vld [vmem:[#allocation36_spill] sm:$0xff]  ;;  %v17368_v45 = vld [vmem:[#allocation37_spill] sm:$0xff] }
 0x3a0   :  { %v15038_v18 = vpop.f32.mrf.mxu0  ;;  %v5173_v27 = vadd.f32 %v17364_v24, %v4847_v41  ;;  %v4857_v47 = vadd.f32 %v14933_v63, %v4531_v53  ;;  %v5174_v28 = vadd.f32 %v17365_v60, %v4848_v21  ;;  %v4858_v36 = vadd.f32 %v17366_v59, %v4532_v5  ;;  %v17369_v44 = vld [vmem:[#allocation38_spill] sm:$0xff]  ;;  %v17370_v63 = vld [vmem:[#allocation39_spill] sm:$0xff]  ;;  %v15083_v39 = vpop.permute.xlu0 %5588 }
 0x3a1   :  { %v5316_v50 = vpop.f32.mrf.mxu1  ;;  %v5179_v16 = vadd.f32 %v17367_v29, %v4853_v25  ;;  %v4863_v51 = vadd.f32 %v14941_v52, %v4537_v58  ;;  %v5180_v37 = vadd.f32 %v17368_v45, %v4854_v26  ;;  %v4864_v10 = vadd.f32 %v17369_v44, %v4538_v4  ;;  %v15085_v1 = vpop.permute.xlu1 %5545 }
 0x3a2   :  { %v5399_v15 = vpop.f32.mrf.mxu0  ;;  %v5185_v56 = vadd.f32 %v14947_v11, %v4859_v61  ;;  %v5175_v53 = vadd.f32 %v17370_v63, %v4849_v62  ;;  %v5186_v5 = vadd.f32 %v14957_v55, %v4860_v48  ;;  %v5176_v21 = vadd.f32 %v14967_v42, %v4850_v32 }
 0x3a3   :  { %v5318_v49 = vpop.f32.mrf.mxu1  ;;  %v5182_v25 = vadd.f32 %v14993_v12, %v4856_v0  ;;  %v15075_v52 = vadd.f32 %v14975_v20, %v4851_v9  ;;  %v5181_v58 = vadd.f32 %v14981_v34, %v4855_v7  ;;  %v15079_v14 = vadd.f32 %v14987_v57, %v4852_v6 }
 0x3a4   :  { %v5401_v35 = vpop.f32.mrf.mxu0  ;;  %v5500_v4 = vadd.f32 %v5318_v49, %v5174_v28  ;;  %v5187_v62 = vadd.f32 %v15005_v3, %v4861_v40  ;;  %v5183_v42 = vadd.f32 %v14999_v31, %v4857_v47  ;;  %v5499_v12 = vadd.f32 %v5316_v50, %v5173_v27 }
 0x3a5   :  { %v5322_v13 = vpop.f32.mrf.mxu1  ;;  %v5188_v0 = vadd.f32 %v5087_v46, %v4862_v8  ;;  %v5501_v34 = vadd.f32 %v5399_v15, %v5175_v53  ;;  %v5502_v7 = vadd.f32 %v5401_v35, %v5176_v21  ;;  %v5184_v46 = vadd.f32 %v15011_v17, %v4858_v36  ;;  %v15103_v21 = vpop.permute.xlu1 %5578 }
 0x3a6   :  { %v5405_v41 = vpop.f32.mrf.mxu0  ;;  %v5505_v22 = vadd.f32 %v5322_v13, %v5179_v16  ;;  %v5526_v57 = vmax.f32 %v5500_v4, 0.0  ;;  %v5525_v15 = vmax.f32 %v5499_v12, 0.0  ;;  %v5189_v45 = vadd.f32 %v15024_v2, %v4863_v51 }
 0x3a7   :  { %v5324_v23 = vpop.f32.mrf.mxu1  ;;  %v5507_v32 = vadd.f32 %v5405_v41, %v5181_v58  ;;  %v5527_v27 = vmax.f32 %v5501_v34, 0.0  ;;  %v5528_v35 = vmax.f32 %v5502_v7, 0.0  ;;  %v5190_v41 = vadd.f32 %v15038_v18, %v4864_v10  ;;  %v5609_v34 = vld [vmem:[%s17237_s3] sm:$0xff] }
 0x3a8   :  { %v5407_v26 = vpop.f32.mrf.mxu0  ;;  %v5506_v11 = vadd.f32 %v5324_v23, %v5180_v37  ;;  %v5531_v9 = vmax.f32 %v5505_v22, 0.0  ;;  %v5559_v59 = vmul.f32 %v15085_v1, %v5526_v57  ;;  %v5558_v63 = vmul.f32 %v15085_v1, %v5525_v15 }
 0x3a9   :  { %v5508_v55 = vadd.f32 %v5407_v26, %v5182_v25  ;;  %v5328_v61 = vpop.f32.mrf.mxu1  ;;  %v5533_v8 = vmax.f32 %v5507_v32, 0.0  ;;  %v5560_v2 = vmul.f32 %v15085_v1, %v5527_v27  ;;  %v5561_v51 = vmul.f32 %v15085_v1, %v5528_v35 }
 0x3aa   :  { %v5411_v20 = vpop.f32.mrf.mxu0  ;;  %v5511_v43 = vadd.f32 %v5328_v61, %v5185_v56  ;;  %v5532_v49 = vmax.f32 %v5506_v11, 0.0  ;;  %v5564_v17 = vmul.f32 %v15068_v38, %v5531_v9  ;;  %v15097_v56 = vpop.permute.xlu0 %5583  ;;  %v5592_v26 = vadd.f32 %v15103_v21, %v5559_v59  ;;  %v5610_v9 = vld [vmem:[%s17237_s3 + $0x8] sm:$0xff] }
 0x3ab   :  { %v5513_v33 = vadd.f32 %v5411_v20, %v5187_v62  ;;  %v5330_v48 = vpop.f32.mrf.mxu1  ;;  %v5534_v31 = vmax.f32 %v5508_v55, 0.0  ;;  %v5566_v53 = vmul.f32 %v15068_v38, %v5533_v8  ;;  %v5591_v20 = vadd.f32 %v15103_v21, %v5558_v63 }
 0x3ac   :  { %v5537_v3 = vmax.f32 %v5511_v43, 0.0  ;;  %v5413_v40 = vpop.f32.mrf.mxu0  ;;  %v5512_v30 = vadd.f32 %v5330_v48, %v5186_v5  ;;  %v5565_v29 = vmul.f32 %v15068_v38, %v5532_v49  ;;  %v5597_v11 = vadd.f32 %v15097_v56, %v5564_v17 }
 0x3ad   :  { %v5539_v50 = vmax.f32 %v5513_v33, 0.0  ;;  %v5514_v19 = vadd.f32 %v5413_v40, %v5188_v0  ;;  %v5482_v6 = vpop.f32.mrf.mxu1  ;;  %v5567_v36 = vmul.f32 %v15068_v38, %v5534_v31  ;;  %v5599_v61 = vadd.f32 %v15097_v56, %v5566_v53 }
 0x3ae   :  { %v5538_v24 = vmax.f32 %v5512_v30, 0.0  ;;  %v5570_v47 = vmul.f32 %v15062_v54, %v5537_v3  ;;  %v5598_v10 = vadd.f32 %v15097_v56, %v5565_v29  ;;  %v5503_v43 = vadd.f32 %v5482_v6, %v15075_v52 }
 0x3af   :  { %v5540_v60 = vmax.f32 %v5514_v19, 0.0  ;;  %v5484_v28 = vpop.f32.mrf.mxu1  ;;  %v5572_v16 = vmul.f32 %v15062_v54, %v5539_v50  ;;  %v5600_v55 = vadd.f32 %v15097_v56, %v5567_v36  ;;  %v5594_v0 = vadd.f32 %v15103_v21, %v5561_v51 }
 0x3b0   :  { %v5571_v13 = vmul.f32 %v15062_v54, %v5538_v24  ;;  %v5603_v25 = vadd.f32 %v15083_v39, %v5570_v47  ;;  %v5504_v12 = vadd.f32 %v5484_v28, %v15079_v14  ;;  %v5593_v14 = vadd.f32 %v15103_v21, %v5560_v2 }
 0x3b1   :  { %v5573_v37 = vmul.f32 %v15062_v54, %v5540_v60  ;;  %v5488_v44 = vpop.f32.mrf.mxu1  ;;  %v5605_v4 = vadd.f32 %v15083_v39, %v5572_v16  ;;  %v5529_v3 = vmax.f32 %v5503_v43, 0.0  ;;  %v17371_v30 = vmov 0.0   ;;  %v6121_v43 = vld [vmem:[%s17238_s11 + $0xa8] sm:$0xff] }
 0x3b2   :  { %v5604_v5 = vadd.f32 %v15083_v39, %v5571_v13  ;;  %v5509_v62 = vadd.f32 %v5488_v44, %v5183_v42  ;;  %v5530_v52 = vmax.f32 %v5504_v12, 0.0  ;;  %v6194_v12 = vld [vmem:[%s17238_s11 + $0x2f0] sm:$0xff] }
 0x3b3   :  { %v5606_v23 = vadd.f32 %v15083_v39, %v5573_v37  ;;  %v5490_v58 = vpop.f32.mrf.mxu1  ;;  %v5562_v15 = vmul.f32 %v15085_v1, %v5529_v3  ;;  %v6116_v3 = vld [vmem:[%s17238_s11 + $0x80] sm:$0xff] }
 0x3b4   :  { %v5510_v18 = vadd.f32 %v5490_v58, %v5184_v46  ;;  %11822 = vmatprep.subr.msk.mxu0 %vm5622_vm11, %v5604_v5  ;;  %v5535_v57 = vmax.f32 %v5509_v62, 0.0  ;;  %v5563_v6 = vmul.f32 %v15085_v1, %v5530_v52  ;;  %v6131_v58 = vld [vmem:[%s17238_s11 + $0xf8] sm:$0xff]  ;;  %v6125_v62 = vld [vmem:[%s17238_s11 + $0xc8] sm:$0xff] }
 0x3b5   :  { %11827 = vmatprep.subr.msk.mxu1 %vm5622_vm11, %v5606_v23  ;;  %v5494_v22 = vpop.f32.mrf.mxu1  ;;  %11823 = vmatpush1.msk.msra.mxu0 %vm5622_vm11, %v5603_v25  ;;  %v5595_v1 = vadd.f32 %v15103_v21, %v5562_v15  ;;  %v6117_v52 = vld [vmem:[%s17238_s11 + $0x88] sm:$0xff]  ;;  %v6112_v15 = vld [vmem:[%s17238_s11 + $0x60] sm:$0xff] }
 0x3b6   :  { %11828 = vmatpush1.msk.msra.mxu1 %vm5622_vm11, %v5605_v4  ;;  %v5515_v32 = vadd.f32 %v5494_v22, %v5189_v45  ;;  %5669 = vmatprep.subr.mxu0 %v5598_v10  ;;  %v5536_v7 = vmax.f32 %v5510_v18, 0.0  ;;  %v5568_v19 = vmul.f32 %v15068_v38, %v5535_v57  ;;  %v6130_v4 = vld [vmem:[%s17238_s11 + $0xf0] sm:$0xff]  ;;  %v6129_v18 = vld [vmem:[%s17238_s11 + $0xe8] sm:$0xff]  ;;  %v6128_v10 = vld [vmem:[%s17238_s11 + $0xe0] sm:$0xff] }
 0x3b7   :  { %5752 = vmatprep.subr.mxu1 %v5600_v55  ;;  %v5496_v42 = vpop.f32.mrf.mxu1  ;;  %5670 = vmatpush1.msra.mxu0 %v5597_v11  ;;  %v6126_v11 = vld [vmem:[%s17238_s11 + $0xd0] sm:$0xff]  ;;  %v6124_v22 = vld [vmem:[%s17238_s11 + $0xc0] sm:$0xff]  ;;  %v6123_v55 = vld [vmem:[%s17238_s11 + $0xb8] sm:$0xff] }
 0x3b8   :  { %v5541_v33 = vmax.f32 %v5515_v32, 0.0  ;;  %5753 = vmatpush1.msra.mxu1 %v5599_v61  ;;  %v5516_v48 = vadd.f32 %v5496_v42, %v5190_v41  ;;  %5671 = vmatprep.subr.mxu0 %v5592_v26  ;;  %v5569_v31 = vmul.f32 %v15068_v38, %v5536_v7  ;;  %v5601_v24 = vadd.f32 %v15097_v56, %v5568_v19  ;;  %v6127_v26 = vld [vmem:[%s17238_s11 + $0xd8] sm:$0xff]  ;;  %v6122_v32 = vld [vmem:[%s17238_s11 + $0xb0] sm:$0xff]  ;;  %v6192_v42 = vld [vmem:[%s17238_s11 + $0x2e0] sm:$0xff] }
 0x3b9   :  { %5754 = vmatprep.subr.mxu1 %v5594_v0  ;;  %5672 = vmatpush1.msra.mxu0 %v5591_v20  ;;  %v6195_v61 = vld [vmem:[%s17238_s11 + $0x2f8] sm:$0xff]  ;;  %v6193_v20 = vld [vmem:[%s17238_s11 + $0x2e8] sm:$0xff]  ;;  %v6188_v57 = vld [vmem:[%s17238_s11 + $0x2c0] sm:$0xff] }
 0x3ba   :  { %v5542_v49 = vmax.f32 %v5516_v48, 0.0  ;;  %5755 = vmatpush1.msra.mxu1 %v5593_v14  ;;  %11824 = vmatmul.mubr.msk.f32.vlgmr.msra.gmra.mxu0 %vm5612_vm12, %v5609_v34  ;;  %v5574_v40 = vmul.f32 %v15062_v54, %v5541_v33  ;;  %v5602_v38 = vadd.f32 %v15097_v56, %v5569_v31  ;;  %v6191_v0 = vld [vmem:[%s17238_s11 + $0x2d8] sm:$0xff]  ;;  %v6190_v14 = vld [vmem:[%s17238_s11 + $0x2d0] sm:$0xff]  ;;  %v6189_v33 = vld [vmem:[%s17238_s11 + $0x2c8] sm:$0xff] }
 0x3bb   :  { %11829 = vmatmul.mubr.msk.f32.vlgmr.msra.gmra.mxu1 %vm5612_vm12, %v5609_v34  ;;  %5711 = vmatprep.mubr.f32.mxu0 %v17371_v30  ;;  %v6119_v7 = vld [vmem:[%s17238_s11 + $0x98] sm:$0xff]  ;;  %v6118_v48 = vld [vmem:[%s17238_s11 + $0x90] sm:$0xff]  ;;  %v6185_v31 = vld [vmem:[%s17238_s11 + $0x2a8] sm:$0xff] }
 0x3bc   :  { %v5575_v50 = vmul.f32 %v15062_v54, %v5542_v49  ;;  %5794 = vmatprep.mubr.f32.mxu1 %v17371_v30  ;;  %v5607_v8 = vadd.f32 %v15083_v39, %v5574_v40  ;;  %v5611_v54 = vld [vmem:[%s17237_s3 + $0x10] sm:$0xff]  ;;  %6276 = vmatprep.subr.mxu1 %v6131_v58  ;;  %v6187_v49 = vld [vmem:[%s17238_s11 + $0x2b8] sm:$0xff]  ;;  %v6184_v19 = vld [vmem:[%s17238_s11 + $0x2a0] sm:$0xff]  ;;  %s13285_s3 = smov 104  }
 0x3bd   :  { %6277 = vmatpush1.msra.mxu1 %v6130_v4  ;;  %v6186_v40 = vld [vmem:[%s17238_s11 + $0x2b0] sm:$0xff]  ;;  %v6176_v58 = vld [vmem:[%s17238_s11 + $0x260] sm:$0xff]  ;;  %v6105_v4 = vld [vmem:[%s17238_s11 + $0x28] sm:$0xff] }
 0x3be   :  { %v5608_v46 = vadd.f32 %v15083_v39, %v5575_v50  ;;  %11825 = vmatmul.mubr.msk.f32.gmra.mxu0 %vm5612_vm12, %v5610_v9  ;;  %v5596_v39 = vadd.f32 %v15103_v21, %v5563_v6  ;;  %6278 = vmatprep.subr.mxu1 %v6129_v18  ;;  %v6114_v50 = vld [vmem:[%s17238_s11 + $0x70] sm:$0xff]  ;;  %v6113_v6 = vld [vmem:[%s17238_s11 + $0x68] sm:$0xff]  ;;  %v6175_v18 = vld [vmem:[%s17238_s11 + $0x258] sm:$0xff] }
 0x3bf   :  { %11830 = vmatmul.mubr.msk.f32.gmra.mxu1 %vm5612_vm12, %v5610_v9  ;;  %5717 = vmatprep.mubr.f32.mxu0 %v17371_v30 }
 0x3c0   :  { %5800 = vmatprep.mubr.f32.mxu1 %v17371_v30  ;;  %11832 = vmatprep.subr.msk.mxu0 %vm5622_vm11, %v5608_v46  ;;  %v6183_v46 = vld [vmem:[%s17238_s11 + $0x298] sm:$0xff] }
 0x3c1   :  { %11833 = vmatpush1.msk.msra.mxu0 %vm5622_vm11, %v5607_v8  ;;  %6279 = vmatpush1.msra.mxu1 %v6128_v10  ;;  %v6182_v8 = vld [vmem:[%s17238_s11 + $0x290] sm:$0xff]  ;;  %v6104_v10 = vld [vmem:[%s17238_s11 + $0x20] sm:$0xff] }
 0x3c2   :  { %11826 = vmatmul.mubr.msk.f32.gmra.mxu0 %vm5612_vm12, %v5611_v54  ;;  %5835 = vmatprep.subr.mxu0 %v5602_v38  ;;  %v6181_v38 = vld [vmem:[%s17238_s11 + $0x288] sm:$0xff] }
 0x3c3   :  { %11831 = vmatmul.mubr.msk.f32.gmra.mxu1 %vm5612_vm12, %v5611_v54  ;;  %5836 = vmatpush1.msra.mxu0 %v5601_v24  ;;  %v6110_v24 = vld [vmem:[%s17238_s11 + $0x50] sm:$0xff] }
 0x3c4   :  { %5837 = vmatprep.subr.mxu0 %v5596_v39  ;;  %5871 = vmatprep.mubr.f32.mxu0 %v17371_v30  ;;  %v6180_v39 = vld [vmem:[%s17238_s11 + $0x280] sm:$0xff] }
 0x3c5   :  { %5838 = vmatpush1.msra.mxu0 %v5595_v1  ;;  %6280 = vmatprep.subr.mxu1 %v6127_v26  ;;  %v6109_v1 = vld [vmem:[%s17238_s11 + $0x48] sm:$0xff]  ;;  %v6174_v26 = vld [vmem:[%s17238_s11 + $0x250] sm:$0xff] }
 0x3c6   :  { %11834 = vmatmul.mubr.msk.f32.vlgmr.msra.gmra.mxu0 %vm5612_vm12, %v5609_v34  ;;  %6281 = vmatpush1.msra.mxu1 %v6126_v11  ;;  %v6120_v34 = vld [vmem:[%s17238_s11 + $0xa0] sm:$0xff]  ;;  %v6103_v11 = vld [vmem:[%s17238_s11 + $0x18] sm:$0xff] }
 0x3c7   :  { %5877 = vmatprep.mubr.f32.mxu0 %v17371_v30  ;;  %6282 = vmatprep.subr.mxu1 %v6125_v62  ;;  %v6173_v62 = vld [vmem:[%s17238_s11 + $0x248] sm:$0xff] }
 0x3c8   :  { %6359 = vmatprep.subr.mxu0 %v6195_v61  ;;  %6283 = vmatpush1.msra.mxu1 %v6124_v22  ;;  %v6102_v22 = vld [vmem:[%s17238_s11 + $0x10] sm:$0xff]  ;;  %v6101_v61 = vld [vmem:[%s17238_s11 + $0x8] sm:$0xff] }
 0x3c9   :  { %6360 = vmatpush1.msra.mxu0 %v6194_v12  ;;  %6284 = vmatprep.subr.mxu1 %v6123_v55  ;;  %v6172_v55 = vld [vmem:[%s17238_s11 + $0x240] sm:$0xff]  ;;  %v6171_v12 = vld [vmem:[%s17238_s11 + $0x238] sm:$0xff] }
 0x3ca   :  { %11835 = vmatmul.mubr.msk.f32.gmra.mxu0 %vm5612_vm12, %v5610_v9  ;;  %6361 = vmatprep.subr.mxu0 %v6193_v20  ;;  %v6115_v9 = vld [vmem:[%s17238_s11 + $0x78] sm:$0xff]  ;;  %v6170_v20 = vld [vmem:[%s17238_s11 + $0x230] sm:$0xff] }
 0x3cb   :  { %5883 = vmatprep.mubr.f32.mxu0 %v17371_v30  ;;  %6285 = vmatpush1.msra.mxu1 %v6122_v32  ;;  %v6100_v32 = vld [vmem:[%s17238_s11] sm:$0xff] }
 0x3cc   :  { %6362 = vmatpush1.msra.mxu0 %v6192_v42  ;;  %6286 = vmatprep.subr.mxu1 %v6121_v43  ;;  %v6163_v43 = vld [vmem:[%s17238_s11 + $0x1f8] sm:$0xff]  ;;  %v6169_v42 = vld [vmem:[%s17238_s11 + $0x228] sm:$0xff] }
 0x3cd   :  { %6363 = vmatprep.subr.mxu0 %v6191_v0  ;;  %6287 = vmatpush1.msra.mxu1 %v6120_v34  ;;  %v6162_v0 = vld [vmem:[%s17238_s11 + $0x1f0] sm:$0xff]  ;;  %v6168_v34 = vld [vmem:[%s17238_s11 + $0x220] sm:$0xff] }
 0x3ce   :  { %11836 = vmatmul.mubr.msk.f32.gmra.mxu0 %vm5612_vm12, %v5611_v54  ;;  %6288 = vmatprep.subr.mxu1 %v6119_v7  ;;  %v6111_v54 = vld [vmem:[%s17238_s11 + $0x58] sm:$0xff] }
 0x3cf   :  { %6364 = vmatpush1.msra.mxu0 %v6190_v14  ;;  %6289 = vmatpush1.msra.mxu1 %v6118_v48  ;;  %v6161_v14 = vld [vmem:[%s17238_s11 + $0x1e8] sm:$0xff]  ;;  %v6167_v7 = vld [vmem:[%s17238_s11 + $0x218] sm:$0xff]  ;;  %v6166_v48 = vld [vmem:[%s17238_s11 + $0x210] sm:$0xff] }
 0x3d0   :  { %6365 = vmatprep.subr.mxu0 %v6189_v33  ;;  %6290 = vmatprep.subr.mxu1 %v6117_v52  ;;  %v6160_v33 = vld [vmem:[%s17238_s11 + $0x1e0] sm:$0xff]  ;;  %v6165_v52 = vld [vmem:[%s17238_s11 + $0x208] sm:$0xff] }
 0x3d1   :  { %6366 = vmatpush1.msra.mxu0 %v6188_v57  ;;  %6291 = vmatpush1.msra.mxu1 %v6116_v3  ;;  %v6159_v57 = vld [vmem:[%s17238_s11 + $0x1d8] sm:$0xff]  ;;  %v6164_v3 = vld [vmem:[%s17238_s11 + $0x200] sm:$0xff] }
 0x3d2   :  { %6367 = vmatprep.subr.mxu0 %v6187_v49  ;;  %6292 = vmatprep.subr.mxu1 %v6115_v9  ;;  %v6158_v49 = vld [vmem:[%s17238_s11 + $0x1d0] sm:$0xff]  ;;  %v6227_v9 = vld [vmem:[%s17238_s11 + $0x3f8] sm:$0xff] }
 0x3d3   :  { %6368 = vmatpush1.msra.mxu0 %v6186_v40  ;;  %6293 = vmatpush1.msra.mxu1 %v6114_v50  ;;  %v6157_v40 = vld [vmem:[%s17238_s11 + $0x1c8] sm:$0xff]  ;;  %v6226_v50 = vld [vmem:[%s17238_s11 + $0x3f0] sm:$0xff] }
 0x3d4   :  { %6369 = vmatprep.subr.mxu0 %v6185_v31  ;;  %6294 = vmatprep.subr.mxu1 %v6113_v6  ;;  %v6156_v31 = vld [vmem:[%s17238_s11 + $0x1c0] sm:$0xff]  ;;  %v6225_v6 = vld [vmem:[%s17238_s11 + $0x3e8] sm:$0xff] }
 0x3d5   :  { %6370 = vmatpush1.msra.mxu0 %v6184_v19  ;;  %6295 = vmatpush1.msra.mxu1 %v6112_v15  ;;  %v6155_v19 = vld [vmem:[%s17238_s11 + $0x1b8] sm:$0xff]  ;;  %v6224_v15 = vld [vmem:[%s17238_s11 + $0x3e0] sm:$0xff] }
 0x3d6   :  { %6371 = vmatprep.subr.mxu0 %v6183_v46  ;;  %6296 = vmatprep.subr.mxu1 %v6111_v54  ;;  %v6154_v46 = vld [vmem:[%s17238_s11 + $0x1b0] sm:$0xff]  ;;  %v6223_v54 = vld [vmem:[%s17238_s11 + $0x3d8] sm:$0xff] }
 0x3d7   :  { %6372 = vmatpush1.msra.mxu0 %v6182_v8  ;;  %6297 = vmatpush1.msra.mxu1 %v6110_v24  ;;  %v6153_v8 = vld [vmem:[%s17238_s11 + $0x1a8] sm:$0xff]  ;;  %v6222_v24 = vld [vmem:[%s17238_s11 + $0x3d0] sm:$0xff] }
 0x3d8   :  { %6373 = vmatprep.subr.mxu0 %v6181_v38  ;;  %6298 = vmatprep.subr.mxu1 %v6109_v1  ;;  %v6152_v38 = vld [vmem:[%s17238_s11 + $0x1a0] sm:$0xff]  ;;  %v6221_v1 = vld [vmem:[%s17238_s11 + $0x3c8] sm:$0xff] }
 0x3d9   :  { %6374 = vmatpush1.msra.mxu0 %v6180_v39  ;;  %v6151_v39 = vld [vmem:[%s17238_s11 + $0x198] sm:$0xff] }
 0x47a   :  { %v15163_v27 = vpop.f32.mrf.mxu0 }
 0x47b   :  { %v15165_v35 = vpop.f32.mrf.mxu1 }
 0x47c   :  { %v15167_v47 = vpop.f32.mrf.mxu0 }
 0x47d   :  { %v15169_v60 = vpop.f32.mrf.mxu1  ;;  %v13202_v28 = vpack.i.bf16 %v15165_v35, %v15167_v47 }
 0x47e   :  { %v13207_v59 = vpack.i.bf16 %v15163_v27, %v15169_v60  ;;  %v15175_v29 = vpop.f32.mrf.mxu0 }
 0x47f   :  { %v15177_v16 = vpop.f32.mrf.mxu1  ;;  %13203 = vrot.lane.b32.xlu0 %v13202_v28, %s13273_s22  ;;  %v6179_v28 = vld [vmem:[%s17238_s11 + $0x278] sm:$0xff] }
 0x480   :  { %13208 = vrot.lane.b32.xlu1 %v13207_v59, %s13273_s22  ;;  %v15181_v13 = vpop.f32.mrf.mxu0  ;;  %v6108_v59 = vld [vmem:[%s17238_s11 + $0x40] sm:$0xff]  ;;  %6375 = vmatprep.subr.mxu0 %v6179_v28  ;;  %v6150_v28 = vld [vmem:[%s17238_s11 + $0x190] sm:$0xff] }
 0x481   :  { %v15183_v45 = vpop.f32.mrf.mxu1  ;;  %v13212_v17 = vpack.i.bf16 %v15177_v16, %v15181_v13  ;;  %6299 = vmatpush1.msra.mxu1 %v6108_v59  ;;  %v6220_v59 = vld [vmem:[%s17238_s11 + $0x3c0] sm:$0xff] }
 0x482   :  { %v13217_v36 = vpack.i.bf16 %v15175_v29, %v15183_v45  ;;  %v15189_v37 = vpop.f32.mrf.mxu0 }
 0x483   :  { %v15191_v44 = vpop.f32.mrf.mxu1  ;;  %13213 = vrot.lane.b32.xlu0 %v13212_v17, %s13273_s22  ;;  %v6178_v17 = vld [vmem:[%s17238_s11 + $0x270] sm:$0xff] }
 0x484   :  { %13218 = vrot.lane.b32.xlu1 %v13217_v36, %s13273_s22  ;;  %v15195_v56 = vpop.f32.mrf.mxu0  ;;  %v6107_v36 = vld [vmem:[%s17238_s11 + $0x38] sm:$0xff]  ;;  %6376 = vmatpush1.msra.mxu0 %v6178_v17  ;;  %v6149_v17 = vld [vmem:[%s17238_s11 + $0x188] sm:$0xff] }
 0x485   :  { %v15197_v41 = vpop.f32.mrf.mxu1  ;;  %v13222_v63 = vpack.i.bf16 %v15191_v44, %v15195_v56  ;;  %6300 = vmatprep.subr.mxu1 %v6107_v36  ;;  %v6148_v36 = vld [vmem:[%s17238_s11 + $0x180] sm:$0xff] }
 0x486   :  { %v13227_v53 = vpack.i.bf16 %v15189_v37, %v15197_v41  ;;  %v15203_v5 = vpop.f32.mrf.mxu0 }
 0x487   :  { %13223 = vrot.lane.b32.xlu0 %v13222_v63, %s13273_s22  ;;  %v6177_v63 = vld [vmem:[%s17238_s11 + $0x268] sm:$0xff] }
 0x488   :  { %13228 = vrot.lane.b32.xlu1 %v13227_v53, %s13273_s22  ;;  %v15207_v21 = vpop.f32.mrf.mxu0  ;;  %v6106_v53 = vld [vmem:[%s17238_s11 + $0x30] sm:$0xff]  ;;  %6377 = vmatprep.subr.mxu0 %v6177_v63  ;;  %v6147_v63 = vld [vmem:[%s17238_s11 + $0x178] sm:$0xff] }
 0x489   :  { %6301 = vmatpush1.msra.mxu1 %v6106_v53  ;;  %6378 = vmatpush1.msra.mxu0 %v6176_v58  ;;  %v6146_v53 = vld [vmem:[%s17238_s11 + $0x170] sm:$0xff]  ;;  %v6145_v58 = vld [vmem:[%s17238_s11 + $0x168] sm:$0xff] }
 0x48a   :  { %v15209_v2 = vpop.f32.mrf.mxu0  ;;  %6302 = vmatprep.subr.mxu1 %v6105_v4  ;;  %6379 = vmatprep.subr.mxu0 %v6175_v18  ;;  %v6144_v4 = vld [vmem:[%s17238_s11 + $0x160] sm:$0xff]  ;;  %v6143_v18 = vld [vmem:[%s17238_s11 + $0x158] sm:$0xff] }
 0x48b   :  { %5913 = vrot.lane.b32.xlu0 %v15203_v5, %s13273_s22  ;;  %6303 = vmatpush1.msra.mxu1 %v6104_v10  ;;  %v6142_v10 = vld [vmem:[%s17238_s11 + $0x150] sm:$0xff] }
 0x48c   :  { %5980 = vrot.lane.b32.xlu1 %v15207_v21, %s13273_s22  ;;  %v15215_v51 = vpop.f32.mrf.mxu0  ;;  %6380 = vmatpush1.msra.mxu0 %v6174_v26  ;;  %v6141_v26 = vld [vmem:[%s17238_s11 + $0x148] sm:$0xff] }
 0x48d   :  { %6304 = vmatprep.subr.mxu1 %v6103_v11  ;;  %6381 = vmatprep.subr.mxu0 %v6173_v62  ;;  %v6140_v11 = vld [vmem:[%s17238_s11 + $0x140] sm:$0xff]  ;;  %v6139_v62 = vld [vmem:[%s17238_s11 + $0x138] sm:$0xff] }
 0x48e   :  { %v15217_v25 = vpop.f32.mrf.mxu0  ;;  %6305 = vmatpush1.msra.mxu1 %v6102_v22  ;;  %6382 = vmatpush1.msra.mxu0 %v6172_v55  ;;  %v6138_v22 = vld [vmem:[%s17238_s11 + $0x130] sm:$0xff]  ;;  %v6219_v55 = vld [vmem:[%s17238_s11 + $0x3b8] sm:$0xff] }
 0x48f   :  { %5923 = vrot.lane.b32.xlu0 %v15209_v2, %s13273_s22  ;;  %6306 = vmatprep.subr.mxu1 %v6101_v61  ;;  %v6137_v61 = vld [vmem:[%s17238_s11 + $0x128] sm:$0xff] }
 0x490   :  { %5982 = vrot.lane.b32.xlu1 %v15215_v51, %s13273_s22  ;;  %v15223_v23 = vpop.f32.mrf.mxu0  ;;  %6383 = vmatprep.subr.mxu0 %v6171_v12  ;;  %v6218_v12 = vld [vmem:[%s17238_s11 + $0x3b0] sm:$0xff] }
 0x491   :  { %6307 = vmatpush1.msra.mxu1 %v6100_v32  ;;  %6384 = vmatpush1.msra.mxu0 %v6170_v20  ;;  %v6136_v32 = vld [vmem:[%s17238_s11 + $0x120] sm:$0xff]  ;;  %v6217_v20 = vld [vmem:[%s17238_s11 + $0x3a8] sm:$0xff] }
 0x492   :  { %6308 = vmatprep.subr.mxu1 %v6163_v43  ;;  %6385 = vmatprep.subr.mxu0 %v6169_v42  ;;  %v6135_v43 = vld [vmem:[%s17238_s11 + $0x118] sm:$0xff]  ;;  %v6216_v42 = vld [vmem:[%s17238_s11 + $0x3a0] sm:$0xff] }
 0x493   :  { %5933 = vrot.lane.b32.xlu0 %v15217_v25, %s13273_s22  ;;  %6309 = vmatpush2.msra.mxu1 %v6162_v0  ;;  %v6134_v0 = vld [vmem:[%s17238_s11 + $0x110] sm:$0xff] }
 0x494   :  { %5984 = vrot.lane.b32.xlu1 %v15223_v23, %s13273_s22  ;;  %6386 = vmatpush1.msra.mxu0 %v6168_v34  ;;  %v6215_v34 = vld [vmem:[%s17238_s11 + $0x398] sm:$0xff] }
 0x495   :  { %6310 = vmatprep.subr.mxu1 %v6161_v14  ;;  %6387 = vmatprep.subr.mxu0 %v6167_v7  ;;  %v6133_v14 = vld [vmem:[%s17238_s11 + $0x108] sm:$0xff] }
 0x496   :  { %6311 = vmatpush2.msra.mxu1 %v6160_v33  ;;  %6388 = vmatpush1.msra.mxu0 %v6166_v48  ;;  %v6214_v33 = vld [vmem:[%s17238_s11 + $0x390] sm:$0xff]  ;;  %v6132_v48 = vld [vmem:[%s17238_s11 + $0x100] sm:$0xff] }
 0x497   :  { %6312 = vmatprep.subr.mxu1 %v6159_v57  ;;  %6389 = vmatprep.subr.mxu0 %v6165_v52  ;;  %v6213_v57 = vld [vmem:[%s17238_s11 + $0x388] sm:$0xff] }
 0x498   :  { %6313 = vmatpush2.msra.mxu1 %v6158_v49  ;;  %6390 = vmatpush1.msra.mxu0 %v6164_v3 }
 0x499   :  { %6314 = vmatprep.subr.mxu1 %v6157_v40  ;;  %6391 = vmatprep.subr.mxu0 %v6227_v9  ;;  %v6212_v40 = vld [vmem:[%s17238_s11 + $0x380] sm:$0xff]  ;;  %v6259_v9 = vld [vmem:[%s17238_s11 + $0x4f8] sm:$0x7f] }
 0x49a   :  { %6315 = vmatpush2.msra.mxu1 %v6156_v31  ;;  %6392 = vmatpush2.msra.mxu0 %v6226_v50 }
 0x49b   :  { %6316 = vmatprep.subr.mxu1 %v6155_v19  ;;  %6393 = vmatprep.subr.mxu0 %v6225_v6  ;;  %v6211_v19 = vld [vmem:[%s17238_s11 + $0x378] sm:$0xff] }
 0x49c   :  { %6317 = vmatpush2.msra.mxu1 %v6154_v46  ;;  %6394 = vmatpush2.msra.mxu0 %v6224_v15  ;;  %v6210_v46 = vld [vmem:[%s17238_s11 + $0x370] sm:$0xff] }
 0x49d   :  { %6318 = vmatprep.subr.mxu1 %v6153_v8  ;;  %6395 = vmatprep.subr.mxu0 %v6223_v54 }
 0x49e   :  { %6319 = vmatpush2.msra.mxu1 %v6152_v38  ;;  %6396 = vmatpush2.msra.mxu0 %v6222_v24 }
 0x49f   :  { %6320 = vmatprep.subr.mxu1 %v6151_v39  ;;  %6397 = vmatprep.subr.mxu0 %v6221_v1 }
 0x4a0   :  { %6321 = vmatpush2.msra.mxu1 %v6150_v28  ;;  %6398 = vmatpush2.msra.mxu0 %v6220_v59 }
 0x4a1   :  { %6322 = vmatprep.subr.mxu1 %v6149_v17  ;;  %6399 = vmatprep.subr.mxu0 %v6219_v55  ;;  %v6209_v17 = vld [vmem:[%s17238_s11 + $0x368] sm:$0xff] }
 0x4a2   :  { %6323 = vmatpush2.msra.mxu1 %v6148_v36  ;;  %6400 = vmatpush2.msra.mxu0 %v6218_v12 }
 0x4a3   :  { %6324 = vmatprep.subr.mxu1 %v6147_v63  ;;  %6401 = vmatprep.subr.mxu0 %v6217_v20  ;;  %v6207_v63 = vld [vmem:[%s17238_s11 + $0x358] sm:$0xff] }
 0x4a4   :  { %6325 = vmatpush2.msra.mxu1 %v6146_v53  ;;  %6402 = vmatpush2.msra.mxu0 %v6216_v42  ;;  %v6202_v42 = vld [vmem:[%s17238_s11 + $0x330] sm:$0xff] }
 0x4a5   :  { %6326 = vmatprep.subr.mxu1 %v6145_v58  ;;  %6403 = vmatprep.subr.mxu0 %v6215_v34  ;;  %v6206_v58 = vld [vmem:[%s17238_s11 + $0x350] sm:$0xff] }
 0x4a6   :  { %6327 = vmatpush2.msra.mxu1 %v6144_v4  ;;  %6404 = vmatpush2.msra.mxu0 %v6214_v33 }
 0x4a7   :  { %6328 = vmatprep.subr.mxu1 %v6143_v18  ;;  %6405 = vmatprep.subr.mxu0 %v6213_v57 }
 0x4a8   :  { %6329 = vmatpush2.msra.mxu1 %v6142_v10  ;;  %6406 = vmatpush2.msra.mxu0 %v6212_v40  ;;  %v6198_v40 = vld [vmem:[%s17238_s11 + $0x310] sm:$0xff] }
 0x4a9   :  { %6330 = vmatprep.subr.mxu1 %v6141_v26  ;;  %6407 = vmatprep.subr.mxu0 %v6211_v19 }
 0x4aa   :  { %6331 = vmatpush2.msra.mxu1 %v6140_v11  ;;  %6408 = vmatpush2.msra.mxu0 %v6210_v46 }
 0x4ab   :  { %6332 = vmatprep.subr.mxu1 %v6139_v62  ;;  %6409 = vmatprep.subr.mxu0 %v6209_v17 }
 0x4ac   :  { %6333 = vmatpush2.msra.mxu1 %v6138_v22 }
 0x4ad   :  { %6334 = vmatprep.subr.mxu1 %v6137_v61  ;;  %v6205_v61 = vld [vmem:[%s17238_s11 + $0x348] sm:$0xff] }
 0x4ae   :  { %6335 = vmatpush2.msra.mxu1 %v6136_v32 }
 0x4af   :  { %6336 = vmatprep.subr.mxu1 %v6135_v43 }
 0x4b0   :  { %6337 = vmatpush2.msra.mxu1 %v6134_v0 }
 0x4b1   :  { %6338 = vmatprep.subr.mxu1 %v6133_v14 }
 0x4b2   :  { %6339 = vmatpush2.msra.mxu1 %v6132_v48 }
 0x4b3   :  { %11837 = vmatprep.subr.msk.mxu1 %vm6269_vm13, %v6259_v9 }
 0x4f1   :  { %v13204_v7 = vpop.permute.xlu0 %13203 }
 0x4f2   :  { %v15562_v52 = vpop.permute.xlu1 %13208  ;;  %v13206_v49 = vunpack.i.h.bf16 %v13204_v7  ;;  %v13205_v3 = vunpack.i.l.bf16 %v13204_v7 }
 0x4f3   :  { %v13211_v31 = vunpack.i.h.bf16 %v15562_v52  ;;  %v13210_v50 = vunpack.i.l.bf16 %v15562_v52 }
 0x4f4   :  { %v5936_v6 = vsel %vm96_vm0, %v13205_v3, %v13206_v49 }
 0x4f5   :  { %v5937_v15 = vsel %vm96_vm0, %v13206_v49, %v13210_v50  ;;  %v5935_v8 = vsel %vm96_vm0, %v13211_v31, %v13205_v3  ;;  %v15585_v54 = vmax.f32 %v15167_v47, %v5936_v6  ;;  %v13214_v38 = vpop.permute.xlu0 %13213  ;;  %v6200_v3 = vld [vmem:[%s17238_s11 + $0x320] sm:$0xff] }
 0x4f6   :  { %v15588_v24 = vmax.f32 %v15165_v35, %v5937_v15  ;;  %v15590_v39 = vpop.permute.xlu1 %13218  ;;  %v13216_v1 = vunpack.i.h.bf16 %v13214_v38  ;;  %v13215_v28 = vunpack.i.l.bf16 %v13214_v38  ;;  %v15593_v59 = vmax.f32 %v15163_v27, %v5935_v8  ;;  %v6208_v35 = vld [vmem:[%s17238_s11 + $0x360] sm:$0xff]  ;;  %v6197_v15 = vld [vmem:[%s17238_s11 + $0x308] sm:$0xff] }
 0x4f7   :  { %v13221_v47 = vunpack.i.h.bf16 %v15590_v39  ;;  %v13220_v36 = vunpack.i.l.bf16 %v15590_v39  ;;  %6410 = vmatpush2.msra.mxu0 %v6208_v35  ;;  %v6196_v8 = vld [vmem:[%s17238_s11 + $0x300] sm:$0xff] }
 0x4f8   :  { %v5940_v27 = vsel %vm96_vm0, %v13215_v28, %v13216_v1  ;;  %6019 = vrot.lane.b32.xlu1 %v15593_v59, %s13275_s23  ;;  %v13232_v53 = vpack.i.bf16 %v15588_v24, %v15585_v54  ;;  %6411 = vmatprep.subr.mxu0 %v6207_v63 }
 0x4f9   :  { %v5941_v4 = vsel %vm96_vm0, %v13216_v1, %v13220_v36  ;;  %v15616_v18 = vmax.f32 %v15181_v13, %v5940_v27  ;;  %v13224_v10 = vpop.permute.xlu0 %13223  ;;  %v5939_v11 = vsel %vm96_vm0, %v13221_v47, %v13215_v28  ;;  %6412 = vmatpush2.msra.mxu0 %v6206_v58  ;;  %v6204_v13 = vld [vmem:[%s17238_s11 + $0x340] sm:$0xff] }
 0x4fa   :  { %v15619_v26 = vmax.f32 %v15177_v16, %v5941_v4  ;;  %v13229_v62 = vpop.permute.xlu1 %13228  ;;  %v13226_v22 = vunpack.i.h.bf16 %v13224_v10  ;;  %v13225_v55 = vunpack.i.l.bf16 %v13224_v10  ;;  %13233 = vrot.lane.b32.xlu0 %v13232_v53, %s13275_s23  ;;  %6413 = vmatprep.subr.mxu0 %v6205_v61  ;;  %v6203_v16 = vld [vmem:[%s17238_s11 + $0x338] sm:$0xff]  ;;  %v15639_v0 = vmax.f32 %v15175_v29, %v5939_v11  ;;  %v6201_v29 = vld [vmem:[%s17238_s11 + $0x328] sm:$0xff]  ;;  %v6258_v61 = vld [vmem:[%s17238_s11 + $0x4f0] sm:$0x7f] }
 0x4fb   :  { %v13231_v12 = vunpack.i.h.bf16 %v13229_v62  ;;  %v13230_v32 = vunpack.i.l.bf16 %v13229_v62  ;;  %6414 = vmatpush2.msra.mxu0 %v6204_v13  ;;  %v6257_v13 = vld [vmem:[%s17238_s11 + $0x4e8] sm:$0xff] }
 0x4fc   :  { %v5944_v20 = vsel %vm96_vm0, %v13225_v55, %v13226_v22  ;;  %v13237_v43 = vpack.i.bf16 %v15619_v26, %v15616_v18  ;;  %6415 = vmatprep.subr.mxu0 %v6203_v16 }
 0x4fd   :  { %v5945_v34 = vsel %vm96_vm0, %v13226_v22, %v13230_v32  ;;  %v5943_v14 = vsel %vm96_vm0, %v13231_v12, %v13225_v55  ;;  %v15644_v7 = vmax.f32 %v15195_v56, %v5944_v20  ;;  %v15646_v33 = vpop.permute.xlu0 %5913  ;;  %6416 = vmatpush2.msra.mxu0 %v6202_v42  ;;  %v6255_v42 = vld [vmem:[%s17238_s11 + $0x4d8] sm:$0xff] }
 0x4fe   :  { %v15649_v48 = vmax.f32 %v15191_v44, %v5945_v34  ;;  %v15652_v57 = vmax.f32 %v15189_v37, %v5943_v14  ;;  %v5981_v49 = vpop.permute.xlu1 %5980  ;;  %13238 = vrot.lane.b32.xlu0 %v13237_v43, %s13275_s23  ;;  %v6199_v37 = vld [vmem:[%s17238_s11 + $0x318] sm:$0xff]  ;;  %6417 = vmatprep.subr.mxu0 %v6201_v29  ;;  %v5938_v19 = vsel %vm96_vm0, %v13210_v50, %v15646_v33 }
 0x4ff   :  { %v13242_v56 = vpack.i.bf16 %v15644_v7, %v15639_v0  ;;  %v5986_v9 = vsel %vm96_vm0, %v15646_v33, %v5981_v49  ;;  %6418 = vmatpush2.msra.mxu0 %v6200_v3  ;;  %v5996_v38 = vmax.f32 %v15207_v21, %v5981_v49  ;;  %v15695_v39 = vmax.f32 %v15169_v60, %v5938_v19  ;;  %v6254_v49 = vld [vmem:[%s17238_s11 + $0x4d0] sm:$0xff]  ;;  %v6252_v3 = vld [vmem:[%s17238_s11 + $0x4c0] sm:$0xff]  ;;  %v6251_v19 = vld [vmem:[%s17238_s11 + $0x4b8] sm:$0xff] }
 0x500   :  { %v13247_v44 = vpack.i.bf16 %v15652_v57, %v15649_v48  ;;  %6419 = vmatprep.subr.mxu0 %v6199_v37  ;;  %v5995_v50 = vmax.f32 %v15203_v5, %v5986_v9 }
 0x501   :  { %v15673_v31 = vpop.permute.xlu0 %5923  ;;  %13243 = vrot.lane.b32.xlu1 %v13242_v56, %s13275_s23  ;;  %6420 = vmatpush2.msra.mxu0 %v6198_v40 }
 0x502   :  { %v5983_v6 = vpop.permute.xlu1 %5982  ;;  %v5942_v46 = vsel %vm96_vm0, %v13220_v36, %v15673_v31  ;;  %13248 = vrot.lane.b32.xlu0 %v13247_v44, %s13275_s23  ;;  %6421 = vmatprep.subr.mxu0 %v6197_v15 }
 0x503   :  { %v15691_v52 = vmax.f32 %v15183_v45, %v5942_v46  ;;  %v5987_v1 = vsel %vm96_vm0, %v15673_v31, %v5983_v6  ;;  %6422 = vmatpush2.msra.mxu0 %v6196_v8  ;;  %v5998_v47 = vmax.f32 %v15215_v51, %v5983_v6  ;;  %v6249_v46 = vld [vmem:[%s17238_s11 + $0x4a8] sm:$0xff]  ;;  %v6248_v8 = vld [vmem:[%s17238_s11 + $0x4a0] sm:$0xff] }
 0x504   :  { %v5997_v21 = vmax.f32 %v15209_v2, %v5987_v1 }
 0x505   :  { %6029 = vrot.lane.b32.xlu1 %v5996_v38, %s13275_s23  ;;  %v15701_v28 = vpop.permute.xlu0 %5933  ;;  %v13252_v45 = vpack.i.bf16 %v15691_v52, %v15695_v39 }
 0x506   :  { %6027 = vrot.lane.b32.xlu0 %v5995_v50, %s13275_s23  ;;  %v5985_v17 = vpop.permute.xlu1 %5984  ;;  %v5946_v60 = vsel %vm96_vm0, %v13230_v32, %v15701_v28 }
 0x507   :  { %v15712_v36 = vmax.f32 %v15197_v41, %v5946_v60  ;;  %v5988_v35 = vsel %vm96_vm0, %v15701_v28, %v5985_v17  ;;  %v6000_v27 = vmax.f32 %v15223_v23, %v5985_v17 }
 0x508   :  { %v5999_v63 = vmax.f32 %v15217_v25, %v5988_v35 }
 0x509   :  { %13253 = vrot.lane.b32.xlu1 %v13252_v45, %s13275_s23  ;;  %v6247_v45 = vld [vmem:[%s17238_s11 + $0x498] sm:$0xff] }
 0x50a   :  { %6039 = vrot.lane.b32.xlu0 %v5997_v21, %s13275_s23  ;;  %v6246_v21 = vld [vmem:[%s17238_s11 + $0x490] sm:$0xff] }
 0x50d   :  { %6041 = vrot.lane.b32.xlu1 %v5998_v47, %s13275_s23 }
 0x50e   :  { %6049 = vrot.lane.b32.xlu0 %v15712_v36, %s13275_s23 }
 0x511   :  { %6051 = vrot.lane.b32.xlu1 %v5999_v63, %s13275_s23 }
 0x512   :  { %6053 = vrot.lane.b32.xlu0 %v6000_v27, %s13275_s23  ;;  %v6244_v27 = vld [vmem:[%s17238_s11 + $0x480] sm:$0xff] }
 0x56a   :  { %v6020_v58 = vpop.permute.xlu1 %6019 }
 0x56c   :  { %v13234_v51 = vpop.permute.xlu0 %13233 }
 0x56d   :  { %v13236_v53 = vunpack.i.h.bf16 %v13234_v51  ;;  %v13235_v41 = vunpack.i.l.bf16 %v13234_v51 }
 0x56f   :  { %v6055_v4 = vsel %vm899_vm4, %v6020_v58, %v13235_v41  ;;  %v6056_v10 = vsel %vm899_vm4, %v13235_v41, %v13236_v53 }
 0x570   :  { %v6085_v11 = vmax.f32 %v15593_v59, %v6055_v4  ;;  %v15726_v62 = vpop.permute.xlu0 %13238  ;;  %v6086_v22 = vmax.f32 %v15585_v54, %v6056_v10  ;;  %v6256_v59 = vld [vmem:[%s17238_s11 + $0x4e0] sm:$0xff]  ;;  %v6241_v4 = vld [vmem:[%s17238_s11 + $0x468] sm:$0xff] }
 0x571   :  { %v13241_v23 = vunpack.i.h.bf16 %v15726_v62  ;;  %v13240_v55 = vunpack.i.l.bf16 %v15726_v62 }
 0x572   :  { %6340 = vmatprep.mubr.f32.mxu1 %v6086_v22 }
 0x573   :  { %6341 = vmatmul.mubr.f32.vlgmr.msra.gmra.mxu1 %v6085_v11  ;;  %v13244_v12 = vpop.permute.xlu1 %13243  ;;  %v6061_v54 = vsel %vm899_vm4, %v13240_v55, %v13241_v23  ;;  %v6240_v11 = vld [vmem:[%s17238_s11 + $0x460] sm:$0xff] }
 0x574   :  { %11838 = vmatpush1.msk.msra.mxu1 %vm6269_vm13, %v6258_v61  ;;  %v15744_v32 = vpop.permute.xlu0 %13248  ;;  %v13246_v16 = vunpack.i.h.bf16 %v13244_v12  ;;  %v13245_v20 = vunpack.i.l.bf16 %v13244_v12  ;;  %v6091_v43 = vmax.f32 %v15616_v18, %v6061_v54  ;;  %v6253_v18 = vld [vmem:[%s17238_s11 + $0x4c8] sm:$0xff]  ;;  %vm11442_vm13 = vcmask 1042432  }
 0x575   :  { %v13251_v34 = vunpack.i.h.bf16 %v15744_v32  ;;  %v13250_v14 = vunpack.i.l.bf16 %v15744_v32  ;;  %6444 = vmatprep.subr.mxu1 %v6257_v13  ;;  %v6237_v13 = vld [vmem:[%s17238_s11 + $0x448] sm:$0xff]  ;;  %v6231_v32 = vld [vmem:[%s17238_s11 + $0x418] sm:$0xff] }
 0x576   :  { %v6060_v29 = vsel %vm899_vm4, %v13245_v20, %v13240_v55  ;;  %6445 = vmatpush1.msra.mxu1 %v6256_v59  ;;  %6346 = vmatprep.mubr.f32.mxu1 %v6091_v43  ;;  %v6238_v55 = vld [vmem:[%s17238_s11 + $0x450] sm:$0xff]  ;;  %v6235_v59 = vld [vmem:[%s17238_s11 + $0x438] sm:$0xff]  ;;  %v6233_v54 = vld [vmem:[%s17238_s11 + $0x428] sm:$0xff] }
 0x577   :  { %6446 = vmatprep.subr.mxu1 %v6255_v42  ;;  %v15759_v56 = vpop.permute.xlu1 %6029  ;;  %v6090_v37 = vmax.f32 %v15639_v0, %v6060_v29  ;;  %v6066_v44 = vsel %vm899_vm4, %v13246_v16, %v13250_v14  ;;  %v6065_v40 = vsel %vm899_vm4, %v13251_v34, %v13246_v16  ;;  %v6250_v0 = vld [vmem:[%s17238_s11 + $0x4b0] sm:$0xff]  ;;  %v6229_v43 = vld [vmem:[%s17238_s11 + $0x408] sm:$0xff]  ;;  %v5966_v42 = vmax.f32 %v15203_v5, %v15646_v33  ;;  %v6228_v34 = vld [vmem:[%s17238_s11 + $0x400] sm:$0xff] }
 0x578   :  { %6447 = vmatpush1.msra.mxu1 %v6254_v49  ;;  %v15769_v9 = vpop.permute.xlu0 %6027  ;;  %v6096_v6 = vmax.f32 %v15644_v7, %v6066_v44  ;;  %v6095_v7 = vmax.f32 %v15652_v57, %v6065_v40  ;;  %v6245_v57 = vld [vmem:[%s17238_s11 + $0x488] sm:$0xff]  ;;  %v6230_v16 = vld [vmem:[%s17238_s11 + $0x410] sm:$0xff]  ;;  %v5971_v29 = vmax.f32 %v15209_v2, %v15673_v31 }
 0x579   :  { %6448 = vmatprep.subr.mxu1 %v6253_v18  ;;  %6347 = vmatmul.mubr.f32.gmra.mxu1 %v6090_v37  ;;  %v6059_v20 = vsel %vm899_vm4, %v15769_v9, %v15759_v56  ;;  %v5976_v56 = vmax.f32 %v15217_v25, %v15701_v28 }
 0x57a   :  { %6449 = vmatpush1.msra.mxu1 %v6252_v3  ;;  %6352 = vmatprep.mubr.f32.mxu1 %v6096_v6 }
 0x57b   :  { %6450 = vmatprep.subr.mxu1 %v6251_v19  ;;  %v13254_v15 = vpop.permute.xlu1 %13253 }
 0x57c   :  { %6451 = vmatpush1.msra.mxu1 %v6250_v0  ;;  %v15785_v38 = vpop.permute.xlu0 %6039  ;;  %v13256_v50 = vunpack.i.h.bf16 %v13254_v15  ;;  %v13255_v1 = vunpack.i.l.bf16 %v13254_v15 }
 0x57d   :  { %6452 = vmatprep.subr.mxu1 %v6249_v46  ;;  %6353 = vmatmul.mubr.f32.gmra.mxu1 %v6095_v7 }
 0x57e   :  { %v6057_v17 = vsel %vm899_vm4, %v13236_v53, %v13255_v1  ;;  %6453 = vmatpush1.msra.mxu1 %v6248_v8  ;;  %v6058_v60 = vsel %vm899_vm4, %v13255_v1, %v15769_v9  ;;  %v6063_v47 = vsel %vm899_vm4, %v13256_v50, %v15785_v38  ;;  %v6243_v53 = vld [vmem:[%s17238_s11 + $0x478] sm:$0xff]  ;;  %6506 = vmatprep.mubr.f32.mxu1 %v17371_v30 }
 0x57f   :  { %v6087_v35 = vmax.f32 %v15588_v24, %v6057_v17  ;;  %6454 = vmatprep.subr.mxu1 %v6247_v45  ;;  %v6042_v63 = vpop.permute.xlu1 %6041  ;;  %v6088_v51 = vmax.f32 %v15695_v39, %v6058_v60  ;;  %v6062_v41 = vsel %vm899_vm4, %v13241_v23, %v13256_v50  ;;  %v6242_v24 = vld [vmem:[%s17238_s11 + $0x470] sm:$0xff]  ;;  %v6093_v58 = vmax.f32 %v15691_v52, %v6063_v47  ;;  %v6239_v52 = vld [vmem:[%s17238_s11 + $0x458] sm:$0xff]  ;;  %v11842_v60 = vld [vmem:[%s17239_s4 + $0x20] sm:$0xff] }
 0x580   :  { %6455 = vmatpush1.msra.mxu1 %v6246_v21  ;;  %v6050_v39 = vpop.permute.xlu0 %6049  ;;  %v6092_v22 = vmax.f32 %v15619_v26, %v6062_v41  ;;  %v6236_v26 = vld [vmem:[%s17238_s11 + $0x440] sm:$0xff]  ;;  %v6064_v49 = vsel %vm899_vm4, %v15785_v38, %v6042_v63 }
 0x581   :  { %6456 = vmatprep.subr.mxu1 %v6245_v57  ;;  %6423 = vmatprep.mubr.f32.mxu0 %v6088_v51  ;;  %v6067_v23 = vsel %vm899_vm4, %v13250_v14, %v6050_v39  ;;  %v6089_v14 = vmax.f32 %v5966_v42, %v6059_v20  ;;  %v6094_v5 = vmax.f32 %v5971_v29, %v6064_v49 }
 0x582   :  { %6457 = vmatpush1.msra.mxu1 %v6244_v27  ;;  %6424 = vmatmul.mubr.f32.vlgmr.msra.gmra.mxu0 %v6087_v35  ;;  %v6097_v12 = vmax.f32 %v15649_v48, %v6067_v23  ;;  %v6232_v48 = vld [vmem:[%s17238_s11 + $0x420] sm:$0xff]  ;;  %v11914_v23 = vld [vmem:[%s17234_s10 + $0x50] sm:$0xff] }
 0x583   :  { %6458 = vmatprep.subr.mxu1 %v6243_v53  ;;  %v6052_v10 = vpop.permute.xlu1 %6051  ;;  %6429 = vmatprep.mubr.f32.mxu0 %v6093_v58 }
 0x584   :  { %6459 = vmatpush1.msra.mxu1 %v6242_v24  ;;  %v6068_v62 = vsel %vm899_vm4, %v6050_v39, %v6052_v10  ;;  %v6054_v18 = vpop.permute.xlu0 %6053  ;;  %v11870_v24 = vld [vmem:[%s17239_s4 + $0x80] sm:$0xff]  ;;  %v11913_v39 = vld [vmem:[%s17233_s9 + $0x68] sm:$0xff] }
 0x585   :  { %6460 = vmatprep.subr.mxu1 %v6241_v4  ;;  %v6098_v61 = vmax.f32 %v15712_v36, %v6068_v62  ;;  %v6234_v36 = vld [vmem:[%s17238_s11 + $0x430] sm:$0xff]  ;;  %v6069_v33 = vsel %vm899_vm4, %v6052_v10, %v6054_v18  ;;  %s13282_s11 = smov 116   ;;  %v11912_v4 = vld [vmem:[%s17233_s9 + $0x60] sm:$0xff]  ;;  %v11917_v10 = vld [vmem:[%s17234_s10 + $0x68] sm:$0xff]  ;;  %vm7376_vm4 = vcmask 842752  }
 0x586   :  { %6461 = vmatpush1.msra.mxu1 %v6240_v11  ;;  %6430 = vmatmul.mubr.f32.gmra.mxu0 %v6092_v22  ;;  %v6099_v3 = vmax.f32 %v5976_v56, %v6069_v33  ;;  %v11911_v11 = vld [vmem:[%s17233_s9 + $0x58] sm:$0xff]  ;;  %v11916_v62 = vld [vmem:[%s17234_s10 + $0x60] sm:$0xff]  ;;  %v11843_v33 = vld [vmem:[%s17239_s4 + $0x28] sm:$0xff] }
 0x587   :  { %6462 = vmatprep.subr.mxu1 %v6239_v52  ;;  %6435 = vmatprep.mubr.f32.mxu0 %v6098_v61  ;;  %v11910_v52 = vld [vmem:[%s17233_s9 + $0x50] sm:$0xff]  ;;  %v11915_v22 = vld [vmem:[%s17234_s10 + $0x58] sm:$0xff] }
 0x588   :  { %6463 = vmatpush1.msra.mxu1 %v6238_v55  ;;  %v11844_v56 = vld [vmem:[%s17239_s4 + $0x30] sm:$0xff] }
 0x589   :  { %6464 = vmatprep.subr.mxu1 %v6237_v13 }
 0x58a   :  { %6465 = vmatpush1.msra.mxu1 %v6236_v26  ;;  %6436 = vmatmul.mubr.f32.gmra.mxu0 %v6097_v12 }
 0x58b   :  { %6466 = vmatprep.subr.mxu1 %v6235_v59  ;;  %12528 = vmatprep.mubr.msk.f32.mxu0 %vm6546_vm14, %v11842_v60 }
 0x58c   :  { %6467 = vmatpush1.msra.mxu1 %v6234_v36 }
 0x58d   :  { %6468 = vmatprep.subr.mxu1 %v6233_v54 }
 0x58e   :  { %6469 = vmatpush1.msra.mxu1 %v6232_v48 }
 0x58f   :  { %6470 = vmatprep.subr.mxu1 %v6231_v32 }
 0x590   :  { %6471 = vmatpush1.msra.mxu1 %v6230_v16 }
 0x591   :  { %6472 = vmatprep.subr.mxu1 %v6229_v43 }
 0x592   :  { %6473 = vmatpush1.msra.mxu1 %v6228_v34 }
 0x593   :  { %11839 = vmatmul.mubr.msk.f32.vlgmr.msra.gmra.mxu1 %vm96_vm0, %v6089_v14 }
 0x594   :  { %6512 = vmatprep.mubr.f32.mxu1 %v17371_v30 }
 0x597   :  { %11840 = vmatmul.mubr.msk.f32.gmra.mxu1 %vm96_vm0, %v6094_v5 }
 0x598   :  { %6518 = vmatprep.mubr.f32.mxu1 %v17371_v30 }
 0x59b   :  { %11841 = vmatmul.mubr.msk.f32.gmra.mxu1 %vm96_vm0, %v6099_v3  ;;  %vm7001_vm0 = vcmask 941056  }
 0x59c   :  { %12576 = vmatprep.mubr.msk.f32.mxu1 %vm6546_vm14, %v11870_v24 }
 0x633   :  { %v6342_v37 = vpop.f32.mrf.mxu1 }
 0x635   :  { %v6344_v2 = vpop.f32.mrf.mxu1 }
 0x639   :  { %v6348_v31 = vpop.f32.mrf.mxu1 }
 0x63b   :  { %v6350_v44 = vpop.f32.mrf.mxu1 }
 0x63d   :  { %v6354_v40 = vpop.f32.mrf.mxu1 }
 0x63f   :  { %v6356_v19 = vpop.f32.mrf.mxu1 }
 0x642   :  { %v6425_v9 = vpop.f32.mrf.mxu0 }
 0x643   :  { %v6426_v6 = vadd.f32 %v6425_v9, %v6342_v37  ;;  %v6526_v9 = vld [vmem:[%s17239_s4 + $0x8] sm:$0xff] }
 0x644   :  { %v6427_v0 = vpop.f32.mrf.mxu0 }
 0x645   :  { %v6428_v28 = vadd.f32 %v6427_v0, %v6344_v2  ;;  %v11845_v2 = vld [vmem:[%s17239_s4 + $0x38] sm:$0xf] }
 0x646   :  { %v6431_v7 = vpop.f32.mrf.mxu0 }
 0x647   :  { %v6432_v50 = vadd.f32 %v6431_v7, %v6348_v31  ;;  %v6525_v31 = vld [vmem:[%s17239_s4] sm:$0xff]  ;;  %v11856_v7 = vld [vmem:[%s17239_s4 + $0x50] sm:$0xff] }
 0x648   :  { %v6433_v1 = vpop.f32.mrf.mxu0 }
 0x649   :  { %v6434_v17 = vadd.f32 %v6433_v1, %v6350_v44  ;;  %v11857_v1 = vld [vmem:[%s17239_s4 + $0x58] sm:$0xf] }
 0x64a   :  { %v6437_v47 = vpop.f32.mrf.mxu0 }
 0x64b   :  { %v6438_v63 = vadd.f32 %v6437_v47, %v6354_v40 }
 0x64c   :  { %v6439_v51 = vpop.f32.mrf.mxu0 }
 0x64d   :  { %v6440_v41 = vadd.f32 %v6439_v51, %v6356_v19  ;;  %v6527_v19 = vld [vmem:[%s17239_s4 + $0x10] sm:$0xff] }
 0x653   :  { %v6508_v46 = vpop.f32.mrf.mxu1 }
 0x654   :  { %v15883_v15 = vadd.f32 %v6508_v46, %v6426_v6  ;;  %v6528_v46 = vld [vmem:[%s17239_s4 + $0x18] sm:$0xf] }
 0x655   :  { %v6510_v25 = vpop.f32.mrf.mxu1 }
 0x656   :  { %6746 = vrot.lane.b32.xlu0 %v15883_v15, %s13274_s0  ;;  %6537 = vrot.lane.b32.xlu1 %v15883_v15, %s13273_s22  ;;  %v15889_v8 = vadd.f32 %v6510_v25, %v6428_v28 }
 0x657   :  { %v6514_v38 = vpop.f32.mrf.mxu1 }
 0x658   :  { %v15903_v45 = vadd.f32 %v6514_v38, %v6432_v50 }
 0x659   :  { %v6516_v21 = vpop.f32.mrf.mxu1 }
 0x65a   :  { %6866 = vrot.lane.b32.xlu0 %v15889_v8, %s13282_s11  ;;  %6864 = vrot.lane.b32.xlu1 %v15883_v15, %s13282_s11  ;;  %v6517_v57 = vadd.f32 %v6516_v21, %v6434_v17  ;;  %v11862_v21 = vld [vmem:[%s17239_s4 + $0x60] sm:$0xff] }
 0x65b   :  { %v6520_v35 = vpop.f32.mrf.mxu1 }
 0x65c   :  { %v15922_v27 = vadd.f32 %v6520_v35, %v6438_v63  ;;  %v11863_v63 = vld [vmem:[%s17239_s4 + $0x68] sm:$0xff] }
 0x65d   :  { %v6522_v53 = vpop.f32.mrf.mxu1 }
 0x65e   :  { %6991 = vrot.lane.b32.xlu0 %v15889_v8, %s13283_s16  ;;  %6989 = vrot.lane.b32.xlu1 %v15883_v15, %s13283_s16  ;;  %v6523_v58 = vadd.f32 %v6522_v53, %v6440_v41  ;;  %v11864_v41 = vld [vmem:[%s17239_s4 + $0x70] sm:$0xff] }
 0x662   :  { %7116 = vrot.lane.b32.xlu0 %v15889_v8, %s13284_s17  ;;  %7114 = vrot.lane.b32.xlu1 %v15883_v15, %s13284_s17 }
 0x666   :  { %6539 = vrot.lane.b32.xlu0 %v15903_v45, %s13273_s22  ;;  %6748 = vrot.lane.b32.xlu1 %v15903_v45, %s13274_s0 }
 0x66a   :  { %6870 = vrot.lane.b32.xlu0 %v6517_v57, %s13282_s11  ;;  %6868 = vrot.lane.b32.xlu1 %v15903_v45, %s13282_s11 }
 0x66e   :  { %6995 = vrot.lane.b32.xlu0 %v6517_v57, %s13283_s16  ;;  %6993 = vrot.lane.b32.xlu1 %v15903_v45, %s13283_s16 }
 0x672   :  { %7120 = vrot.lane.b32.xlu0 %v6517_v57, %s13284_s17  ;;  %7118 = vrot.lane.b32.xlu1 %v15903_v45, %s13284_s17 }
 0x676   :  { %7245 = vrot.lane.b32.xlu0 %v6517_v57, %s13285_s3  ;;  %6541 = vrot.lane.b32.xlu1 %v15922_v27, %s13273_s22 }
 0x67a   :  { %7241 = vrot.lane.b32.xlu0 %v15889_v8, %s13285_s3  ;;  %7243 = vrot.lane.b32.xlu1 %v15903_v45, %s13285_s3 }
 0x67e   :  { %7370 = vrot.lane.b32.xlu0 %v6517_v57, %s13286_s25  ;;  %7239 = vrot.lane.b32.xlu1 %v15883_v15, %s13285_s3 }
 0x682   :  { %7366 = vrot.lane.b32.xlu0 %v15889_v8, %s13286_s25  ;;  %7368 = vrot.lane.b32.xlu1 %v15903_v45, %s13286_s25 }
 0x686   :  { %6750 = vrot.lane.b32.xlu0 %v15922_v27, %s13274_s0  ;;  %7364 = vrot.lane.b32.xlu1 %v15883_v15, %s13286_s25 }
 0x68a   :  { %7495 = vrot.lane.b32.xlu0 %v6517_v57, %s13287_s18  ;;  %7493 = vrot.lane.b32.xlu1 %v15903_v45, %s13287_s18 }
 0x68e   :  { %6872 = vrot.lane.b32.xlu1 %v15922_v27, %s13282_s11  ;;  %6874 = vrot.lane.b32.xlu0 %v6523_v58, %s13282_s11 }
 0x692   :  { %6997 = vrot.lane.b32.xlu1 %v15922_v27, %s13283_s16  ;;  %6999 = vrot.lane.b32.xlu0 %v6523_v58, %s13283_s16 }
 0x696   :  { %7122 = vrot.lane.b32.xlu1 %v15922_v27, %s13284_s17  ;;  %7124 = vrot.lane.b32.xlu0 %v6523_v58, %s13284_s17 }
 0x69a   :  { %7247 = vrot.lane.b32.xlu1 %v15922_v27, %s13285_s3  ;;  %7249 = vrot.lane.b32.xlu0 %v6523_v58, %s13285_s3 }
 0x69e   :  { %7372 = vrot.lane.b32.xlu1 %v15922_v27, %s13286_s25  ;;  %7374 = vrot.lane.b32.xlu0 %v6523_v58, %s13286_s25 }
 0x6a2   :  { %7497 = vrot.lane.b32.xlu1 %v15922_v27, %s13287_s18  ;;  %7499 = vrot.lane.b32.xlu0 %v6523_v58, %s13287_s18 }
 0x6a6   :  { %7489 = vrot.lane.b32.xlu1 %v15883_v15, %s13287_s18  ;;  %7491 = vrot.lane.b32.xlu0 %v15889_v8, %s13287_s18  ;;  %v11855_v8 = vld [vmem:[%s17239_s4 + $0x48] sm:$0xff] }
 0x6aa   :  { %7640 = vperm.xlu1 %13200, %v11913_v39   ;;  %7635 = vperm.xlu0 %13201, %v11912_v4   ;;  %v11871_v39 = vld [vmem:[%s17239_s4 + $0x88] sm:$0xff]  ;;  %v11865_v4 = vld [vmem:[%s17239_s4 + $0x78] sm:$0xf] }
 0x6ae   :  { %7664 = vperm.xlu1 %13200, %v11917_v10   ;;  %7630 = vperm.xlu0 %13201, %v11911_v11  }
 0x6b2   :  { %7659 = vperm.xlu1 %13200, %v11916_v62   ;;  %7625 = vperm.xlu0 %13201, %v11910_v52   ;;  %v11872_v52 = vld [vmem:[%s17239_s4 + $0x90] sm:$0xff] }
 0x6b6   :  { %7654 = vperm.xlu1 %13200, %v11915_v22   ;;  %7649 = vperm.xlu0 %13201, %v11914_v23   ;;  %v11878_v23 = vld [vmem:[%s17239_s4 + $0xa0] sm:$0xff] }
 0x6c8   :  { %v6747_v55 = vpop.permute.xlu0 %6746  ;;  %v6538_v61 = vpop.permute.xlu1 %6537 }
 0x6cc   :  { %v15995_v13 = vpop.permute.xlu0 %6866  ;;  %v15997_v26 = vpop.permute.xlu1 %6864 }
 0x6cd   :  { %v6877_v35 = vsel %vm6876_vm15, %v15997_v26, %v15995_v13  ;;  %v11873_v13 = vld [vmem:[%s17239_s4 + $0x98] sm:$0xf] }
 0x6d0   :  { %v15999_v12 = vpop.permute.xlu0 %6991  ;;  %v16001_v59 = vpop.permute.xlu1 %6989 }
 0x6d1   :  { %v7002_v24 = vsel %vm7001_vm0, %v16001_v59, %v15999_v12 }
 0x6d4   :  { %v16003_v36 = vpop.permute.xlu0 %7116  ;;  %v16005_v54 = vpop.permute.xlu1 %7114 }
 0x6d8   :  { %v6540_v48 = vpop.permute.xlu0 %6539  ;;  %v6749_v32 = vpop.permute.xlu1 %6748 }
 0x6dc   :  { %v16007_v16 = vpop.permute.xlu0 %6870  ;;  %v16009_v20 = vpop.permute.xlu1 %6868 }
 0x6dd   :  { %v6878_v57 = vsel %vm6876_vm15, %v16009_v20, %v16007_v16  ;;  %v11887_v16 = vld [vmem:[%s17239_s4 + $0xc8] sm:$0xff] }
 0x6e0   :  { %v16011_v43 = vpop.permute.xlu0 %6995  ;;  %v16013_v42 = vpop.permute.xlu1 %6993 }
 0x6e4   :  { %v16015_v34 = vpop.permute.xlu0 %7120  ;;  %v16017_v14 = vpop.permute.xlu1 %7118 }
 0x6e5   :  { %v7128_v11 = vsel %vm7126_vm2, %v16017_v14, %v16015_v34 }
 0x6e8   :  { %v16019_v49 = vpop.permute.xlu0 %7245  ;;  %v6542_v29 = vpop.permute.xlu1 %6541 }
 0x6e9   :  { %12522 = vmatprep.subr.mxu0 %v6542_v29 }
 0x6ea   :  { %12523 = vmatpush3.msra.mxu0 %v6542_v29  ;;  %v11894_v29 = vld [vmem:[%s17239_s4 + $0xe0] sm:$0xff] }
 0x6eb   :  { %12524 = vmatprep.subr.mxu0 %v6540_v48 }
 0x6ec   :  { %v16021_v18 = vpop.permute.xlu0 %7241  ;;  %12525 = vmatpush3.msra.mxu0 %v6540_v48  ;;  %v16023_v5 = vpop.permute.xlu1 %7243  ;;  %v11886_v48 = vld [vmem:[%s17239_s4 + $0xc0] sm:$0xff] }
 0x6ed   :  { %12526 = vmatprep.subr.mxu0 %v6538_v61  ;;  %v7253_v59 = vsel %vm7251_vm3, %v16023_v5, %v16019_v49  ;;  %v11888_v49 = vld [vmem:[%s17239_s4 + $0xd0] sm:$0xff] }
 0x6ee   :  { %12527 = vmatpush3.msra.mxu0 %v6538_v61  ;;  %v11879_v61 = vld [vmem:[%s17239_s4 + $0xa8] sm:$0xff] }
 0x6ef   :  { %12529 = vmatmul.mubr.msk.f32.vlgmr.msra.gmra.mxu0 %vm6546_vm14, %v11843_v33  ;;  %12534 = vmatprep.subr.mxu0 %v15922_v27  ;;  %v11895_v33 = vld [vmem:[%s17239_s4 + $0xe8] sm:$0xff] }
 0x6f0   :  { %v16033_v3 = vpop.permute.xlu0 %7370  ;;  %12535 = vmatpush3.msra.mxu0 %v15922_v27  ;;  %v16036_v37 = vpop.permute.xlu1 %7239  ;;  %12531 = vmatprep.mubr.msk.f32.mxu0 %vm6546_vm14, %v11844_v56  ;;  %v7003_v27 = vsel %vm7001_vm0, %v16013_v42, %v16011_v43  ;;  %v11881_v43 = vld [vmem:[%s17239_s4 + $0xb8] sm:$0xf] }
 0x6f1   :  { %12536 = vmatprep.subr.mxu0 %v15903_v45 }
 0x6f2   :  { %12537 = vmatpush3.msra.mxu0 %v15903_v45 }
 0x6f3   :  { %12532 = vmatmul.mubr.msk.f32.gmra.mxu0 %vm6546_vm14, %v11845_v2  ;;  %12538 = vmatprep.subr.mxu0 %v15883_v15 }
 0x6f4   :  { %v16049_v44 = vpop.permute.xlu0 %7366  ;;  %12539 = vmatpush3.msra.mxu0 %v15883_v15  ;;  %v16052_v40 = vpop.permute.xlu1 %7368  ;;  %12540 = vmatprep.mubr.msk.f32.mxu0 %vm6546_vm14, %v6525_v31  ;;  %v11854_v15 = vld [vmem:[%s17239_s4 + $0x40] sm:$0xff] }
 0x6f5   :  { %v7378_v14 = vsel %vm7376_vm4, %v16052_v40, %v16033_v3  ;;  %v11889_v3 = vld [vmem:[%s17239_s4 + $0xd8] sm:$0xf] }
 0x6f6   :  { %v11897_v40 = vld [vmem:[%s17239_s4 + $0xf8] sm:$0xf] }
 0x6f7   :  { %12541 = vmatmul.mubr.msk.f32.vlgmr.msra.gmra.mxu0 %vm6546_vm14, %v6526_v9  ;;  %v11903_v9 = vld [vmem:[%s17239_s4 + $0x108] sm:$0xff] }
 0x6f8   :  { %v6751_v6 = vpop.permute.xlu0 %6750  ;;  %v16062_v0 = vpop.permute.xlu1 %7364  ;;  %12543 = vmatprep.mubr.msk.f32.mxu0 %vm6546_vm14, %v6527_v19  ;;  %v11904_v19 = vld [vmem:[%s17239_s4 + $0x110] sm:$0xff] }
 0x6f9   :  { %12546 = vmatprep.subr.mxu0 %v6751_v6 }
 0x6fa   :  { %12547 = vmatpush3.msra.mxu0 %v6751_v6  ;;  %v11905_v6 = vld [vmem:[%s17239_s4 + $0x118] sm:$0xf] }
 0x6fb   :  { %12544 = vmatmul.mubr.msk.f32.gmra.mxu0 %vm6546_vm14, %v6528_v46  ;;  %12548 = vmatprep.subr.mxu0 %v6749_v32 }
 0x6fc   :  { %v16072_v25 = vpop.permute.xlu0 %7495  ;;  %12549 = vmatpush3.msra.mxu0 %v6749_v32  ;;  %v16074_v28 = vpop.permute.xlu1 %7493  ;;  %12552 = vmatprep.mubr.msk.f32.mxu0 %vm6546_vm14, %v11854_v15  ;;  %v7252_v32 = vsel %vm7251_vm3, %v16036_v37, %v16021_v18  ;;  %v7377_v18 = vsel %vm7376_vm4, %v16062_v0, %v16049_v44  ;;  %v11896_v37 = vld [vmem:[%s17239_s4 + $0xf0] sm:$0xff]  ;;  %v11902_v44 = vld [vmem:[%s17239_s4 + $0x100] sm:$0xff] }
 0x6fd   :  { %12550 = vmatprep.subr.mxu0 %v6747_v55  ;;  %v7503_v2 = vsel %vm7501_vm5, %v16074_v28, %v16072_v25 }
 0x6fe   :  { %12551 = vmatpush3.msra.mxu0 %v6747_v55  ;;  %v7127_v55 = vsel %vm7126_vm2, %v16005_v54, %v16003_v36  ;;  %v11880_v54 = vld [vmem:[%s17239_s4 + $0xb0] sm:$0xff] }
 0x6ff   :  { %12553 = vmatmul.mubr.msk.f32.vlgmr.msra.gmra.mxu0 %vm6546_vm14, %v11855_v8 }
 0x700   :  { %v6873_v38 = vpop.permute.xlu1 %6872  ;;  %v6875_v50 = vpop.permute.xlu0 %6874  ;;  %12555 = vmatprep.mubr.msk.f32.mxu0 %vm6546_vm14, %v11856_v7 }
 0x701   :  { %v6879_v45 = vsel %vm6876_vm15, %v6873_v38, %v6875_v50 }
 0x702   :  { %12558 = vmatprep.subr.mxu0 %v6879_v45 }
 0x703   :  { %12556 = vmatmul.mubr.msk.f32.gmra.mxu0 %vm6546_vm14, %v11857_v1 }
 0x704   :  { %12559 = vmatpush3.msra.mxu0 %v6879_v45  ;;  %v6998_v17 = vpop.permute.xlu1 %6997  ;;  %v7000_v60 = vpop.permute.xlu0 %6999  ;;  %12564 = vmatprep.mubr.msk.f32.mxu0 %vm6546_vm14, %v11862_v21 }
 0x705   :  { %12560 = vmatprep.subr.mxu0 %v6878_v57  ;;  %v7004_v47 = vsel %vm7001_vm0, %v6998_v17, %v7000_v60 }
 0x706   :  { %12561 = vmatpush3.msra.mxu0 %v6878_v57  ;;  %12570 = vmatprep.subr.mxu1 %v7004_v47 }
 0x707   :  { %12562 = vmatprep.subr.mxu0 %v6877_v35  ;;  %12571 = vmatpush3.msra.mxu1 %v7004_v47 }
 0x708   :  { %12563 = vmatpush3.msra.mxu0 %v6877_v35  ;;  %v7123_v51 = vpop.permute.xlu1 %7122  ;;  %12572 = vmatprep.subr.mxu1 %v7003_v27  ;;  %v7125_v53 = vpop.permute.xlu0 %7124 }
 0x709   :  { %12565 = vmatmul.mubr.msk.f32.vlgmr.msra.gmra.mxu0 %vm6546_vm14, %v11863_v63  ;;  %12573 = vmatpush3.msra.mxu1 %v7003_v27  ;;  %v7129_v58 = vsel %vm7126_vm2, %v7123_v51, %v7125_v53 }
 0x70a   :  { %12574 = vmatprep.subr.mxu1 %v7002_v24  ;;  %12582 = vmatprep.subr.mxu0 %v7129_v58 }
 0x70b   :  { %12567 = vmatprep.mubr.msk.f32.mxu0 %vm6546_vm14, %v11864_v41  ;;  %12575 = vmatpush3.msra.mxu1 %v7002_v24 }
 0x70c   :  { %12583 = vmatpush3.msra.mxu0 %v7129_v58  ;;  %v7248_v10 = vpop.permute.xlu1 %7247  ;;  %12577 = vmatmul.mubr.msk.f32.vlgmr.msra.gmra.mxu1 %vm6546_vm14, %v11871_v39  ;;  %v7250_v62 = vpop.permute.xlu0 %7249 }
 0x70d   :  { %12568 = vmatmul.mubr.msk.f32.gmra.mxu0 %vm6546_vm14, %v11865_v4  ;;  %12584 = vmatprep.subr.mxu0 %v7128_v11  ;;  %v7254_v22 = vsel %vm7251_vm3, %v7248_v10, %v7250_v62 }
 0x70e   :  { %12585 = vmatpush3.msra.mxu0 %v7128_v11  ;;  %12594 = vmatprep.subr.mxu1 %v7254_v22 }
 0x70f   :  { %12586 = vmatprep.subr.mxu0 %v7127_v55  ;;  %12579 = vmatprep.mubr.msk.f32.mxu1 %vm6546_vm14, %v11872_v52 }
 0x710   :  { %12587 = vmatpush3.msra.mxu0 %v7127_v55  ;;  %12588 = vmatprep.mubr.msk.f32.mxu0 %vm6546_vm14, %v11878_v23  ;;  %v7373_v26 = vpop.permute.xlu1 %7372  ;;  %v7375_v12 = vpop.permute.xlu0 %7374 }
 0x711   :  { %12595 = vmatpush3.msra.mxu1 %v7254_v22  ;;  %12589 = vmatmul.mubr.msk.f32.vlgmr.msra.gmra.mxu0 %vm6546_vm14, %v11879_v61  ;;  %v7379_v36 = vsel %vm7376_vm4, %v7373_v26, %v7375_v12 }
 0x712   :  { %12580 = vmatmul.mubr.msk.f32.gmra.mxu1 %vm6546_vm14, %v11873_v13  ;;  %12596 = vmatprep.subr.mxu1 %v7253_v59 }
 0x713   :  { %12597 = vmatpush3.msra.mxu1 %v7253_v59  ;;  %12606 = vmatprep.subr.mxu0 %v7379_v36 }
 0x714   :  { %12598 = vmatprep.subr.mxu1 %v7252_v32  ;;  %12591 = vmatprep.mubr.msk.f32.mxu0 %vm6546_vm14, %v11880_v54  ;;  %v7498_v20 = vpop.permute.xlu1 %7497  ;;  %v7500_v42 = vpop.permute.xlu0 %7499 }
 0x715   :  { %12599 = vmatpush3.msra.mxu1 %v7252_v32  ;;  %12600 = vmatprep.mubr.msk.f32.mxu1 %vm6546_vm14, %v11886_v48  ;;  %v7504_v34 = vsel %vm7501_vm5, %v7498_v20, %v7500_v42 }
 0x716   :  { %12607 = vmatpush3.msra.mxu0 %v7379_v36  ;;  %12601 = vmatmul.mubr.msk.f32.vlgmr.msra.gmra.mxu1 %vm6546_vm14, %v11887_v16 }
 0x717   :  { %12592 = vmatmul.mubr.msk.f32.gmra.mxu0 %vm6546_vm14, %v11881_v43  ;;  %12608 = vmatprep.subr.mxu0 %v7378_v14 }
 0x718   :  { %12609 = vmatpush3.msra.mxu0 %v7378_v14  ;;  %12618 = vmatprep.subr.mxu1 %v7504_v34  ;;  %v7490_v5 = vpop.permute.xlu1 %7489  ;;  %v7492_v56 = vpop.permute.xlu0 %7491 }
 0x719   :  { %12610 = vmatprep.subr.mxu0 %v7377_v18  ;;  %12603 = vmatprep.mubr.msk.f32.mxu1 %vm6546_vm14, %v11888_v49  ;;  %v7502_v31 = vsel %vm7501_vm5, %v7490_v5, %v7492_v56 }
 0x71a   :  { %12611 = vmatpush3.msra.mxu0 %v7377_v18  ;;  %12612 = vmatprep.mubr.msk.f32.mxu0 %vm6546_vm14, %v11894_v29 }
 0x71b   :  { %12619 = vmatpush3.msra.mxu1 %v7504_v34  ;;  %12613 = vmatmul.mubr.msk.f32.vlgmr.msra.gmra.mxu0 %vm6546_vm14, %v11895_v33 }
 0x71c   :  { %12604 = vmatmul.mubr.msk.f32.gmra.mxu1 %vm6546_vm14, %v11889_v3  ;;  %12620 = vmatprep.subr.mxu1 %v7503_v2 }
 0x71d   :  { %12621 = vmatpush3.msra.mxu1 %v7503_v2  ;;  %12615 = vmatprep.mubr.msk.f32.mxu0 %vm6546_vm14, %v11896_v37 }
 0x71e   :  { %12622 = vmatprep.subr.mxu1 %v7502_v31  ;;  %12624 = vmatprep.mubr.msk.f32.mxu1 %vm6546_vm14, %v11902_v44 }
 0x71f   :  { %12623 = vmatpush3.msra.mxu1 %v7502_v31  ;;  %12616 = vmatmul.mubr.msk.f32.gmra.mxu0 %vm6546_vm14, %v11897_v40 }
 0x720   :  { %12625 = vmatmul.mubr.msk.f32.vlgmr.msra.gmra.mxu1 %vm6546_vm14, %v11903_v9 }
 0x721   :  { %12627 = vmatprep.mubr.msk.f32.mxu1 %vm6546_vm14, %v11904_v19 }
 0x724   :  { %12628 = vmatmul.mubr.msk.f32.gmra.mxu1 %vm6546_vm14, %v11905_v6 }
 0x725   :  { %v7641_v24 = vpop.permute.xlu1 %7640  ;;  %v7636_v36 = vpop.permute.xlu0 %7635 }
 0x729   :  { %v7665_v59 = vpop.permute.xlu1 %7664  ;;  %v7631_v44 = vpop.permute.xlu0 %7630 }
 0x72d   :  { %v7660_v2 = vpop.permute.xlu1 %7659 }
 0x7af   :  { %v12530_v0 = vpop.f32.mrf.mxu0 }
 0x7b1   :  { %v6625_v46 = vpop.f32.mrf.mxu0 }
 0x7b3   :  { %v12533_v15 = vpop.f32.mrf.mxu0 }
 0x7b5   :  { %v6635_v25 = vpop.f32.mrf.mxu0 }
 0x7b7   :  { %v12542_v28 = vpop.f32.mrf.mxu0 }
 0x7b8   :  { %v6728_v53 = vadd.f32 %v12542_v28, %v12530_v0 }
 0x7b9   :  { %v6722_v8 = vpop.f32.mrf.mxu0 }
 0x7ba   :  { %v6723_v39 = vadd.f32 %v6722_v8, %v6625_v46 }
 0x7bb   :  { %v12545_v7 = vpop.f32.mrf.mxu0 }
 0x7bc   :  { %v6738_v11 = vadd.f32 %v12545_v7, %v12533_v15 }
 0x7bd   :  { %v6732_v38 = vpop.f32.mrf.mxu0 }
 0x7be   :  { %v6733_v55 = vadd.f32 %v6732_v38, %v6635_v25 }
 0x7bf   :  { %v12554_v50 = vpop.f32.mrf.mxu0 }
 0x7c0   :  { %v6853_v4 = vadd.f32 %v12554_v50, %v6728_v53 }
 0x7c1   :  { %v6833_v1 = vpop.f32.mrf.mxu0 }
 0x7c2   :  { %v6852_v62 = vadd.f32 %v6833_v1, %v6723_v39 }
 0x7c3   :  { %v12557_v45 = vpop.f32.mrf.mxu0 }
 0x7c4   :  { %v6855_v61 = vadd.f32 %v12557_v45, %v6738_v11  ;;  %v7655_v45 = vpop.permute.xlu1 %7654  ;;  %v11918_v11 = vld [vmem:[%s17240_s5 + $0x20] sm:$0xff] }
 0x7c5   :  { %v6843_v21 = vpop.f32.mrf.mxu0  ;;  %12638 = vmatprep.mubr.msk.f32.mxu0 %vm7695_vm6, %v11918_v11  ;;  %v11977_v11 = vld [vmem:[%s17240_s5 + $0xe0] sm:$0xff] }
 0x7c6   :  { %v6854_v54 = vadd.f32 %v6843_v21, %v6733_v55  ;;  %v11998_v55 = vld [vmem:[%s17233_s9 + $0x90] sm:$0xff] }
 0x7c9   :  { %v12566_v17 = vpop.f32.mrf.mxu0 }
 0x7ca   :  { %v6981_v52 = vadd.f32 %v12566_v17, %v6853_v4  ;;  %v7671_v4 = vld [vmem:[%s17240_s5] sm:$0xff] }
 0x7cb   :  { %v6961_v57 = vpop.f32.mrf.mxu0  ;;  %12652 = vmatprep.mubr.msk.f32.mxu1 %vm7695_vm6, %v7671_v4 }
 0x7cc   :  { %v12578_v60 = vpop.f32.mrf.mxu1  ;;  %v6980_v13 = vadd.f32 %v6961_v57, %v6852_v62  ;;  %v7673_v62 = vld [vmem:[%s17240_s5 + $0x10] sm:$0xff] }
 0x7cd   :  { %v12569_v47 = vpop.f32.mrf.mxu0  ;;  %v7106_v26 = vadd.f32 %v12578_v60, %v6981_v52  ;;  %v7674_v52 = vld [vmem:[%s17240_s5 + $0x18] sm:$0xff] }
 0x7ce   :  { %v7086_v35 = vpop.f32.mrf.mxu1  ;;  %v6983_v48 = vadd.f32 %v12569_v47, %v6855_v61  ;;  %v11996_v61 = vld [vmem:[%s17233_s9 + $0x80] sm:$0xff] }
 0x7cf   :  { %v6971_v63 = vpop.f32.mrf.mxu0  ;;  %v7105_v32 = vadd.f32 %v7086_v35, %v6980_v13  ;;  %v7626_v35 = vpop.permute.xlu0 %7625  ;;  %v12002_v13 = vld [vmem:[%s17234_s10 + $0x90] sm:$0xff] }
 0x7d0   :  { %v6982_v42 = vadd.f32 %v6971_v63, %v6854_v54 }
 0x7d1   :  { %v12590_v27 = vpop.f32.mrf.mxu0 }
 0x7d2   :  { %v12581_v51 = vpop.f32.mrf.mxu1  ;;  %v7231_v16 = vadd.f32 %v12590_v27, %v7106_v26  ;;  %v11995_v26 = vld [vmem:[%s17233_s9 + $0x78] sm:$0xff] }
 0x7d3   :  { %v7211_v41 = vpop.f32.mrf.mxu0  ;;  %v7108_v34 = vadd.f32 %v12581_v51, %v6983_v48  ;;  %v7650_v39 = vpop.permute.xlu0 %7649 }
 0x7d4   :  { %v7096_v58 = vpop.f32.mrf.mxu1  ;;  %v7230_v14 = vadd.f32 %v7211_v41, %v7105_v32 }
 0x7d5   :  { %v7107_v5 = vadd.f32 %v7096_v58, %v6982_v42 }
 0x7d6   :  { %v12602_v10 = vpop.f32.mrf.mxu1 }
 0x7d7   :  { %v12593_v22 = vpop.f32.mrf.mxu0  ;;  %v7356_v49 = vadd.f32 %v12602_v10, %v7231_v16  ;;  %v7672_v10 = vld [vmem:[%s17240_s5 + $0x8] sm:$0xff] }
 0x7d8   :  { %v7336_v23 = vpop.f32.mrf.mxu1  ;;  %v7233_v33 = vadd.f32 %v12593_v22, %v7108_v34  ;;  %v11941_v22 = vld [vmem:[%s17240_s5 + $0x60] sm:$0xff] }
 0x7d9   :  { %v7221_v12 = vpop.f32.mrf.mxu0  ;;  %v7355_v56 = vadd.f32 %v7336_v23, %v7230_v14  ;;  %v11997_v23 = vld [vmem:[%s17233_s9 + $0x88] sm:$0xff] }
 0x7da   :  { %v7232_v40 = vadd.f32 %v7221_v12, %v7107_v5  ;;  %v12001_v12 = vld [vmem:[%s17234_s10 + $0x88] sm:$0xff] }
 0x7db   :  { %v12614_v20 = vpop.f32.mrf.mxu0 }
 0x7dc   :  { %v12605_v43 = vpop.f32.mrf.mxu1  ;;  %v7481_v3 = vadd.f32 %v12614_v20, %v7356_v49 }
 0x7dd   :  { %v7461_v29 = vpop.f32.mrf.mxu0  ;;  %v7358_v9 = vadd.f32 %v12605_v43, %v7233_v33 }
 0x7de   :  { %v7346_v18 = vpop.f32.mrf.mxu1  ;;  %v7480_v19 = vadd.f32 %v7461_v29, %v7355_v56 }
 0x7df   :  { %v12617_v37 = vpop.f32.mrf.mxu0  ;;  %v7357_v15 = vadd.f32 %v7346_v18, %v7232_v40 }
 0x7e0   :  { %v12626_v31 = vpop.f32.mrf.mxu1  ;;  %v7483_v25 = vadd.f32 %v12617_v37, %v7358_v9  ;;  %v11932_v9 = vld [vmem:[%s17240_s5 + $0x40] sm:$0xff] }
 0x7e1   :  { %v7606_v6 = vadd.f32 %v12626_v31, %v7481_v3  ;;  %v7471_v0 = vpop.f32.mrf.mxu0  ;;  %v11919_v3 = vld [vmem:[%s17240_s5 + $0x28] sm:$0xff] }
 0x7e2   :  { %v7586_v46 = vpop.f32.mrf.mxu1  ;;  %v7482_v50 = vadd.f32 %v7471_v0, %v7357_v15 }
 0x7e3   :  { %v7620_v28 = vmax.f32 %v7606_v6, 0.0  ;;  %v7605_v8 = vadd.f32 %v7586_v46, %v7480_v19  ;;  %v11933_v6 = vld [vmem:[%s17240_s5 + $0x48] sm:$0xff]  ;;  %v11934_v46 = vld [vmem:[%s17240_s5 + $0x50] sm:$0xff] }
 0x7e4   :  { %v12629_v7 = vpop.f32.mrf.mxu1 }
 0x7e5   :  { %v7644_v38 = vmul.f32 %v7631_v44, %v7620_v28  ;;  %v7608_v1 = vadd.f32 %v12629_v7, %v7483_v25  ;;  %v7619_v57 = vmax.f32 %v7605_v8, 0.0  ;;  %v11921_v44 = vld [vmem:[%s17240_s5 + $0x38] sm:$0xff]  ;;  %v11942_v8 = vld [vmem:[%s17240_s5 + $0x68] sm:$0xff] }
 0x7e6   :  { %v7596_v21 = vpop.f32.mrf.mxu1  ;;  %v11935_v28 = vld [vmem:[%s17240_s5 + $0x58] sm:$0xff] }
 0x7e7   :  { %v16218_v17 = vadd.f32 %v7655_v45, %v7644_v38  ;;  %v7622_v60 = vmax.f32 %v7608_v1, 0.0  ;;  %v7607_v47 = vadd.f32 %v7596_v21, %v7482_v50  ;;  %v7643_v51 = vmul.f32 %v7626_v35, %v7619_v57  ;;  %v11943_v50 = vld [vmem:[%s17240_s5 + $0x70] sm:$0xff]  ;;  %v11950_v1 = vld [vmem:[%s17240_s5 + $0x80] sm:$0xff]  ;;  %v11944_v45 = vld [vmem:[%s17240_s5 + $0x78] sm:$0xff] }
 0x7e8   :  { %v11951_v21 = vld [vmem:[%s17240_s5 + $0x88] sm:$0xff]  ;;  %v11953_v35 = vld [vmem:[%s17240_s5 + $0x98] sm:$0xff] }
 0x7e9   :  { %v7646_v63 = vmul.f32 %v7641_v24, %v7622_v60  ;;  %v7621_v27 = vmax.f32 %v7607_v47, 0.0  ;;  %8020 = vrot.lane.b32.xlu0 %v16218_v17, %s13282_s11  ;;  %7686 = vrot.lane.b32.xlu1 %v16218_v17, %s13273_s22  ;;  %v7667_v24 = vadd.f32 %v7650_v39, %v7643_v51  ;;  %v11952_v60 = vld [vmem:[%s17240_s5 + $0x90] sm:$0xff]  ;;  %v11959_v47 = vld [vmem:[%s17240_s5 + $0xa0] sm:$0xff] }
 0x7ea   :  { %v11969_v39 = vld [vmem:[%s17240_s5 + $0xc8] sm:$0xff] }
 0x7eb   :  { %v7670_v53 = vadd.f32 %v7665_v59, %v7646_v63  ;;  %v7645_v41 = vmul.f32 %v7636_v36, %v7621_v27  ;;  %v11999_v59 = vld [vmem:[%s17234_s10 + $0x78] sm:$0xff]  ;;  %v12000_v36 = vld [vmem:[%s17234_s10 + $0x80] sm:$0xff]  ;;  %v11960_v63 = vld [vmem:[%s17240_s5 + $0xa8] sm:$0xff] }
 0x7ed   :  { %v7669_v58 = vadd.f32 %v7660_v2, %v7645_v41  ;;  %12644 = vmatprep.subr.msk.mxu1 %vm5622_vm11, %v7670_v53  ;;  %8258 = vrot.lane.b32.xlu0 %v16218_v17, %s13284_s17  ;;  %v11920_v2 = vld [vmem:[%s17240_s5 + $0x30] sm:$0xff]  ;;  %v11968_v41 = vld [vmem:[%s17240_s5 + $0xc0] sm:$0xff] }
 0x7ee   :  { %7901 = vrot.lane.b32.xlu1 %v16218_v17, %s13274_s0  ;;  %12645 = vmatpush3.msk.msra.mxu1 %vm5622_vm11, %v7670_v53 }
 0x7ef   :  { %12646 = vmatprep.subr.mxu1 %v7669_v58 }
 0x7f0   :  { %12647 = vmatpush3.msra.mxu1 %v7669_v58 }
 0x7f1   :  { %12648 = vmatprep.subr.mxu1 %v16218_v17  ;;  %7684 = vrot.lane.b32.xlu0 %v7667_v24, %s13273_s22 }
 0x7f2   :  { %8139 = vrot.lane.b32.xlu1 %v16218_v17, %s13283_s16  ;;  %12649 = vmatpush3.msra.mxu1 %v16218_v17 }
 0x7f3   :  { %12650 = vmatprep.subr.mxu1 %v7667_v24 }
 0x7f4   :  { %12651 = vmatpush3.msra.mxu1 %v7667_v24 }
 0x7f5   :  { %7899 = vrot.lane.b32.xlu0 %v7667_v24, %s13274_s0  ;;  %12653 = vmatmul.mubr.msk.f32.vlgmr.msra.gmra.mxu1 %vm7695_vm6, %v7672_v10  ;;  %v11970_v10 = vld [vmem:[%s17240_s5 + $0xd0] sm:$0xff] }
 0x7f6   :  { %7690 = vrot.lane.b32.xlu1 %v7670_v53, %s13273_s22  ;;  %12655 = vmatprep.mubr.msk.f32.mxu1 %vm7695_vm6, %v7673_v62  ;;  %v11971_v62 = vld [vmem:[%s17240_s5 + $0xd8] sm:$0xff] }
 0x7f9   :  { %8018 = vrot.lane.b32.xlu0 %v7667_v24, %s13282_s11  ;;  %12656 = vmatmul.mubr.msk.f32.gmra.mxu1 %vm7695_vm6, %v7674_v52  ;;  %v11978_v52 = vld [vmem:[%s17240_s5 + $0xe8] sm:$0xff] }
 0x7fa   :  { %7905 = vrot.lane.b32.xlu1 %v7670_v53, %s13274_s0  ;;  %12680 = vmatprep.mubr.msk.f32.mxu1 %vm7695_vm6, %v11941_v22 }
 0x7fd   :  { %8137 = vrot.lane.b32.xlu0 %v7667_v24, %s13283_s16 }
 0x7fe   :  { %8024 = vrot.lane.b32.xlu1 %v7670_v53, %s13282_s11 }
 0x801   :  { %7688 = vrot.lane.b32.xlu0 %v7669_v58, %s13273_s22 }
 0x802   :  { %8143 = vrot.lane.b32.xlu1 %v7670_v53, %s13283_s16 }
 0x805   :  { %8256 = vrot.lane.b32.xlu0 %v7667_v24, %s13284_s17 }
 0x806   :  { %8262 = vrot.lane.b32.xlu1 %v7670_v53, %s13284_s17 }
 0x809   :  { %7903 = vrot.lane.b32.xlu0 %v7669_v58, %s13274_s0 }
 0x80a   :  { %8381 = vrot.lane.b32.xlu1 %v7670_v53, %s13285_s3 }
 0x80d   :  { %8022 = vrot.lane.b32.xlu0 %v7669_v58, %s13282_s11 }
 0x80e   :  { %8377 = vrot.lane.b32.xlu1 %v16218_v17, %s13285_s3 }
 0x811   :  { %8375 = vrot.lane.b32.xlu0 %v7667_v24, %s13285_s3 }
 0x812   :  { %8141 = vrot.lane.b32.xlu1 %v7669_v58, %s13283_s16 }
 0x815   :  { %8260 = vrot.lane.b32.xlu0 %v7669_v58, %s13284_s17 }
 0x816   :  { %8500 = vrot.lane.b32.xlu1 %v7670_v53, %s13286_s25 }
 0x819   :  { %8496 = vrot.lane.b32.xlu0 %v16218_v17, %s13286_s25 }
 0x81a   :  { %8379 = vrot.lane.b32.xlu1 %v7669_v58, %s13285_s3 }
 0x81d   :  { %8498 = vrot.lane.b32.xlu0 %v7669_v58, %s13286_s25 }
 0x81e   :  { %8619 = vrot.lane.b32.xlu1 %v7670_v53, %s13287_s18  ;;  %v11961_v53 = vld [vmem:[%s17240_s5 + $0xb0] sm:$0xff] }
 0x821   :  { %8494 = vrot.lane.b32.xlu0 %v7667_v24, %s13286_s25 }
 0x822   :  { %8617 = vrot.lane.b32.xlu1 %v7669_v58, %s13287_s18  ;;  %v11962_v58 = vld [vmem:[%s17240_s5 + $0xb8] sm:$0xff] }
 0x825   :  { %8613 = vrot.lane.b32.xlu0 %v7667_v24, %s13287_s18 }
 0x826   :  { %8615 = vrot.lane.b32.xlu1 %v16218_v17, %s13287_s18 }
 0x829   :  { %8753 = vperm.xlu0 %13201, %v11997_v23   ;;  %v11979_v23 = vld [vmem:[%s17240_s5 + $0xf0] sm:$0xff] }
 0x82a   :  { %8758 = vperm.xlu1 %13200, %v11998_v55   ;;  %v11986_v55 = vld [vmem:[%s17240_s5 + $0x100] sm:$0xff] }
 0x82d   :  { %8748 = vperm.xlu0 %13201, %v11996_v61   ;;  %v11980_v61 = vld [vmem:[%s17240_s5 + $0xf8] sm:$0xff] }
 0x82e   :  { %8782 = vperm.xlu1 %13200, %v12002_v13  }
 0x831   :  { %8743 = vperm.xlu0 %13201, %v11995_v26   ;;  %v11987_v26 = vld [vmem:[%s17240_s5 + $0x108] sm:$0xff] }
 0x832   :  { %8777 = vperm.xlu1 %13200, %v12001_v12   ;;  %v11988_v12 = vld [vmem:[%s17240_s5 + $0x110] sm:$0xff] }
 0x835   :  { %8767 = vperm.xlu0 %13201, %v11999_v59   ;;  %v11989_v59 = vld [vmem:[%s17240_s5 + $0x118] sm:$0xff] }
 0x836   :  { %8772 = vperm.xlu1 %13200, %v12000_v36  }
 0x85b   :  { %v7687_v54 = vpop.permute.xlu1 %7686  ;;  %v8021_v48 = vpop.permute.xlu0 %8020 }
 0x85f   :  { %v16312_v32 = vpop.permute.xlu0 %8258 }
 0x860   :  { %v7902_v16 = vpop.permute.xlu1 %7901 }
 0x863   :  { %v7685_v20 = vpop.permute.xlu0 %7684 }
 0x864   :  { %v16314_v43 = vpop.permute.xlu1 %8139 }
 0x867   :  { %v7900_v42 = vpop.permute.xlu0 %7899 }
 0x868   :  { %v7691_v34 = vpop.permute.xlu1 %7690 }
 0x869   :  { %12630 = vmatprep.subr.msk.mxu0 %vm5622_vm11, %v7691_v34 }
 0x86a   :  { %12631 = vmatpush3.msk.msra.mxu0 %vm5622_vm11, %v7691_v34 }
 0x86b   :  { %v8019_v14 = vpop.permute.xlu0 %8018 }
 0x86c   :  { %v7906_v49 = vpop.permute.xlu1 %7905 }
 0x86f   :  { %v16318_v29 = vpop.permute.xlu0 %8137 }
 0x870   :  { %v8025_v18 = vpop.permute.xlu1 %8024 }
 0x871   :  { %12672 = vmatprep.subr.msk.mxu1 %vm5622_vm11, %v8025_v18 }
 0x872   :  { %12673 = vmatpush3.msk.msra.mxu1 %vm5622_vm11, %v8025_v18 }
 0x873   :  { %v7689_v5 = vpop.permute.xlu0 %7688 }
 0x874   :  { %v8144_v33 = vpop.permute.xlu1 %8143  ;;  %12632 = vmatprep.subr.mxu0 %v7689_v5 }
 0x875   :  { %12633 = vmatpush3.msra.mxu0 %v7689_v5 }
 0x876   :  { %12634 = vmatprep.subr.mxu0 %v7687_v54 }
 0x877   :  { %12635 = vmatpush3.msra.mxu0 %v7687_v54  ;;  %v16322_v56 = vpop.permute.xlu0 %8256 }
 0x878   :  { %v8263_v37 = vpop.permute.xlu1 %8262  ;;  %12636 = vmatprep.subr.mxu0 %v7685_v20 }
 0x879   :  { %12637 = vmatpush3.msra.mxu0 %v7685_v20 }
 0x87a   :  { %12639 = vmatmul.mubr.msk.f32.vlgmr.msra.gmra.mxu0 %vm7695_vm6, %v11919_v3  ;;  %12658 = vmatprep.subr.msk.mxu0 %vm5622_vm11, %v7906_v49 }
 0x87b   :  { %12659 = vmatpush3.msk.msra.mxu0 %vm5622_vm11, %v7906_v49  ;;  %v7904_v31 = vpop.permute.xlu0 %7903  ;;  %12641 = vmatprep.mubr.msk.f32.mxu0 %vm7695_vm6, %v11920_v2 }
 0x87c   :  { %v8382_v40 = vpop.permute.xlu1 %8381  ;;  %12660 = vmatprep.subr.mxu0 %v7904_v31 }
 0x87d   :  { %12661 = vmatpush3.msra.mxu0 %v7904_v31 }
 0x87e   :  { %12642 = vmatmul.mubr.msk.f32.gmra.mxu0 %vm7695_vm6, %v11921_v44  ;;  %12662 = vmatprep.subr.mxu0 %v7902_v16 }
 0x87f   :  { %12663 = vmatpush3.msra.mxu0 %v7902_v16  ;;  %v8023_v19 = vpop.permute.xlu0 %8022  ;;  %12666 = vmatprep.mubr.msk.f32.mxu0 %vm7695_vm6, %v11932_v9 }
 0x880   :  { %v8378_v0 = vpop.permute.xlu1 %8377  ;;  %12664 = vmatprep.subr.mxu0 %v7900_v42  ;;  %12674 = vmatprep.subr.mxu1 %v8023_v19 }
 0x881   :  { %12665 = vmatpush3.msra.mxu0 %v7900_v42  ;;  %12675 = vmatpush3.msra.mxu1 %v8023_v19 }
 0x882   :  { %12667 = vmatmul.mubr.msk.f32.vlgmr.msra.gmra.mxu0 %vm7695_vm6, %v11933_v6  ;;  %12676 = vmatprep.subr.mxu1 %v8021_v48 }
 0x883   :  { %12686 = vmatprep.subr.msk.mxu0 %vm5622_vm11, %v8144_v33  ;;  %12677 = vmatpush3.msra.mxu1 %v8021_v48  ;;  %v8376_v15 = vpop.permute.xlu0 %8375 }
 0x884   :  { %v8142_v25 = vpop.permute.xlu1 %8141  ;;  %12687 = vmatpush3.msk.msra.mxu0 %vm5622_vm11, %v8144_v33  ;;  %12678 = vmatprep.subr.mxu1 %v8019_v14 }
 0x885   :  { %12688 = vmatprep.subr.mxu0 %v8142_v25  ;;  %12669 = vmatprep.mubr.msk.f32.mxu0 %vm7695_vm6, %v11934_v46 }
 0x886   :  { %12679 = vmatpush3.msra.mxu1 %v8019_v14  ;;  %12689 = vmatpush3.msra.mxu0 %v8142_v25 }
 0x887   :  { %12670 = vmatmul.mubr.msk.f32.gmra.mxu0 %vm7695_vm6, %v11935_v28  ;;  %12681 = vmatmul.mubr.msk.f32.vlgmr.msra.gmra.mxu1 %vm7695_vm6, %v11942_v8  ;;  %v8261_v7 = vpop.permute.xlu0 %8260 }
 0x888   :  { %12690 = vmatprep.subr.mxu0 %v16314_v43  ;;  %12700 = vmatprep.subr.msk.mxu1 %vm5622_vm11, %v8263_v37  ;;  %v8501_v38 = vpop.permute.xlu1 %8500 }
 0x889   :  { %12691 = vmatpush3.msra.mxu0 %v16314_v43  ;;  %12701 = vmatpush3.msk.msra.mxu1 %vm5622_vm11, %v8263_v37 }
 0x88a   :  { %12692 = vmatprep.subr.mxu0 %v16318_v29  ;;  %12702 = vmatprep.subr.mxu1 %v8261_v7 }
 0x88b   :  { %12683 = vmatprep.mubr.msk.f32.mxu1 %vm7695_vm6, %v11943_v50  ;;  %12693 = vmatpush3.msra.mxu0 %v16318_v29  ;;  %v8497_v57 = vpop.permute.xlu0 %8496 }
 0x88c   :  { %12694 = vmatprep.mubr.msk.f32.mxu0 %vm7695_vm6, %v11950_v1  ;;  %12703 = vmatpush3.msra.mxu1 %v8261_v7  ;;  %v8380_v17 = vpop.permute.xlu1 %8379 }
 0x88d   :  { %12684 = vmatmul.mubr.msk.f32.gmra.mxu1 %vm7695_vm6, %v11944_v45  ;;  %12695 = vmatmul.mubr.msk.f32.vlgmr.msra.gmra.mxu0 %vm7695_vm6, %v11951_v21 }
 0x88e   :  { %12704 = vmatprep.subr.mxu1 %v16312_v32  ;;  %12714 = vmatprep.subr.msk.mxu0 %vm5622_vm11, %v8382_v40 }
 0x88f   :  { %12705 = vmatpush3.msra.mxu1 %v16312_v32  ;;  %12715 = vmatpush3.msk.msra.mxu0 %vm5622_vm11, %v8382_v40  ;;  %v8499_v51 = vpop.permute.xlu0 %8498 }
 0x890   :  { %12706 = vmatprep.subr.mxu1 %v16322_v56  ;;  %12716 = vmatprep.subr.mxu0 %v8380_v17  ;;  %v8620_v27 = vpop.permute.xlu1 %8619 }
 0x891   :  { %12697 = vmatprep.mubr.msk.f32.mxu0 %vm7695_vm6, %v11952_v60  ;;  %12707 = vmatpush3.msra.mxu1 %v16322_v56 }
 0x892   :  { %12708 = vmatprep.mubr.msk.f32.mxu1 %vm7695_vm6, %v11959_v47  ;;  %12717 = vmatpush3.msra.mxu0 %v8380_v17 }
 0x893   :  { %12698 = vmatmul.mubr.msk.f32.gmra.mxu0 %vm7695_vm6, %v11953_v35  ;;  %12709 = vmatmul.mubr.msk.f32.vlgmr.msra.gmra.mxu1 %vm7695_vm6, %v11960_v63  ;;  %v8495_v4 = vpop.permute.xlu0 %8494 }
 0x894   :  { %12718 = vmatprep.subr.mxu0 %v8378_v0  ;;  %12728 = vmatprep.subr.msk.mxu1 %vm5622_vm11, %v8501_v38  ;;  %v8618_v24 = vpop.permute.xlu1 %8617 }
 0x895   :  { %12719 = vmatpush3.msra.mxu0 %v8378_v0  ;;  %12729 = vmatpush3.msk.msra.mxu1 %vm5622_vm11, %v8501_v38 }
 0x896   :  { %12720 = vmatprep.subr.mxu0 %v8376_v15  ;;  %12730 = vmatprep.subr.mxu1 %v8499_v51 }
 0x897   :  { %12711 = vmatprep.mubr.msk.f32.mxu1 %vm7695_vm6, %v11961_v53  ;;  %12721 = vmatpush3.msra.mxu0 %v8376_v15  ;;  %v8614_v13 = vpop.permute.xlu0 %8613 }
 0x898   :  { %12722 = vmatprep.mubr.msk.f32.mxu0 %vm7695_vm6, %v11968_v41  ;;  %12731 = vmatpush3.msra.mxu1 %v8499_v51  ;;  %v8616_v22 = vpop.permute.xlu1 %8615 }
 0x899   :  { %12712 = vmatmul.mubr.msk.f32.gmra.mxu1 %vm7695_vm6, %v11962_v58  ;;  %12723 = vmatmul.mubr.msk.f32.vlgmr.msra.gmra.mxu0 %vm7695_vm6, %v11969_v39 }
 0x89a   :  { %12732 = vmatprep.subr.mxu1 %v8497_v57  ;;  %12742 = vmatprep.subr.msk.mxu0 %vm5622_vm11, %v8620_v27 }
 0x89b   :  { %12733 = vmatpush3.msra.mxu1 %v8497_v57  ;;  %12743 = vmatpush3.msk.msra.mxu0 %vm5622_vm11, %v8620_v27 }
 0x89c   :  { %12734 = vmatprep.subr.mxu1 %v8495_v4  ;;  %12744 = vmatprep.subr.mxu0 %v8618_v24 }
 0x89d   :  { %12725 = vmatprep.mubr.msk.f32.mxu0 %vm7695_vm6, %v11970_v10  ;;  %12735 = vmatpush3.msra.mxu1 %v8495_v4 }
 0x89e   :  { %12736 = vmatprep.mubr.msk.f32.mxu1 %vm7695_vm6, %v11977_v11  ;;  %12745 = vmatpush3.msra.mxu0 %v8618_v24 }
 0x89f   :  { %12726 = vmatmul.mubr.msk.f32.gmra.mxu0 %vm7695_vm6, %v11971_v62  ;;  %12737 = vmatmul.mubr.msk.f32.vlgmr.msra.gmra.mxu1 %vm7695_vm6, %v11978_v52 }
 0x8a0   :  { %12746 = vmatprep.subr.mxu0 %v8616_v22  ;;  %12739 = vmatprep.mubr.msk.f32.mxu1 %vm7695_vm6, %v11979_v23 }
 0x8a1   :  { %12747 = vmatpush3.msra.mxu0 %v8616_v22  ;;  %12750 = vmatprep.mubr.msk.f32.mxu0 %vm7695_vm6, %v11986_v55 }
 0x8a2   :  { %12748 = vmatprep.subr.mxu0 %v8614_v13 }
 0x8a3   :  { %12740 = vmatmul.mubr.msk.f32.gmra.mxu1 %vm7695_vm6, %v11980_v61  ;;  %12749 = vmatpush3.msra.mxu0 %v8614_v13 }
 0x8a4   :  { %12751 = vmatmul.mubr.msk.f32.vlgmr.msra.gmra.mxu0 %vm7695_vm6, %v11987_v26  ;;  %v8754_v17 = vpop.permute.xlu0 %8753 }
 0x8a5   :  { %12753 = vmatprep.mubr.msk.f32.mxu0 %vm7695_vm6, %v11988_v12  ;;  %v8759_v19 = vpop.permute.xlu1 %8758 }
 0x8a8   :  { %12754 = vmatmul.mubr.msk.f32.gmra.mxu0 %vm7695_vm6, %v11989_v59  ;;  %v8749_v61 = vpop.permute.xlu0 %8748 }
 0x8a9   :  { %v8783_v57 = vpop.permute.xlu1 %8782 }
 0x8ad   :  { %v8778_v23 = vpop.permute.xlu1 %8777 }
 0x8b5   :  { %v12654_v36 = vpop.f32.mrf.mxu1 }
 0x8b7   :  { %v7875_v32 = vpop.f32.mrf.mxu1 }
 0x8b9   :  { %v12657_v43 = vpop.f32.mrf.mxu1 }
 0x8bb   :  { %v7885_v14 = vpop.f32.mrf.mxu1 }
 0x93a   :  { %v12640_v54 = vpop.f32.mrf.mxu0 }
 0x93b   :  { %v7881_v9 = vadd.f32 %v12654_v36, %v12640_v54 }
 0x93c   :  { %v7776_v48 = vpop.f32.mrf.mxu0 }
 0x93d   :  { %v7876_v6 = vadd.f32 %v7875_v32, %v7776_v48 }
 0x93e   :  { %v12643_v16 = vpop.f32.mrf.mxu0 }
 0x93f   :  { %v7891_v25 = vadd.f32 %v12657_v43, %v12643_v16 }
 0x940   :  { %v7786_v20 = vpop.f32.mrf.mxu0 }
 0x941   :  { %v7886_v50 = vadd.f32 %v7885_v14, %v7786_v20 }
 0x942   :  { %v12668_v42 = vpop.f32.mrf.mxu0 }
 0x943   :  { %v8010_v0 = vadd.f32 %v12668_v42, %v7881_v9 }
 0x944   :  { %v7990_v34 = vpop.f32.mrf.mxu0 }
 0x945   :  { %v8009_v28 = vadd.f32 %v7990_v34, %v7876_v6 }
 0x947   :  { %v12671_v49 = vpop.f32.mrf.mxu0  ;;  %v12682_v29 = vpop.f32.mrf.mxu1 }
 0x948   :  { %v8129_v8 = vadd.f32 %v12682_v29, %v8010_v0  ;;  %v8012_v1 = vadd.f32 %v12671_v49, %v7891_v25  ;;  %v8773_v49 = vpop.permute.xlu1 %8772  ;;  %v8789_v0 = vld [vmem:[%s17241_s6] sm:$0xff]  ;;  %v8791_v25 = vld [vmem:[%s17241_s6 + $0x10] sm:$0xff] }
 0x949   :  { %v8000_v18 = vpop.f32.mrf.mxu0  ;;  %v8109_v5 = vpop.f32.mrf.mxu1  ;;  %12778 = vmatprep.mubr.msk.f32.mxu0 %vm8814_vm7, %v8789_v0 }
 0x94a   :  { %v8128_v45 = vadd.f32 %v8109_v5, %v8009_v28  ;;  %v8011_v60 = vadd.f32 %v8000_v18, %v7886_v50  ;;  %v8792_v28 = vld [vmem:[%s17241_s6 + $0x18] sm:$0xff]  ;;  %v12076_v50 = vld [vmem:[%s17234_s10 + $0xa8] sm:$0xff] }
 0x94d   :  { %v12685_v33 = vpop.f32.mrf.mxu1  ;;  %v12696_v56 = vpop.f32.mrf.mxu0 }
 0x94e   :  { %v8248_v21 = vadd.f32 %v12696_v56, %v8129_v8  ;;  %v8131_v47 = vadd.f32 %v12685_v33, %v8012_v1  ;;  %v12023_v8 = vld [vmem:[%s17241_s6 + $0x60] sm:$0xff] }
 0x94f   :  { %v8119_v3 = vpop.f32.mrf.mxu1  ;;  %v8228_v37 = vpop.f32.mrf.mxu0  ;;  %v12075_v1 = vld [vmem:[%s17234_s10 + $0xa0] sm:$0xff] }
 0x950   :  { %v8247_v35 = vadd.f32 %v8228_v37, %v8128_v45  ;;  %v8130_v53 = vadd.f32 %v8119_v3, %v8011_v60  ;;  %v8744_v3 = vpop.permute.xlu0 %8743  ;;  %v12074_v45 = vld [vmem:[%s17233_s9 + $0xb8] sm:$0xff] }
 0x953   :  { %v12699_v2 = vpop.f32.mrf.mxu0  ;;  %v12710_v31 = vpop.f32.mrf.mxu1 }
 0x954   :  { %v8367_v63 = vadd.f32 %v12710_v31, %v8248_v21  ;;  %v8250_v41 = vadd.f32 %v12699_v2, %v8131_v47  ;;  %v8768_v6 = vpop.permute.xlu0 %8767  ;;  %v12073_v21 = vld [vmem:[%s17233_s9 + $0xb0] sm:$0xff] }
 0x955   :  { %v8238_v44 = vpop.f32.mrf.mxu0  ;;  %v8347_v40 = vpop.f32.mrf.mxu1 }
 0x956   :  { %v8366_v58 = vadd.f32 %v8347_v40, %v8247_v35  ;;  %v8249_v10 = vadd.f32 %v8238_v44, %v8130_v53 }
 0x959   :  { %v12713_v46 = vpop.f32.mrf.mxu1  ;;  %v12724_v15 = vpop.f32.mrf.mxu0 }
 0x95a   :  { %v8486_v39 = vadd.f32 %v12724_v15, %v8367_v63  ;;  %v8369_v11 = vadd.f32 %v12713_v46, %v8250_v41  ;;  %v8790_v46 = vld [vmem:[%s17241_s6 + $0x8] sm:$0xff]  ;;  %v12003_v15 = vld [vmem:[%s17241_s6 + $0x20] sm:$0xff] }
 0x95b   :  { %v8357_v7 = vpop.f32.mrf.mxu1  ;;  %v8466_v38 = vpop.f32.mrf.mxu0  ;;  %12764 = vmatprep.mubr.msk.f32.mxu1 %vm8814_vm7, %v12003_v15  ;;  %v12055_v15 = vld [vmem:[%s17241_s6 + $0xe0] sm:$0xff] }
 0x95c   :  { %v8485_v62 = vadd.f32 %v8466_v38, %v8366_v58  ;;  %v8368_v13 = vadd.f32 %v8357_v7, %v8249_v10  ;;  %v12072_v7 = vld [vmem:[%s17233_s9 + $0xa8] sm:$0xff]  ;;  %v12071_v38 = vld [vmem:[%s17233_s9 + $0xa0] sm:$0xff] }
 0x95f   :  { %v12727_v27 = vpop.f32.mrf.mxu0  ;;  %v12738_v51 = vpop.f32.mrf.mxu1 }
 0x960   :  { %v8605_v52 = vadd.f32 %v12738_v51, %v8486_v39  ;;  %v8488_v26 = vadd.f32 %v12727_v27, %v8369_v11 }
 0x961   :  { %v8585_v24 = vpop.f32.mrf.mxu1  ;;  %v8476_v4 = vpop.f32.mrf.mxu0 }
 0x962   :  { %v8604_v12 = vadd.f32 %v8585_v24, %v8485_v62  ;;  %v8487_v48 = vadd.f32 %v8476_v4, %v8368_v13 }
 0x963   :  { %v12741_v22 = vpop.f32.mrf.mxu1 }
 0x964   :  { %v12752_v55 = vpop.f32.mrf.mxu0  ;;  %v8607_v32 = vadd.f32 %v12741_v22, %v8488_v26  ;;  %v12015_v26 = vld [vmem:[%s17241_s6 + $0x40] sm:$0xff] }
 0x965   :  { %v8724_v59 = vadd.f32 %v12752_v55, %v8605_v52  ;;  %v8595_v36 = vpop.f32.mrf.mxu1  ;;  %v12004_v52 = vld [vmem:[%s17241_s6 + $0x28] sm:$0xff] }
 0x966   :  { %v8704_v54 = vpop.f32.mrf.mxu0  ;;  %v8606_v42 = vadd.f32 %v8595_v36, %v8487_v48 }
 0x967   :  { %v8738_v16 = vmax.f32 %v8724_v59, 0.0  ;;  %v8723_v20 = vadd.f32 %v8704_v54, %v8604_v12  ;;  %v12016_v59 = vld [vmem:[%s17241_s6 + $0x48] sm:$0xff]  ;;  %v12017_v54 = vld [vmem:[%s17241_s6 + $0x50] sm:$0xff] }
 0x968   :  { %v12755_v43 = vpop.f32.mrf.mxu0 }
 0x969   :  { %v8762_v34 = vmul.f32 %v8749_v61, %v8738_v16  ;;  %v8726_v14 = vadd.f32 %v12755_v43, %v8607_v32  ;;  %v8737_v5 = vmax.f32 %v8723_v20, 0.0  ;;  %v12006_v61 = vld [vmem:[%s17241_s6 + $0x38] sm:$0xff]  ;;  %v12024_v20 = vld [vmem:[%s17241_s6 + $0x68] sm:$0xff] }
 0x96a   :  { %v8714_v29 = vpop.f32.mrf.mxu0  ;;  %v12018_v16 = vld [vmem:[%s17241_s6 + $0x58] sm:$0xff] }
 0x96b   :  { %v16464_v18 = vadd.f32 %v8773_v49, %v8762_v34  ;;  %v8740_v33 = vmax.f32 %v8726_v14, 0.0  ;;  %v8725_v56 = vadd.f32 %v8714_v29, %v8606_v42  ;;  %v8761_v31 = vmul.f32 %v8744_v3, %v8737_v5  ;;  %v12025_v34 = vld [vmem:[%s17241_s6 + $0x70] sm:$0xff]  ;;  %v12031_v14 = vld [vmem:[%s17241_s6 + $0x80] sm:$0xff]  ;;  %v12026_v49 = vld [vmem:[%s17241_s6 + $0x78] sm:$0xff] }
 0x96c   :  { %v12032_v29 = vld [vmem:[%s17241_s6 + $0x88] sm:$0xff]  ;;  %v12034_v3 = vld [vmem:[%s17241_s6 + $0x98] sm:$0xff] }
 0x96d   :  { %v8764_v37 = vmul.f32 %v8759_v19, %v8740_v33  ;;  %v8739_v2 = vmax.f32 %v8725_v56, 0.0  ;;  %9134 = vrot.lane.b32.xlu0 %v16464_v18, %s13282_s11  ;;  %8804 = vrot.lane.b32.xlu1 %v16464_v18, %s13273_s22  ;;  %v8785_v19 = vadd.f32 %v8768_v6, %v8761_v31  ;;  %v12033_v33 = vld [vmem:[%s17241_s6 + $0x90] sm:$0xff]  ;;  %v12039_v56 = vld [vmem:[%s17241_s6 + $0xa0] sm:$0xff] }
 0x96e   :  { %v12048_v6 = vld [vmem:[%s17241_s6 + $0xc8] sm:$0xff] }
 0x96f   :  { %v8788_v44 = vadd.f32 %v8783_v57, %v8764_v37  ;;  %v8763_v40 = vmul.f32 %v8754_v17, %v8739_v2  ;;  %v12078_v17 = vld [vmem:[%s17234_s10 + $0xb8] sm:$0xff]  ;;  %v12077_v57 = vld [vmem:[%s17234_s10 + $0xb0] sm:$0xff]  ;;  %v12040_v37 = vld [vmem:[%s17241_s6 + $0xa8] sm:$0xff] }
 0x971   :  { %v8787_v9 = vadd.f32 %v8778_v23, %v8763_v40  ;;  %12770 = vmatprep.subr.mxu0 %v8788_v44  ;;  %9370 = vrot.lane.b32.xlu0 %v16464_v18, %s13284_s17  ;;  %v12005_v23 = vld [vmem:[%s17241_s6 + $0x30] sm:$0xff]  ;;  %v12047_v40 = vld [vmem:[%s17241_s6 + $0xc0] sm:$0xff] }
 0x972   :  { %9016 = vrot.lane.b32.xlu1 %v16464_v18, %s13274_s0  ;;  %12771 = vmatpush3.msra.mxu0 %v8788_v44 }
 0x973   :  { %12772 = vmatprep.subr.mxu0 %v8787_v9 }
 0x974   :  { %12773 = vmatpush3.msra.mxu0 %v8787_v9 }
 0x975   :  { %12774 = vmatprep.subr.mxu0 %v16464_v18  ;;  %8802 = vrot.lane.b32.xlu0 %v8785_v19, %s13273_s22 }
 0x976   :  { %9252 = vrot.lane.b32.xlu1 %v16464_v18, %s13283_s16  ;;  %12775 = vmatpush3.msra.mxu0 %v16464_v18 }
 0x977   :  { %12776 = vmatprep.subr.mxu0 %v8785_v19 }
 0x978   :  { %12777 = vmatpush3.msra.mxu0 %v8785_v19 }
 0x979   :  { %9014 = vrot.lane.b32.xlu0 %v8785_v19, %s13274_s0  ;;  %12779 = vmatmul.mubr.msk.f32.vlgmr.msra.gmra.mxu0 %vm8814_vm7, %v8790_v46  ;;  %v12049_v46 = vld [vmem:[%s17241_s6 + $0xd0] sm:$0xff] }
 0x97a   :  { %8808 = vrot.lane.b32.xlu1 %v8788_v44, %s13273_s22  ;;  %12781 = vmatprep.mubr.msk.f32.mxu0 %vm8814_vm7, %v8791_v25  ;;  %v12050_v25 = vld [vmem:[%s17241_s6 + $0xd8] sm:$0xff] }
 0x97d   :  { %9132 = vrot.lane.b32.xlu0 %v8785_v19, %s13282_s11  ;;  %12782 = vmatmul.mubr.msk.f32.gmra.mxu0 %vm8814_vm7, %v8792_v28  ;;  %v12056_v28 = vld [vmem:[%s17241_s6 + $0xe8] sm:$0xff] }
 0x97e   :  { %9020 = vrot.lane.b32.xlu1 %v8788_v44, %s13274_s0  ;;  %12806 = vmatprep.mubr.msk.f32.mxu0 %vm8814_vm7, %v12023_v8 }
 0x981   :  { %9250 = vrot.lane.b32.xlu0 %v8785_v19, %s13283_s16 }
 0x982   :  { %9138 = vrot.lane.b32.xlu1 %v8788_v44, %s13282_s11 }
 0x985   :  { %8806 = vrot.lane.b32.xlu0 %v8787_v9, %s13273_s22 }
 0x986   :  { %9256 = vrot.lane.b32.xlu1 %v8788_v44, %s13283_s16 }
 0x989   :  { %9368 = vrot.lane.b32.xlu0 %v8785_v19, %s13284_s17 }
 0x98a   :  { %9374 = vrot.lane.b32.xlu1 %v8788_v44, %s13284_s17 }
 0x98d   :  { %9018 = vrot.lane.b32.xlu0 %v8787_v9, %s13274_s0 }
 0x98e   :  { %9492 = vrot.lane.b32.xlu1 %v8788_v44, %s13285_s3 }
 0x991   :  { %9136 = vrot.lane.b32.xlu0 %v8787_v9, %s13282_s11 }
 0x992   :  { %9488 = vrot.lane.b32.xlu1 %v16464_v18, %s13285_s3 }
 0x995   :  { %9486 = vrot.lane.b32.xlu0 %v8785_v19, %s13285_s3 }
 0x996   :  { %9254 = vrot.lane.b32.xlu1 %v8787_v9, %s13283_s16 }
 0x999   :  { %9372 = vrot.lane.b32.xlu0 %v8787_v9, %s13284_s17 }
 0x99a   :  { %9610 = vrot.lane.b32.xlu1 %v8788_v44, %s13286_s25 }
 0x99d   :  { %9606 = vrot.lane.b32.xlu0 %v16464_v18, %s13286_s25 }
 0x99e   :  { %9490 = vrot.lane.b32.xlu1 %v8787_v9, %s13285_s3 }
 0x9a1   :  { %9608 = vrot.lane.b32.xlu0 %v8787_v9, %s13286_s25 }
 0x9a2   :  { %9728 = vrot.lane.b32.xlu1 %v8788_v44, %s13287_s18  ;;  %v12041_v44 = vld [vmem:[%s17241_s6 + $0xb0] sm:$0xff] }
 0x9a5   :  { %9604 = vrot.lane.b32.xlu0 %v8785_v19, %s13286_s25 }
 0x9a6   :  { %9726 = vrot.lane.b32.xlu1 %v8787_v9, %s13287_s18  ;;  %v12042_v9 = vld [vmem:[%s17241_s6 + $0xb8] sm:$0xff] }
 0x9a9   :  { %9722 = vrot.lane.b32.xlu0 %v8785_v19, %s13287_s18 }
 0x9aa   :  { %9724 = vrot.lane.b32.xlu1 %v16464_v18, %s13287_s18 }
 0x9ad   :  { %9856 = vperm.xlu0 %13201, %v12072_v7   ;;  %v12057_v7 = vld [vmem:[%s17241_s6 + $0xf0] sm:$0xff] }
 0x9ae   :  { %9851 = vperm.xlu1 %13200, %v12071_v38   ;;  %v12063_v38 = vld [vmem:[%s17241_s6 + $0x100] sm:$0xff] }
 0x9b1   :  { %9880 = vperm.xlu0 %13201, %v12076_v50   ;;  %v12058_v50 = vld [vmem:[%s17241_s6 + $0xf8] sm:$0xff] }
 0x9b2   :  { %9875 = vperm.xlu1 %13200, %v12075_v1  }
 0x9b5   :  { %9866 = vperm.xlu0 %13201, %v12074_v45   ;;  %v12064_v45 = vld [vmem:[%s17241_s6 + $0x108] sm:$0xff] }
 0x9b6   :  { %9861 = vperm.xlu1 %13200, %v12073_v21   ;;  %v12065_v21 = vld [vmem:[%s17241_s6 + $0x110] sm:$0xff] }
 0x9b9   :  { %9890 = vperm.xlu0 %13201, %v12078_v17   ;;  %v12066_v17 = vld [vmem:[%s17241_s6 + $0x118] sm:$0xff] }
 0x9ba   :  { %9885 = vperm.xlu1 %13200, %v12077_v57   ;;  %v9905_v57 = vld [vmem:[%s17242_s12 + $0x40] sm:$0x3] }
 0x9df   :  { %v8805_v60 = vpop.permute.xlu1 %8804  ;;  %v9135_v47 = vpop.permute.xlu0 %9134 }
 0x9e3   :  { %v16556_v35 = vpop.permute.xlu0 %9370 }
 0x9e4   :  { %v9017_v63 = vpop.permute.xlu1 %9016 }
 0x9e7   :  { %v8803_v27 = vpop.permute.xlu0 %8802 }
 0x9e8   :  { %v16558_v51 = vpop.permute.xlu1 %9252 }
 0x9eb   :  { %v9015_v53 = vpop.permute.xlu0 %9014 }
 0x9ec   :  { %v8809_v41 = vpop.permute.xlu1 %8808 }
 0x9ed   :  { %12756 = vmatprep.subr.mxu1 %v8809_v41 }
 0x9ee   :  { %12757 = vmatpush3.msra.mxu1 %v8809_v41  ;;  %v9897_v41 = vld [vmem:[%s17242_s12] sm:$0xff] }
 0x9ef   :  { %v9133_v58 = vpop.permute.xlu0 %9132 }
 0x9f0   :  { %v9021_v39 = vpop.permute.xlu1 %9020 }
 0x9f3   :  { %v16560_v24 = vpop.permute.xlu0 %9250 }
 0x9f4   :  { %v9139_v4 = vpop.permute.xlu1 %9138 }
 0x9f5   :  { %12798 = vmatprep.subr.mxu0 %v9139_v4 }
 0x9f6   :  { %12799 = vmatpush3.msra.mxu0 %v9139_v4 }
 0x9f7   :  { %v8807_v10 = vpop.permute.xlu0 %8806 }
 0x9f8   :  { %v9257_v11 = vpop.permute.xlu1 %9256  ;;  %12758 = vmatprep.subr.mxu1 %v8807_v10 }
 0x9f9   :  { %12759 = vmatpush3.msra.mxu1 %v8807_v10 }
 0x9fa   :  { %12760 = vmatprep.subr.mxu1 %v8805_v60 }
 0x9fb   :  { %12761 = vmatpush3.msra.mxu1 %v8805_v60  ;;  %v16562_v62 = vpop.permute.xlu0 %9368  ;;  %v9904_v60 = vld [vmem:[%s17242_s12 + $0x38] sm:$0xff] }
 0x9fc   :  { %v9375_v22 = vpop.permute.xlu1 %9374  ;;  %12762 = vmatprep.subr.mxu1 %v8803_v27 }
 0x9fd   :  { %12763 = vmatpush3.msra.mxu1 %v8803_v27  ;;  %v9900_v27 = vld [vmem:[%s17242_s12 + $0x18] sm:$0xff] }
 0x9fe   :  { %12765 = vmatmul.mubr.msk.f32.vlgmr.msra.gmra.mxu1 %vm8814_vm7, %v12004_v52  ;;  %12784 = vmatprep.subr.mxu1 %v9021_v39 }
 0x9ff   :  { %12785 = vmatpush3.msra.mxu1 %v9021_v39  ;;  %v9019_v55 = vpop.permute.xlu0 %9018  ;;  %12767 = vmatprep.mubr.msk.f32.mxu1 %vm8814_vm7, %v12005_v23 }
 0xa00   :  { %v9493_v13 = vpop.permute.xlu1 %9492  ;;  %12786 = vmatprep.subr.mxu1 %v9019_v55 }
 0xa01   :  { %12787 = vmatpush3.msra.mxu1 %v9019_v55 }
 0xa02   :  { %12768 = vmatmul.mubr.msk.f32.gmra.mxu1 %vm8814_vm7, %v12006_v61  ;;  %12788 = vmatprep.subr.mxu1 %v9017_v63 }
 0xa03   :  { %12789 = vmatpush3.msra.mxu1 %v9017_v63  ;;  %v9137_v12 = vpop.permute.xlu0 %9136  ;;  %12792 = vmatprep.mubr.msk.f32.mxu1 %vm8814_vm7, %v12015_v26  ;;  %v9901_v63 = vld [vmem:[%s17242_s12 + $0x20] sm:$0xff] }
 0xa04   :  { %v9489_v36 = vpop.permute.xlu1 %9488  ;;  %12790 = vmatprep.subr.mxu1 %v9015_v53  ;;  %12800 = vmatprep.subr.mxu0 %v9137_v12 }
 0xa05   :  { %12791 = vmatpush3.msra.mxu1 %v9015_v53  ;;  %12801 = vmatpush3.msra.mxu0 %v9137_v12  ;;  %v9898_v53 = vld [vmem:[%s17242_s12 + $0x8] sm:$0xff] }
 0xa06   :  { %12793 = vmatmul.mubr.msk.f32.vlgmr.msra.gmra.mxu1 %vm8814_vm7, %v12016_v59  ;;  %12802 = vmatprep.subr.mxu0 %v9135_v47 }
 0xa07   :  { %12812 = vmatprep.subr.mxu1 %v9257_v11  ;;  %12803 = vmatpush3.msra.mxu0 %v9135_v47  ;;  %v9487_v48 = vpop.permute.xlu0 %9486  ;;  %v9903_v47 = vld [vmem:[%s17242_s12 + $0x30] sm:$0xff] }
 0xa08   :  { %v9255_v32 = vpop.permute.xlu1 %9254  ;;  %12813 = vmatpush3.msra.mxu1 %v9257_v11  ;;  %12804 = vmatprep.subr.mxu0 %v9133_v58 }
 0xa09   :  { %12814 = vmatprep.subr.mxu1 %v9255_v32  ;;  %12795 = vmatprep.mubr.msk.f32.mxu1 %vm8814_vm7, %v12017_v54 }
 0xa0a   :  { %12805 = vmatpush3.msra.mxu0 %v9133_v58  ;;  %12815 = vmatpush3.msra.mxu1 %v9255_v32 }
 0xa0b   :  { %12796 = vmatmul.mubr.msk.f32.gmra.mxu1 %vm8814_vm7, %v12018_v16  ;;  %12807 = vmatmul.mubr.msk.f32.vlgmr.msra.gmra.mxu0 %vm8814_vm7, %v12024_v20  ;;  %v9373_v43 = vpop.permute.xlu0 %9372 }
 0xa0c   :  { %12816 = vmatprep.subr.mxu1 %v16558_v51  ;;  %12826 = vmatprep.subr.mxu0 %v9375_v22  ;;  %v9611_v42 = vpop.permute.xlu1 %9610 }
 0xa0d   :  { %12817 = vmatpush3.msra.mxu1 %v16558_v51  ;;  %12827 = vmatpush3.msra.mxu0 %v9375_v22  ;;  %v9899_v51 = vld [vmem:[%s17242_s12 + $0x10] sm:$0xff] }
 0xa0e   :  { %12818 = vmatprep.subr.mxu1 %v16560_v24  ;;  %12828 = vmatprep.subr.mxu0 %v9373_v43 }
 0xa0f   :  { %12809 = vmatprep.mubr.msk.f32.mxu0 %vm8814_vm7, %v12025_v34  ;;  %12819 = vmatpush3.msra.mxu1 %v16560_v24  ;;  %v9607_v5 = vpop.permute.xlu0 %9606 }
 0xa10   :  { %12820 = vmatprep.mubr.msk.f32.mxu1 %vm8814_vm7, %v12031_v14  ;;  %12829 = vmatpush3.msra.mxu0 %v9373_v43  ;;  %v9491_v18 = vpop.permute.xlu1 %9490 }
 0xa11   :  { %12810 = vmatmul.mubr.msk.f32.gmra.mxu0 %vm8814_vm7, %v12026_v49  ;;  %12821 = vmatmul.mubr.msk.f32.vlgmr.msra.gmra.mxu1 %vm8814_vm7, %v12032_v29 }
 0xa12   :  { %12830 = vmatprep.subr.mxu0 %v16556_v35  ;;  %12840 = vmatprep.subr.mxu1 %v9493_v13 }
 0xa13   :  { %12831 = vmatpush3.msra.mxu0 %v16556_v35  ;;  %12841 = vmatpush3.msra.mxu1 %v9493_v13  ;;  %v9609_v31 = vpop.permute.xlu0 %9608  ;;  %v9902_v35 = vld [vmem:[%s17242_s12 + $0x28] sm:$0xff] }
 0xa14   :  { %12832 = vmatprep.subr.mxu0 %v16562_v62  ;;  %12842 = vmatprep.subr.mxu1 %v9491_v18  ;;  %v9729_v2 = vpop.permute.xlu1 %9728 }
 0xa15   :  { %12823 = vmatprep.mubr.msk.f32.mxu1 %vm8814_vm7, %v12033_v33  ;;  %12833 = vmatpush3.msra.mxu0 %v16562_v62 }
 0xa16   :  { %12834 = vmatprep.mubr.msk.f32.mxu0 %vm8814_vm7, %v12039_v56  ;;  %12843 = vmatpush3.msra.mxu1 %v9491_v18 }
 0xa17   :  { %12824 = vmatmul.mubr.msk.f32.gmra.mxu1 %vm8814_vm7, %v12034_v3  ;;  %12835 = vmatmul.mubr.msk.f32.vlgmr.msra.gmra.mxu0 %vm8814_vm7, %v12040_v37  ;;  %v9605_v0 = vpop.permute.xlu0 %9604 }
 0xa18   :  { %12844 = vmatprep.subr.mxu1 %v9489_v36  ;;  %12854 = vmatprep.subr.mxu0 %v9611_v42  ;;  %v9727_v19 = vpop.permute.xlu1 %9726 }
 0xa19   :  { %12845 = vmatpush3.msra.mxu1 %v9489_v36  ;;  %12855 = vmatpush3.msra.mxu0 %v9611_v42 }
 0xa1a   :  { %12846 = vmatprep.subr.mxu1 %v9487_v48  ;;  %12856 = vmatprep.subr.mxu0 %v9609_v31 }
 0xa1b   :  { %12837 = vmatprep.mubr.msk.f32.mxu0 %vm8814_vm7, %v12041_v44  ;;  %12847 = vmatpush3.msra.mxu1 %v9487_v48  ;;  %v9723_v1 = vpop.permute.xlu0 %9722 }
 0xa1c   :  { %12848 = vmatprep.mubr.msk.f32.mxu1 %vm8814_vm7, %v12047_v40  ;;  %12857 = vmatpush3.msra.mxu0 %v9609_v31  ;;  %v9725_v8 = vpop.permute.xlu1 %9724 }
 0xa1d   :  { %12838 = vmatmul.mubr.msk.f32.gmra.mxu0 %vm8814_vm7, %v12042_v9  ;;  %12849 = vmatmul.mubr.msk.f32.vlgmr.msra.gmra.mxu1 %vm8814_vm7, %v12048_v6 }
 0xa1e   :  { %12858 = vmatprep.subr.mxu0 %v9607_v5  ;;  %12868 = vmatprep.subr.mxu1 %v9729_v2 }
 0xa1f   :  { %12859 = vmatpush3.msra.mxu0 %v9607_v5  ;;  %12869 = vmatpush3.msra.mxu1 %v9729_v2 }
 0xa20   :  { %12860 = vmatprep.subr.mxu0 %v9605_v0  ;;  %12870 = vmatprep.subr.mxu1 %v9727_v19 }
 0xa21   :  { %12851 = vmatprep.mubr.msk.f32.mxu1 %vm8814_vm7, %v12049_v46  ;;  %12861 = vmatpush3.msra.mxu0 %v9605_v0 }
 0xa22   :  { %12862 = vmatprep.mubr.msk.f32.mxu0 %vm8814_vm7, %v12055_v15  ;;  %12871 = vmatpush3.msra.mxu1 %v9727_v19 }
 0xa23   :  { %12852 = vmatmul.mubr.msk.f32.gmra.mxu1 %vm8814_vm7, %v12050_v25  ;;  %12863 = vmatmul.mubr.msk.f32.vlgmr.msra.gmra.mxu0 %vm8814_vm7, %v12056_v28 }
 0xa24   :  { %12872 = vmatprep.subr.mxu1 %v9725_v8  ;;  %12865 = vmatprep.mubr.msk.f32.mxu0 %vm8814_vm7, %v12057_v7 }
 0xa25   :  { %12873 = vmatpush3.msra.mxu1 %v9725_v8  ;;  %12876 = vmatprep.mubr.msk.f32.mxu1 %vm8814_vm7, %v12063_v38 }
 0xa26   :  { %12874 = vmatprep.subr.mxu1 %v9723_v1  ;;  %12882 = vmatprep.subr.msk.mxu0 %vm109_vm1, %v9905_v57 }
 0xa27   :  { %12866 = vmatmul.mubr.msk.f32.gmra.mxu0 %vm8814_vm7, %v12058_v50  ;;  %12875 = vmatpush3.msra.mxu1 %v9723_v1 }
 0xa28   :  { %12877 = vmatmul.mubr.msk.f32.vlgmr.msra.gmra.mxu1 %vm8814_vm7, %v12064_v45  ;;  %12906 = vmatprep.subr.mxu1 %v17371_v30  ;;  %v9857_v40 = vpop.permute.xlu0 %9856 }
 0xa29   :  { %12879 = vmatprep.mubr.msk.f32.mxu1 %vm8814_vm7, %v12065_v21  ;;  %12883 = vmatpush3.msk.msra.mxu0 %vm109_vm1, %v9905_v57  ;;  %v9852_v44 = vpop.permute.xlu1 %9851 }
 0xa2a   :  { %12884 = vmatprep.subr.mxu0 %v9904_v60 }
 0xa2b   :  { %12885 = vmatpush3.msra.mxu0 %v9904_v60 }
 0xa2c   :  { %12880 = vmatmul.mubr.msk.f32.gmra.mxu1 %vm8814_vm7, %v12066_v17  ;;  %12886 = vmatprep.subr.mxu0 %v9903_v47 }
 0xa2d   :  { %12887 = vmatpush3.msra.mxu0 %v9903_v47  ;;  %v9876_v60 = vpop.permute.xlu1 %9875  ;;  %12914 = vmatprep.mubr.msk.f32.mxu1 %vm13288_vm9, %v17371_v30 }
 0xa2e   :  { %12888 = vmatprep.subr.mxu0 %v9902_v35 }
 0xa2f   :  { %12889 = vmatpush3.msra.mxu0 %v9902_v35  ;;  %v9881_v35 = vpop.permute.xlu0 %9880 }
 0xa30   :  { %12890 = vmatprep.subr.mxu0 %v9901_v63 }
 0xa31   :  { %12891 = vmatpush3.msra.mxu0 %v9901_v63 }
 0xa32   :  { %12892 = vmatprep.subr.mxu0 %v9900_v27 }
 0xa33   :  { %12893 = vmatpush3.msra.mxu0 %v9900_v27 }
 0xa34   :  { %12894 = vmatprep.subr.mxu0 %v9899_v51 }
 0xa35   :  { %12895 = vmatpush3.msra.mxu0 %v9899_v51 }
 0xa36   :  { %12896 = vmatprep.subr.mxu0 %v9898_v53 }
 0xa37   :  { %12897 = vmatpush3.msra.mxu0 %v9898_v53 }
 0xa38   :  { %12898 = vmatprep.subr.mxu0 %v9897_v41 }
 0xa39   :  { %12899 = vmatpush3.msra.mxu0 %v9897_v41  ;;  %v12780_v58 = vpop.f32.mrf.mxu0 }
 0xa3a   :  { %12929 = vmatprep.subr.mxu0 %v17371_v30 }
 0xa3b   :  { %v8990_v4 = vpop.f32.mrf.mxu0 }
 0xa3d   :  { %v12783_v62 = vpop.f32.mrf.mxu0 }
 0xa3f   :  { %v9000_v23 = vpop.f32.mrf.mxu0 }
 0xabe   :  { %v12766_v39 = vpop.f32.mrf.mxu1 }
 0xabf   :  { %v8996_v43 = vadd.f32 %v12780_v58, %v12766_v39 }
 0xac0   :  { %v8893_v24 = vpop.f32.mrf.mxu1 }
 0xac1   :  { %v8991_v42 = vadd.f32 %v8990_v4, %v8893_v24 }
 0xac2   :  { %v12769_v10 = vpop.f32.mrf.mxu1 }
 0xac3   :  { %v9006_v29 = vadd.f32 %v12783_v62, %v12769_v10 }
 0xac4   :  { %v8903_v11 = vpop.f32.mrf.mxu1 }
 0xac5   :  { %v9001_v3 = vadd.f32 %v9000_v23, %v8903_v11  ;;  %v9862_v23 = vpop.permute.xlu1 %9861 }
 0xac6   :  { %v12794_v52 = vpop.f32.mrf.mxu1 }
 0xac7   :  { %v9124_v34 = vadd.f32 %v12794_v52, %v8996_v43 }
 0xac8   :  { %v9104_v22 = vpop.f32.mrf.mxu1 }
 0xac9   :  { %v9123_v18 = vadd.f32 %v9104_v22, %v8991_v42 }
 0xacb   :  { %v12797_v55 = vpop.f32.mrf.mxu1  ;;  %v12808_v61 = vpop.f32.mrf.mxu0 }
 0xacc   :  { %v9242_v5 = vadd.f32 %v12808_v61, %v9124_v34  ;;  %v9126_v37 = vadd.f32 %v12797_v55, %v9006_v29 }
 0xacd   :  { %v9114_v13 = vpop.f32.mrf.mxu1  ;;  %v9222_v26 = vpop.f32.mrf.mxu0 }
 0xace   :  { %v9241_v2 = vadd.f32 %v9222_v26, %v9123_v18  ;;  %v9125_v9 = vadd.f32 %v9114_v13, %v9001_v3  ;;  %v9867_v13 = vpop.permute.xlu0 %9866  ;;  %v10010_v3 = vld [vmem:[%s17243_s7 + $0x18] sm:$0xff] }
 0xad1   :  { %v12811_v12 = vpop.f32.mrf.mxu0  ;;  %v12822_v59 = vpop.f32.mrf.mxu1 }
 0xad2   :  { %v9360_v31 = vadd.f32 %v12822_v59, %v9242_v5  ;;  %v9244_v6 = vadd.f32 %v12811_v12, %v9126_v37  ;;  %v9891_v43 = vpop.permute.xlu0 %9890  ;;  %v10007_v5 = vld [vmem:[%s17243_s7] sm:$0xff] }
 0xad3   :  { %v9232_v36 = vpop.f32.mrf.mxu0  ;;  %v9340_v54 = vpop.f32.mrf.mxu1  ;;  %v10011_v37 = vld [vmem:[%s17243_s7 + $0x20] sm:$0xf] }
 0xad4   :  { %v9359_v19 = vadd.f32 %v9340_v54, %v9241_v2  ;;  %v9243_v25 = vadd.f32 %v9232_v36, %v9125_v9  ;;  %v12169_v2 = vld [vmem:[%s17233_s9 + $0xc8] sm:$0xff]  ;;  %v12171_v9 = vld [vmem:[%s17233_s9 + $0xd8] sm:$0xff] }
 0xad7   :  { %v12825_v48 = vpop.f32.mrf.mxu1  ;;  %v12836_v32 = vpop.f32.mrf.mxu0 }
 0xad8   :  { %v9478_v0 = vadd.f32 %v12836_v32, %v9360_v31  ;;  %v9362_v28 = vadd.f32 %v12825_v48, %v9244_v6  ;;  %v12174_v31 = vld [vmem:[%s17234_s10 + $0xc8] sm:$0xff]  ;;  %v12176_v6 = vld [vmem:[%s17234_s10 + $0xd8] sm:$0xff] }
 0xad9   :  { %v9350_v16 = vpop.f32.mrf.mxu1  ;;  %v9458_v20 = vpop.f32.mrf.mxu0 }
 0xada   :  { %v9477_v8 = vadd.f32 %v9458_v20, %v9359_v19  ;;  %v9361_v1 = vadd.f32 %v9350_v16, %v9243_v25  ;;  %v9886_v20 = vpop.permute.xlu1 %9885  ;;  %v12172_v19 = vld [vmem:[%s17233_s9 + $0xe0] sm:$0xff] }
 0xadd   :  { %v12839_v14 = vpop.f32.mrf.mxu0  ;;  %v12850_v49 = vpop.f32.mrf.mxu1 }
 0xade   :  { %v9596_v7 = vadd.f32 %v12850_v49, %v9478_v0  ;;  %v9480_v45 = vadd.f32 %v12839_v14, %v9362_v28  ;;  %v12177_v0 = vld [vmem:[%s17234_s10 + $0xe0] sm:$0xff] }
 0xadf   :  { %v9468_v33 = vpop.f32.mrf.mxu0  ;;  %v9576_v56 = vpop.f32.mrf.mxu1 }
 0xae0   :  { %v9595_v21 = vadd.f32 %v9576_v56, %v9477_v8  ;;  %v9479_v63 = vadd.f32 %v9468_v33, %v9361_v1  ;;  %v10008_v33 = vld [vmem:[%s17243_s7 + $0x8] sm:$0xff]  ;;  %v10009_v56 = vld [vmem:[%s17243_s7 + $0x10] sm:$0xff] }
 0xae1   :  { %v12085_v1 = vld [vmem:[%s17243_s7 + $0x30] sm:$0xff] }
 0xae3   :  { %v12853_v46 = vpop.f32.mrf.mxu1  ;;  %v12864_v15 = vpop.f32.mrf.mxu0 }
 0xae4   :  { %v9714_v17 = vadd.f32 %v12864_v15, %v9596_v7  ;;  %v9598_v27 = vadd.f32 %v12853_v46, %v9480_v45  ;;  %v12173_v46 = vld [vmem:[%s17233_s9 + $0xe8] sm:$0xf] }
 0xae5   :  { %v9694_v38 = vpop.f32.mrf.mxu0  ;;  %v9586_v50 = vpop.f32.mrf.mxu1  ;;  %v12178_v15 = vld [vmem:[%s17234_s10 + $0xe8] sm:$0xf] }
 0xae6   :  { %v9713_v51 = vadd.f32 %v9694_v38, %v9595_v21  ;;  %v9597_v39 = vadd.f32 %v9586_v50, %v9479_v63  ;;  %v12084_v7 = vld [vmem:[%s17243_s7 + $0x28] sm:$0xff] }
 0xae7   :  { %v12867_v57 = vpop.f32.mrf.mxu0 }
 0xae8   :  { %v12878_v47 = vpop.f32.mrf.mxu1  ;;  %v9716_v24 = vadd.f32 %v12867_v57, %v9598_v27  ;;  %v12088_v27 = vld [vmem:[%s17243_s7 + $0x48] sm:$0xf] }
 0xae9   :  { %v9832_v53 = vadd.f32 %v12878_v47, %v9714_v17  ;;  %v9704_v41 = vpop.f32.mrf.mxu0  ;;  %v12086_v17 = vld [vmem:[%s17243_s7 + $0x38] sm:$0xff]  ;;  %v12087_v47 = vld [vmem:[%s17243_s7 + $0x40] sm:$0xff] }
 0xaea   :  { %v9812_v58 = vpop.f32.mrf.mxu1  ;;  %v9715_v62 = vadd.f32 %v9704_v41, %v9597_v39  ;;  %v12099_v41 = vld [vmem:[%s17243_s7 + $0x50] sm:$0xff] }
 0xaeb   :  { %v9846_v4 = vmax.f32 %v9832_v53, 0.0  ;;  %v9831_v10 = vadd.f32 %v9812_v58, %v9713_v51  ;;  %v12109_v58 = vld [vmem:[%s17243_s7 + $0x78] sm:$0xff] }
 0xaec   :  { %v12881_v11 = vpop.f32.mrf.mxu1 }
 0xaed   :  { %v9845_v52 = vmax.f32 %v9831_v10, 0.0  ;;  %v9834_v22 = vadd.f32 %v12881_v11, %v9716_v24  ;;  %v9870_v55 = vmul.f32 %v9857_v40, %v9846_v4  ;;  %v12175_v40 = vld [vmem:[%s17234_s10 + $0xd0] sm:$0xff]  ;;  %v12100_v4 = vld [vmem:[%s17243_s7 + $0x58] sm:$0xff]  ;;  %v12110_v11 = vld [vmem:[%s17243_s7 + $0x80] sm:$0xff] }
 0xaee   :  { %v9822_v61 = vpop.f32.mrf.mxu1 }
 0xaef   :  { %v9869_v26 = vmul.f32 %v9852_v44, %v9845_v52  ;;  %v9848_v12 = vmax.f32 %v9834_v22, 0.0  ;;  %v9833_v59 = vadd.f32 %v9822_v61, %v9715_v62  ;;  %v9894_v48 = vadd.f32 %v9881_v35, %v9870_v55  ;;  %v12170_v44 = vld [vmem:[%s17233_s9 + $0xd0] sm:$0xff]  ;;  %v12101_v52 = vld [vmem:[%s17243_s7 + $0x60] sm:$0xff]  ;;  %v12102_v61 = vld [vmem:[%s17243_s7 + $0x68] sm:$0xff] }
 0xaf1   :  { %v9893_v36 = vadd.f32 %v9876_v60, %v9869_v26  ;;  %v9847_v54 = vmax.f32 %v9833_v59, 0.0  ;;  %v9872_v32 = vmul.f32 %v9867_v13, %v9848_v12  ;;  %v12112_v26 = vld [vmem:[%s17243_s7 + $0x90] sm:$0xff] }
 0xaf2   :  { %v12103_v59 = vld [vmem:[%s17243_s7 + $0x70] sm:$0xf] }
 0xaf3   :  { %v9871_v16 = vmul.f32 %v9862_v23, %v9847_v54  ;;  %12900 = vmatprep.mubr.msk.f32.mxu0 %vm9906_vm8, %v9893_v36  ;;  %v9896_v34 = vadd.f32 %v9891_v43, %v9872_v32  ;;  %v12111_v23 = vld [vmem:[%s17243_s7 + $0x88] sm:$0xff]  ;;  %v12113_v54 = vld [vmem:[%s17243_s7 + $0x98] sm:$0xf]  ;;  %v12119_v32 = vld [vmem:[%s17243_s7 + $0xa0] sm:$0xff] }
 0xaf4   :  { %12901 = vmatmul.mubr.msk.f32.vlgmr.msra.gmra.mxu0 %vm9906_vm8, %v9894_v48 }
 0xaf5   :  { %v9895_v42 = vadd.f32 %v9886_v20, %v9871_v16  ;;  %v12129_v20 = vld [vmem:[%s17243_s7 + $0xc8] sm:$0xff] }
 0xaf7   :  { %12903 = vmatprep.mubr.msk.f32.mxu0 %vm9906_vm8, %v9895_v42  ;;  %v12120_v42 = vld [vmem:[%s17243_s7 + $0xa8] sm:$0xff] }
 0xaf8   :  { %12904 = vmatmul.mubr.msk.f32.gmra.mxu0 %vm9906_vm8, %v9896_v34 }
 0xaf9   :  { %12937 = vmatprep.mubr.msk.f32.mxu0 %vm13288_vm9, %v17371_v30 }
 0xbb4   :  { %v12902_v14 = vpop.f32.mrf.mxu0 }
 0xbb6   :  { %v9988_v49 = vpop.f32.mrf.mxu0 }
 0xbb8   :  { %v12905_v29 = vpop.f32.mrf.mxu0 }
 0xbb9   :  { %10028 = vrot.lane.b32.xlu1 %v12905_v29, %s13273_s22  ;;  %12930 = vmatpush3.msra.mxu0 %v12905_v29 }
 0xbba   :  { %v9998_v18 = vpop.f32.mrf.mxu0  ;;  %12931 = vmatprep.subr.mxu0 %v17371_v30 }
 0xbbb   :  { %10026 = vrot.lane.b32.xlu0 %v9998_v18, %s13273_s22  ;;  %12932 = vmatpush3.msra.mxu0 %v9998_v18 }
 0xbbc   :  { %12933 = vmatprep.subr.mxu0 %v17371_v30 }
 0xbbd   :  { %10024 = vrot.lane.b32.xlu1 %v12902_v14, %s13273_s22  ;;  %12934 = vmatpush3.msra.mxu0 %v12902_v14 }
 0xbbe   :  { %12935 = vmatprep.subr.mxu0 %v17371_v30 }
 0xbbf   :  { %10022 = vrot.lane.b32.xlu0 %v9988_v49, %s13273_s22  ;;  %12936 = vmatpush3.msra.mxu0 %v9988_v49 }
 0xbc0   :  { %12938 = vmatmul.mubr.msk.f32.vlgmr.msra.gmra.mxu0 %vm8814_vm7, %v10007_v5  ;;  %12975 = vmatprep.subr.mxu0 %v17371_v30 }
 0xbc1   :  { %10256 = vrot.lane.b32.xlu1 %v12905_v29, %s13274_s0  ;;  %12940 = vmatprep.mubr.msk.f32.mxu0 %vm13288_vm9, %v17371_v30 }
 0xbc3   :  { %10254 = vrot.lane.b32.xlu0 %v9998_v18, %s13274_s0 }
 0xbc4   :  { %12941 = vmatmul.mubr.msk.f32.gmra.mxu0 %vm8814_vm7, %v10008_v33  ;;  %v12122_v33 = vld [vmem:[%s17243_s7 + $0xb8] sm:$0xff] }
 0xbc5   :  { %10252 = vrot.lane.b32.xlu1 %v12902_v14, %s13274_s0  ;;  %12943 = vmatprep.mubr.msk.f32.mxu0 %vm13288_vm9, %v17371_v30 }
 0xbc7   :  { %10250 = vrot.lane.b32.xlu0 %v9988_v49, %s13274_s0 }
 0xbc8   :  { %12944 = vmatmul.mubr.msk.f32.gmra.mxu0 %vm8814_vm7, %v10009_v56  ;;  %v12132_v56 = vld [vmem:[%s17243_s7 + $0xe0] sm:$0xff] }
 0xbc9   :  { %10384 = vrot.lane.b32.xlu1 %v12905_v29, %s13282_s11  ;;  %12946 = vmatprep.mubr.msk.f32.mxu0 %vm13288_vm9, %v17371_v30 }
 0xbcb   :  { %10380 = vrot.lane.b32.xlu0 %v12902_v14, %s13282_s11 }
 0xbcc   :  { %12947 = vmatmul.mubr.msk.f32.gmra.mxu0 %vm8814_vm7, %v10010_v3 }
 0xbcd   :  { %10512 = vrot.lane.b32.xlu1 %v12905_v29, %s13283_s16  ;;  %12949 = vmatprep.mubr.msk.f32.mxu0 %vm13288_vm9, %v17371_v30 }
 0xbcf   :  { %10382 = vrot.lane.b32.xlu0 %v9998_v18, %s13282_s11 }
 0xbd0   :  { %12950 = vmatmul.mubr.msk.f32.gmra.mxu0 %vm8814_vm7, %v10011_v37  ;;  %v12123_v37 = vld [vmem:[%s17243_s7 + $0xc0] sm:$0xf] }
 0xbd1   :  { %10510 = vrot.lane.b32.xlu1 %v9998_v18, %s13283_s16  ;;  %12983 = vmatprep.mubr.msk.f32.mxu0 %vm13288_vm9, %v17371_v30 }
 0xbd3   :  { %10378 = vrot.lane.b32.xlu0 %v9988_v49, %s13282_s11 }
 0xbd5   :  { %10508 = vrot.lane.b32.xlu1 %v12902_v14, %s13283_s16 }
 0xbd7   :  { %10506 = vrot.lane.b32.xlu0 %v9988_v49, %s13283_s16 }
 0xbd9   :  { %10640 = vrot.lane.b32.xlu1 %v12905_v29, %s13284_s17 }
 0xbdb   :  { %10636 = vrot.lane.b32.xlu0 %v12902_v14, %s13284_s17 }
 0xbdd   :  { %10768 = vrot.lane.b32.xlu1 %v12905_v29, %s13285_s3 }
 0xbdf   :  { %10638 = vrot.lane.b32.xlu0 %v9998_v18, %s13284_s17 }
 0xbe1   :  { %10766 = vrot.lane.b32.xlu1 %v9998_v18, %s13285_s3 }
 0xbe3   :  { %10634 = vrot.lane.b32.xlu0 %v9988_v49, %s13284_s17 }
 0xbe5   :  { %10764 = vrot.lane.b32.xlu1 %v12902_v14, %s13285_s3 }
 0xbe7   :  { %10762 = vrot.lane.b32.xlu0 %v9988_v49, %s13285_s3 }
 0xbe9   :  { %10896 = vrot.lane.b32.xlu1 %v12905_v29, %s13286_s25 }
 0xbeb   :  { %10892 = vrot.lane.b32.xlu0 %v12902_v14, %s13286_s25 }
 0xbed   :  { %11024 = vrot.lane.b32.xlu1 %v12905_v29, %s13287_s18  ;;  %v12121_v29 = vld [vmem:[%s17243_s7 + $0xb0] sm:$0xff] }
 0xbef   :  { %10894 = vrot.lane.b32.xlu0 %v9998_v18, %s13286_s25 }
 0xbf1   :  { %11022 = vrot.lane.b32.xlu1 %v9998_v18, %s13287_s18  ;;  %v12131_v18 = vld [vmem:[%s17243_s7 + $0xd8] sm:$0xff] }
 0xbf3   :  { %10890 = vrot.lane.b32.xlu0 %v9988_v49, %s13286_s25 }
 0xbf5   :  { %11020 = vrot.lane.b32.xlu1 %v12902_v14, %s13287_s18  ;;  %v12130_v14 = vld [vmem:[%s17243_s7 + $0xd0] sm:$0xff] }
 0xbf7   :  { %11018 = vrot.lane.b32.xlu0 %v9988_v49, %s13287_s18 }
 0xbf9   :  { %11159 = vperm.xlu1 %13200, %v12169_v2   ;;  %v12133_v2 = vld [vmem:[%s17243_s7 + $0xe8] sm:$0xf] }
 0xbfb   :  { %11189 = vperm.xlu0 %13201, %v12174_v31   ;;  %v12139_v31 = vld [vmem:[%s17243_s7 + $0xf0] sm:$0xff] }
 0xbfd   :  { %11164 = vperm.xlu1 %13200, %v12170_v44  }
 0xbff   :  { %11194 = vperm.xlu0 %13201, %v12175_v40   ;;  %v12149_v40 = vld [vmem:[%s17243_s7 + $0x118] sm:$0xff] }
 0xc01   :  { %11169 = vperm.xlu1 %13200, %v12171_v9   ;;  %v12140_v9 = vld [vmem:[%s17243_s7 + $0xf8] sm:$0xff] }
 0xc03   :  { %11199 = vperm.xlu0 %13201, %v12176_v6   ;;  %v12150_v6 = vld [vmem:[%s17243_s7 + $0x120] sm:$0xff] }
 0xc05   :  { %11174 = vperm.xlu1 %13200, %v12172_v19  }
 0xc07   :  { %11204 = vperm.xlu0 %13201, %v12177_v0   ;;  %v12141_v0 = vld [vmem:[%s17243_s7 + $0x100] sm:$0xff] }
 0xc09   :  { %11179 = vperm.xlu1 %13200, %v12173_v46  }
 0xc0b   :  { %11209 = vperm.xlu0 %13201, %v12178_v15   ;;  %v12151_v15 = vld [vmem:[%s17243_s7 + $0x128] sm:$0xff] }
 0xc2b   :  { %v10029_v25 = vpop.permute.xlu1 %10028 }
 0xc2c   :  { %12907 = vmatpush3.msra.mxu1 %v10029_v25  ;;  %v12142_v25 = vld [vmem:[%s17243_s7 + $0x108] sm:$0xff] }
 0xc2d   :  { %12908 = vmatprep.subr.mxu1 %v17371_v30  ;;  %v10027_v28 = vpop.permute.xlu0 %10026 }
 0xc2e   :  { %12909 = vmatpush3.msra.mxu1 %v10027_v28  ;;  %v12152_v28 = vld [vmem:[%s17243_s7 + $0x130] sm:$0xff] }
 0xc2f   :  { %v10025_v8 = vpop.permute.xlu1 %10024  ;;  %12910 = vmatprep.subr.mxu1 %v17371_v30 }
 0xc30   :  { %12911 = vmatpush3.msra.mxu1 %v10025_v8  ;;  %v12143_v8 = vld [vmem:[%s17243_s7 + $0x110] sm:$0xf] }
 0xc31   :  { %12912 = vmatprep.subr.mxu1 %v17371_v30  ;;  %v10023_v38 = vpop.permute.xlu0 %10022 }
 0xc32   :  { %12913 = vmatpush3.msra.mxu1 %v10023_v38 }
 0xc33   :  { %v10257_v50 = vpop.permute.xlu1 %10256  ;;  %12915 = vmatmul.mubr.msk.f32.vlgmr.msra.gmra.mxu1 %vm8814_vm7, %v12084_v7  ;;  %12952 = vmatprep.subr.mxu1 %v17371_v30  ;;  %v12153_v7 = vld [vmem:[%s17243_s7 + $0x138] sm:$0xf] }
 0xc34   :  { %12953 = vmatpush3.msra.mxu1 %v10257_v50  ;;  %12917 = vmatprep.mubr.msk.f32.mxu1 %vm13288_vm9, %v17371_v30  ;;  %v12159_v50 = vld [vmem:[%s17243_s7 + $0x140] sm:$0xff] }
 0xc35   :  { %12954 = vmatprep.subr.mxu1 %v17371_v30  ;;  %v10255_v45 = vpop.permute.xlu0 %10254 }
 0xc36   :  { %12955 = vmatpush3.msra.mxu1 %v10255_v45 }
 0xc37   :  { %v10253_v21 = vpop.permute.xlu1 %10252  ;;  %12918 = vmatmul.mubr.msk.f32.gmra.mxu1 %vm8814_vm7, %v12085_v1  ;;  %12956 = vmatprep.subr.mxu1 %v17371_v30 }
 0xc38   :  { %12957 = vmatpush3.msra.mxu1 %v10253_v21  ;;  %12920 = vmatprep.mubr.msk.f32.mxu1 %vm13288_vm9, %v17371_v30  ;;  %v12160_v21 = vld [vmem:[%s17243_s7 + $0x148] sm:$0xff] }
 0xc39   :  { %12958 = vmatprep.subr.mxu1 %v17371_v30  ;;  %v10251_v57 = vpop.permute.xlu0 %10250 }
 0xc3a   :  { %12959 = vmatpush3.msra.mxu1 %v10251_v57 }
 0xc3b   :  { %v10385_v60 = vpop.permute.xlu1 %10384  ;;  %12921 = vmatmul.mubr.msk.f32.gmra.mxu1 %vm8814_vm7, %v12086_v17  ;;  %12998 = vmatprep.subr.mxu1 %v17371_v30 }
 0xc3c   :  { %12976 = vmatpush3.msra.mxu0 %v10385_v60  ;;  %12923 = vmatprep.mubr.msk.f32.mxu1 %vm13288_vm9, %v17371_v30  ;;  %v12161_v60 = vld [vmem:[%s17243_s7 + $0x150] sm:$0xff] }
 0xc3d   :  { %v10381_v35 = vpop.permute.xlu0 %10380  ;;  %12977 = vmatprep.subr.mxu0 %v17371_v30 }
 0xc3f   :  { %v10513_v63 = vpop.permute.xlu1 %10512  ;;  %12924 = vmatmul.mubr.msk.f32.gmra.mxu1 %vm8814_vm7, %v12087_v47 }
 0xc40   :  { %12926 = vmatprep.mubr.msk.f32.mxu1 %vm13288_vm9, %v17371_v30 }
 0xc41   :  { %v10383_v51 = vpop.permute.xlu0 %10382 }
 0xc42   :  { %12978 = vmatpush3.msra.mxu0 %v10383_v51 }
 0xc43   :  { %v10511_v53 = vpop.permute.xlu1 %10510  ;;  %12927 = vmatmul.mubr.msk.f32.gmra.mxu1 %vm8814_vm7, %v12088_v27  ;;  %12979 = vmatprep.subr.mxu0 %v17371_v30 }
 0xc44   :  { %12980 = vmatpush3.msra.mxu0 %v10381_v35  ;;  %12960 = vmatprep.mubr.msk.f32.mxu1 %vm13288_vm9, %v17371_v30 }
 0xc45   :  { %v10379_v39 = vpop.permute.xlu0 %10378  ;;  %12981 = vmatprep.subr.mxu0 %v17371_v30 }
 0xc46   :  { %12982 = vmatpush3.msra.mxu0 %v10379_v39  ;;  %v11224_v39 = vld [vmem:[%s17244_s13 + $0x38] sm:$0xff] }
 0xc47   :  { %v10509_v24 = vpop.permute.xlu1 %10508  ;;  %12961 = vmatmul.mubr.msk.f32.vlgmr.msra.gmra.mxu1 %vm8814_vm7, %v12099_v41  ;;  %12984 = vmatmul.mubr.msk.f32.vlgmr.msra.gmra.mxu0 %vm8814_vm7, %v12109_v58  ;;  %v11225_v58 = vld [vmem:[%s17244_s13 + $0x40] sm:$0x3] }
 0xc48   :  { %12999 = vmatpush3.msra.mxu1 %v10513_v63  ;;  %12963 = vmatprep.mubr.msk.f32.mxu1 %vm13288_vm9, %v17371_v30  ;;  %v12162_v63 = vld [vmem:[%s17243_s7 + $0x158] sm:$0xff] }
 0xc49   :  { %13000 = vmatprep.subr.mxu1 %v17371_v30  ;;  %v10507_v10 = vpop.permute.xlu0 %10506  ;;  %12986 = vmatprep.mubr.msk.f32.mxu0 %vm13288_vm9, %v17371_v30 }
 0xc4a   :  { %13001 = vmatpush3.msra.mxu1 %v10511_v53  ;;  %13021 = vmatprep.subr.mxu0 %v17371_v30  ;;  %v12163_v53 = vld [vmem:[%s17243_s7 + $0x160] sm:$0xf] }
 0xc4b   :  { %13002 = vmatprep.subr.mxu1 %v17371_v30  ;;  %v10641_v62 = vpop.permute.xlu1 %10640  ;;  %12964 = vmatmul.mubr.msk.f32.gmra.mxu1 %vm8814_vm7, %v12100_v4  ;;  %v11222_v4 = vld [vmem:[%s17244_s13 + $0x28] sm:$0xff] }
 0xc4c   :  { %13003 = vmatpush3.msra.mxu1 %v10509_v24  ;;  %12987 = vmatmul.mubr.msk.f32.gmra.mxu0 %vm8814_vm7, %v12110_v11  ;;  %v11223_v24 = vld [vmem:[%s17244_s13 + $0x30] sm:$0xff]  ;;  %v11220_v11 = vld [vmem:[%s17244_s13 + $0x18] sm:$0xff] }
 0xc4d   :  { %13004 = vmatprep.subr.mxu1 %v17371_v30  ;;  %13022 = vmatpush3.msra.mxu0 %v10641_v62  ;;  %v10637_v22 = vpop.permute.xlu0 %10636  ;;  %v11219_v62 = vld [vmem:[%s17244_s13 + $0x10] sm:$0xff] }
 0xc4e   :  { %13005 = vmatpush3.msra.mxu1 %v10507_v10  ;;  %12966 = vmatprep.mubr.msk.f32.mxu1 %vm13288_vm9, %v17371_v30  ;;  %v11221_v10 = vld [vmem:[%s17244_s13 + $0x20] sm:$0xff] }
 0xc4f   :  { %v10769_v55 = vpop.permute.xlu1 %10768  ;;  %12967 = vmatmul.mubr.msk.f32.gmra.mxu1 %vm8814_vm7, %v12101_v52  ;;  %12989 = vmatprep.mubr.msk.f32.mxu0 %vm13288_vm9, %v17371_v30  ;;  %v11218_v52 = vld [vmem:[%s17244_s13 + $0x8] sm:$0xff] }
 0xc50   :  { %12990 = vmatmul.mubr.msk.f32.gmra.mxu0 %vm8814_vm7, %v12111_v23  ;;  %13023 = vmatprep.subr.mxu0 %v17371_v30 }
 0xc51   :  { %v10639_v13 = vpop.permute.xlu0 %10638  ;;  %12969 = vmatprep.mubr.msk.f32.mxu1 %vm13288_vm9, %v17371_v30  ;;  %12992 = vmatprep.mubr.msk.f32.mxu0 %vm13288_vm9, %v17371_v30 }
 0xc52   :  { %13024 = vmatpush3.msra.mxu0 %v10639_v13  ;;  %13044 = vmatprep.subr.mxu1 %v17371_v30 }
 0xc53   :  { %v10767_v12 = vpop.permute.xlu1 %10766  ;;  %12970 = vmatmul.mubr.msk.f32.gmra.mxu1 %vm8814_vm7, %v12102_v61  ;;  %13025 = vmatprep.subr.mxu0 %v17371_v30 }
 0xc54   :  { %12993 = vmatmul.mubr.msk.f32.gmra.mxu0 %vm8814_vm7, %v12112_v26  ;;  %12972 = vmatprep.mubr.msk.f32.mxu1 %vm13288_vm9, %v17371_v30 }
 0xc55   :  { %13026 = vmatpush3.msra.mxu0 %v10637_v22  ;;  %v10635_v36 = vpop.permute.xlu0 %10634  ;;  %12995 = vmatprep.mubr.msk.f32.mxu0 %vm13288_vm9, %v17371_v30  ;;  %v11217_v22 = vld [vmem:[%s17244_s13] sm:$0xff] }
 0xc56   :  { %13027 = vmatprep.subr.mxu0 %v17371_v30 }
 0xc57   :  { %13028 = vmatpush3.msra.mxu0 %v10635_v36  ;;  %v10765_v48 = vpop.permute.xlu1 %10764  ;;  %12973 = vmatmul.mubr.msk.f32.gmra.mxu1 %vm8814_vm7, %v12103_v59 }
 0xc58   :  { %12996 = vmatmul.mubr.msk.f32.gmra.mxu0 %vm8814_vm7, %v12113_v54  ;;  %13006 = vmatprep.mubr.msk.f32.mxu1 %vm13288_vm9, %v17371_v30 }
 0xc59   :  { %v10763_v16 = vpop.permute.xlu0 %10762  ;;  %13029 = vmatprep.mubr.msk.f32.mxu0 %vm13288_vm9, %v17371_v30  ;;  %13067 = vmatprep.subr.mxu0 %v17371_v30 }
 0xc5b   :  { %v10897_v43 = vpop.permute.xlu1 %10896  ;;  %13007 = vmatmul.mubr.msk.f32.vlgmr.msra.gmra.mxu1 %vm8814_vm7, %v12119_v32 }
 0xc5c   :  { %13045 = vmatpush3.msra.mxu1 %v10769_v55  ;;  %13030 = vmatmul.mubr.msk.f32.vlgmr.msra.gmra.mxu0 %vm8814_vm7, %v12129_v20 }
 0xc5d   :  { %13046 = vmatprep.subr.mxu1 %v17371_v30  ;;  %13068 = vmatpush3.msra.mxu0 %v10897_v43  ;;  %v10893_v34 = vpop.permute.xlu0 %10892 }
 0xc5e   :  { %13047 = vmatpush3.msra.mxu1 %v10767_v12  ;;  %13009 = vmatprep.mubr.msk.f32.mxu1 %vm13288_vm9, %v17371_v30 }
 0xc5f   :  { %13048 = vmatprep.subr.mxu1 %v17371_v30  ;;  %13010 = vmatmul.mubr.msk.f32.gmra.mxu1 %vm8814_vm7, %v12120_v42  ;;  %v11025_v3 = vpop.permute.xlu1 %11024 }
 0xc60   :  { %13049 = vmatpush3.msra.mxu1 %v10765_v48  ;;  %13032 = vmatprep.mubr.msk.f32.mxu0 %vm13288_vm9, %v17371_v30 }
 0xc61   :  { %13050 = vmatprep.subr.mxu1 %v17371_v30  ;;  %v10895_v49 = vpop.permute.xlu0 %10894  ;;  %13033 = vmatmul.mubr.msk.f32.gmra.mxu0 %vm8814_vm7, %v12130_v14 }
 0xc62   :  { %13051 = vmatpush3.msra.mxu1 %v10763_v16  ;;  %13069 = vmatprep.subr.mxu0 %v17371_v30 }
 0xc63   :  { %13012 = vmatprep.mubr.msk.f32.mxu1 %vm13288_vm9, %v17371_v30  ;;  %13070 = vmatpush3.msra.mxu0 %v10895_v49  ;;  %v11023_v44 = vpop.permute.xlu1 %11022 }
 0xc64   :  { %13013 = vmatmul.mubr.msk.f32.gmra.mxu1 %vm8814_vm7, %v12121_v29  ;;  %13071 = vmatprep.subr.mxu0 %v17371_v30 }
 0xc65   :  { %13035 = vmatprep.mubr.msk.f32.mxu0 %vm13288_vm9, %v17371_v30  ;;  %13072 = vmatpush3.msra.mxu0 %v10893_v34  ;;  %v10891_v5 = vpop.permute.xlu0 %10890 }
 0xc66   :  { %13036 = vmatmul.mubr.msk.f32.gmra.mxu0 %vm8814_vm7, %v12131_v18  ;;  %13073 = vmatprep.subr.mxu0 %v17371_v30 }
 0xc67   :  { %13015 = vmatprep.mubr.msk.f32.mxu1 %vm13288_vm9, %v17371_v30  ;;  %13074 = vmatpush3.msra.mxu0 %v10891_v5  ;;  %v11021_v19 = vpop.permute.xlu1 %11020 }
 0xc68   :  { %13016 = vmatmul.mubr.msk.f32.gmra.mxu1 %vm8814_vm7, %v12122_v33  ;;  %13038 = vmatprep.mubr.msk.f32.mxu0 %vm13288_vm9, %v17371_v30 }
 0xc69   :  { %13018 = vmatprep.mubr.msk.f32.mxu1 %vm13288_vm9, %v17371_v30  ;;  %13090 = vmatprep.subr.mxu1 %v17371_v30  ;;  %v11019_v46 = vpop.permute.xlu0 %11018 }
 0xc6a   :  { %13039 = vmatmul.mubr.msk.f32.gmra.mxu0 %vm8814_vm7, %v12132_v56  ;;  %13113 = vmatprep.subr.mxu0 %v17371_v30 }
 0xc6b   :  { %13041 = vmatprep.mubr.msk.f32.mxu0 %vm13288_vm9, %v17371_v30 }
 0xc6c   :  { %13019 = vmatmul.mubr.msk.f32.gmra.mxu1 %vm8814_vm7, %v12123_v37 }
 0xc6d   :  { %13052 = vmatprep.mubr.msk.f32.mxu1 %vm13288_vm9, %v17371_v30 }
 0xc6e   :  { %13042 = vmatmul.mubr.msk.f32.gmra.mxu0 %vm8814_vm7, %v12133_v2 }
 0xc6f   :  { %13075 = vmatprep.mubr.msk.f32.mxu0 %vm13288_vm9, %v17371_v30 }
 0xc70   :  { %13053 = vmatmul.mubr.msk.f32.vlgmr.msra.gmra.mxu1 %vm8814_vm7, %v12139_v31 }
 0xc71   :  { %13091 = vmatpush3.msra.mxu1 %v11025_v3  ;;  %13055 = vmatprep.mubr.msk.f32.mxu1 %vm13288_vm9, %v17371_v30 }
 0xc72   :  { %13092 = vmatprep.subr.mxu1 %v17371_v30  ;;  %13076 = vmatmul.mubr.msk.f32.vlgmr.msra.gmra.mxu0 %vm8814_vm7, %v12149_v40 }
 0xc73   :  { %13093 = vmatpush3.msra.mxu1 %v11023_v44  ;;  %13078 = vmatprep.mubr.msk.f32.mxu0 %vm13288_vm9, %v17371_v30 }
 0xc74   :  { %13094 = vmatprep.subr.mxu1 %v17371_v30  ;;  %13056 = vmatmul.mubr.msk.f32.gmra.mxu1 %vm8814_vm7, %v12140_v9 }
 0xc75   :  { %13095 = vmatpush3.msra.mxu1 %v11021_v19  ;;  %13058 = vmatprep.mubr.msk.f32.mxu1 %vm13288_vm9, %v17371_v30 }
 0xc76   :  { %13096 = vmatprep.subr.mxu1 %v17371_v30  ;;  %13079 = vmatmul.mubr.msk.f32.gmra.mxu0 %vm8814_vm7, %v12150_v6 }
 0xc77   :  { %13097 = vmatpush3.msra.mxu1 %v11019_v46  ;;  %13081 = vmatprep.mubr.msk.f32.mxu0 %vm13288_vm9, %v17371_v30 }
 0xc78   :  { %13059 = vmatmul.mubr.msk.f32.gmra.mxu1 %vm8814_vm7, %v12141_v0  ;;  %13146 = vmatprep.subr.mxu1 %v17371_v30 }
 0xc79   :  { %13061 = vmatprep.mubr.msk.f32.mxu1 %vm13288_vm9, %v17371_v30  ;;  %13114 = vmatpush3.msk.msra.mxu0 %vm109_vm1, %v11225_v58  ;;  %vm11337_vm1 = vcmask 293888  }
 0xc7a   :  { %13082 = vmatmul.mubr.msk.f32.gmra.mxu0 %vm8814_vm7, %v12151_v15  ;;  %13115 = vmatprep.subr.mxu0 %v17371_v30 }
 0xc7b   :  { %13084 = vmatprep.mubr.msk.f32.mxu0 %vm13288_vm9, %v17371_v30  ;;  %13116 = vmatpush3.msra.mxu0 %v11224_v39 }
 0xc7c   :  { %13062 = vmatmul.mubr.msk.f32.gmra.mxu1 %vm8814_vm7, %v12142_v25  ;;  %13117 = vmatprep.subr.mxu0 %v17371_v30 }
 0xc7d   :  { %13064 = vmatprep.mubr.msk.f32.mxu1 %vm13288_vm9, %v17371_v30  ;;  %13118 = vmatpush3.msra.mxu0 %v11223_v24 }
 0xc7e   :  { %13085 = vmatmul.mubr.msk.f32.gmra.mxu0 %vm8814_vm7, %v12152_v28  ;;  %13119 = vmatprep.subr.mxu0 %v17371_v30 }
 0xc7f   :  { %13087 = vmatprep.mubr.msk.f32.mxu0 %vm13288_vm9, %v17371_v30  ;;  %13120 = vmatpush3.msra.mxu0 %v11222_v4 }
 0xc80   :  { %13065 = vmatmul.mubr.msk.f32.gmra.mxu1 %vm8814_vm7, %v12143_v8  ;;  %v17064_v38 = vpop.f32.mrf.mxu0  ;;  %13121 = vmatprep.subr.mxu0 %v17371_v30 }
 0xc81   :  { %13098 = vmatprep.mubr.msk.f32.mxu1 %vm13288_vm9, %v17371_v30  ;;  %13122 = vmatpush3.msra.mxu0 %v11221_v10 }
 0xc82   :  { %13088 = vmatmul.mubr.msk.f32.gmra.mxu0 %vm8814_vm7, %v12153_v7  ;;  %v12939_v1 = vpop.f32.mrf.mxu0  ;;  %13123 = vmatprep.subr.mxu0 %v17371_v30 }
 0xc83   :  { %13131 = vmatprep.mubr.msk.f32.mxu0 %vm13288_vm9, %v17371_v30  ;;  %13124 = vmatpush3.msra.mxu0 %v11220_v11 }
 0xc84   :  { %13099 = vmatmul.mubr.msk.f32.vlgmr.msra.gmra.mxu1 %vm8814_vm7, %v12159_v50  ;;  %v17075_v45 = vpop.f32.mrf.mxu0  ;;  %13125 = vmatprep.subr.mxu0 %v17371_v30 }
 0xc85   :  { %13101 = vmatprep.mubr.msk.f32.mxu1 %vm13288_vm9, %v17371_v30  ;;  %13126 = vmatpush3.msra.mxu0 %v11219_v62 }
 0xc86   :  { %v12942_v17 = vpop.f32.mrf.mxu0  ;;  %13127 = vmatprep.subr.mxu0 %v17371_v30 }
 0xc87   :  { %13128 = vmatpush3.msra.mxu0 %v11218_v52 }
 0xc88   :  { %13102 = vmatmul.mubr.msk.f32.gmra.mxu1 %vm8814_vm7, %v12160_v21  ;;  %v17083_v57 = vpop.f32.mrf.mxu0  ;;  %13129 = vmatprep.subr.mxu0 %v17371_v30 }
 0xc89   :  { %13104 = vmatprep.mubr.msk.f32.mxu1 %vm13288_vm9, %v17371_v30  ;;  %13130 = vmatpush3.msra.mxu0 %v11217_v22 }
 0xc8a   :  { %v12945_v47 = vpop.f32.mrf.mxu0 }
 0xc8c   :  { %13105 = vmatmul.mubr.msk.f32.gmra.mxu1 %vm8814_vm7, %v12161_v60  ;;  %v17091_v35 = vpop.f32.mrf.mxu0 }
 0xc8d   :  { %13107 = vmatprep.mubr.msk.f32.mxu1 %vm13288_vm9, %v17371_v30 }
 0xc8e   :  { %v12948_v27 = vpop.f32.mrf.mxu0 }
 0xc90   :  { %13108 = vmatmul.mubr.msk.f32.gmra.mxu1 %vm8814_vm7, %v12162_v63  ;;  %v17099_v51 = vpop.f32.mrf.mxu0 }
 0xc91   :  { %13110 = vmatprep.mubr.msk.f32.mxu1 %vm13288_vm9, %v17371_v30 }
 0xc92   :  { %v12951_v41 = vpop.f32.mrf.mxu0 }
 0xc94   :  { %13111 = vmatmul.mubr.msk.f32.gmra.mxu1 %vm8814_vm7, %v12163_v53 }
 0xc95   :  { %13156 = vmatprep.mubr.msk.f32.mxu1 %vm13288_vm9, %v17371_v30 }
 0xcf3   :  { %v10115_v23 = vpop.f32.mrf.mxu1 }
 0xcf4   :  { %v10221_v24 = vadd.f32 %v17064_v38, %v10115_v23 }
 0xcf5   :  { %v12916_v55 = vpop.f32.mrf.mxu1 }
 0xcf7   :  { %v10120_v61 = vpop.f32.mrf.mxu1 }
 0xcf8   :  { %v10226_v22 = vadd.f32 %v17075_v45, %v10120_v61 }
 0xcf9   :  { %v12919_v13 = vpop.f32.mrf.mxu1 }
 0xcfb   :  { %v10125_v26 = vpop.f32.mrf.mxu1 }
 0xcfd   :  { %v12922_v12 = vpop.f32.mrf.mxu1 }
 0xcff   :  { %v17145_v59 = vpop.f32.mrf.mxu1 }
 0xd01   :  { %v12925_v36 = vpop.f32.mrf.mxu1 }
 0xd03   :  { %v17147_v54 = vpop.f32.mrf.mxu1 }
 0xd05   :  { %v12928_v48 = vpop.f32.mrf.mxu1 }
 0xd07   :  { %v10343_v32 = vpop.f32.mrf.mxu1  ;;  %v10471_v16 = vpop.f32.mrf.mxu0 }
 0xd08   :  { %v10367_v11 = vadd.f32 %v10343_v32, %v10221_v24  ;;  %v10236_v32 = vadd.f32 %v17091_v35, %v17145_v59 }
 0xd09   :  { %v12962_v20 = vpop.f32.mrf.mxu1  ;;  %v12985_v43 = vpop.f32.mrf.mxu0 }
 0xd0a   :  { %v10495_v12 = vadd.f32 %v10471_v16, %v10367_v11  ;;  %v10231_v43 = vadd.f32 %v17083_v57, %v10125_v26  ;;  %v11160_v16 = vpop.permute.xlu1 %11159  ;;  %v11190_v26 = vpop.permute.xlu0 %11189 }
 0xd0b   :  { %v10348_v42 = vpop.f32.mrf.mxu1 }
 0xd0c   :  { %v10476_v34 = vpop.f32.mrf.mxu0  ;;  %v10368_v36 = vadd.f32 %v10348_v42, %v10226_v22 }
 0xd0d   :  { %v12965_v14 = vpop.f32.mrf.mxu1 }
 0xd0e   :  { %v12988_v49 = vpop.f32.mrf.mxu0 }
 0xd0f   :  { %v10353_v29 = vpop.f32.mrf.mxu1 }
 0xd10   :  { %v10481_v18 = vpop.f32.mrf.mxu0  ;;  %v10369_v38 = vadd.f32 %v10353_v29, %v10231_v43 }
 0xd11   :  { %v12968_v5 = vpop.f32.mrf.mxu1 }
 0xd12   :  { %v12991_v33 = vpop.f32.mrf.mxu0  ;;  %v10497_v42 = vadd.f32 %v10481_v18, %v10369_v38 }
 0xd13   :  { %v10358_v56 = vpop.f32.mrf.mxu1  ;;  %v10496_v33 = vadd.f32 %v10476_v34, %v10368_v36  ;;  %v10241_v34 = vadd.f32 %v17099_v51, %v17147_v54 }
 0xd14   :  { %v17149_v3 = vpop.f32.mrf.mxu0 }
 0xd15   :  { %v12971_v37 = vpop.f32.mrf.mxu1 }
 0xd16   :  { %v12994_v2 = vpop.f32.mrf.mxu0 }
 0xd17   :  { %v17151_v31 = vpop.f32.mrf.mxu1 }
 0xd18   :  { %v17153_v44 = vpop.f32.mrf.mxu0  ;;  %v10371_v59 = vadd.f32 %v17151_v31, %v10241_v34 }
 0xd19   :  { %v12974_v40 = vpop.f32.mrf.mxu1 }
 0xd1a   :  { %v12997_v9 = vpop.f32.mrf.mxu0 }
 0xd1b   :  { %v10599_v6 = vpop.f32.mrf.mxu1  ;;  %v10370_v9 = vadd.f32 %v10358_v56, %v10236_v32 }
 0xd1c   :  { %v10727_v19 = vpop.f32.mrf.mxu0  ;;  %v10623_v14 = vadd.f32 %v10599_v6, %v10495_v12 }
 0xd1d   :  { %v13008_v0 = vpop.f32.mrf.mxu1  ;;  %v10498_v35 = vadd.f32 %v17149_v3, %v10370_v9 }
 0xd1e   :  { %v13031_v46 = vpop.f32.mrf.mxu0  ;;  %v10751_v2 = vadd.f32 %v10727_v19, %v10623_v14 }
 0xd1f   :  { %v10604_v15 = vpop.f32.mrf.mxu1 }
 0xd20   :  { %v10624_v45 = vadd.f32 %v10604_v15, %v10496_v33 }
 0xd21   :  { %v13011_v25 = vpop.f32.mrf.mxu1  ;;  %v10732_v28 = vpop.f32.mrf.mxu0 }
 0xd22   :  { %v10752_v29 = vadd.f32 %v10732_v28, %v10624_v45 }
 0xd23   :  { %v13034_v8 = vpop.f32.mrf.mxu0 }
 0xd24   :  { %v10609_v7 = vpop.f32.mrf.mxu1 }
 0xd25   :  { %v10625_v6 = vadd.f32 %v10609_v7, %v10497_v42  ;;  %v11195_v7 = vpop.permute.xlu0 %11194 }
 0xd26   :  { %v13014_v50 = vpop.f32.mrf.mxu1  ;;  %v10737_v1 = vpop.f32.mrf.mxu0 }
 0xd27   :  { %v10753_v56 = vadd.f32 %v10737_v1, %v10625_v6 }
 0xd28   :  { %v10614_v21 = vpop.f32.mrf.mxu1  ;;  %v13037_v17 = vpop.f32.mrf.mxu0 }
 0xd29   :  { %v10626_v17 = vadd.f32 %v10614_v21, %v10498_v35 }
 0xd2a   :  { %v13017_v60 = vpop.f32.mrf.mxu1  ;;  %v10742_v47 = vpop.f32.mrf.mxu0 }
 0xd2b   :  { %v10754_v24 = vadd.f32 %v10742_v47, %v10626_v17 }
 0xd2c   :  { %v10619_v63 = vpop.f32.mrf.mxu1  ;;  %v13040_v27 = vpop.f32.mrf.mxu0 }
 0xd2d   :  { %v11165_v27 = vpop.permute.xlu1 %11164 }
 0xd2e   :  { %v13020_v53 = vpop.f32.mrf.mxu1  ;;  %v17155_v41 = vpop.f32.mrf.mxu0 }
 0xd30   :  { %v13043_v58 = vpop.f32.mrf.mxu0  ;;  %v10855_v39 = vpop.f32.mrf.mxu1 }
 0xd31   :  { %v10879_v0 = vadd.f32 %v10855_v39, %v10751_v2  ;;  %v10499_v58 = vadd.f32 %v17153_v44, %v10371_v59  ;;  %v11170_v21 = vpop.permute.xlu1 %11169 }
 0xd32   :  { %v13054_v4 = vpop.f32.mrf.mxu1  ;;  %v10983_v10 = vpop.f32.mrf.mxu0 }
 0xd33   :  { %v11007_v19 = vadd.f32 %v10983_v10, %v10879_v0  ;;  %v10627_v3 = vadd.f32 %v10619_v63, %v10499_v58 }
 0xd34   :  { %v10860_v62 = vpop.f32.mrf.mxu1  ;;  %v13077_v52 = vpop.f32.mrf.mxu0 }
 0xd35   :  { %v10880_v15 = vadd.f32 %v10860_v62, %v10752_v29 }
 0xd36   :  { %v13057_v55 = vpop.f32.mrf.mxu1  ;;  %v10988_v13 = vpop.f32.mrf.mxu0 }
 0xd37   :  { %v11008_v51 = vadd.f32 %v10988_v13, %v10880_v15  ;;  %v10755_v55 = vadd.f32 %v17155_v41, %v10627_v3  ;;  %v11200_v13 = vpop.permute.xlu0 %11199  ;;  %v11334_v15 = vld [vmem:[%s17245_s8] sm:$0xff] }
 0xd38   :  { %v10865_v48 = vpop.f32.mrf.mxu1  ;;  %v13080_v20 = vpop.f32.mrf.mxu0 }
 0xd39   :  { %v10881_v54 = vadd.f32 %v10865_v48, %v10753_v56 }
 0xd3a   :  { %v13060_v49 = vpop.f32.mrf.mxu1  ;;  %v10993_v5 = vpop.f32.mrf.mxu0 }
 0xd3b   :  { %v11009_v11 = vadd.f32 %v10993_v5, %v10881_v54  ;;  %v11175_v5 = vpop.permute.xlu1 %11174 }
 0xd3c   :  { %v10870_v23 = vpop.f32.mrf.mxu1  ;;  %v13083_v37 = vpop.f32.mrf.mxu0 }
 0xd3d   :  { %v10882_v62 = vadd.f32 %v10870_v23, %v10754_v24  ;;  %v11205_v37 = vpop.permute.xlu0 %11204 }
 0xd3e   :  { %v13063_v61 = vpop.f32.mrf.mxu1  ;;  %v10998_v40 = vpop.f32.mrf.mxu0 }
 0xd3f   :  { %v11010_v47 = vadd.f32 %v10998_v40, %v10882_v62  ;;  %v11180_v42 = vpop.permute.xlu1 %11179 }
 0xd40   :  { %v10875_v46 = vpop.f32.mrf.mxu1  ;;  %v13086_v57 = vpop.f32.mrf.mxu0 }
 0xd41   :  { %v10883_v63 = vadd.f32 %v10875_v46, %v10755_v55  ;;  %v11210_v0 = vpop.permute.xlu0 %11209 }
 0xd42   :  { %v13066_v25 = vpop.f32.mrf.mxu1  ;;  %v11003_v8 = vpop.f32.mrf.mxu0 }
 0xd43   :  { %v11011_v33 = vadd.f32 %v11003_v8, %v10883_v63 }
 0xd44   :  { %v11111_v50 = vpop.f32.mrf.mxu1  ;;  %v13089_v18 = vpop.f32.mrf.mxu0 }
 0xd45   :  { %v11135_v60 = vadd.f32 %v11111_v50, %v11007_v19  ;;  %v11335_v50 = vld [vmem:[%s17245_s8 + $0x8] sm:$0xff]  ;;  %v11336_v18 = vld [vmem:[%s17245_s8 + $0x10] sm:$0xf] }
 0xd46   :  { %v13100_v53 = vpop.f32.mrf.mxu1 }
 0xd47   :  { %v11152_v28 = vmax.f32 %v11135_v60, 0.0 }
 0xd48   :  { %v11116_v39 = vpop.f32.mrf.mxu1 }
 0xd49   :  { %v11182_v4 = vmul.f32 %v11160_v16, %v11152_v28  ;;  %v11136_v31 = vadd.f32 %v11116_v39, %v11008_v51 }
 0xd4a   :  { %v13103_v10 = vpop.f32.mrf.mxu1 }
 0xd4b   :  { %v11212_v52 = vadd.f32 %v11190_v26, %v11182_v4  ;;  %v11153_v1 = vmax.f32 %v11136_v31, 0.0  ;;  %v17372_v10 = vld [vmem:[#allocation2_spill] sm:$0xff] }
 0xd4c   :  { %v11121_v22 = vpop.f32.mrf.mxu1  ;;  %v11463_v55 = vsub.s32 0, %v17372_v10 }
 0xd4d   :  { %v11183_v12 = vmul.f32 %v11165_v27, %v11153_v1  ;;  %v11137_v44 = vadd.f32 %v11121_v22, %v11009_v11  ;;  %13132 = vmatmul.mubr.msk.f32.vlgmr.msra.gmra.mxu0 %vm9906_vm8, %v11212_v52  ;;  %v11454_v11 = vsub.s32 4, %v17372_v10 }
 0xd4e   :  { %v13106_v36 = vpop.f32.mrf.mxu1  ;;  %13134 = vmatprep.mubr.msk.f32.mxu0 %vm13288_vm9, %v17371_v30 }
 0xd4f   :  { %v11213_v48 = vadd.f32 %v11195_v7, %v11183_v12  ;;  %v11154_v20 = vmax.f32 %v11137_v44, 0.0 }
 0xd50   :  { %v11126_v43 = vpop.f32.mrf.mxu1 }
 0xd51   :  { %v11184_v14 = vmul.f32 %v11170_v21, %v11154_v20  ;;  %v11138_v49 = vadd.f32 %v11126_v43, %v11010_v47  ;;  %13135 = vmatmul.mubr.msk.f32.gmra.mxu0 %vm9906_vm8, %v11213_v48 }
 0xd52   :  { %v13109_v41 = vpop.f32.mrf.mxu1  ;;  %13137 = vmatprep.mubr.msk.f32.mxu0 %vm13288_vm9, %v17371_v30 }
 0xd53   :  { %v11214_v38 = vadd.f32 %v11200_v13, %v11184_v14  ;;  %v11155_v23 = vmax.f32 %v11138_v49, 0.0  ;;  %v11474_v49 = vld [vmem:[%s17246_s14] sm:$0xff]  ;;  %v11475_v41 = vld [vmem:[%s17246_s14 + $0x8] sm:$0xff] }
 0xd54   :  { %v11131_v32 = vpop.f32.mrf.mxu1 }
 0xd55   :  { %v11185_v2 = vmul.f32 %v11175_v5, %v11155_v23  ;;  %v11139_v45 = vadd.f32 %v11131_v32, %v11011_v33  ;;  %13138 = vmatmul.mubr.msk.f32.gmra.mxu0 %vm9906_vm8, %v11214_v38  ;;  %v11476_v33 = vld [vmem:[%s17246_s14 + $0x10] sm:$0xf] }
 0xd56   :  { %v13112_v61 = vpop.f32.mrf.mxu1  ;;  %13140 = vmatprep.mubr.msk.f32.mxu0 %vm13288_vm9, %v17371_v30 }
 0xd57   :  { %v11215_v40 = vadd.f32 %v11205_v37, %v11185_v2  ;;  %v11156_v16 = vmax.f32 %v11139_v45, 0.0 }
 0xd59   :  { %v11186_v9 = vmul.f32 %v11180_v42, %v11156_v16  ;;  %13141 = vmatmul.mubr.msk.f32.gmra.mxu0 %vm9906_vm8, %v11215_v40 }
 0xd5a   :  { %13143 = vmatprep.mubr.msk.f32.mxu0 %vm13288_vm9, %v17371_v30 }
 0xd5b   :  { %v11216_v46 = vadd.f32 %v11210_v0, %v11186_v9 }
 0xd5d   :  { %13144 = vmatmul.mubr.msk.f32.gmra.mxu0 %vm9906_vm8, %v11216_v46 }
 0xe0d   :  { %v11310_v57 = vpop.f32.mrf.mxu0 }
 0xe0f   :  { %v13133_v26 = vpop.f32.mrf.mxu0 }
 0xe11   :  { %v11315_v34 = vpop.f32.mrf.mxu0 }
 0xe13   :  { %v13136_v29 = vpop.f32.mrf.mxu0 }
 0xe15   :  { %v11320_v6 = vpop.f32.mrf.mxu0 }
 0xe17   :  { %v13139_v25 = vpop.f32.mrf.mxu0 }
 0xe19   :  { %v11325_v8 = vpop.f32.mrf.mxu0 }
 0xe1b   :  { %v13142_v35 = vpop.f32.mrf.mxu0 }
 0xe1d   :  { %v11330_v59 = vpop.f32.mrf.mxu0 }
 0xe1e   :  { %13147 = vmatpush3.msk.msra.mxu1 %vm5622_vm11, %v11330_v59 }
 0xe1f   :  { %v13145_v19 = vpop.f32.mrf.mxu0  ;;  %13148 = vmatprep.subr.mxu1 %v17371_v30 }
 0xe20   :  { %13149 = vmatpush3.msra.mxu1 %v11325_v8 }
 0xe21   :  { %13150 = vmatprep.subr.mxu1 %v17371_v30 }
 0xe22   :  { %13151 = vmatpush3.msra.mxu1 %v11320_v6 }
 0xe23   :  { %13152 = vmatprep.subr.mxu1 %v17371_v30 }
 0xe24   :  { %13153 = vmatpush3.msra.mxu1 %v11315_v34 }
 0xe25   :  { %13154 = vmatprep.subr.mxu1 %v17371_v30 }
 0xe26   :  { %13155 = vmatpush3.msra.mxu1 %v11310_v57 }
 0xe27   :  { %13157 = vmatmul.mubr.msk.f32.vlgmr.msra.gmra.mxu1 %vm11337_vm1, %v11334_v15  ;;  %13165 = vmatprep.subr.mxu1 %v17371_v30 }
 0xe28   :  { %13159 = vmatprep.mubr.msk.f32.mxu1 %vm13288_vm9, %v17371_v30 }
 0xe2b   :  { %13160 = vmatmul.mubr.msk.f32.gmra.mxu1 %vm11337_vm1, %v11335_v50 }
 0xe2c   :  { %13162 = vmatprep.mubr.msk.f32.mxu1 %vm13288_vm9, %v17371_v30 }
 0xe2f   :  { %13163 = vmatmul.mubr.msk.f32.gmra.mxu1 %vm11337_vm1, %v11336_v18 }
 0xe30   :  { %13171 = vmatprep.mubr.msk.f32.mxu1 %vm13288_vm9, %v17371_v30 }
 0xee7   :  { %v11416_v56 = vpop.f32.mrf.mxu1 }
 0xee9   :  { %v13158_v17 = vpop.f32.mrf.mxu1 }
 0xeeb   :  { %v11421_v60 = vpop.f32.mrf.mxu1 }
 0xeec   :  { %v11433_v58 = vrot.slane %v11421_v60, 2 }
 0xeed   :  { %v13161_v27 = vpop.f32.mrf.mxu1 }
 0xeef   :  { %v11426_v53 = vpop.f32.mrf.mxu1 }
 0xef0   :  { %v11434_v51 = vrot.slane %v11426_v53, 2 }
 0xef1   :  { %v13164_v54 = vpop.f32.mrf.mxu1 }
 0xef2   :  { %v11435_v28 = vsel %vm11432_vm10, %v11433_v58, %v11434_v51  ;;  %v11439_v7 = vmax.f32 %v11421_v60, %v11434_v51 }
 0xef3   :  { %v11438_v39 = vmax.f32 %v11416_v56, %v11435_v28 }
 0xef4   :  { %v11444_v24 = vrot.slane %v11439_v7, 5 }
 0xef5   :  { %v11443_v3 = vrot.slane %v11438_v39, 5 }
 0xef7   :  { %v11445_v4 = vsel %vm11442_vm13, %v11443_v3, %v11444_v24 }
 0xef8   :  { %v11447_v31 = vmax.f32 %v11438_v39, %v11445_v4 }
 0xefa   :  { %v11449_v62 = vrot.slane %v11447_v31, 2  ;;  %v11455_v1 = vrot.slane %v11447_v31, %v11454_v11 }
 0xefc   :  { %v11451_v52 = vmax.f32 %v11447_v31, %v11449_v62 }
 0xefe   :  { %v11456_v21 = vmax.f32 %v11451_v52, %v11455_v1 }
 0xf00   :  { %v11458_v22 = vrot.slane %v11456_v21, 1 }
 0xf02   :  { %v11460_v12 = vmax.f32 %v11456_v21, %v11458_v22 }
 0xf04   :  { %v11464_v44 = vrot.slane %v11460_v12, %v11463_v55 }
 0xf06   :  { %v11466_v13 = vsub.f32 %v11421_v60, %v11464_v44  ;;  %v11467_v36 = vsub.f32 %v11426_v53, %v11464_v44  ;;  %v11465_v47 = vsub.f32 %v11416_v56, %v11464_v44 }
 0xf08   :  { %v11472_v63 = vmul.f32 1.442695, %v11467_v36  ;;  %v11470_v48 = vmul.f32 1.442695, %v11466_v13  ;;  %v11468_v20 = vmul.f32 1.442695, %v11465_v47 }
 0xf0a   :  { %13259 = vpow2.f32 %v11472_v63 }
 0xf0b   :  { %13261 = vpow2.f32 %v11470_v48 }
 0xf0c   :  { %13263 = vpow2.f32 %v11468_v20 }
 0xf17   :  { %v13260_v43 = vpop.eup %13259 }
 0xf18   :  { %13166 = vmatpush3.msk.msra.mxu1 %vm5622_vm11, %v13260_v43  ;;  %v13262_v14 = vpop.eup %13261  ;;  %vm11578_vm11 = vcmask 7168  }
 0xf19   :  { %13167 = vmatprep.subr.mxu1 %v17371_v30  ;;  %v13264_v5 = vpop.eup %13263 }
 0xf1a   :  { %13168 = vmatpush3.msra.mxu1 %v13262_v14 }
 0xf1b   :  { %13169 = vmatprep.subr.mxu1 %v17371_v30 }
 0xf1c   :  { %13170 = vmatpush3.msra.mxu1 %v13264_v5 }
 0xf1d   :  { %13172 = vmatmul.mubr.msk.f32.vlgmr.msra.gmra.mxu1 %vm5612_vm12, %v11474_v49 }
 0xf1e   :  { %13174 = vmatprep.mubr.msk.f32.mxu1 %vm13288_vm9, %v17371_v30 }
 0xf21   :  { %13175 = vmatmul.mubr.msk.f32.gmra.mxu1 %vm5612_vm12, %v11475_v41 }
 0xf22   :  { %13177 = vmatprep.mubr.msk.f32.mxu1 %vm13288_vm9, %v17371_v30 }
 0xf25   :  { %13178 = vmatmul.mubr.msk.f32.gmra.mxu1 %vm5612_vm12, %v11476_v33  ;;  %vm11581_vm12 = vcmask 3072  }
 0xfdd   :  { %v11555_v38 = vpop.f32.mrf.mxu1 }
 0xfde   :  { %13265 = vlog2.f32 %v11555_v38 }
 0xfdf   :  { %v13173_v23 = vpop.f32.mrf.mxu1 }
 0xfe1   :  { %v11560_v37 = vpop.f32.mrf.mxu1 }
 0xfe2   :  { %13267 = vlog2.f32 %v11560_v37 }
 0xfe3   :  { %v13176_v32 = vpop.f32.mrf.mxu1 }
 0xfe5   :  { %v11565_v2 = vpop.f32.mrf.mxu1 }
 0xfe6   :  { %13269 = vlog2.f32 %v11565_v2 }
 0xfe7   :  { %v13179_v45 = vpop.f32.mrf.mxu1 }
 0xfeb   :  { %v13266_v61 = vpop.eup %13265 }
 0xfec   :  { %v11570_v40 = vmul.f32 0.6931472, %v13266_v61 }
 0xfee   :  { %v11575_v16 = vsub.f32 %v11465_v47, %v11570_v40 }
 0xfef   :  { %v13268_v30 = vpop.eup %13267 }
 0xff0   :  { %11579 = vst.msk [vmem:[%s17247_s15] sm:$0xff] %vm11578_vm11, %v11575_v16  ;;  %v11572_v42 = vmul.f32 0.6931472, %v13268_v30 }
 0xff2   :  { %v11576_v9 = vsub.f32 %v11466_v13, %v11572_v42 }
 0xff3   :  { %v13270_v0 = vpop.eup %13269 }
 0xff4   :  { %11580 = vst.msk [vmem:[%s17247_s15 + $0x8] sm:$0xff] %vm11578_vm11, %v11576_v9  ;;  %v11574_v46 = vmul.f32 0.6931472, %v13270_v0 }
 0xff6   :  { %v11577_v57 = vsub.f32 %v11467_v36, %v11574_v46 }
 0xff8   :  { %11582 = vst.msk [vmem:[%s17247_s15 + $0x10] sm:$0xf] %vm11581_vm12, %v11577_v57 }

</bundles_post_ra>
